<compile_context>
chip_gen: v7x
topology: tpu7x:2x2x1
jax: 0.10.0
libtpu: 0.0.40
codegen_flags: <defaults>
</compile_context>

<pallas_src>
import numpy as np
import jax
import jax.numpy as jnp
from jax.experimental import pallas as pl
from jax.experimental.pallas import tpu as pltpu


INPUT_SIZE = 18
TB = 8                      # batch elements per grid step (=> 128 lanes at 16 w/batch)


# ---------------------------------------------------------------------------
# Host-side parameter preparation (numpy, once, outside the jitted hot path).
# ---------------------------------------------------------------------------
def prepare_params(params, tb=TB):
    w0 = np.asarray(params["w0"], np.float32)      # (18, 1024)  cols = (c, h, w)
    b0 = np.asarray(params["b0"], np.float32)      # (1024,)
    w1 = np.asarray(params["w1"], np.float32)      # (4, 16, 2, 2)  [cin, cout, kh, kw]
    b1 = np.asarray(params["b1"], np.float32)      # (16,)
    w2 = np.asarray(params["w2"], np.float32)      # (16, 3, 2, 2)
    b2 = np.asarray(params["b2"], np.float32)      # (3,)
    L = tb * 16

    # to2d:  a0_aug = Wcat_aug @ Ecat_aug.  Rows n = c*16+h (64) + one ones-row.
    # Columns (k, w') for k<18 carry w0; column block k==18 carries b0 / the ones.
    w0r = w0.reshape(INPUT_SIZE, 4, 16, 16)
    b0r = b0.reshape(4, 16, 16)
    wcat = np.zeros((65, 19 * 16), np.float32)
    for c in range(4):
        for h in range(16):
            n = c * 16 + h
            for k in range(INPUT_SIZE):
                wcat[n, k * 16:(k + 1) * 16] = w0r[k, c, h]
            wcat[n, 18 * 16:] = b0r[c, h]
    wcat[64, 18 * 16:] = 1.0                       # produces the all-ones row of a0_aug

    # t_conv1 as a left matmul on a0_aug. Rows (kw1, qb, c1, qi) with q = qb*8+qi
    # = 2h+kh1; bias b1 folded into column 64 (multiplies a0_aug's ones-row).
    l1 = np.zeros((1024, 65), np.float32)
    for kw1 in range(2):
        for q in range(32):
            qb, qi = q // 8, q % 8
            h, kh1 = q // 2, q % 2
            for c1 in range(16):
                row = kw1 * 512 + qb * 128 + c1 * 8 + qi
                for c in range(4):
                    l1[row, c * 16 + h] = w1[c, c1, kh1, kw1]
                l1[row, 64] = b1[c1]

    # Width interleave of t_conv1, block-diagonal over the batch lanes:
    # lane a = j*16+w  ->  2a+kw1 = j*32 + (2w+kw1).
    s1 = np.zeros((2, L, 2 * L), np.float32)
    for kw1 in range(2):
        for a in range(L):
            s1[kw1, a, 2 * a + kw1] = 1.0

    # t_conv2 channel mix per q-block of 8 (shared across the 4 blocks):
    # rows (t2=(kh2,kw2), co, qi), cols (c1, qi)  --  the (x)I is only over qi=8.
    l2b = np.zeros((96, 128), np.float32)
    for kh2 in range(2):
        for kw2 in range(2):
            t2 = kh2 * 2 + kw2
            for co in range(3):
                for qi in range(8):
                    for c1 in range(16):
                        l2b[t2 * 24 + co * 8 + qi, c1 * 8 + qi] = w2[c1, co, kh2, kw2]

    # Final per-batch lane scatter:  r -> kh2*64 + 2r + kw2.
    s2 = np.zeros((4, 32, 128), np.float32)
    for t2 in range(4):
        kh2, kw2 = t2 // 2, t2 % 2
        for r in range(32):
            s2[t2, r, kh2 * 64 + 2 * r + kw2] = 1.0

    # t_conv2 bias pre-broadcast to the full (96, 128) output tile (rows (co, q)).
    b2bc = np.repeat(b2, 32).astype(np.float32)[:, None] * np.ones((1, 128), np.float32)

    # Lane replication (batch column -> its 16 width lanes) and width identity mask.
    rep = np.zeros((tb, L), np.float32)
    for j in range(tb):
        rep[j, j * 16:(j + 1) * 16] = 1.0
    imask = np.tile(np.eye(16, dtype=np.float32), (1, tb))   # (16, L)

    prepared = dict(wcat=wcat, l1=l1, s1=s1, l2b=l2b, s2=s2, b2bc=b2bc,
                    rep=rep, imask=imask)
    return {k: jnp.asarray(v) for k, v in prepared.items()}


# ---------------------------------------------------------------------------
# Fused decoder kernel: one grid step per TB batch elements (batch in lanes).
# ---------------------------------------------------------------------------
def _decoder_kernel(x_ref, wcat_ref, l1_ref, s1_ref, l2b_ref, s2_ref, b2_ref,
                    rep_ref, imask_ref, o_ref, z2s_ref):
    tb = rep_ref.shape[0]
    L = rep_ref.shape[1]                                   # tb * 16

    # ---- to2d: Linear(18 -> 4*16*16), full lane density, biases folded in ----
    xT = x_ref[0]                                          # (18, tb)
    xT_aug = jnp.concatenate([xT, jnp.ones((1, tb), jnp.float32)], axis=0)   # (19, tb)
    xlane = jnp.dot(xT_aug, rep_ref[...],
                    preferred_element_type=jnp.float32)    # (19, L): x[j,k] in lanes
    # Ecat_aug[(k,w'), (j,w)] = xlane[k,(j,w)] * delta(w, w')
    ecat = (xlane[:, None, :] * imask_ref[...][None, :, :]).reshape(19 * 16, L)
    a0 = jnp.dot(wcat_ref[...], ecat,
                 preferred_element_type=jnp.float32)       # (65, L): rows (c,h) + ones

    # ---- t_conv1 (ConvTranspose2d(4,16,2,s2)) + ReLU ----
    z1 = jnp.dot(l1_ref[...], a0,
                 preferred_element_type=jnp.float32)       # (1024, L): rows (kw1,qb,c1,qi)
    y1 = jnp.maximum(
        jnp.dot(z1[:512], s1_ref[0], preferred_element_type=jnp.float32)
        + jnp.dot(z1[512:], s1_ref[1], preferred_element_type=jnp.float32),
        0.0)                                               # (512, 2L): rows (qb,c1,qi), lanes (j, r)

    # ---- t_conv2 channel mix, one shared (96,128) matrix per q-block ----
    for qb in range(4):
        z2c = jnp.dot(l2b_ref[...], y1[qb * 128:(qb + 1) * 128],
                      preferred_element_type=jnp.float32)  # (96, 2L): rows (t2, co, qi)
        # Re-interleave q-blocks into scratch rows (t2, co, q=qb*8+qi): 12 aligned
        # 8-row (= whole-vreg) stores per block.
        for t2 in range(4):
            for co in range(3):
                dst = t2 * 96 + co * 32 + qb * 8
                src = t2 * 24 + co * 8
                z2s_ref[dst:dst + 8, :] = z2c[src:src + 8, :]

    # ---- per-batch width/height interleave + bias + sigmoid + lane-dense store ----
    for j in range(tb):
        acc = b2_ref[...]                                  # (96, 128) pre-broadcast bias
        for t2 in range(4):
            acc = acc + jnp.dot(
                z2s_ref[t2 * 96:(t2 + 1) * 96, j * 32:(j + 1) * 32],
                s2_ref[t2], preferred_element_type=jnp.float32)
        # rows (co, oh//2), lanes (oh%2, ow)  ==  row-major NCHW slab of batch j.
        o_ref[j * 96:(j + 1) * 96, :] = jax.nn.sigmoid(acc)


# ---------------------------------------------------------------------------
# Forward wrapper: pad batch to a multiple of TB, one pallas_call, free reshape.
# ---------------------------------------------------------------------------
def conv_decoder_forward(x, prep, tb=TB):
    B = x.shape[0]
    steps = -(-B // tb)
    B_pad = steps * tb
    L = tb * 16
    if B_pad != B:
        x = jnp.pad(x, ((0, B_pad - B), (0, 0)))
    # Tiny layout plumbing outside the kernel: (steps, 18, tb), batch last.
    x3 = x.reshape(steps, tb, INPUT_SIZE).transpose(0, 2, 1)

    flops_step = 2 * (19 * tb * L + 65 * 304 * L + 1024 * 65 * L
                      + 2 * 512 * L * 2 * L + 4 * 96 * 128 * 2 * L
                      + tb * 4 * 96 * 32 * 128)
    bytes_accessed = 4 * (B_pad * INPUT_SIZE + 65 * 304 + 1024 * 65
                          + 2 * L * 2 * L + 96 * 128 + 4 * 32 * 128
                          + 96 * 128 + tb * L + 16 * L + B_pad * 96 * 128)

    out = pl.pallas_call(
        _decoder_kernel,
        out_shape=jax.ShapeDtypeStruct((B_pad * 96, 128), jnp.float32),
        grid=(steps,),
        in_specs=[
            pl.BlockSpec((1, INPUT_SIZE, tb), lambda g: (g, 0, 0)),   # x (per-step block)
            pl.BlockSpec((65, 19 * 16), lambda g: (0, 0)),            # wcat_aug
            pl.BlockSpec((1024, 65), lambda g: (0, 0)),               # l1_aug
            pl.BlockSpec((2, L, 2 * L), lambda g: (0, 0, 0)),         # s1 (block-diag)
            pl.BlockSpec((96, 128), lambda g: (0, 0)),                # l2b
            pl.BlockSpec((4, 32, 128), lambda g: (0, 0, 0)),          # s2
            pl.BlockSpec((96, 128), lambda g: (0, 0)),                # b2 (pre-broadcast)
            pl.BlockSpec((tb, L), lambda g: (0, 0)),                  # rep
            pl.BlockSpec((16, L), lambda g: (0, 0)),                  # imask
        ],
        out_specs=pl.BlockSpec((tb * 96, 128), lambda g: (g, 0)),
        scratch_shapes=[pltpu.VMEM((384, 2 * L), jnp.float32)],
        compiler_params=pltpu.CompilerParams(
            dimension_semantics=("parallel",)),
        cost_estimate=pl.CostEstimate(
            flops=steps * flops_step,
            transcendentals=B_pad * 96 * 128,
            bytes_accessed=bytes_accessed),
    )(x3, prep["wcat"], prep["l1"], prep["s1"], prep["l2b"], prep["s2"],
      prep["b2bc"], prep["rep"], prep["imask"])

    # (B_pad*3*32, 128) is row-major identical to (B_pad, 3, 64, 64) -> free reshape.
    out = out.reshape(B_pad, 3, 64, 64)
    return out[:B]


# ---------------------------------------------------------------------------
# Pure-numpy float64 reference (independent of the Pallas formulation).
# ---------------------------------------------------------------------------
def _convT_ref(x, w, b):
    B, Ci, H, W = x.shape
    Co = w.shape[1]
    out = np.zeros((B, Co, 2 * H, 2 * W), dtype=np.float64)
    for ki in range(2):
        for kj in range(2):
            out[:, :, ki::2, kj::2] = np.einsum("bchw,co->bohw", x, w[:, :, ki, kj])
    return out + b[None, :, None, None]


def _forward_ref(inputs, params):
    x = (inputs.astype(np.float64) @ np.asarray(params["w0"], np.float64)
         + np.asarray(params["b0"], np.float64))
    x = x.reshape(inputs.shape[0], 4, 16, 16)
    x = np.maximum(_convT_ref(x, np.asarray(params["w1"], np.float64),
                              np.asarray(params["b1"], np.float64)), 0.0)
    x = _convT_ref(x, np.asarray(params["w2"], np.float64),
                   np.asarray(params["b2"], np.float64))
    return 1.0 / (1.0 + np.exp(-x))


# ---------------------------------------------------------------------------
if __name__ == "__main__":
    key = jax.random.PRNGKey(0)
    k_in, k0, k1, k2, kb0, kb1, kb2, k_in2 = jax.random.split(key, 8)

    params = {
        # nn.Linear(18, 1024): stored transposed as (K, N) = (18, 1024)
        "w0": jax.random.normal(k0, (INPUT_SIZE, 4 * 16 * 16), jnp.float32) * 0.1,
        "b0": jax.random.normal(kb0, (4 * 16 * 16,), jnp.float32) * 0.1,
        # nn.ConvTranspose2d(4, 16, 2, stride=2): weight (Cin, Cout, 2, 2)
        "w1": jax.random.normal(k1, (4, 16, 2, 2), jnp.float32) * 0.1,
        "b1": jax.random.normal(kb1, (16,), jnp.float32) * 0.1,
        # nn.ConvTranspose2d(16, 3, 2, stride=2): weight (Cin, Cout, 2, 2)
        "w2": jax.random.normal(k2, (16, 3, 2, 2), jnp.float32) * 0.1,
        "b2": jax.random.normal(kb2, (3,), jnp.float32) * 0.1,
    }
    prep = prepare_params(params)
    fwd = jax.jit(conv_decoder_forward)

    # Primary small-shape run (batch=2).
    B = 2
    inputs = jax.random.normal(k_in, (B, INPUT_SIZE), dtype=jnp.float32)
    out = jax.block_until_ready(fwd(inputs, prep))
    assert out.shape == (B, 3, 64, 64), out.shape
    ref = _forward_ref(np.asarray(inputs), params)
    np.testing.assert_allclose(np.asarray(out), ref, rtol=1e-4, atol=1e-4)

    # Extra correctness check: batch not a multiple of TB -> padding + 2 grid steps.
    B2 = 10
    inputs2 = jax.random.normal(k_in2, (B2, INPUT_SIZE), dtype=jnp.float32)
    out2 = jax.block_until_ready(fwd(inputs2, prep))
    ref2 = _forward_ref(np.asarray(inputs2), params)
    np.testing.assert_allclose(np.asarray(out2), ref2, rtol=1e-4, atol=1e-4)

    print("KERNEL_OK")
</pallas_src>

<mosaic_0001>
module attributes {stable_mosaic.version = 11 : i64} {
  func.func @_decoder_kernel(%arg0: i32, %arg1: memref<1x18x8xf32, #tpu.memory_space<vmem>>, %arg2: memref<65x304xf32, #tpu.memory_space<vmem>>, %arg3: memref<1024x65xf32, #tpu.memory_space<vmem>>, %arg4: memref<2x128x256xf32, #tpu.memory_space<vmem>>, %arg5: memref<96x128xf32, #tpu.memory_space<vmem>>, %arg6: memref<4x32x128xf32, #tpu.memory_space<vmem>>, %arg7: memref<96x128xf32, #tpu.memory_space<vmem>>, %arg8: memref<8x128xf32, #tpu.memory_space<vmem>>, %arg9: memref<16x128xf32, #tpu.memory_space<vmem>>, %arg10: memref<768x128xf32, #tpu.memory_space<vmem>>, %arg11: memref<384x256xf32, #tpu.memory_space<vmem>>) attributes {dimension_semantics = [#tpu.dimension_semantics<parallel>], iteration_bounds = array<i64: 1>, scalar_prefetch = 0 : i64, scratch_operands = 1 : i64, tpu.core_type = #tpu.core_type<tc>, window_params = [{transform_indices = @transform_0, window_bounds = array<i64: 1, 18, 8>}, {pipeline_mode = #tpu.pipeline_mode<synchronous>, transform_indices = @transform_1, window_bounds = array<i64: 65, 304>}, {pipeline_mode = #tpu.pipeline_mode<synchronous>, transform_indices = @transform_2, window_bounds = array<i64: 1024, 65>}, {pipeline_mode = #tpu.pipeline_mode<synchronous>, transform_indices = @transform_3, window_bounds = array<i64: 2, 128, 256>}, {pipeline_mode = #tpu.pipeline_mode<synchronous>, transform_indices = @transform_4, window_bounds = array<i64: 96, 128>}, {pipeline_mode = #tpu.pipeline_mode<synchronous>, transform_indices = @transform_5, window_bounds = array<i64: 4, 32, 128>}, {pipeline_mode = #tpu.pipeline_mode<synchronous>, transform_indices = @transform_6, window_bounds = array<i64: 96, 128>}, {pipeline_mode = #tpu.pipeline_mode<synchronous>, transform_indices = @transform_7, window_bounds = array<i64: 8, 128>}, {pipeline_mode = #tpu.pipeline_mode<synchronous>, transform_indices = @transform_8, window_bounds = array<i64: 16, 128>}, {transform_indices = @transform_9, window_bounds = array<i64: 768, 128>}]} {
    %c0 = arith.constant 0 : index
    %c0_0 = arith.constant 0 : index
    %c0_1 = arith.constant 0 : index
    %0 = vector.load %arg1[%c0, %c0_0, %c0_1] : memref<1x18x8xf32, #tpu.memory_space<vmem>>, vector<1x18x8xf32>
    %1 = vector.shape_cast %0 : vector<1x18x8xf32> to vector<18x8xf32>
    %cst = arith.constant 1.000000e+00 : f32
    %2 = vector.broadcast %cst : f32 to vector<1x8xf32>
    %3 = tpu.concatenate %1, %2 in 0 : vector<18x8xf32>, vector<1x8xf32> -> vector<19x8xf32>
    %c0_2 = arith.constant 0 : index
    %c0_3 = arith.constant 0 : index
    %4 = vector.load %arg8[%c0_2, %c0_3] : memref<8x128xf32, #tpu.memory_space<vmem>>, vector<8x128xf32>
    %cst_4 = arith.constant dense<0.000000e+00> : vector<19x128xf32>
    %5 = tpu.matmul %3, %4, %cst_4 {dimension_numbers = #tpu.dot_dimension_numbers<[1], [0], [0], [1], [0, 0, 1, 1], [], []>} : vector<19x8xf32>, vector<8x128xf32>, vector<19x128xf32> -> vector<19x128xf32>
    %6 = vector.shape_cast %5 : vector<19x128xf32> to vector<19x1x128xf32>
    %c0_5 = arith.constant 0 : index
    %c0_6 = arith.constant 0 : index
    %7 = vector.load %arg9[%c0_5, %c0_6] : memref<16x128xf32, #tpu.memory_space<vmem>>, vector<16x128xf32>
    %8 = vector.shape_cast %7 : vector<16x128xf32> to vector<1x16x128xf32>
    %9 = vector.broadcast %6 : vector<19x1x128xf32> to vector<19x16x128xf32>
    %10 = vector.broadcast %8 : vector<1x16x128xf32> to vector<19x16x128xf32>
    %11 = arith.mulf %9, %10 : vector<19x16x128xf32>
    %12 = vector.shape_cast %11 : vector<19x16x128xf32> to vector<304x128xf32>
    %c0_7 = arith.constant 0 : index
    %c0_8 = arith.constant 0 : index
    %13 = vector.load %arg2[%c0_7, %c0_8] : memref<65x304xf32, #tpu.memory_space<vmem>>, vector<65x304xf32>
    %cst_9 = arith.constant dense<0.000000e+00> : vector<65x128xf32>
    %14 = tpu.matmul %13, %12, %cst_9 {dimension_numbers = #tpu.dot_dimension_numbers<[1], [0], [0], [1], [0, 0, 1, 1], [], []>} : vector<65x304xf32>, vector<304x128xf32>, vector<65x128xf32> -> vector<65x128xf32>
    %c0_10 = arith.constant 0 : index
    %c0_11 = arith.constant 0 : index
    %15 = vector.load %arg3[%c0_10, %c0_11] : memref<1024x65xf32, #tpu.memory_space<vmem>>, vector<1024x65xf32>
    %cst_12 = arith.constant dense<0.000000e+00> : vector<1024x128xf32>
    %16 = tpu.matmul %15, %14, %cst_12 {dimension_numbers = #tpu.dot_dimension_numbers<[1], [0], [0], [1], [0, 0, 1, 1], [], []>} : vector<1024x65xf32>, vector<65x128xf32>, vector<1024x128xf32> -> vector<1024x128xf32>
    %17 = vector.extract_strided_slice %16 {offsets = [0, 0], sizes = [512, 128], strides = [1, 1]} : vector<1024x128xf32> to vector<512x128xf32>
    %c0_13 = arith.constant 0 : index
    %c0_14 = arith.constant 0 : index
    %c0_15 = arith.constant 0 : index
    %18 = vector.load %arg4[%c0_13, %c0_14, %c0_15] : memref<2x128x256xf32, #tpu.memory_space<vmem>>, vector<1x128x256xf32>
    %19 = vector.shape_cast %18 : vector<1x128x256xf32> to vector<128x256xf32>
    %cst_16 = arith.constant dense<0.000000e+00> : vector<512x256xf32>
    %20 = tpu.matmul %17, %19, %cst_16 {dimension_numbers = #tpu.dot_dimension_numbers<[1], [0], [0], [1], [0, 0, 1, 1], [], []>} : vector<512x128xf32>, vector<128x256xf32>, vector<512x256xf32> -> vector<512x256xf32>
    %21 = vector.extract_strided_slice %16 {offsets = [512, 0], sizes = [512, 128], strides = [1, 1]} : vector<1024x128xf32> to vector<512x128xf32>
    %c1 = arith.constant 1 : index
    %c0_17 = arith.constant 0 : index
    %c0_18 = arith.constant 0 : index
    %22 = vector.load %arg4[%c1, %c0_17, %c0_18] : memref<2x128x256xf32, #tpu.memory_space<vmem>>, vector<1x128x256xf32>
    %23 = vector.shape_cast %22 : vector<1x128x256xf32> to vector<128x256xf32>
    %cst_19 = arith.constant dense<0.000000e+00> : vector<512x256xf32>
    %24 = tpu.matmul %21, %23, %cst_19 {dimension_numbers = #tpu.dot_dimension_numbers<[1], [0], [0], [1], [0, 0, 1, 1], [], []>} : vector<512x128xf32>, vector<128x256xf32>, vector<512x256xf32> -> vector<512x256xf32>
    %25 = arith.addf %20, %24 : vector<512x256xf32>
    %cst_20 = arith.constant 0.000000e+00 : f32
    %26 = vector.broadcast %cst_20 : f32 to vector<512x256xf32>
    %27 = arith.maximumf %25, %26 : vector<512x256xf32>
    %c0_21 = arith.constant 0 : index
    %c0_22 = arith.constant 0 : index
    %28 = vector.load %arg5[%c0_21, %c0_22] : memref<96x128xf32, #tpu.memory_space<vmem>>, vector<96x128xf32>
    %29 = vector.extract_strided_slice %27 {offsets = [0, 0], sizes = [128, 256], strides = [1, 1]} : vector<512x256xf32> to vector<128x256xf32>
    %cst_23 = arith.constant dense<0.000000e+00> : vector<96x256xf32>
    %30 = tpu.matmul %28, %29, %cst_23 {dimension_numbers = #tpu.dot_dimension_numbers<[1], [0], [0], [1], [0, 0, 1, 1], [], []>} : vector<96x128xf32>, vector<128x256xf32>, vector<96x256xf32> -> vector<96x256xf32>
    %31 = vector.extract_strided_slice %30 {offsets = [0, 0], sizes = [8, 256], strides = [1, 1]} : vector<96x256xf32> to vector<8x256xf32>
    %c0_24 = arith.constant 0 : index
    %c0_25 = arith.constant 0 : index
    %32 = vector.load %arg11[%c0_24, %c0_25] : memref<384x256xf32, #tpu.memory_space<vmem>>, vector<8x256xf32>
    tpu.vector_store %arg11[%c0_24, %c0_25], %31 {strides = array<i32>} : memref<384x256xf32, #tpu.memory_space<vmem>>, vector<8x256xf32>,
    %33 = vector.extract_strided_slice %30 {offsets = [8, 0], sizes = [8, 256], strides = [1, 1]} : vector<96x256xf32> to vector<8x256xf32>
    %c32 = arith.constant 32 : index
    %c0_26 = arith.constant 0 : index
    %34 = vector.load %arg11[%c32, %c0_26] : memref<384x256xf32, #tpu.memory_space<vmem>>, vector<8x256xf32>
    tpu.vector_store %arg11[%c32, %c0_26], %33 {strides = array<i32>} : memref<384x256xf32, #tpu.memory_space<vmem>>, vector<8x256xf32>,
    %35 = vector.extract_strided_slice %30 {offsets = [16, 0], sizes = [8, 256], strides = [1, 1]} : vector<96x256xf32> to vector<8x256xf32>
    %c64 = arith.constant 64 : index
    %c0_27 = arith.constant 0 : index
    %36 = vector.load %arg11[%c64, %c0_27] : memref<384x256xf32, #tpu.memory_space<vmem>>, vector<8x256xf32>
    tpu.vector_store %arg11[%c64, %c0_27], %35 {strides = array<i32>} : memref<384x256xf32, #tpu.memory_space<vmem>>, vector<8x256xf32>,
    %37 = vector.extract_strided_slice %30 {offsets = [24, 0], sizes = [8, 256], strides = [1, 1]} : vector<96x256xf32> to vector<8x256xf32>
    %c96 = arith.constant 96 : index
    %c0_28 = arith.constant 0 : index
    %38 = vector.load %arg11[%c96, %c0_28] : memref<384x256xf32, #tpu.memory_space<vmem>>, vector<8x256xf32>
    tpu.vector_store %arg11[%c96, %c0_28], %37 {strides = array<i32>} : memref<384x256xf32, #tpu.memory_space<vmem>>, vector<8x256xf32>,
    %39 = vector.extract_strided_slice %30 {offsets = [32, 0], sizes = [8, 256], strides = [1, 1]} : vector<96x256xf32> to vector<8x256xf32>
    %c128 = arith.constant 128 : index
    %c0_29 = arith.constant 0 : index
    %40 = vector.load %arg11[%c128, %c0_29] : memref<384x256xf32, #tpu.memory_space<vmem>>, vector<8x256xf32>
    tpu.vector_store %arg11[%c128, %c0_29], %39 {strides = array<i32>} : memref<384x256xf32, #tpu.memory_space<vmem>>, vector<8x256xf32>,
    %41 = vector.extract_strided_slice %30 {offsets = [40, 0], sizes = [8, 256], strides = [1, 1]} : vector<96x256xf32> to vector<8x256xf32>
    %c160 = arith.constant 160 : index
    %c0_30 = arith.constant 0 : index
    %42 = vector.load %arg11[%c160, %c0_30] : memref<384x256xf32, #tpu.memory_space<vmem>>, vector<8x256xf32>
    tpu.vector_store %arg11[%c160, %c0_30], %41 {strides = array<i32>} : memref<384x256xf32, #tpu.memory_space<vmem>>, vector<8x256xf32>,
    %43 = vector.extract_strided_slice %30 {offsets = [48, 0], sizes = [8, 256], strides = [1, 1]} : vector<96x256xf32> to vector<8x256xf32>
    %c192 = arith.constant 192 : index
    %c0_31 = arith.constant 0 : index
    %44 = vector.load %arg11[%c192, %c0_31] : memref<384x256xf32, #tpu.memory_space<vmem>>, vector<8x256xf32>
    tpu.vector_store %arg11[%c192, %c0_31], %43 {strides = array<i32>} : memref<384x256xf32, #tpu.memory_space<vmem>>, vector<8x256xf32>,
    %45 = vector.extract_strided_slice %30 {offsets = [56, 0], sizes = [8, 256], strides = [1, 1]} : vector<96x256xf32> to vector<8x256xf32>
    %c224 = arith.constant 224 : index
    %c0_32 = arith.constant 0 : index
    %46 = vector.load %arg11[%c224, %c0_32] : memref<384x256xf32, #tpu.memory_space<vmem>>, vector<8x256xf32>
    tpu.vector_store %arg11[%c224, %c0_32], %45 {strides = array<i32>} : memref<384x256xf32, #tpu.memory_space<vmem>>, vector<8x256xf32>,
    %47 = vector.extract_strided_slice %30 {offsets = [64, 0], sizes = [8, 256], strides = [1, 1]} : vector<96x256xf32> to vector<8x256xf32>
    %c256 = arith.constant 256 : index
    %c0_33 = arith.constant 0 : index
    %48 = vector.load %arg11[%c256, %c0_33] : memref<384x256xf32, #tpu.memory_space<vmem>>, vector<8x256xf32>
    tpu.vector_store %arg11[%c256, %c0_33], %47 {strides = array<i32>} : memref<384x256xf32, #tpu.memory_space<vmem>>, vector<8x256xf32>,
    %49 = vector.extract_strided_slice %30 {offsets = [72, 0], sizes = [8, 256], strides = [1, 1]} : vector<96x256xf32> to vector<8x256xf32>
    %c288 = arith.constant 288 : index
    %c0_34 = arith.constant 0 : index
    %50 = vector.load %arg11[%c288, %c0_34] : memref<384x256xf32, #tpu.memory_space<vmem>>, vector<8x256xf32>
    tpu.vector_store %arg11[%c288, %c0_34], %49 {strides = array<i32>} : memref<384x256xf32, #tpu.memory_space<vmem>>, vector<8x256xf32>,
    %51 = vector.extract_strided_slice %30 {offsets = [80, 0], sizes = [8, 256], strides = [1, 1]} : vector<96x256xf32> to vector<8x256xf32>
    %c320 = arith.constant 320 : index
    %c0_35 = arith.constant 0 : index
    %52 = vector.load %arg11[%c320, %c0_35] : memref<384x256xf32, #tpu.memory_space<vmem>>, vector<8x256xf32>
    tpu.vector_store %arg11[%c320, %c0_35], %51 {strides = array<i32>} : memref<384x256xf32, #tpu.memory_space<vmem>>, vector<8x256xf32>,
    %53 = vector.extract_strided_slice %30 {offsets = [88, 0], sizes = [8, 256], strides = [1, 1]} : vector<96x256xf32> to vector<8x256xf32>
    %c352 = arith.constant 352 : index
    %c0_36 = arith.constant 0 : index
    %54 = vector.load %arg11[%c352, %c0_36] : memref<384x256xf32, #tpu.memory_space<vmem>>, vector<8x256xf32>
    tpu.vector_store %arg11[%c352, %c0_36], %53 {strides = array<i32>} : memref<384x256xf32, #tpu.memory_space<vmem>>, vector<8x256xf32>,
    %c0_37 = arith.constant 0 : index
    %c0_38 = arith.constant 0 : index
    %55 = vector.load %arg5[%c0_37, %c0_38] : memref<96x128xf32, #tpu.memory_space<vmem>>, vector<96x128xf32>
    %56 = vector.extract_strided_slice %27 {offsets = [128, 0], sizes = [128, 256], strides = [1, 1]} : vector<512x256xf32> to vector<128x256xf32>
    %cst_39 = arith.constant dense<0.000000e+00> : vector<96x256xf32>
    %57 = tpu.matmul %55, %56, %cst_39 {dimension_numbers = #tpu.dot_dimension_numbers<[1], [0], [0], [1], [0, 0, 1, 1], [], []>} : vector<96x128xf32>, vector<128x256xf32>, vector<96x256xf32> -> vector<96x256xf32>
    %58 = vector.extract_strided_slice %57 {offsets = [0, 0], sizes = [8, 256], strides = [1, 1]} : vector<96x256xf32> to vector<8x256xf32>
    %c8 = arith.constant 8 : index
    %c0_40 = arith.constant 0 : index
    %59 = vector.load %arg11[%c8, %c0_40] : memref<384x256xf32, #tpu.memory_space<vmem>>, vector<8x256xf32>
    tpu.vector_store %arg11[%c8, %c0_40], %58 {strides = array<i32>} : memref<384x256xf32, #tpu.memory_space<vmem>>, vector<8x256xf32>,
    %60 = vector.extract_strided_slice %57 {offsets = [8, 0], sizes = [8, 256], strides = [1, 1]} : vector<96x256xf32> to vector<8x256xf32>
    %c40 = arith.constant 40 : index
    %c0_41 = arith.constant 0 : index
    %61 = vector.load %arg11[%c40, %c0_41] : memref<384x256xf32, #tpu.memory_space<vmem>>, vector<8x256xf32>
    tpu.vector_store %arg11[%c40, %c0_41], %60 {strides = array<i32>} : memref<384x256xf32, #tpu.memory_space<vmem>>, vector<8x256xf32>,
    %62 = vector.extract_strided_slice %57 {offsets = [16, 0], sizes = [8, 256], strides = [1, 1]} : vector<96x256xf32> to vector<8x256xf32>
    %c72 = arith.constant 72 : index
    %c0_42 = arith.constant 0 : index
    %63 = vector.load %arg11[%c72, %c0_42] : memref<384x256xf32, #tpu.memory_space<vmem>>, vector<8x256xf32>
    tpu.vector_store %arg11[%c72, %c0_42], %62 {strides = array<i32>} : memref<384x256xf32, #tpu.memory_space<vmem>>, vector<8x256xf32>,
    %64 = vector.extract_strided_slice %57 {offsets = [24, 0], sizes = [8, 256], strides = [1, 1]} : vector<96x256xf32> to vector<8x256xf32>
    %c104 = arith.constant 104 : index
    %c0_43 = arith.constant 0 : index
    %65 = vector.load %arg11[%c104, %c0_43] : memref<384x256xf32, #tpu.memory_space<vmem>>, vector<8x256xf32>
    tpu.vector_store %arg11[%c104, %c0_43], %64 {strides = array<i32>} : memref<384x256xf32, #tpu.memory_space<vmem>>, vector<8x256xf32>,
    %66 = vector.extract_strided_slice %57 {offsets = [32, 0], sizes = [8, 256], strides = [1, 1]} : vector<96x256xf32> to vector<8x256xf32>
    %c136 = arith.constant 136 : index
    %c0_44 = arith.constant 0 : index
    %67 = vector.load %arg11[%c136, %c0_44] : memref<384x256xf32, #tpu.memory_space<vmem>>, vector<8x256xf32>
    tpu.vector_store %arg11[%c136, %c0_44], %66 {strides = array<i32>} : memref<384x256xf32, #tpu.memory_space<vmem>>, vector<8x256xf32>,
    %68 = vector.extract_strided_slice %57 {offsets = [40, 0], sizes = [8, 256], strides = [1, 1]} : vector<96x256xf32> to vector<8x256xf32>
    %c168 = arith.constant 168 : index
    %c0_45 = arith.constant 0 : index
    %69 = vector.load %arg11[%c168, %c0_45] : memref<384x256xf32, #tpu.memory_space<vmem>>, vector<8x256xf32>
    tpu.vector_store %arg11[%c168, %c0_45], %68 {strides = array<i32>} : memref<384x256xf32, #tpu.memory_space<vmem>>, vector<8x256xf32>,
    %70 = vector.extract_strided_slice %57 {offsets = [48, 0], sizes = [8, 256], strides = [1, 1]} : vector<96x256xf32> to vector<8x256xf32>
    %c200 = arith.constant 200 : index
    %c0_46 = arith.constant 0 : index
    %71 = vector.load %arg11[%c200, %c0_46] : memref<384x256xf32, #tpu.memory_space<vmem>>, vector<8x256xf32>
    tpu.vector_store %arg11[%c200, %c0_46], %70 {strides = array<i32>} : memref<384x256xf32, #tpu.memory_space<vmem>>, vector<8x256xf32>,
    %72 = vector.extract_strided_slice %57 {offsets = [56, 0], sizes = [8, 256], strides = [1, 1]} : vector<96x256xf32> to vector<8x256xf32>
    %c232 = arith.constant 232 : index
    %c0_47 = arith.constant 0 : index
    %73 = vector.load %arg11[%c232, %c0_47] : memref<384x256xf32, #tpu.memory_space<vmem>>, vector<8x256xf32>
    tpu.vector_store %arg11[%c232, %c0_47], %72 {strides = array<i32>} : memref<384x256xf32, #tpu.memory_space<vmem>>, vector<8x256xf32>,
    %74 = vector.extract_strided_slice %57 {offsets = [64, 0], sizes = [8, 256], strides = [1, 1]} : vector<96x256xf32> to vector<8x256xf32>
    %c264 = arith.constant 264 : index
    %c0_48 = arith.constant 0 : index
    %75 = vector.load %arg11[%c264, %c0_48] : memref<384x256xf32, #tpu.memory_space<vmem>>, vector<8x256xf32>
    tpu.vector_store %arg11[%c264, %c0_48], %74 {strides = array<i32>} : memref<384x256xf32, #tpu.memory_space<vmem>>, vector<8x256xf32>,
    %76 = vector.extract_strided_slice %57 {offsets = [72, 0], sizes = [8, 256], strides = [1, 1]} : vector<96x256xf32> to vector<8x256xf32>
    %c296 = arith.constant 296 : index
    %c0_49 = arith.constant 0 : index
    %77 = vector.load %arg11[%c296, %c0_49] : memref<384x256xf32, #tpu.memory_space<vmem>>, vector<8x256xf32>
    tpu.vector_store %arg11[%c296, %c0_49], %76 {strides = array<i32>} : memref<384x256xf32, #tpu.memory_space<vmem>>, vector<8x256xf32>,
    %78 = vector.extract_strided_slice %57 {offsets = [80, 0], sizes = [8, 256], strides = [1, 1]} : vector<96x256xf32> to vector<8x256xf32>
    %c328 = arith.constant 328 : index
    %c0_50 = arith.constant 0 : index
    %79 = vector.load %arg11[%c328, %c0_50] : memref<384x256xf32, #tpu.memory_space<vmem>>, vector<8x256xf32>
    tpu.vector_store %arg11[%c328, %c0_50], %78 {strides = array<i32>} : memref<384x256xf32, #tpu.memory_space<vmem>>, vector<8x256xf32>,
    %80 = vector.extract_strided_slice %57 {offsets = [88, 0], sizes = [8, 256], strides = [1, 1]} : vector<96x256xf32> to vector<8x256xf32>
    %c360 = arith.constant 360 : index
    %c0_51 = arith.constant 0 : index
    %81 = vector.load %arg11[%c360, %c0_51] : memref<384x256xf32, #tpu.memory_space<vmem>>, vector<8x256xf32>
    tpu.vector_store %arg11[%c360, %c0_51], %80 {strides = array<i32>} : memref<384x256xf32, #tpu.memory_space<vmem>>, vector<8x256xf32>,
    %c0_52 = arith.constant 0 : index
    %c0_53 = arith.constant 0 : index
    %82 = vector.load %arg5[%c0_52, %c0_53] : memref<96x128xf32, #tpu.memory_space<vmem>>, vector<96x128xf32>
    %83 = vector.extract_strided_slice %27 {offsets = [256, 0], sizes = [128, 256], strides = [1, 1]} : vector<512x256xf32> to vector<128x256xf32>
    %cst_54 = arith.constant dense<0.000000e+00> : vector<96x256xf32>
    %84 = tpu.matmul %82, %83, %cst_54 {dimension_numbers = #tpu.dot_dimension_numbers<[1], [0], [0], [1], [0, 0, 1, 1], [], []>} : vector<96x128xf32>, vector<128x256xf32>, vector<96x256xf32> -> vector<96x256xf32>
    %85 = vector.extract_strided_slice %84 {offsets = [0, 0], sizes = [8, 256], strides = [1, 1]} : vector<96x256xf32> to vector<8x256xf32>
    %c16 = arith.constant 16 : index
    %c0_55 = arith.constant 0 : index
    %86 = vector.load %arg11[%c16, %c0_55] : memref<384x256xf32, #tpu.memory_space<vmem>>, vector<8x256xf32>
    tpu.vector_store %arg11[%c16, %c0_55], %85 {strides = array<i32>} : memref<384x256xf32, #tpu.memory_space<vmem>>, vector<8x256xf32>,
    %87 = vector.extract_strided_slice %84 {offsets = [8, 0], sizes = [8, 256], strides = [1, 1]} : vector<96x256xf32> to vector<8x256xf32>
    %c48 = arith.constant 48 : index
    %c0_56 = arith.constant 0 : index
    %88 = vector.load %arg11[%c48, %c0_56] : memref<384x256xf32, #tpu.memory_space<vmem>>, vector<8x256xf32>
    tpu.vector_store %arg11[%c48, %c0_56], %87 {strides = array<i32>} : memref<384x256xf32, #tpu.memory_space<vmem>>, vector<8x256xf32>,
    %89 = vector.extract_strided_slice %84 {offsets = [16, 0], sizes = [8, 256], strides = [1, 1]} : vector<96x256xf32> to vector<8x256xf32>
    %c80 = arith.constant 80 : index
    %c0_57 = arith.constant 0 : index
    %90 = vector.load %arg11[%c80, %c0_57] : memref<384x256xf32, #tpu.memory_space<vmem>>, vector<8x256xf32>
    tpu.vector_store %arg11[%c80, %c0_57], %89 {strides = array<i32>} : memref<384x256xf32, #tpu.memory_space<vmem>>, vector<8x256xf32>,
    %91 = vector.extract_strided_slice %84 {offsets = [24, 0], sizes = [8, 256], strides = [1, 1]} : vector<96x256xf32> to vector<8x256xf32>
    %c112 = arith.constant 112 : index
    %c0_58 = arith.constant 0 : index
    %92 = vector.load %arg11[%c112, %c0_58] : memref<384x256xf32, #tpu.memory_space<vmem>>, vector<8x256xf32>
    tpu.vector_store %arg11[%c112, %c0_58], %91 {strides = array<i32>} : memref<384x256xf32, #tpu.memory_space<vmem>>, vector<8x256xf32>,
    %93 = vector.extract_strided_slice %84 {offsets = [32, 0], sizes = [8, 256], strides = [1, 1]} : vector<96x256xf32> to vector<8x256xf32>
    %c144 = arith.constant 144 : index
    %c0_59 = arith.constant 0 : index
    %94 = vector.load %arg11[%c144, %c0_59] : memref<384x256xf32, #tpu.memory_space<vmem>>, vector<8x256xf32>
    tpu.vector_store %arg11[%c144, %c0_59], %93 {strides = array<i32>} : memref<384x256xf32, #tpu.memory_space<vmem>>, vector<8x256xf32>,
    %95 = vector.extract_strided_slice %84 {offsets = [40, 0], sizes = [8, 256], strides = [1, 1]} : vector<96x256xf32> to vector<8x256xf32>
    %c176 = arith.constant 176 : index
    %c0_60 = arith.constant 0 : index
    %96 = vector.load %arg11[%c176, %c0_60] : memref<384x256xf32, #tpu.memory_space<vmem>>, vector<8x256xf32>
    tpu.vector_store %arg11[%c176, %c0_60], %95 {strides = array<i32>} : memref<384x256xf32, #tpu.memory_space<vmem>>, vector<8x256xf32>,
    %97 = vector.extract_strided_slice %84 {offsets = [48, 0], sizes = [8, 256], strides = [1, 1]} : vector<96x256xf32> to vector<8x256xf32>
    %c208 = arith.constant 208 : index
    %c0_61 = arith.constant 0 : index
    %98 = vector.load %arg11[%c208, %c0_61] : memref<384x256xf32, #tpu.memory_space<vmem>>, vector<8x256xf32>
    tpu.vector_store %arg11[%c208, %c0_61], %97 {strides = array<i32>} : memref<384x256xf32, #tpu.memory_space<vmem>>, vector<8x256xf32>,
    %99 = vector.extract_strided_slice %84 {offsets = [56, 0], sizes = [8, 256], strides = [1, 1]} : vector<96x256xf32> to vector<8x256xf32>
    %c240 = arith.constant 240 : index
    %c0_62 = arith.constant 0 : index
    %100 = vector.load %arg11[%c240, %c0_62] : memref<384x256xf32, #tpu.memory_space<vmem>>, vector<8x256xf32>
    tpu.vector_store %arg11[%c240, %c0_62], %99 {strides = array<i32>} : memref<384x256xf32, #tpu.memory_space<vmem>>, vector<8x256xf32>,
    %101 = vector.extract_strided_slice %84 {offsets = [64, 0], sizes = [8, 256], strides = [1, 1]} : vector<96x256xf32> to vector<8x256xf32>
    %c272 = arith.constant 272 : index
    %c0_63 = arith.constant 0 : index
    %102 = vector.load %arg11[%c272, %c0_63] : memref<384x256xf32, #tpu.memory_space<vmem>>, vector<8x256xf32>
    tpu.vector_store %arg11[%c272, %c0_63], %101 {strides = array<i32>} : memref<384x256xf32, #tpu.memory_space<vmem>>, vector<8x256xf32>,
    %103 = vector.extract_strided_slice %84 {offsets = [72, 0], sizes = [8, 256], strides = [1, 1]} : vector<96x256xf32> to vector<8x256xf32>
    %c304 = arith.constant 304 : index
    %c0_64 = arith.constant 0 : index
    %104 = vector.load %arg11[%c304, %c0_64] : memref<384x256xf32, #tpu.memory_space<vmem>>, vector<8x256xf32>
    tpu.vector_store %arg11[%c304, %c0_64], %103 {strides = array<i32>} : memref<384x256xf32, #tpu.memory_space<vmem>>, vector<8x256xf32>,
    %105 = vector.extract_strided_slice %84 {offsets = [80, 0], sizes = [8, 256], strides = [1, 1]} : vector<96x256xf32> to vector<8x256xf32>
    %c336 = arith.constant 336 : index
    %c0_65 = arith.constant 0 : index
    %106 = vector.load %arg11[%c336, %c0_65] : memref<384x256xf32, #tpu.memory_space<vmem>>, vector<8x256xf32>
    tpu.vector_store %arg11[%c336, %c0_65], %105 {strides = array<i32>} : memref<384x256xf32, #tpu.memory_space<vmem>>, vector<8x256xf32>,
    %107 = vector.extract_strided_slice %84 {offsets = [88, 0], sizes = [8, 256], strides = [1, 1]} : vector<96x256xf32> to vector<8x256xf32>
    %c368 = arith.constant 368 : index
    %c0_66 = arith.constant 0 : index
    %108 = vector.load %arg11[%c368, %c0_66] : memref<384x256xf32, #tpu.memory_space<vmem>>, vector<8x256xf32>
    tpu.vector_store %arg11[%c368, %c0_66], %107 {strides = array<i32>} : memref<384x256xf32, #tpu.memory_space<vmem>>, vector<8x256xf32>,
    %c0_67 = arith.constant 0 : index
    %c0_68 = arith.constant 0 : index
    %109 = vector.load %arg5[%c0_67, %c0_68] : memref<96x128xf32, #tpu.memory_space<vmem>>, vector<96x128xf32>
    %110 = vector.extract_strided_slice %27 {offsets = [384, 0], sizes = [128, 256], strides = [1, 1]} : vector<512x256xf32> to vector<128x256xf32>
    %cst_69 = arith.constant dense<0.000000e+00> : vector<96x256xf32>
    %111 = tpu.matmul %109, %110, %cst_69 {dimension_numbers = #tpu.dot_dimension_numbers<[1], [0], [0], [1], [0, 0, 1, 1], [], []>} : vector<96x128xf32>, vector<128x256xf32>, vector<96x256xf32> -> vector<96x256xf32>
    %112 = vector.extract_strided_slice %111 {offsets = [0, 0], sizes = [8, 256], strides = [1, 1]} : vector<96x256xf32> to vector<8x256xf32>
    %c24 = arith.constant 24 : index
    %c0_70 = arith.constant 0 : index
    %113 = vector.load %arg11[%c24, %c0_70] : memref<384x256xf32, #tpu.memory_space<vmem>>, vector<8x256xf32>
    tpu.vector_store %arg11[%c24, %c0_70], %112 {strides = array<i32>} : memref<384x256xf32, #tpu.memory_space<vmem>>, vector<8x256xf32>,
    %114 = vector.extract_strided_slice %111 {offsets = [8, 0], sizes = [8, 256], strides = [1, 1]} : vector<96x256xf32> to vector<8x256xf32>
    %c56 = arith.constant 56 : index
    %c0_71 = arith.constant 0 : index
    %115 = vector.load %arg11[%c56, %c0_71] : memref<384x256xf32, #tpu.memory_space<vmem>>, vector<8x256xf32>
    tpu.vector_store %arg11[%c56, %c0_71], %114 {strides = array<i32>} : memref<384x256xf32, #tpu.memory_space<vmem>>, vector<8x256xf32>,
    %116 = vector.extract_strided_slice %111 {offsets = [16, 0], sizes = [8, 256], strides = [1, 1]} : vector<96x256xf32> to vector<8x256xf32>
    %c88 = arith.constant 88 : index
    %c0_72 = arith.constant 0 : index
    %117 = vector.load %arg11[%c88, %c0_72] : memref<384x256xf32, #tpu.memory_space<vmem>>, vector<8x256xf32>
    tpu.vector_store %arg11[%c88, %c0_72], %116 {strides = array<i32>} : memref<384x256xf32, #tpu.memory_space<vmem>>, vector<8x256xf32>,
    %118 = vector.extract_strided_slice %111 {offsets = [24, 0], sizes = [8, 256], strides = [1, 1]} : vector<96x256xf32> to vector<8x256xf32>
    %c120 = arith.constant 120 : index
    %c0_73 = arith.constant 0 : index
    %119 = vector.load %arg11[%c120, %c0_73] : memref<384x256xf32, #tpu.memory_space<vmem>>, vector<8x256xf32>
    tpu.vector_store %arg11[%c120, %c0_73], %118 {strides = array<i32>} : memref<384x256xf32, #tpu.memory_space<vmem>>, vector<8x256xf32>,
    %120 = vector.extract_strided_slice %111 {offsets = [32, 0], sizes = [8, 256], strides = [1, 1]} : vector<96x256xf32> to vector<8x256xf32>
    %c152 = arith.constant 152 : index
    %c0_74 = arith.constant 0 : index
    %121 = vector.load %arg11[%c152, %c0_74] : memref<384x256xf32, #tpu.memory_space<vmem>>, vector<8x256xf32>
    tpu.vector_store %arg11[%c152, %c0_74], %120 {strides = array<i32>} : memref<384x256xf32, #tpu.memory_space<vmem>>, vector<8x256xf32>,
    %122 = vector.extract_strided_slice %111 {offsets = [40, 0], sizes = [8, 256], strides = [1, 1]} : vector<96x256xf32> to vector<8x256xf32>
    %c184 = arith.constant 184 : index
    %c0_75 = arith.constant 0 : index
    %123 = vector.load %arg11[%c184, %c0_75] : memref<384x256xf32, #tpu.memory_space<vmem>>, vector<8x256xf32>
    tpu.vector_store %arg11[%c184, %c0_75], %122 {strides = array<i32>} : memref<384x256xf32, #tpu.memory_space<vmem>>, vector<8x256xf32>,
    %124 = vector.extract_strided_slice %111 {offsets = [48, 0], sizes = [8, 256], strides = [1, 1]} : vector<96x256xf32> to vector<8x256xf32>
    %c216 = arith.constant 216 : index
    %c0_76 = arith.constant 0 : index
    %125 = vector.load %arg11[%c216, %c0_76] : memref<384x256xf32, #tpu.memory_space<vmem>>, vector<8x256xf32>
    tpu.vector_store %arg11[%c216, %c0_76], %124 {strides = array<i32>} : memref<384x256xf32, #tpu.memory_space<vmem>>, vector<8x256xf32>,
    %126 = vector.extract_strided_slice %111 {offsets = [56, 0], sizes = [8, 256], strides = [1, 1]} : vector<96x256xf32> to vector<8x256xf32>
    %c248 = arith.constant 248 : index
    %c0_77 = arith.constant 0 : index
    %127 = vector.load %arg11[%c248, %c0_77] : memref<384x256xf32, #tpu.memory_space<vmem>>, vector<8x256xf32>
    tpu.vector_store %arg11[%c248, %c0_77], %126 {strides = array<i32>} : memref<384x256xf32, #tpu.memory_space<vmem>>, vector<8x256xf32>,
    %128 = vector.extract_strided_slice %111 {offsets = [64, 0], sizes = [8, 256], strides = [1, 1]} : vector<96x256xf32> to vector<8x256xf32>
    %c280 = arith.constant 280 : index
    %c0_78 = arith.constant 0 : index
    %129 = vector.load %arg11[%c280, %c0_78] : memref<384x256xf32, #tpu.memory_space<vmem>>, vector<8x256xf32>
    tpu.vector_store %arg11[%c280, %c0_78], %128 {strides = array<i32>} : memref<384x256xf32, #tpu.memory_space<vmem>>, vector<8x256xf32>,
    %130 = vector.extract_strided_slice %111 {offsets = [72, 0], sizes = [8, 256], strides = [1, 1]} : vector<96x256xf32> to vector<8x256xf32>
    %c312 = arith.constant 312 : index
    %c0_79 = arith.constant 0 : index
    %131 = vector.load %arg11[%c312, %c0_79] : memref<384x256xf32, #tpu.memory_space<vmem>>, vector<8x256xf32>
    tpu.vector_store %arg11[%c312, %c0_79], %130 {strides = array<i32>} : memref<384x256xf32, #tpu.memory_space<vmem>>, vector<8x256xf32>,
    %132 = vector.extract_strided_slice %111 {offsets = [80, 0], sizes = [8, 256], strides = [1, 1]} : vector<96x256xf32> to vector<8x256xf32>
    %c344 = arith.constant 344 : index
    %c0_80 = arith.constant 0 : index
    %133 = vector.load %arg11[%c344, %c0_80] : memref<384x256xf32, #tpu.memory_space<vmem>>, vector<8x256xf32>
    tpu.vector_store %arg11[%c344, %c0_80], %132 {strides = array<i32>} : memref<384x256xf32, #tpu.memory_space<vmem>>, vector<8x256xf32>,
    %134 = vector.extract_strided_slice %111 {offsets = [88, 0], sizes = [8, 256], strides = [1, 1]} : vector<96x256xf32> to vector<8x256xf32>
    %c376 = arith.constant 376 : index
    %c0_81 = arith.constant 0 : index
    %135 = vector.load %arg11[%c376, %c0_81] : memref<384x256xf32, #tpu.memory_space<vmem>>, vector<8x256xf32>
    tpu.vector_store %arg11[%c376, %c0_81], %134 {strides = array<i32>} : memref<384x256xf32, #tpu.memory_space<vmem>>, vector<8x256xf32>,
    %c0_82 = arith.constant 0 : index
    %c0_83 = arith.constant 0 : index
    %136 = vector.load %arg7[%c0_82, %c0_83] : memref<96x128xf32, #tpu.memory_space<vmem>>, vector<96x128xf32>
    %c0_84 = arith.constant 0 : index
    %c0_85 = arith.constant 0 : index
    %137 = vector.load %arg11[%c0_84, %c0_85] : memref<384x256xf32, #tpu.memory_space<vmem>>, vector<96x32xf32>
    %c0_86 = arith.constant 0 : index
    %c0_87 = arith.constant 0 : index
    %c0_88 = arith.constant 0 : index
    %138 = vector.load %arg6[%c0_86, %c0_87, %c0_88] : memref<4x32x128xf32, #tpu.memory_space<vmem>>, vector<1x32x128xf32>
    %139 = vector.shape_cast %138 : vector<1x32x128xf32> to vector<32x128xf32>
    %cst_89 = arith.constant dense<0.000000e+00> : vector<96x128xf32>
    %140 = tpu.matmul %137, %139, %cst_89 {dimension_numbers = #tpu.dot_dimension_numbers<[1], [0], [0], [1], [0, 0, 1, 1], [], []>} : vector<96x32xf32>, vector<32x128xf32>, vector<96x128xf32> -> vector<96x128xf32>
    %141 = arith.addf %136, %140 : vector<96x128xf32>
    %c96_90 = arith.constant 96 : index
    %c0_91 = arith.constant 0 : index
    %142 = vector.load %arg11[%c96_90, %c0_91] : memref<384x256xf32, #tpu.memory_space<vmem>>, vector<96x32xf32>
    %c1_92 = arith.constant 1 : index
    %c0_93 = arith.constant 0 : index
    %c0_94 = arith.constant 0 : index
    %143 = vector.load %arg6[%c1_92, %c0_93, %c0_94] : memref<4x32x128xf32, #tpu.memory_space<vmem>>, vector<1x32x128xf32>
    %144 = vector.shape_cast %143 : vector<1x32x128xf32> to vector<32x128xf32>
    %cst_95 = arith.constant dense<0.000000e+00> : vector<96x128xf32>
    %145 = tpu.matmul %142, %144, %cst_95 {dimension_numbers = #tpu.dot_dimension_numbers<[1], [0], [0], [1], [0, 0, 1, 1], [], []>} : vector<96x32xf32>, vector<32x128xf32>, vector<96x128xf32> -> vector<96x128xf32>
    %146 = arith.addf %141, %145 : vector<96x128xf32>
    %c192_96 = arith.constant 192 : index
    %c0_97 = arith.constant 0 : index
    %147 = vector.load %arg11[%c192_96, %c0_97] : memref<384x256xf32, #tpu.memory_space<vmem>>, vector<96x32xf32>
    %c2 = arith.constant 2 : index
    %c0_98 = arith.constant 0 : index
    %c0_99 = arith.constant 0 : index
    %148 = vector.load %arg6[%c2, %c0_98, %c0_99] : memref<4x32x128xf32, #tpu.memory_space<vmem>>, vector<1x32x128xf32>
    %149 = vector.shape_cast %148 : vector<1x32x128xf32> to vector<32x128xf32>
    %cst_100 = arith.constant dense<0.000000e+00> : vector<96x128xf32>
    %150 = tpu.matmul %147, %149, %cst_100 {dimension_numbers = #tpu.dot_dimension_numbers<[1], [0], [0], [1], [0, 0, 1, 1], [], []>} : vector<96x32xf32>, vector<32x128xf32>, vector<96x128xf32> -> vector<96x128xf32>
    %151 = arith.addf %146, %150 : vector<96x128xf32>
    %c288_101 = arith.constant 288 : index
    %c0_102 = arith.constant 0 : index
    %152 = vector.load %arg11[%c288_101, %c0_102] : memref<384x256xf32, #tpu.memory_space<vmem>>, vector<96x32xf32>
    %c3 = arith.constant 3 : index
    %c0_103 = arith.constant 0 : index
    %c0_104 = arith.constant 0 : index
    %153 = vector.load %arg6[%c3, %c0_103, %c0_104] : memref<4x32x128xf32, #tpu.memory_space<vmem>>, vector<1x32x128xf32>
    %154 = vector.shape_cast %153 : vector<1x32x128xf32> to vector<32x128xf32>
    %cst_105 = arith.constant dense<0.000000e+00> : vector<96x128xf32>
    %155 = tpu.matmul %152, %154, %cst_105 {dimension_numbers = #tpu.dot_dimension_numbers<[1], [0], [0], [1], [0, 0, 1, 1], [], []>} : vector<96x32xf32>, vector<32x128xf32>, vector<96x128xf32> -> vector<96x128xf32>
    %156 = arith.addf %151, %155 : vector<96x128xf32>
    %157 = arith.negf %156 : vector<96x128xf32>
    %158 = math.exp %157 : vector<96x128xf32>
    %cst_106 = arith.constant 1.000000e+00 : f32
    %159 = vector.broadcast %cst_106 : f32 to vector<96x128xf32>
    %160 = arith.addf %159, %158 : vector<96x128xf32>
    %161 = arith.divf %159, %160 : vector<96x128xf32>
    %c0_107 = arith.constant 0 : index
    %c0_108 = arith.constant 0 : index
    %162 = vector.load %arg10[%c0_107, %c0_108] : memref<768x128xf32, #tpu.memory_space<vmem>>, vector<96x128xf32>
    tpu.vector_store %arg10[%c0_107, %c0_108], %161 {strides = array<i32>} : memref<768x128xf32, #tpu.memory_space<vmem>>, vector<96x128xf32>,
    %c0_109 = arith.constant 0 : index
    %c0_110 = arith.constant 0 : index
    %163 = vector.load %arg7[%c0_109, %c0_110] : memref<96x128xf32, #tpu.memory_space<vmem>>, vector<96x128xf32>
    %c0_111 = arith.constant 0 : index
    %c32_112 = arith.constant 32 : index
    %164 = vector.load %arg11[%c0_111, %c32_112] : memref<384x256xf32, #tpu.memory_space<vmem>>, vector<96x32xf32>
    %c0_113 = arith.constant 0 : index
    %c0_114 = arith.constant 0 : index
    %c0_115 = arith.constant 0 : index
    %165 = vector.load %arg6[%c0_113, %c0_114, %c0_115] : memref<4x32x128xf32, #tpu.memory_space<vmem>>, vector<1x32x128xf32>
    %166 = vector.shape_cast %165 : vector<1x32x128xf32> to vector<32x128xf32>
    %cst_116 = arith.constant dense<0.000000e+00> : vector<96x128xf32>
    %167 = tpu.matmul %164, %166, %cst_116 {dimension_numbers = #tpu.dot_dimension_numbers<[1], [0], [0], [1], [0, 0, 1, 1], [], []>} : vector<96x32xf32>, vector<32x128xf32>, vector<96x128xf32> -> vector<96x128xf32>
    %168 = arith.addf %163, %167 : vector<96x128xf32>
    %c96_117 = arith.constant 96 : index
    %c32_118 = arith.constant 32 : index
    %169 = vector.load %arg11[%c96_117, %c32_118] : memref<384x256xf32, #tpu.memory_space<vmem>>, vector<96x32xf32>
    %c1_119 = arith.constant 1 : index
    %c0_120 = arith.constant 0 : index
    %c0_121 = arith.constant 0 : index
    %170 = vector.load %arg6[%c1_119, %c0_120, %c0_121] : memref<4x32x128xf32, #tpu.memory_space<vmem>>, vector<1x32x128xf32>
    %171 = vector.shape_cast %170 : vector<1x32x128xf32> to vector<32x128xf32>
    %cst_122 = arith.constant dense<0.000000e+00> : vector<96x128xf32>
    %172 = tpu.matmul %169, %171, %cst_122 {dimension_numbers = #tpu.dot_dimension_numbers<[1], [0], [0], [1], [0, 0, 1, 1], [], []>} : vector<96x32xf32>, vector<32x128xf32>, vector<96x128xf32> -> vector<96x128xf32>
    %173 = arith.addf %168, %172 : vector<96x128xf32>
    %c192_123 = arith.constant 192 : index
    %c32_124 = arith.constant 32 : index
    %174 = vector.load %arg11[%c192_123, %c32_124] : memref<384x256xf32, #tpu.memory_space<vmem>>, vector<96x32xf32>
    %c2_125 = arith.constant 2 : index
    %c0_126 = arith.constant 0 : index
    %c0_127 = arith.constant 0 : index
    %175 = vector.load %arg6[%c2_125, %c0_126, %c0_127] : memref<4x32x128xf32, #tpu.memory_space<vmem>>, vector<1x32x128xf32>
    %176 = vector.shape_cast %175 : vector<1x32x128xf32> to vector<32x128xf32>
    %cst_128 = arith.constant dense<0.000000e+00> : vector<96x128xf32>
    %177 = tpu.matmul %174, %176, %cst_128 {dimension_numbers = #tpu.dot_dimension_numbers<[1], [0], [0], [1], [0, 0, 1, 1], [], []>} : vector<96x32xf32>, vector<32x128xf32>, vector<96x128xf32> -> vector<96x128xf32>
    %178 = arith.addf %173, %177 : vector<96x128xf32>
    %c288_129 = arith.constant 288 : index
    %c32_130 = arith.constant 32 : index
    %179 = vector.load %arg11[%c288_129, %c32_130] : memref<384x256xf32, #tpu.memory_space<vmem>>, vector<96x32xf32>
    %c3_131 = arith.constant 3 : index
    %c0_132 = arith.constant 0 : index
    %c0_133 = arith.constant 0 : index
    %180 = vector.load %arg6[%c3_131, %c0_132, %c0_133] : memref<4x32x128xf32, #tpu.memory_space<vmem>>, vector<1x32x128xf32>
    %181 = vector.shape_cast %180 : vector<1x32x128xf32> to vector<32x128xf32>
    %cst_134 = arith.constant dense<0.000000e+00> : vector<96x128xf32>
    %182 = tpu.matmul %179, %181, %cst_134 {dimension_numbers = #tpu.dot_dimension_numbers<[1], [0], [0], [1], [0, 0, 1, 1], [], []>} : vector<96x32xf32>, vector<32x128xf32>, vector<96x128xf32> -> vector<96x128xf32>
    %183 = arith.addf %178, %182 : vector<96x128xf32>
    %184 = arith.negf %183 : vector<96x128xf32>
    %185 = math.exp %184 : vector<96x128xf32>
    %cst_135 = arith.constant 1.000000e+00 : f32
    %186 = vector.broadcast %cst_135 : f32 to vector<96x128xf32>
    %187 = arith.addf %186, %185 : vector<96x128xf32>
    %188 = arith.divf %186, %187 : vector<96x128xf32>
    %c96_136 = arith.constant 96 : index
    %c0_137 = arith.constant 0 : index
    %189 = vector.load %arg10[%c96_136, %c0_137] : memref<768x128xf32, #tpu.memory_space<vmem>>, vector<96x128xf32>
    tpu.vector_store %arg10[%c96_136, %c0_137], %188 {strides = array<i32>} : memref<768x128xf32, #tpu.memory_space<vmem>>, vector<96x128xf32>,
    %c0_138 = arith.constant 0 : index
    %c0_139 = arith.constant 0 : index
    %190 = vector.load %arg7[%c0_138, %c0_139] : memref<96x128xf32, #tpu.memory_space<vmem>>, vector<96x128xf32>
    %c0_140 = arith.constant 0 : index
    %c64_141 = arith.constant 64 : index
    %191 = vector.load %arg11[%c0_140, %c64_141] : memref<384x256xf32, #tpu.memory_space<vmem>>, vector<96x32xf32>
    %c0_142 = arith.constant 0 : index
    %c0_143 = arith.constant 0 : index
    %c0_144 = arith.constant 0 : index
    %192 = vector.load %arg6[%c0_142, %c0_143, %c0_144] : memref<4x32x128xf32, #tpu.memory_space<vmem>>, vector<1x32x128xf32>
    %193 = vector.shape_cast %192 : vector<1x32x128xf32> to vector<32x128xf32>
    %cst_145 = arith.constant dense<0.000000e+00> : vector<96x128xf32>
    %194 = tpu.matmul %191, %193, %cst_145 {dimension_numbers = #tpu.dot_dimension_numbers<[1], [0], [0], [1], [0, 0, 1, 1], [], []>} : vector<96x32xf32>, vector<32x128xf32>, vector<96x128xf32> -> vector<96x128xf32>
    %195 = arith.addf %190, %194 : vector<96x128xf32>
    %c96_146 = arith.constant 96 : index
    %c64_147 = arith.constant 64 : index
    %196 = vector.load %arg11[%c96_146, %c64_147] : memref<384x256xf32, #tpu.memory_space<vmem>>, vector<96x32xf32>
    %c1_148 = arith.constant 1 : index
    %c0_149 = arith.constant 0 : index
    %c0_150 = arith.constant 0 : index
    %197 = vector.load %arg6[%c1_148, %c0_149, %c0_150] : memref<4x32x128xf32, #tpu.memory_space<vmem>>, vector<1x32x128xf32>
    %198 = vector.shape_cast %197 : vector<1x32x128xf32> to vector<32x128xf32>
    %cst_151 = arith.constant dense<0.000000e+00> : vector<96x128xf32>
    %199 = tpu.matmul %196, %198, %cst_151 {dimension_numbers = #tpu.dot_dimension_numbers<[1], [0], [0], [1], [0, 0, 1, 1], [], []>} : vector<96x32xf32>, vector<32x128xf32>, vector<96x128xf32> -> vector<96x128xf32>
    %200 = arith.addf %195, %199 : vector<96x128xf32>
    %c192_152 = arith.constant 192 : index
    %c64_153 = arith.constant 64 : index
    %201 = vector.load %arg11[%c192_152, %c64_153] : memref<384x256xf32, #tpu.memory_space<vmem>>, vector<96x32xf32>
    %c2_154 = arith.constant 2 : index
    %c0_155 = arith.constant 0 : index
    %c0_156 = arith.constant 0 : index
    %202 = vector.load %arg6[%c2_154, %c0_155, %c0_156] : memref<4x32x128xf32, #tpu.memory_space<vmem>>, vector<1x32x128xf32>
    %203 = vector.shape_cast %202 : vector<1x32x128xf32> to vector<32x128xf32>
    %cst_157 = arith.constant dense<0.000000e+00> : vector<96x128xf32>
    %204 = tpu.matmul %201, %203, %cst_157 {dimension_numbers = #tpu.dot_dimension_numbers<[1], [0], [0], [1], [0, 0, 1, 1], [], []>} : vector<96x32xf32>, vector<32x128xf32>, vector<96x128xf32> -> vector<96x128xf32>
    %205 = arith.addf %200, %204 : vector<96x128xf32>
    %c288_158 = arith.constant 288 : index
    %c64_159 = arith.constant 64 : index
    %206 = vector.load %arg11[%c288_158, %c64_159] : memref<384x256xf32, #tpu.memory_space<vmem>>, vector<96x32xf32>
    %c3_160 = arith.constant 3 : index
    %c0_161 = arith.constant 0 : index
    %c0_162 = arith.constant 0 : index
    %207 = vector.load %arg6[%c3_160, %c0_161, %c0_162] : memref<4x32x128xf32, #tpu.memory_space<vmem>>, vector<1x32x128xf32>
    %208 = vector.shape_cast %207 : vector<1x32x128xf32> to vector<32x128xf32>
    %cst_163 = arith.constant dense<0.000000e+00> : vector<96x128xf32>
    %209 = tpu.matmul %206, %208, %cst_163 {dimension_numbers = #tpu.dot_dimension_numbers<[1], [0], [0], [1], [0, 0, 1, 1], [], []>} : vector<96x32xf32>, vector<32x128xf32>, vector<96x128xf32> -> vector<96x128xf32>
    %210 = arith.addf %205, %209 : vector<96x128xf32>
    %211 = arith.negf %210 : vector<96x128xf32>
    %212 = math.exp %211 : vector<96x128xf32>
    %cst_164 = arith.constant 1.000000e+00 : f32
    %213 = vector.broadcast %cst_164 : f32 to vector<96x128xf32>
    %214 = arith.addf %213, %212 : vector<96x128xf32>
    %215 = arith.divf %213, %214 : vector<96x128xf32>
    %c192_165 = arith.constant 192 : index
    %c0_166 = arith.constant 0 : index
    %216 = vector.load %arg10[%c192_165, %c0_166] : memref<768x128xf32, #tpu.memory_space<vmem>>, vector<96x128xf32>
    tpu.vector_store %arg10[%c192_165, %c0_166], %215 {strides = array<i32>} : memref<768x128xf32, #tpu.memory_space<vmem>>, vector<96x128xf32>,
    %c0_167 = arith.constant 0 : index
    %c0_168 = arith.constant 0 : index
    %217 = vector.load %arg7[%c0_167, %c0_168] : memref<96x128xf32, #tpu.memory_space<vmem>>, vector<96x128xf32>
    %c0_169 = arith.constant 0 : index
    %c96_170 = arith.constant 96 : index
    %218 = vector.load %arg11[%c0_169, %c96_170] : memref<384x256xf32, #tpu.memory_space<vmem>>, vector<96x32xf32>
    %c0_171 = arith.constant 0 : index
    %c0_172 = arith.constant 0 : index
    %c0_173 = arith.constant 0 : index
    %219 = vector.load %arg6[%c0_171, %c0_172, %c0_173] : memref<4x32x128xf32, #tpu.memory_space<vmem>>, vector<1x32x128xf32>
    %220 = vector.shape_cast %219 : vector<1x32x128xf32> to vector<32x128xf32>
    %cst_174 = arith.constant dense<0.000000e+00> : vector<96x128xf32>
    %221 = tpu.matmul %218, %220, %cst_174 {dimension_numbers = #tpu.dot_dimension_numbers<[1], [0], [0], [1], [0, 0, 1, 1], [], []>} : vector<96x32xf32>, vector<32x128xf32>, vector<96x128xf32> -> vector<96x128xf32>
    %222 = arith.addf %217, %221 : vector<96x128xf32>
    %c96_175 = arith.constant 96 : index
    %c96_176 = arith.constant 96 : index
    %223 = vector.load %arg11[%c96_175, %c96_176] : memref<384x256xf32, #tpu.memory_space<vmem>>, vector<96x32xf32>
    %c1_177 = arith.constant 1 : index
    %c0_178 = arith.constant 0 : index
    %c0_179 = arith.constant 0 : index
    %224 = vector.load %arg6[%c1_177, %c0_178, %c0_179] : memref<4x32x128xf32, #tpu.memory_space<vmem>>, vector<1x32x128xf32>
    %225 = vector.shape_cast %224 : vector<1x32x128xf32> to vector<32x128xf32>
    %cst_180 = arith.constant dense<0.000000e+00> : vector<96x128xf32>
    %226 = tpu.matmul %223, %225, %cst_180 {dimension_numbers = #tpu.dot_dimension_numbers<[1], [0], [0], [1], [0, 0, 1, 1], [], []>} : vector<96x32xf32>, vector<32x128xf32>, vector<96x128xf32> -> vector<96x128xf32>
    %227 = arith.addf %222, %226 : vector<96x128xf32>
    %c192_181 = arith.constant 192 : index
    %c96_182 = arith.constant 96 : index
    %228 = vector.load %arg11[%c192_181, %c96_182] : memref<384x256xf32, #tpu.memory_space<vmem>>, vector<96x32xf32>
    %c2_183 = arith.constant 2 : index
    %c0_184 = arith.constant 0 : index
    %c0_185 = arith.constant 0 : index
    %229 = vector.load %arg6[%c2_183, %c0_184, %c0_185] : memref<4x32x128xf32, #tpu.memory_space<vmem>>, vector<1x32x128xf32>
    %230 = vector.shape_cast %229 : vector<1x32x128xf32> to vector<32x128xf32>
    %cst_186 = arith.constant dense<0.000000e+00> : vector<96x128xf32>
    %231 = tpu.matmul %228, %230, %cst_186 {dimension_numbers = #tpu.dot_dimension_numbers<[1], [0], [0], [1], [0, 0, 1, 1], [], []>} : vector<96x32xf32>, vector<32x128xf32>, vector<96x128xf32> -> vector<96x128xf32>
    %232 = arith.addf %227, %231 : vector<96x128xf32>
    %c288_187 = arith.constant 288 : index
    %c96_188 = arith.constant 96 : index
    %233 = vector.load %arg11[%c288_187, %c96_188] : memref<384x256xf32, #tpu.memory_space<vmem>>, vector<96x32xf32>
    %c3_189 = arith.constant 3 : index
    %c0_190 = arith.constant 0 : index
    %c0_191 = arith.constant 0 : index
    %234 = vector.load %arg6[%c3_189, %c0_190, %c0_191] : memref<4x32x128xf32, #tpu.memory_space<vmem>>, vector<1x32x128xf32>
    %235 = vector.shape_cast %234 : vector<1x32x128xf32> to vector<32x128xf32>
    %cst_192 = arith.constant dense<0.000000e+00> : vector<96x128xf32>
    %236 = tpu.matmul %233, %235, %cst_192 {dimension_numbers = #tpu.dot_dimension_numbers<[1], [0], [0], [1], [0, 0, 1, 1], [], []>} : vector<96x32xf32>, vector<32x128xf32>, vector<96x128xf32> -> vector<96x128xf32>
    %237 = arith.addf %232, %236 : vector<96x128xf32>
    %238 = arith.negf %237 : vector<96x128xf32>
    %239 = math.exp %238 : vector<96x128xf32>
    %cst_193 = arith.constant 1.000000e+00 : f32
    %240 = vector.broadcast %cst_193 : f32 to vector<96x128xf32>
    %241 = arith.addf %240, %239 : vector<96x128xf32>
    %242 = arith.divf %240, %241 : vector<96x128xf32>
    %c288_194 = arith.constant 288 : index
    %c0_195 = arith.constant 0 : index
    %243 = vector.load %arg10[%c288_194, %c0_195] : memref<768x128xf32, #tpu.memory_space<vmem>>, vector<96x128xf32>
    tpu.vector_store %arg10[%c288_194, %c0_195], %242 {strides = array<i32>} : memref<768x128xf32, #tpu.memory_space<vmem>>, vector<96x128xf32>,
    %c0_196 = arith.constant 0 : index
    %c0_197 = arith.constant 0 : index
    %244 = vector.load %arg7[%c0_196, %c0_197] : memref<96x128xf32, #tpu.memory_space<vmem>>, vector<96x128xf32>
    %c0_198 = arith.constant 0 : index
    %c128_199 = arith.constant 128 : index
    %245 = vector.load %arg11[%c0_198, %c128_199] : memref<384x256xf32, #tpu.memory_space<vmem>>, vector<96x32xf32>
    %c0_200 = arith.constant 0 : index
    %c0_201 = arith.constant 0 : index
    %c0_202 = arith.constant 0 : index
    %246 = vector.load %arg6[%c0_200, %c0_201, %c0_202] : memref<4x32x128xf32, #tpu.memory_space<vmem>>, vector<1x32x128xf32>
    %247 = vector.shape_cast %246 : vector<1x32x128xf32> to vector<32x128xf32>
    %cst_203 = arith.constant dense<0.000000e+00> : vector<96x128xf32>
    %248 = tpu.matmul %245, %247, %cst_203 {dimension_numbers = #tpu.dot_dimension_numbers<[1], [0], [0], [1], [0, 0, 1, 1], [], []>} : vector<96x32xf32>, vector<32x128xf32>, vector<96x128xf32> -> vector<96x128xf32>
    %249 = arith.addf %244, %248 : vector<96x128xf32>
    %c96_204 = arith.constant 96 : index
    %c128_205 = arith.constant 128 : index
    %250 = vector.load %arg11[%c96_204, %c128_205] : memref<384x256xf32, #tpu.memory_space<vmem>>, vector<96x32xf32>
    %c1_206 = arith.constant 1 : index
    %c0_207 = arith.constant 0 : index
    %c0_208 = arith.constant 0 : index
    %251 = vector.load %arg6[%c1_206, %c0_207, %c0_208] : memref<4x32x128xf32, #tpu.memory_space<vmem>>, vector<1x32x128xf32>
    %252 = vector.shape_cast %251 : vector<1x32x128xf32> to vector<32x128xf32>
    %cst_209 = arith.constant dense<0.000000e+00> : vector<96x128xf32>
    %253 = tpu.matmul %250, %252, %cst_209 {dimension_numbers = #tpu.dot_dimension_numbers<[1], [0], [0], [1], [0, 0, 1, 1], [], []>} : vector<96x32xf32>, vector<32x128xf32>, vector<96x128xf32> -> vector<96x128xf32>
    %254 = arith.addf %249, %253 : vector<96x128xf32>
    %c192_210 = arith.constant 192 : index
    %c128_211 = arith.constant 128 : index
    %255 = vector.load %arg11[%c192_210, %c128_211] : memref<384x256xf32, #tpu.memory_space<vmem>>, vector<96x32xf32>
    %c2_212 = arith.constant 2 : index
    %c0_213 = arith.constant 0 : index
    %c0_214 = arith.constant 0 : index
    %256 = vector.load %arg6[%c2_212, %c0_213, %c0_214] : memref<4x32x128xf32, #tpu.memory_space<vmem>>, vector<1x32x128xf32>
    %257 = vector.shape_cast %256 : vector<1x32x128xf32> to vector<32x128xf32>
    %cst_215 = arith.constant dense<0.000000e+00> : vector<96x128xf32>
    %258 = tpu.matmul %255, %257, %cst_215 {dimension_numbers = #tpu.dot_dimension_numbers<[1], [0], [0], [1], [0, 0, 1, 1], [], []>} : vector<96x32xf32>, vector<32x128xf32>, vector<96x128xf32> -> vector<96x128xf32>
    %259 = arith.addf %254, %258 : vector<96x128xf32>
    %c288_216 = arith.constant 288 : index
    %c128_217 = arith.constant 128 : index
    %260 = vector.load %arg11[%c288_216, %c128_217] : memref<384x256xf32, #tpu.memory_space<vmem>>, vector<96x32xf32>
    %c3_218 = arith.constant 3 : index
    %c0_219 = arith.constant 0 : index
    %c0_220 = arith.constant 0 : index
    %261 = vector.load %arg6[%c3_218, %c0_219, %c0_220] : memref<4x32x128xf32, #tpu.memory_space<vmem>>, vector<1x32x128xf32>
    %262 = vector.shape_cast %261 : vector<1x32x128xf32> to vector<32x128xf32>
    %cst_221 = arith.constant dense<0.000000e+00> : vector<96x128xf32>
    %263 = tpu.matmul %260, %262, %cst_221 {dimension_numbers = #tpu.dot_dimension_numbers<[1], [0], [0], [1], [0, 0, 1, 1], [], []>} : vector<96x32xf32>, vector<32x128xf32>, vector<96x128xf32> -> vector<96x128xf32>
    %264 = arith.addf %259, %263 : vector<96x128xf32>
    %265 = arith.negf %264 : vector<96x128xf32>
    %266 = math.exp %265 : vector<96x128xf32>
    %cst_222 = arith.constant 1.000000e+00 : f32
    %267 = vector.broadcast %cst_222 : f32 to vector<96x128xf32>
    %268 = arith.addf %267, %266 : vector<96x128xf32>
    %269 = arith.divf %267, %268 : vector<96x128xf32>
    %c384 = arith.constant 384 : index
    %c0_223 = arith.constant 0 : index
    %270 = vector.load %arg10[%c384, %c0_223] : memref<768x128xf32, #tpu.memory_space<vmem>>, vector<96x128xf32>
    tpu.vector_store %arg10[%c384, %c0_223], %269 {strides = array<i32>} : memref<768x128xf32, #tpu.memory_space<vmem>>, vector<96x128xf32>,
    %c0_224 = arith.constant 0 : index
    %c0_225 = arith.constant 0 : index
    %271 = vector.load %arg7[%c0_224, %c0_225] : memref<96x128xf32, #tpu.memory_space<vmem>>, vector<96x128xf32>
    %c0_226 = arith.constant 0 : index
    %c160_227 = arith.constant 160 : index
    %272 = vector.load %arg11[%c0_226, %c160_227] : memref<384x256xf32, #tpu.memory_space<vmem>>, vector<96x32xf32>
    %c0_228 = arith.constant 0 : index
    %c0_229 = arith.constant 0 : index
    %c0_230 = arith.constant 0 : index
    %273 = vector.load %arg6[%c0_228, %c0_229, %c0_230] : memref<4x32x128xf32, #tpu.memory_space<vmem>>, vector<1x32x128xf32>
    %274 = vector.shape_cast %273 : vector<1x32x128xf32> to vector<32x128xf32>
    %cst_231 = arith.constant dense<0.000000e+00> : vector<96x128xf32>
    %275 = tpu.matmul %272, %274, %cst_231 {dimension_numbers = #tpu.dot_dimension_numbers<[1], [0], [0], [1], [0, 0, 1, 1], [], []>} : vector<96x32xf32>, vector<32x128xf32>, vector<96x128xf32> -> vector<96x128xf32>
    %276 = arith.addf %271, %275 : vector<96x128xf32>
    %c96_232 = arith.constant 96 : index
    %c160_233 = arith.constant 160 : index
    %277 = vector.load %arg11[%c96_232, %c160_233] : memref<384x256xf32, #tpu.memory_space<vmem>>, vector<96x32xf32>
    %c1_234 = arith.constant 1 : index
    %c0_235 = arith.constant 0 : index
    %c0_236 = arith.constant 0 : index
    %278 = vector.load %arg6[%c1_234, %c0_235, %c0_236] : memref<4x32x128xf32, #tpu.memory_space<vmem>>, vector<1x32x128xf32>
    %279 = vector.shape_cast %278 : vector<1x32x128xf32> to vector<32x128xf32>
    %cst_237 = arith.constant dense<0.000000e+00> : vector<96x128xf32>
    %280 = tpu.matmul %277, %279, %cst_237 {dimension_numbers = #tpu.dot_dimension_numbers<[1], [0], [0], [1], [0, 0, 1, 1], [], []>} : vector<96x32xf32>, vector<32x128xf32>, vector<96x128xf32> -> vector<96x128xf32>
    %281 = arith.addf %276, %280 : vector<96x128xf32>
    %c192_238 = arith.constant 192 : index
    %c160_239 = arith.constant 160 : index
    %282 = vector.load %arg11[%c192_238, %c160_239] : memref<384x256xf32, #tpu.memory_space<vmem>>, vector<96x32xf32>
    %c2_240 = arith.constant 2 : index
    %c0_241 = arith.constant 0 : index
    %c0_242 = arith.constant 0 : index
    %283 = vector.load %arg6[%c2_240, %c0_241, %c0_242] : memref<4x32x128xf32, #tpu.memory_space<vmem>>, vector<1x32x128xf32>
    %284 = vector.shape_cast %283 : vector<1x32x128xf32> to vector<32x128xf32>
    %cst_243 = arith.constant dense<0.000000e+00> : vector<96x128xf32>
    %285 = tpu.matmul %282, %284, %cst_243 {dimension_numbers = #tpu.dot_dimension_numbers<[1], [0], [0], [1], [0, 0, 1, 1], [], []>} : vector<96x32xf32>, vector<32x128xf32>, vector<96x128xf32> -> vector<96x128xf32>
    %286 = arith.addf %281, %285 : vector<96x128xf32>
    %c288_244 = arith.constant 288 : index
    %c160_245 = arith.constant 160 : index
    %287 = vector.load %arg11[%c288_244, %c160_245] : memref<384x256xf32, #tpu.memory_space<vmem>>, vector<96x32xf32>
    %c3_246 = arith.constant 3 : index
    %c0_247 = arith.constant 0 : index
    %c0_248 = arith.constant 0 : index
    %288 = vector.load %arg6[%c3_246, %c0_247, %c0_248] : memref<4x32x128xf32, #tpu.memory_space<vmem>>, vector<1x32x128xf32>
    %289 = vector.shape_cast %288 : vector<1x32x128xf32> to vector<32x128xf32>
    %cst_249 = arith.constant dense<0.000000e+00> : vector<96x128xf32>
    %290 = tpu.matmul %287, %289, %cst_249 {dimension_numbers = #tpu.dot_dimension_numbers<[1], [0], [0], [1], [0, 0, 1, 1], [], []>} : vector<96x32xf32>, vector<32x128xf32>, vector<96x128xf32> -> vector<96x128xf32>
    %291 = arith.addf %286, %290 : vector<96x128xf32>
    %292 = arith.negf %291 : vector<96x128xf32>
    %293 = math.exp %292 : vector<96x128xf32>
    %cst_250 = arith.constant 1.000000e+00 : f32
    %294 = vector.broadcast %cst_250 : f32 to vector<96x128xf32>
    %295 = arith.addf %294, %293 : vector<96x128xf32>
    %296 = arith.divf %294, %295 : vector<96x128xf32>
    %c480 = arith.constant 480 : index
    %c0_251 = arith.constant 0 : index
    %297 = vector.load %arg10[%c480, %c0_251] : memref<768x128xf32, #tpu.memory_space<vmem>>, vector<96x128xf32>
    tpu.vector_store %arg10[%c480, %c0_251], %296 {strides = array<i32>} : memref<768x128xf32, #tpu.memory_space<vmem>>, vector<96x128xf32>,
    %c0_252 = arith.constant 0 : index
    %c0_253 = arith.constant 0 : index
    %298 = vector.load %arg7[%c0_252, %c0_253] : memref<96x128xf32, #tpu.memory_space<vmem>>, vector<96x128xf32>
    %c0_254 = arith.constant 0 : index
    %c192_255 = arith.constant 192 : index
    %299 = vector.load %arg11[%c0_254, %c192_255] : memref<384x256xf32, #tpu.memory_space<vmem>>, vector<96x32xf32>
    %c0_256 = arith.constant 0 : index
    %c0_257 = arith.constant 0 : index
    %c0_258 = arith.constant 0 : index
    %300 = vector.load %arg6[%c0_256, %c0_257, %c0_258] : memref<4x32x128xf32, #tpu.memory_space<vmem>>, vector<1x32x128xf32>
    %301 = vector.shape_cast %300 : vector<1x32x128xf32> to vector<32x128xf32>
    %cst_259 = arith.constant dense<0.000000e+00> : vector<96x128xf32>
    %302 = tpu.matmul %299, %301, %cst_259 {dimension_numbers = #tpu.dot_dimension_numbers<[1], [0], [0], [1], [0, 0, 1, 1], [], []>} : vector<96x32xf32>, vector<32x128xf32>, vector<96x128xf32> -> vector<96x128xf32>
    %303 = arith.addf %298, %302 : vector<96x128xf32>
    %c96_260 = arith.constant 96 : index
    %c192_261 = arith.constant 192 : index
    %304 = vector.load %arg11[%c96_260, %c192_261] : memref<384x256xf32, #tpu.memory_space<vmem>>, vector<96x32xf32>
    %c1_262 = arith.constant 1 : index
    %c0_263 = arith.constant 0 : index
    %c0_264 = arith.constant 0 : index
    %305 = vector.load %arg6[%c1_262, %c0_263, %c0_264] : memref<4x32x128xf32, #tpu.memory_space<vmem>>, vector<1x32x128xf32>
    %306 = vector.shape_cast %305 : vector<1x32x128xf32> to vector<32x128xf32>
    %cst_265 = arith.constant dense<0.000000e+00> : vector<96x128xf32>
    %307 = tpu.matmul %304, %306, %cst_265 {dimension_numbers = #tpu.dot_dimension_numbers<[1], [0], [0], [1], [0, 0, 1, 1], [], []>} : vector<96x32xf32>, vector<32x128xf32>, vector<96x128xf32> -> vector<96x128xf32>
    %308 = arith.addf %303, %307 : vector<96x128xf32>
    %c192_266 = arith.constant 192 : index
    %c192_267 = arith.constant 192 : index
    %309 = vector.load %arg11[%c192_266, %c192_267] : memref<384x256xf32, #tpu.memory_space<vmem>>, vector<96x32xf32>
    %c2_268 = arith.constant 2 : index
    %c0_269 = arith.constant 0 : index
    %c0_270 = arith.constant 0 : index
    %310 = vector.load %arg6[%c2_268, %c0_269, %c0_270] : memref<4x32x128xf32, #tpu.memory_space<vmem>>, vector<1x32x128xf32>
    %311 = vector.shape_cast %310 : vector<1x32x128xf32> to vector<32x128xf32>
    %cst_271 = arith.constant dense<0.000000e+00> : vector<96x128xf32>
    %312 = tpu.matmul %309, %311, %cst_271 {dimension_numbers = #tpu.dot_dimension_numbers<[1], [0], [0], [1], [0, 0, 1, 1], [], []>} : vector<96x32xf32>, vector<32x128xf32>, vector<96x128xf32> -> vector<96x128xf32>
    %313 = arith.addf %308, %312 : vector<96x128xf32>
    %c288_272 = arith.constant 288 : index
    %c192_273 = arith.constant 192 : index
    %314 = vector.load %arg11[%c288_272, %c192_273] : memref<384x256xf32, #tpu.memory_space<vmem>>, vector<96x32xf32>
    %c3_274 = arith.constant 3 : index
    %c0_275 = arith.constant 0 : index
    %c0_276 = arith.constant 0 : index
    %315 = vector.load %arg6[%c3_274, %c0_275, %c0_276] : memref<4x32x128xf32, #tpu.memory_space<vmem>>, vector<1x32x128xf32>
    %316 = vector.shape_cast %315 : vector<1x32x128xf32> to vector<32x128xf32>
    %cst_277 = arith.constant dense<0.000000e+00> : vector<96x128xf32>
    %317 = tpu.matmul %314, %316, %cst_277 {dimension_numbers = #tpu.dot_dimension_numbers<[1], [0], [0], [1], [0, 0, 1, 1], [], []>} : vector<96x32xf32>, vector<32x128xf32>, vector<96x128xf32> -> vector<96x128xf32>
    %318 = arith.addf %313, %317 : vector<96x128xf32>
    %319 = arith.negf %318 : vector<96x128xf32>
    %320 = math.exp %319 : vector<96x128xf32>
    %cst_278 = arith.constant 1.000000e+00 : f32
    %321 = vector.broadcast %cst_278 : f32 to vector<96x128xf32>
    %322 = arith.addf %321, %320 : vector<96x128xf32>
    %323 = arith.divf %321, %322 : vector<96x128xf32>
    %c576 = arith.constant 576 : index
    %c0_279 = arith.constant 0 : index
    %324 = vector.load %arg10[%c576, %c0_279] : memref<768x128xf32, #tpu.memory_space<vmem>>, vector<96x128xf32>
    tpu.vector_store %arg10[%c576, %c0_279], %323 {strides = array<i32>} : memref<768x128xf32, #tpu.memory_space<vmem>>, vector<96x128xf32>,
    %c0_280 = arith.constant 0 : index
    %c0_281 = arith.constant 0 : index
    %325 = vector.load %arg7[%c0_280, %c0_281] : memref<96x128xf32, #tpu.memory_space<vmem>>, vector<96x128xf32>
    %c0_282 = arith.constant 0 : index
    %c224_283 = arith.constant 224 : index
    %326 = vector.load %arg11[%c0_282, %c224_283] : memref<384x256xf32, #tpu.memory_space<vmem>>, vector<96x32xf32>
    %c0_284 = arith.constant 0 : index
    %c0_285 = arith.constant 0 : index
    %c0_286 = arith.constant 0 : index
    %327 = vector.load %arg6[%c0_284, %c0_285, %c0_286] : memref<4x32x128xf32, #tpu.memory_space<vmem>>, vector<1x32x128xf32>
    %328 = vector.shape_cast %327 : vector<1x32x128xf32> to vector<32x128xf32>
    %cst_287 = arith.constant dense<0.000000e+00> : vector<96x128xf32>
    %329 = tpu.matmul %326, %328, %cst_287 {dimension_numbers = #tpu.dot_dimension_numbers<[1], [0], [0], [1], [0, 0, 1, 1], [], []>} : vector<96x32xf32>, vector<32x128xf32>, vector<96x128xf32> -> vector<96x128xf32>
    %330 = arith.addf %325, %329 : vector<96x128xf32>
    %c96_288 = arith.constant 96 : index
    %c224_289 = arith.constant 224 : index
    %331 = vector.load %arg11[%c96_288, %c224_289] : memref<384x256xf32, #tpu.memory_space<vmem>>, vector<96x32xf32>
    %c1_290 = arith.constant 1 : index
    %c0_291 = arith.constant 0 : index
    %c0_292 = arith.constant 0 : index
    %332 = vector.load %arg6[%c1_290, %c0_291, %c0_292] : memref<4x32x128xf32, #tpu.memory_space<vmem>>, vector<1x32x128xf32>
    %333 = vector.shape_cast %332 : vector<1x32x128xf32> to vector<32x128xf32>
    %cst_293 = arith.constant dense<0.000000e+00> : vector<96x128xf32>
    %334 = tpu.matmul %331, %333, %cst_293 {dimension_numbers = #tpu.dot_dimension_numbers<[1], [0], [0], [1], [0, 0, 1, 1], [], []>} : vector<96x32xf32>, vector<32x128xf32>, vector<96x128xf32> -> vector<96x128xf32>
    %335 = arith.addf %330, %334 : vector<96x128xf32>
    %c192_294 = arith.constant 192 : index
    %c224_295 = arith.constant 224 : index
    %336 = vector.load %arg11[%c192_294, %c224_295] : memref<384x256xf32, #tpu.memory_space<vmem>>, vector<96x32xf32>
    %c2_296 = arith.constant 2 : index
    %c0_297 = arith.constant 0 : index
    %c0_298 = arith.constant 0 : index
    %337 = vector.load %arg6[%c2_296, %c0_297, %c0_298] : memref<4x32x128xf32, #tpu.memory_space<vmem>>, vector<1x32x128xf32>
    %338 = vector.shape_cast %337 : vector<1x32x128xf32> to vector<32x128xf32>
    %cst_299 = arith.constant dense<0.000000e+00> : vector<96x128xf32>
    %339 = tpu.matmul %336, %338, %cst_299 {dimension_numbers = #tpu.dot_dimension_numbers<[1], [0], [0], [1], [0, 0, 1, 1], [], []>} : vector<96x32xf32>, vector<32x128xf32>, vector<96x128xf32> -> vector<96x128xf32>
    %340 = arith.addf %335, %339 : vector<96x128xf32>
    %c288_300 = arith.constant 288 : index
    %c224_301 = arith.constant 224 : index
    %341 = vector.load %arg11[%c288_300, %c224_301] : memref<384x256xf32, #tpu.memory_space<vmem>>, vector<96x32xf32>
    %c3_302 = arith.constant 3 : index
    %c0_303 = arith.constant 0 : index
    %c0_304 = arith.constant 0 : index
    %342 = vector.load %arg6[%c3_302, %c0_303, %c0_304] : memref<4x32x128xf32, #tpu.memory_space<vmem>>, vector<1x32x128xf32>
    %343 = vector.shape_cast %342 : vector<1x32x128xf32> to vector<32x128xf32>
    %cst_305 = arith.constant dense<0.000000e+00> : vector<96x128xf32>
    %344 = tpu.matmul %341, %343, %cst_305 {dimension_numbers = #tpu.dot_dimension_numbers<[1], [0], [0], [1], [0, 0, 1, 1], [], []>} : vector<96x32xf32>, vector<32x128xf32>, vector<96x128xf32> -> vector<96x128xf32>
    %345 = arith.addf %340, %344 : vector<96x128xf32>
    %346 = arith.negf %345 : vector<96x128xf32>
    %347 = math.exp %346 : vector<96x128xf32>
    %cst_306 = arith.constant 1.000000e+00 : f32
    %348 = vector.broadcast %cst_306 : f32 to vector<96x128xf32>
    %349 = arith.addf %348, %347 : vector<96x128xf32>
    %350 = arith.divf %348, %349 : vector<96x128xf32>
    %c672 = arith.constant 672 : index
    %c0_307 = arith.constant 0 : index
    %351 = vector.load %arg10[%c672, %c0_307] : memref<768x128xf32, #tpu.memory_space<vmem>>, vector<96x128xf32>
    tpu.vector_store %arg10[%c672, %c0_307], %350 {strides = array<i32>} : memref<768x128xf32, #tpu.memory_space<vmem>>, vector<96x128xf32>,
    return
  }
  func.func @transform_0(%arg0: i32) -> (i32, i32, i32) {
    %c0_i32 = arith.constant 0 : i32
    %c0_i32_0 = arith.constant 0 : i32
    %c0_i32_1 = arith.constant 0 : i32
    return %arg0, %c0_i32, %c0_i32_0 : i32, i32, i32
  }
  func.func @transform_1(%arg0: i32) -> (i32, i32) {
    %c0_i32 = arith.constant 0 : i32
    %c0_i32_0 = arith.constant 0 : i32
    %c0_i32_1 = arith.constant 0 : i32
    return %c0_i32, %c0_i32_0 : i32, i32
  }
  func.func @transform_2(%arg0: i32) -> (i32, i32) {
    %c0_i32 = arith.constant 0 : i32
    %c0_i32_0 = arith.constant 0 : i32
    %c0_i32_1 = arith.constant 0 : i32
    return %c0_i32, %c0_i32_0 : i32, i32
  }
  func.func @transform_3(%arg0: i32) -> (i32, i32, i32) {
    %c0_i32 = arith.constant 0 : i32
    %c0_i32_0 = arith.constant 0 : i32
    %c0_i32_1 = arith.constant 0 : i32
    %c0_i32_2 = arith.constant 0 : i32
    return %c0_i32, %c0_i32_0, %c0_i32_1 : i32, i32, i32
  }
  func.func @transform_4(%arg0: i32) -> (i32, i32) {
    %c0_i32 = arith.constant 0 : i32
    %c0_i32_0 = arith.constant 0 : i32
    %c0_i32_1 = arith.constant 0 : i32
    return %c0_i32, %c0_i32_0 : i32, i32
  }
  func.func @transform_5(%arg0: i32) -> (i32, i32, i32) {
    %c0_i32 = arith.constant 0 : i32
    %c0_i32_0 = arith.constant 0 : i32
    %c0_i32_1 = arith.constant 0 : i32
    %c0_i32_2 = arith.constant 0 : i32
    return %c0_i32, %c0_i32_0, %c0_i32_1 : i32, i32, i32
  }
  func.func @transform_6(%arg0: i32) -> (i32, i32) {
    %c0_i32 = arith.constant 0 : i32
    %c0_i32_0 = arith.constant 0 : i32
    %c0_i32_1 = arith.constant 0 : i32
    return %c0_i32, %c0_i32_0 : i32, i32
  }
  func.func @transform_7(%arg0: i32) -> (i32, i32) {
    %c0_i32 = arith.constant 0 : i32
    %c0_i32_0 = arith.constant 0 : i32
    %c0_i32_1 = arith.constant 0 : i32
    return %c0_i32, %c0_i32_0 : i32, i32
  }
  func.func @transform_8(%arg0: i32) -> (i32, i32) {
    %c0_i32 = arith.constant 0 : i32
    %c0_i32_0 = arith.constant 0 : i32
    %c0_i32_1 = arith.constant 0 : i32
    return %c0_i32, %c0_i32_0 : i32, i32
  }
  func.func @transform_9(%arg0: i32) -> (i32, i32) {
    %c0_i32 = arith.constant 0 : i32
    %c0_i32_0 = arith.constant 0 : i32
    return %arg0, %c0_i32 : i32, i32
  }
}

</mosaic_0001>

<bundles_post_ra>
// kernel: conv_decoder_forward.1
= control target key start
LH: loop header
LB: loop body
LE: loop exit
PB: predicated region body
PF: predicated region fallthrough
CT: control target
= control target key end

     0   :  { %vm38_vm0 = vcmask 64512   ;;  %v19406_v0 = vmov 0.0   ;;  %vm15068_vm1 = vmmov 0   ;;  %vm35_vm2 = vcmask 1041408   ;;  %s15071_s11 = smov 96   ;;  %s15072_s12 = smov 32   ;;  %s19396_s7 = inlined_call_operand.vmem [shape: f32[8,128], index: 7, kind: input, shape index: {}]   ;;  %s19397_s0 = inlined_call_operand.vmem [shape: f32[1,18,8], index: 0, kind: input, shape index: {}]   ;;  %s19398_s1 = inlined_call_operand.vmem [shape: f32[65,304], index: 1, kind: input, shape index: {}]   ;;  %s19399_s8 = inlined_call_operand.vmem [shape: f32[16,128], index: 8, kind: input, shape index: {}]   ;;  %s19400_s2 = inlined_call_operand.vmem [shape: f32[1024,65], index: 2, kind: input, shape index: {}]   ;;  %s19401_s3 = inlined_call_operand.vmem [shape: f32[2,128,256], index: 3, kind: input, shape index: {}]   ;;  %s19402_s4 = inlined_call_operand.vmem [shape: f32[96,128], index: 4, kind: input, shape index: {}]   ;;  %s19403_s5 = inlined_call_operand.vmem [shape: f32[4,32,128], index: 5, kind: input, shape index: {}]   ;;  %s19404_s6 = inlined_call_operand.vmem [shape: f32[96,128], index: 6, kind: input, shape index: {}]   ;;  %s19405_s9 = inlined_call_operand.vmem [shape: f32[768,128], index: 9, kind: output, shape index: {}]  }
   0x1   :  { %12543 = vmatprep.subr.mxu0 %v19406_v0  ;;  %v37_v1 = vld [vmem:[%s19396_s7] sm:$0xff]  ;;  %12545 = vmatprep.mubr.msk.f32.mxu0 %vm15068_vm1, %v19406_v0  ;;  %v33_v3 = vld [vmem:[%s19397_s0 + $0x8] sm:$0xff]  ;;  %v34_v4 = vld [vmem:[%s19397_s0 + $0x10] sm:$0x3]  ;;  %v15069_v6 = vmov 0.0|0.0   ;;  %v135_v10 = vlaneseq  ;;  %vm414_vm3 = vcmask 392192  }
   0x2   :  { %v32_v2 = vld [vmem:[%s19397_s0] sm:$0xff]  ;;  %12544 = vmatpush3.msra.mxu0 %v37_v1  ;;  %v36_v5 = vsel %vm35_vm2, %v34_v4, 1.0  ;;  %v388_v7 = vld [vmem:[%s19398_s1 + $0x8] sm:$0xff]  ;;  %v15070_v8 = vmov 1966171168   ;;  %vm790_vm4 = vcmask 531456  }
   0x3   :  { %12546 = vmatmul.mubr.msk.f32.vlgmr.msra.gmra.mrb[0].mxu0 %vm38_vm0, %v32_v2  ;;  %13667 = vmatprep.subr.bf16.mxu0 %v15069_v6  ;;  %v133_v9 = vunpack.c.l.s4 %v15070_v8  ;;  %v136_v12 = vshrl.u32 %v135_v10, 7  ;;  %v15166_v30 = vld [vmem:[%s19399_s8] sm:$0xff]  ;;  %v15171_v31 = vld [vmem:[%s19399_s8 + $0x8] sm:$0xff]  ;;  %vm1175_vm5 = vcmask 1040384   ;;  %s15073_s13 = smov 64   ;;  %vm3695_vm6 = vcmask 261120  }
   0x4   :  { %12548 = vmatprep.mubr.msk.f32.mxu0 %vm15068_vm1, %v19406_v0  ;;  %506 = vmatprep.mubr.f32.mxu1 %v388_v7 }
   0x5   :  { %v134_v11 = vunpack.c.0.s8 %v133_v9  ;;  %v15155_v18 = vsub.s32 0, %v136_v12 }
   0x7   :  { %12549 = vmatmul.mubr.msk.f32.gmra.mrb[2].mxu0 %vm38_vm0, %v33_v3  ;;  %v15152_v13 = vsub.s32 %v134_v11, %v136_v12 }
   0x8   :  { %12551 = vmatprep.mubr.msk.f32.mxu0 %vm15068_vm1, %v19406_v0 }
   0xb   :  { %12552 = vmatmul.mubr.msk.f32.gmra.mrb[4].mxu0 %vm38_vm0, %v36_v5 }
   0xc   :  { %12566 = vmatprep.mubr.msk.f32.mxu0 %vm15068_vm1, %v19406_v0 }
  0xd6   :  { %v114_v14 = vpop.f32.mrb[0].mxu0 }
  0xd7   :  { %v138_v15 = vrot.slane %v114_v14, %v15152_v13  ;;  %v12547_v16 = vpop.f32.mrb[1].mxu0  ;;  %v131_v21 = vcombine.high %v114_v14, %v114_v14 }
  0xd9   :  { %v146_v17 = vcombine.high %v138_v15, %v138_v15  ;;  %v154_v19 = vrot.slane %v138_v15, %v15152_v13  ;;  %v15174_v33 = vrot.slane %v131_v21, %v15152_v13 }
  0xda   :  { %v119_v20 = vpop.f32.mrb[2].mxu0 }
  0xdb   :  { %v168_v22 = vrot.slane %v146_v17, %v15152_v13  ;;  %v180_v23 = vcombine.high %v119_v20, %v119_v20  ;;  %v12550_v24 = vpop.f32.mrb[3].mxu0  ;;  %v187_v25 = vrot.slane %v119_v20, %v15152_v13  ;;  %v257_v27 = vrot.slane %v154_v19, %v15155_v18 }
  0xdc   :  { %v176_v34 = vcombine.high %v154_v19, %v154_v19  ;;  %v147_v2 = vcombine.high %v15174_v33, %v15174_v33  ;;  %v161_v3 = vrot.slane %v15174_v33, %v15152_v13 }
  0xdd   :  { %v194_v26 = vrot.slane %v180_v23, %v15152_v13  ;;  %v195_v28 = vcombine.high %v187_v25, %v187_v25  ;;  %v203_v29 = vrot.slane %v187_v25, %v15152_v13  ;;  %v261_v35 = vrot.slane %v168_v22, %v15155_v18 }
  0xde   :  { %v124_v32 = vpop.f32.mrb[4].mxu0  ;;  %v178_v40 = vcombine.high %v168_v22, %v168_v22  ;;  %v349_v42 = vmul.f32 %v257_v27, %v15166_v30  ;;  %v350_v43 = vmul.f32 %v257_v27, %v15171_v31  ;;  %v265_v56 = vrot.slane %v176_v34, %v15155_v18 }
  0xdf   :  { %v12553_v36 = vpop.f32.mrb[5].mxu0  ;;  %v217_v37 = vrot.slane %v195_v28, %v15152_v13  ;;  %v225_v38 = vcombine.high %v203_v29, %v203_v29  ;;  %v289_v39 = vrot.slane %v203_v29, %v15155_v18  ;;  %v196_v41 = vcombine.high %v194_v26, %v194_v26 }
  0xe0   :  { %v235_v44 = vrot.slane %v124_v32, %v15152_v13  ;;  %v15187_v49 = vrot.slane %v194_v26, %v15152_v13  ;;  %v351_v50 = vmul.f32 %v261_v35, %v15166_v30  ;;  %v13637_v57 = vpack.c.bf16 %v350_v43, %v349_v42 }
  0xe1   :  { %v365_v45 = vmul.f32 %v289_v39, %v15166_v30  ;;  %v366_v46 = vmul.f32 %v289_v39, %v15171_v31  ;;  %v293_v47 = vrot.slane %v217_v37, %v15155_v18  ;;  %v297_v48 = vrot.slane %v225_v38, %v15155_v18 }
  0xe2   :  { %v236_v51 = vcombine.high %v235_v44, %v235_v44  ;;  %v243_v52 = vrot.slane %v235_v44, %v15152_v13  ;;  %v352_v58 = vmul.f32 %v261_v35, %v15171_v31  ;;  %v227_v1 = vcombine.high %v217_v37, %v217_v37 }
  0xe3   :  { %v13635_v53 = vpack.c.bf16 %v366_v46, %v365_v45  ;;  %v367_v54 = vmul.f32 %v293_v47, %v15166_v30  ;;  %v368_v55 = vmul.f32 %v293_v47, %v15171_v31  ;;  %v369_v62 = vmul.f32 %v297_v48, %v15166_v30 }
  0xe4   :  { %v250_v59 = vrot.slane %v236_v51, %v15152_v13  ;;  %v321_v60 = vrot.slane %v243_v52, %v15155_v18  ;;  %v370_v63 = vmul.f32 %v297_v48, %v15171_v31  ;;  %v251_v4 = vcombine.high %v243_v52, %v243_v52 }
  0xe5   :  { %13636 = vmatprep.subr.bf16.mxu1 %v13635_v53  ;;  %v13639_v61 = vpack.c.bf16 %v368_v55, %v367_v54  ;;  %v269_v5 = vrot.slane %v178_v40, %v15155_v18  ;;  %v353_v8 = vmul.f32 %v265_v56, %v15166_v30  ;;  %v354_v9 = vmul.f32 %v265_v56, %v15171_v31  ;;  %v389_v55 = vld [vmem:[%s19398_s1 + $0x10] sm:$0xff] }
  0xe6   :  { %13638 = vmatpush3.bf16.msra.mxu1 %v13637_v57  ;;  %v325_v7 = vrot.slane %v250_v59, %v15155_v18  ;;  %v301_v10 = vrot.slane %v227_v1, %v15155_v18  ;;  %v13641_v11 = vpack.c.bf16 %v352_v58, %v351_v50  ;;  %v305_v12 = vrot.slane %v15187_v49, %v15155_v18 }
  0xe7   :  { %13640 = vmatprep.subr.bf16.mxu1 %v13639_v61  ;;  %v381_v14 = vmul.f32 %v321_v60, %v15166_v30  ;;  %v382_v15 = vmul.f32 %v321_v60, %v15171_v31  ;;  %v13643_v16 = vpack.c.bf16 %v370_v63, %v369_v62  ;;  %v224_v20 = vrot.slane %v196_v41, %v15152_v13  ;;  %v392_v63 = vld [vmem:[%s19398_s1 + $0x28] sm:$0xff] }
  0xe8   :  { %v371_v17 = vmul.f32 %v301_v10, %v15166_v30  ;;  %v372_v19 = vmul.f32 %v301_v10, %v15171_v31  ;;  %v329_v21 = vrot.slane %v251_v4, %v15155_v18  ;;  %v273_v22 = vrot.slane %v161_v3, %v15155_v18  ;;  %v391_v10 = vld [vmem:[%s19398_s1 + $0x20] sm:$0xff] }
  0xe9   :  { %v13668_v23 = vpack.c.bf16 %v382_v15, %v381_v14  ;;  %v13645_v24 = vpack.c.bf16 %v354_v9, %v353_v8  ;;  %v355_v25 = vmul.f32 %v269_v5, %v15166_v30  ;;  %v356_v26 = vmul.f32 %v269_v5, %v15171_v31  ;;  %v394_v14 = vld [vmem:[%s19398_s1 + $0x38] sm:$0xff]  ;;  %v404_v15 = vld [vmem:[%s19398_s1 + $0x88] sm:$0xff] }
  0xea   :  { %13642 = vmatpush3.bf16.msra.mxu1 %v13641_v11  ;;  %v383_v27 = vmul.f32 %v325_v7, %v15166_v30  ;;  %v373_v28 = vmul.f32 %v305_v12, %v15166_v30  ;;  %v374_v29 = vmul.f32 %v305_v12, %v15171_v31  ;;  %v175_v32 = vrot.slane %v147_v2, %v15152_v13  ;;  %v401_v11 = vld [vmem:[%s19398_s1 + $0x70] sm:$0xff]  ;;  %v390_v12 = vld [vmem:[%s19398_s1 + $0x18] sm:$0xff] }
  0xeb   :  { %13644 = vmatprep.subr.bf16.mxu1 %v13643_v16  ;;  %13669 = vmatpush3.bf16.msra.mxu0 %v13668_v23  ;;  %v384_v33 = vmul.f32 %v325_v7, %v15171_v31  ;;  %v13647_v34 = vpack.c.bf16 %v372_v19, %v371_v17  ;;  %v309_v35 = vrot.slane %v224_v20, %v15155_v18  ;;  %v395_v7 = vld [vmem:[%s19398_s1 + $0x40] sm:$0xff]  ;;  %v393_v16 = vld [vmem:[%s19398_s1 + $0x30] sm:$0xff] }
  0xec   :  { %13670 = vmatprep.subr.bf16.mxu0 %v15069_v6  ;;  %v226_v36 = vcombine.high %v15187_v49, %v15187_v49  ;;  %v385_v38 = vmul.f32 %v329_v21, %v15166_v30  ;;  %v13649_v39 = vpack.c.bf16 %v356_v26, %v355_v25  ;;  %v357_v40 = vmul.f32 %v273_v22, %v15166_v30  ;;  %v397_v17 = vld [vmem:[%s19398_s1 + $0x50] sm:$0xff]  ;;  %v407_v19 = vld [vmem:[%s19398_s1 + $0xa0] sm:$0xff]  ;;  %v402_v26 = vld [vmem:[%s19398_s1 + $0x78] sm:$0xff] }
  0xed   :  { %v13671_v37 = vpack.c.bf16 %v384_v33, %v383_v27  ;;  %v358_v13 = vmul.f32 %v273_v22, %v15171_v31  ;;  %v13651_v41 = vpack.c.bf16 %v374_v29, %v373_v28  ;;  %v277_v42 = vrot.slane %v175_v32, %v15155_v18  ;;  %v410_v22 = vld [vmem:[%s19398_s1 + $0xb8] sm:$0xff]  ;;  %v399_v23 = vld [vmem:[%s19398_s1 + $0x60] sm:$0xff]  ;;  %v413_v25 = vld [vmem:[%s19398_s1 + $0xd0] sm:$0x1] }
  0xee   :  { %13646 = vmatpush3.bf16.msra.mxu1 %v13645_v24  ;;  %v177_v43 = vcombine.high %v161_v3, %v161_v3  ;;  %v386_v44 = vmul.f32 %v329_v21, %v15171_v31  ;;  %v375_v45 = vmul.f32 %v309_v35, %v15166_v30  ;;  %v376_v46 = vmul.f32 %v309_v35, %v15171_v31  ;;  %v400_v21 = vld [vmem:[%s19398_s1 + $0x68] sm:$0xff]  ;;  %v403_v24 = vld [vmem:[%s19398_s1 + $0x80] sm:$0xff]  ;;  %v406_v27 = vld [vmem:[%s19398_s1 + $0x98] sm:$0xff] }
  0xef   :  { %13648 = vmatprep.subr.bf16.mxu1 %v13647_v34  ;;  %13672 = vmatpush3.bf16.msra.mxu0 %v13671_v37  ;;  %v313_v47 = vrot.slane %v226_v36, %v15155_v18  ;;  %v228_v48 = vcombine.high %v224_v20, %v224_v20  ;;  %v13653_v50 = vpack.c.bf16 %v358_v13, %v357_v40  ;;  %v396_v20 = vld [vmem:[%s19398_s1 + $0x48] sm:$0xff]  ;;  %v405_v28 = vld [vmem:[%s19398_s1 + $0x90] sm:$0xff]  ;;  %v411_v34 = vld [vmem:[%s19398_s1 + $0xc0] sm:$0x1] }
  0xf0   :  { %13673 = vmatprep.subr.bf16.mxu0 %v15069_v6  ;;  %v13674_v49 = vpack.c.bf16 %v386_v44, %v385_v38  ;;  %v359_v51 = vmul.f32 %v277_v42, %v15166_v30  ;;  %v360_v52 = vmul.f32 %v277_v42, %v15171_v31  ;;  %v281_v53 = vrot.slane %v177_v43, %v15155_v18  ;;  %v409_v29 = vld [vmem:[%s19398_s1 + $0xb0] sm:$0xff]  ;;  %v412_v33 = vld [vmem:[%s19398_s1 + $0xc8] sm:$0x1]  ;;  %v662_v35 = vld [vmem:[%s19400_s2] sm:$0xff] }
  0xf1   :  { %v179_v54 = vcombine.high %v175_v32, %v175_v32  ;;  %v13655_v56 = vpack.c.bf16 %v376_v46, %v375_v45  ;;  %v377_v6 = vmul.f32 %v313_v47, %v15166_v30  ;;  %v378_v57 = vmul.f32 %v313_v47, %v15171_v31  ;;  %v408_v32 = vld [vmem:[%s19398_s1 + $0xa8] sm:$0xff] }
  0xf2   :  { %13650 = vmatpush3.bf16.msra.mxu1 %v13649_v39  ;;  %v317_v58 = vrot.slane %v228_v48, %v15155_v18  ;;  %v13657_v59 = vpack.c.bf16 %v360_v52, %v359_v51  ;;  %v361_v60 = vmul.f32 %v281_v53, %v15166_v30  ;;  %v362_v61 = vmul.f32 %v281_v53, %v15171_v31 }
  0xf3   :  { %13652 = vmatprep.subr.bf16.mxu1 %v13651_v41  ;;  %13675 = vmatpush3.bf16.msra.mxu0 %v13674_v49  ;;  %v285_v62 = vrot.slane %v179_v54, %v15155_v18  ;;  %v13659_v1 = vpack.c.bf16 %v378_v57, %v377_v6 }
  0xf4   :  { %v379_v2 = vmul.f32 %v317_v58, %v15166_v30  ;;  %v380_v3 = vmul.f32 %v317_v58, %v15171_v31  ;;  %v13661_v4 = vpack.c.bf16 %v362_v61, %v361_v60 }
  0xf5   :  { %v363_v5 = vmul.f32 %v285_v62, %v15166_v30  ;;  %v364_v18 = vmul.f32 %v285_v62, %v15171_v31  ;;  %v398_v30 = vld [vmem:[%s19398_s1 + $0x58] sm:$0xff]  ;;  %v387_v31 = vld [vmem:[%s19398_s1] sm:$0xff] }
  0xf6   :  { %13654 = vmatpush3.bf16.msra.mxu1 %v13653_v50  ;;  %12567 = vmatmul.mubr.msk.f32.vlgmr.msra.gmra.mrb[6].mxu0 %vm414_vm3, %v389_v55  ;;  %v13663_v8 = vpack.c.bf16 %v380_v3, %v379_v2 }
  0xf7   :  { %13656 = vmatprep.subr.bf16.mxu1 %v13655_v56  ;;  %12569 = vmatprep.mubr.msk.f32.mxu0 %vm15068_vm1, %v19406_v0  ;;  %v13665_v9 = vpack.c.bf16 %v364_v18, %v363_v5 }
  0xfa   :  { %13658 = vmatpush3.bf16.msra.mxu1 %v13657_v59  ;;  %12570 = vmatmul.mubr.msk.f32.gmra.mrb[8].mxu0 %vm414_vm3, %v392_v63 }
  0xfb   :  { %13660 = vmatprep.subr.bf16.mxu1 %v13659_v1  ;;  %12572 = vmatprep.mubr.msk.f32.mxu0 %vm15068_vm1, %v19406_v0 }
  0xfe   :  { %13662 = vmatpush3.bf16.msra.mxu1 %v13661_v4  ;;  %12573 = vmatmul.mubr.msk.f32.gmra.mrb[10].mxu0 %vm414_vm3, %v395_v7 }
  0xff   :  { %13664 = vmatprep.subr.bf16.mxu1 %v13663_v8  ;;  %12575 = vmatprep.mubr.msk.f32.mxu0 %vm15068_vm1, %v19406_v0 }
 0x102   :  { %13666 = vmatpush3.bf16.msra.mxu1 %v13665_v9  ;;  %12576 = vmatmul.mubr.msk.f32.gmra.mrb[12].mxu0 %vm414_vm3, %v398_v30 }
 0x103   :  { %12578 = vmatprep.mubr.msk.f32.mxu0 %vm15068_vm1, %v19406_v0 }
 0x105   :  { %507 = vmatmul.mubr.f32.vlgmr.msra.gmra.mrb[0].mxu1 %v387_v31 }
 0x106   :  { %511 = vmatprep.mubr.f32.mxu1 %v391_v10  ;;  %12579 = vmatmul.mubr.msk.f32.gmra.mrb[14].mxu0 %vm414_vm3, %v401_v11 }
 0x107   :  { %12581 = vmatprep.mubr.msk.f32.mxu0 %vm15068_vm1, %v19406_v0 }
 0x109   :  { %512 = vmatmul.mubr.f32.gmra.mrb[2].mxu1 %v390_v12 }
 0x10a   :  { %516 = vmatprep.mubr.f32.mxu1 %v394_v14  ;;  %12582 = vmatmul.mubr.msk.f32.gmra.mrb[16].mxu0 %vm414_vm3, %v404_v15 }
 0x10b   :  { %12584 = vmatprep.mubr.msk.f32.mxu0 %vm15068_vm1, %v19406_v0 }
 0x10d   :  { %517 = vmatmul.mubr.f32.gmra.mrb[4].mxu1 %v393_v16 }
 0x10e   :  { %521 = vmatprep.mubr.f32.mxu1 %v397_v17  ;;  %12585 = vmatmul.mubr.msk.f32.gmra.mrb[18].mxu0 %vm414_vm3, %v407_v19 }
 0x10f   :  { %12587 = vmatprep.mubr.msk.f32.mxu0 %vm15068_vm1, %v19406_v0 }
 0x111   :  { %522 = vmatmul.mubr.f32.gmra.mrb[6].mxu1 %v396_v20 }
 0x112   :  { %526 = vmatprep.mubr.f32.mxu1 %v400_v21  ;;  %12588 = vmatmul.mubr.msk.f32.gmra.mrb[20].mxu0 %vm414_vm3, %v410_v22 }
 0x113   :  { %12590 = vmatprep.mubr.msk.f32.mxu0 %vm15068_vm1, %v19406_v0 }
 0x115   :  { %527 = vmatmul.mubr.f32.gmra.mrb[8].mxu1 %v399_v23 }
 0x116   :  { %531 = vmatprep.mubr.f32.mxu1 %v403_v24  ;;  %12591 = vmatmul.mubr.msk.f32.gmra.mrb[22].mxu0 %vm414_vm3, %v413_v25 }
 0x117   :  { %12611 = vmatprep.mubr.msk.f32.mxu0 %vm790_vm4, %v662_v35  ;;  %v667_v35 = vld [vmem:[%s19400_s2 + $0x28] sm:$0xff] }
 0x119   :  { %532 = vmatmul.mubr.f32.gmra.mrb[10].mxu1 %v402_v26 }
 0x11a   :  { %536 = vmatprep.mubr.f32.mxu1 %v406_v27 }
 0x11d   :  { %537 = vmatmul.mubr.f32.gmra.mrb[12].mxu1 %v405_v28 }
 0x11e   :  { %541 = vmatprep.mubr.f32.mxu1 %v409_v29  ;;  %v663_v29 = vld [vmem:[%s19400_s2 + $0x8] sm:$0xff] }
 0x121   :  { %542 = vmatmul.mubr.f32.gmra.mrb[14].mxu1 %v408_v32  ;;  %v664_v32 = vld [vmem:[%s19400_s2 + $0x10] sm:$0xff] }
 0x122   :  { %546 = vmatprep.mubr.f32.mxu1 %v412_v33  ;;  %v665_v33 = vld [vmem:[%s19400_s2 + $0x18] sm:$0xff] }
 0x125   :  { %547 = vmatmul.mubr.f32.gmra.mrb[16].mxu1 %v411_v34  ;;  %v666_v34 = vld [vmem:[%s19400_s2 + $0x20] sm:$0xff] }
 0x126   :  { %2073 = vmatprep.mubr.f32.mxu1 %v19406_v0 }
 0x1c9   :  { %v618_v36 = vpop.f32.mrb[6].mxu0 }
 0x1ca   :  { %v12568_v37 = vpop.f32.mrb[7].mxu0 }
 0x1cb   :  { %v669_v37 = vld [vmem:[%s19400_s2 + $0x38] sm:$0xff] }
 0x1cd   :  { %v623_v38 = vpop.f32.mrb[8].mxu0 }
 0x1ce   :  { %v12571_v39 = vpop.f32.mrb[9].mxu0 }
 0x1cf   :  { %v671_v39 = vld [vmem:[%s19400_s2 + $0x48] sm:$0xff] }
 0x1d1   :  { %v628_v40 = vpop.f32.mrb[10].mxu0 }
 0x1d2   :  { %v12574_v13 = vpop.f32.mrb[11].mxu0 }
 0x1d3   :  { %v673_v13 = vld [vmem:[%s19400_s2 + $0x58] sm:$0xff] }
 0x1d5   :  { %v633_v41 = vpop.f32.mrb[12].mxu0 }
 0x1d6   :  { %v12577_v42 = vpop.f32.mrb[13].mxu0 }
 0x1d7   :  { %v675_v42 = vld [vmem:[%s19400_s2 + $0x68] sm:$0xff] }
 0x1d8   :  { %v11852_v43 = vpop.f32.mrb[0].mxu1 }
 0x1d9   :  { %v11853_v44 = vpop.f32.mrb[1].mxu1  ;;  %v638_v46 = vpop.f32.mrb[14].mxu0 }
 0x1da   :  { %v11854_v45 = vadd.f32 %v11853_v44, %v11852_v43  ;;  %v12580_v47 = vpop.f32.mrb[15].mxu0  ;;  %v676_v43 = vld [vmem:[%s19400_s2 + $0x70] sm:$0xff]  ;;  %v677_v44 = vld [vmem:[%s19400_s2 + $0x78] sm:$0xff] }
 0x1db   :  { %v680_v47 = vld [vmem:[%s19400_s2 + $0x90] sm:$0xff] }
 0x1dc   :  { %v619_v48 = vadd.f32 %v11854_v45, %v618_v36  ;;  %v11855_v49 = vpop.f32.mrb[2].mxu1  ;;  %v668_v36 = vld [vmem:[%s19400_s2 + $0x30] sm:$0xff]  ;;  %v678_v45 = vld [vmem:[%s19400_s2 + $0x80] sm:$0xff] }
 0x1dd   :  { %v11856_v50 = vpop.f32.mrb[3].mxu1  ;;  %v643_v52 = vpop.f32.mrb[16].mxu0 }
 0x1de   :  { %v11857_v51 = vadd.f32 %v11856_v50, %v11855_v49  ;;  %v12583_v53 = vpop.f32.mrb[17].mxu0  ;;  %v682_v49 = vld [vmem:[%s19400_s2 + $0xa0] sm:$0xff]  ;;  %v683_v50 = vld [vmem:[%s19400_s2 + $0xa8] sm:$0xff] }
 0x1df   :  { %v686_v53 = vld [vmem:[%s19400_s2 + $0xc0] sm:$0xff] }
 0x1e0   :  { %v624_v54 = vadd.f32 %v11857_v51, %v623_v38  ;;  %v11858_v55 = vpop.f32.mrb[4].mxu1  ;;  %v670_v38 = vld [vmem:[%s19400_s2 + $0x40] sm:$0xff]  ;;  %v684_v51 = vld [vmem:[%s19400_s2 + $0xb0] sm:$0xff] }
 0x1e1   :  { %v11859_v56 = vpop.f32.mrb[5].mxu1  ;;  %v648_v58 = vpop.f32.mrb[18].mxu0 }
 0x1e2   :  { %v11860_v6 = vadd.f32 %v11859_v56, %v11858_v55  ;;  %v13676_v57 = vpack.c.bf16 %v624_v54, %v619_v48  ;;  %v12586_v59 = vpop.f32.mrb[19].mxu0  ;;  %v681_v48 = vld [vmem:[%s19400_s2 + $0x98] sm:$0xff]  ;;  %v687_v54 = vld [vmem:[%s19400_s2 + $0xc8] sm:$0xff]  ;;  %v688_v55 = vld [vmem:[%s19400_s2 + $0xd0] sm:$0xff] }
 0x1e3   :  { %v689_v56 = vld [vmem:[%s19400_s2 + $0xd8] sm:$0xff] }
 0x1e4   :  { %v629_v60 = vadd.f32 %v11860_v6, %v628_v40  ;;  %v11861_v61 = vpop.f32.mrb[6].mxu1  ;;  %13677 = vmatprep.subr.bf16.mxu0 %v13676_v57  ;;  %v672_v40 = vld [vmem:[%s19400_s2 + $0x50] sm:$0xff]  ;;  %v690_v6 = vld [vmem:[%s19400_s2 + $0xe0] sm:$0xff]  ;;  %v693_v59 = vld [vmem:[%s19400_s2 + $0xf8] sm:$0xff] }
 0x1e5   :  { %v11862_v62 = vpop.f32.mrb[7].mxu1  ;;  %13679 = vmatpush3.bf16.msra.mxu0 %v13676_v57  ;;  %v653_v1 = vpop.f32.mrb[20].mxu0  ;;  %v691_v57 = vld [vmem:[%s19400_s2 + $0xe8] sm:$0xff] }
 0x1e6   :  { %v11863_v63 = vadd.f32 %v11862_v62, %v11861_v61  ;;  %v12589_v2 = vpop.f32.mrb[21].mxu0  ;;  %v695_v61 = vld [vmem:[%s19400_s2 + $0x108] sm:$0xff]  ;;  %v696_v62 = vld [vmem:[%s19400_s2 + $0x110] sm:$0xff] }
 0x1e7   :  { %v699_v2 = vld [vmem:[%s19400_s2 + $0x128] sm:$0xff] }
 0x1e8   :  { %v11864_v3 = vpop.f32.mrb[8].mxu1  ;;  %v634_v4 = vadd.f32 %v11863_v63, %v633_v41  ;;  %v674_v41 = vld [vmem:[%s19400_s2 + $0x60] sm:$0xff]  ;;  %v697_v63 = vld [vmem:[%s19400_s2 + $0x118] sm:$0xff] }
 0x1e9   :  { %v11865_v5 = vpop.f32.mrb[9].mxu1  ;;  %v658_v8 = vpop.f32.mrb[22].mxu0 }
 0x1ea   :  { %v11866_v18 = vadd.f32 %v11865_v5, %v11864_v3  ;;  %v13680_v7 = vpack.c.bf16 %v634_v4, %v629_v60  ;;  %v12592_v9 = vpop.f32.mrb[23].mxu0  ;;  %v694_v60 = vld [vmem:[%s19400_s2 + $0x100] sm:$0xff]  ;;  %v700_v3 = vld [vmem:[%s19400_s2 + $0x130] sm:$0xff]  ;;  %v701_v4 = vld [vmem:[%s19400_s2 + $0x138] sm:$0xff] }
 0x1eb   :  { %v702_v5 = vld [vmem:[%s19400_s2 + $0x140] sm:$0xff] }
 0x1ec   :  { %v11867_v30 = vpop.f32.mrb[10].mxu1  ;;  %13681 = vmatprep.subr.bf16.mxu0 %v13680_v7  ;;  %v639_v31 = vadd.f32 %v11866_v18, %v638_v46  ;;  %v679_v46 = vld [vmem:[%s19400_s2 + $0x88] sm:$0xff]  ;;  %v706_v9 = vld [vmem:[%s19400_s2 + $0x160] sm:$0xff] }
 0x1ed   :  { %v11868_v10 = vpop.f32.mrb[11].mxu1  ;;  %13683 = vmatpush3.bf16.msra.mxu0 %v13680_v7  ;;  %v703_v18 = vld [vmem:[%s19400_s2 + $0x148] sm:$0xff]  ;;  %v704_v7 = vld [vmem:[%s19400_s2 + $0x150] sm:$0xff] }
 0x1ee   :  { %v11869_v11 = vadd.f32 %v11868_v10, %v11867_v30  ;;  %v707_v30 = vld [vmem:[%s19400_s2 + $0x168] sm:$0xff]  ;;  %v709_v10 = vld [vmem:[%s19400_s2 + $0x178] sm:$0xff] }
 0x1f0   :  { %v11870_v12 = vpop.f32.mrb[12].mxu1  ;;  %v644_v14 = vadd.f32 %v11869_v11, %v643_v52  ;;  %v685_v52 = vld [vmem:[%s19400_s2 + $0xb8] sm:$0xff]  ;;  %v710_v11 = vld [vmem:[%s19400_s2 + $0x180] sm:$0xff] }
 0x1f1   :  { %v11871_v15 = vpop.f32.mrb[13].mxu1 }
 0x1f2   :  { %v11872_v16 = vadd.f32 %v11871_v15, %v11870_v12  ;;  %v13684_v17 = vpack.c.bf16 %v644_v14, %v639_v31  ;;  %v708_v31 = vld [vmem:[%s19400_s2 + $0x170] sm:$0xff]  ;;  %v711_v12 = vld [vmem:[%s19400_s2 + $0x188] sm:$0xff]  ;;  %v713_v15 = vld [vmem:[%s19400_s2 + $0x198] sm:$0xff] }
 0x1f3   :  { %v712_v14 = vld [vmem:[%s19400_s2 + $0x190] sm:$0xff] }
 0x1f4   :  { %v11873_v19 = vpop.f32.mrb[14].mxu1  ;;  %13685 = vmatprep.subr.bf16.mxu0 %v13684_v17  ;;  %v649_v20 = vadd.f32 %v11872_v16, %v648_v58  ;;  %v692_v58 = vld [vmem:[%s19400_s2 + $0xf0] sm:$0xff]  ;;  %v714_v16 = vld [vmem:[%s19400_s2 + $0x1a0] sm:$0xff] }
 0x1f5   :  { %v11874_v21 = vpop.f32.mrb[15].mxu1  ;;  %13687 = vmatpush3.bf16.msra.mxu0 %v13684_v17  ;;  %v715_v17 = vld [vmem:[%s19400_s2 + $0x1a8] sm:$0xff] }
 0x1f6   :  { %v11875_v22 = vadd.f32 %v11874_v21, %v11873_v19  ;;  %v716_v19 = vld [vmem:[%s19400_s2 + $0x1b0] sm:$0xff]  ;;  %v718_v21 = vld [vmem:[%s19400_s2 + $0x1c0] sm:$0xff] }
 0x1f8   :  { %v11876_v23 = vpop.f32.mrb[16].mxu1  ;;  %v654_v24 = vadd.f32 %v11875_v22, %v653_v1  ;;  %v698_v1 = vld [vmem:[%s19400_s2 + $0x120] sm:$0xff]  ;;  %v719_v22 = vld [vmem:[%s19400_s2 + $0x1c8] sm:$0xff] }
 0x1f9   :  { %v11877_v25 = vpop.f32.mrb[17].mxu1 }
 0x1fa   :  { %v11878_v26 = vadd.f32 %v11877_v25, %v11876_v23  ;;  %v13688_v27 = vpack.c.bf16 %v654_v24, %v649_v20  ;;  %v717_v20 = vld [vmem:[%s19400_s2 + $0x1b8] sm:$0xff]  ;;  %v720_v23 = vld [vmem:[%s19400_s2 + $0x1d0] sm:$0xff]  ;;  %v722_v25 = vld [vmem:[%s19400_s2 + $0x1e0] sm:$0xff] }
 0x1fb   :  { %v721_v24 = vld [vmem:[%s19400_s2 + $0x1d8] sm:$0xff] }
 0x1fc   :  { %13689 = vmatprep.subr.bf16.mxu0 %v13688_v27  ;;  %v659_v28 = vadd.f32 %v11878_v26, %v658_v8  ;;  %v705_v8 = vld [vmem:[%s19400_s2 + $0x158] sm:$0xff]  ;;  %v723_v26 = vld [vmem:[%s19400_s2 + $0x1e8] sm:$0xff] }
 0x1fd   :  { %13691 = vmatpush3.bf16.msra.mxu0 %v13688_v27  ;;  %v724_v27 = vld [vmem:[%s19400_s2 + $0x1f0] sm:$0xff] }
 0x1fe   :  { %12609 = vmatprep.subr.msk.mxu0 %vm1175_vm5, %v659_v28 }
 0x201   :  { %12610 = vmatpush3.msk.msra.mxu0 %vm1175_vm5, %v659_v28  ;;  %v725_v28 = vld [vmem:[%s19400_s2 + $0x1f8] sm:$0xff] }
 0x202   :  { %12612 = vmatmul.mubr.msk.f32.vlgmr.msra.gmra.mrb[24].mxu0 %vm790_vm4, %v663_v29  ;;  %v726_v29 = vld [vmem:[%s19400_s2 + $0x200] sm:$0xff] }
 0x203   :  { %12614 = vmatprep.mubr.msk.f32.mxu0 %vm790_vm4, %v664_v32  ;;  %v727_v32 = vld [vmem:[%s19400_s2 + $0x208] sm:$0xff] }
 0x206   :  { %12615 = vmatmul.mubr.msk.f32.gmra.mrb[26].mxu0 %vm790_vm4, %v665_v33  ;;  %v728_v33 = vld [vmem:[%s19400_s2 + $0x210] sm:$0xff] }
 0x207   :  { %12617 = vmatprep.mubr.msk.f32.mxu0 %vm790_vm4, %v666_v34  ;;  %v729_v34 = vld [vmem:[%s19400_s2 + $0x218] sm:$0xff] }
 0x20a   :  { %12618 = vmatmul.mubr.msk.f32.gmra.mrb[28].mxu0 %vm790_vm4, %v667_v35  ;;  %v730_v35 = vld [vmem:[%s19400_s2 + $0x220] sm:$0xff] }
 0x20b   :  { %12620 = vmatprep.mubr.msk.f32.mxu0 %vm790_vm4, %v668_v36  ;;  %v731_v36 = vld [vmem:[%s19400_s2 + $0x228] sm:$0xff] }
 0x20e   :  { %12621 = vmatmul.mubr.msk.f32.gmra.mrb[30].mxu0 %vm790_vm4, %v669_v37  ;;  %v732_v37 = vld [vmem:[%s19400_s2 + $0x230] sm:$0xff] }
 0x20f   :  { %12623 = vmatprep.mubr.msk.f32.mxu0 %vm790_vm4, %v670_v38  ;;  %v733_v38 = vld [vmem:[%s19400_s2 + $0x238] sm:$0xff] }
 0x212   :  { %12624 = vmatmul.mubr.msk.f32.gmra.mrb[32].mxu0 %vm790_vm4, %v671_v39  ;;  %v734_v39 = vld [vmem:[%s19400_s2 + $0x240] sm:$0xff] }
 0x213   :  { %12626 = vmatprep.mubr.msk.f32.mxu0 %vm790_vm4, %v672_v40  ;;  %v735_v40 = vld [vmem:[%s19400_s2 + $0x248] sm:$0xff] }
 0x216   :  { %12627 = vmatmul.mubr.msk.f32.gmra.mrb[34].mxu0 %vm790_vm4, %v673_v13  ;;  %v736_v13 = vld [vmem:[%s19400_s2 + $0x250] sm:$0xff] }
 0x217   :  { %12629 = vmatprep.mubr.msk.f32.mxu0 %vm790_vm4, %v674_v41  ;;  %v737_v41 = vld [vmem:[%s19400_s2 + $0x258] sm:$0xff] }
 0x21a   :  { %12630 = vmatmul.mubr.msk.f32.gmra.mrb[36].mxu0 %vm790_vm4, %v675_v42  ;;  %v738_v42 = vld [vmem:[%s19400_s2 + $0x260] sm:$0xff] }
 0x21b   :  { %12632 = vmatprep.mubr.msk.f32.mxu0 %vm790_vm4, %v676_v43  ;;  %v739_v43 = vld [vmem:[%s19400_s2 + $0x268] sm:$0xff] }
 0x21e   :  { %12633 = vmatmul.mubr.msk.f32.gmra.mrb[38].mxu0 %vm790_vm4, %v677_v44  ;;  %v740_v44 = vld [vmem:[%s19400_s2 + $0x270] sm:$0xff] }
 0x21f   :  { %12635 = vmatprep.mubr.msk.f32.mxu0 %vm790_vm4, %v678_v45  ;;  %v741_v45 = vld [vmem:[%s19400_s2 + $0x278] sm:$0xff] }
 0x222   :  { %12636 = vmatmul.mubr.msk.f32.gmra.mrb[40].mxu0 %vm790_vm4, %v679_v46  ;;  %v742_v46 = vld [vmem:[%s19400_s2 + $0x280] sm:$0xff] }
 0x223   :  { %12638 = vmatprep.mubr.msk.f32.mxu0 %vm790_vm4, %v680_v47  ;;  %v743_v47 = vld [vmem:[%s19400_s2 + $0x288] sm:$0xff] }
 0x226   :  { %12639 = vmatmul.mubr.msk.f32.gmra.mrb[42].mxu0 %vm790_vm4, %v681_v48  ;;  %v744_v48 = vld [vmem:[%s19400_s2 + $0x290] sm:$0xff] }
 0x227   :  { %12641 = vmatprep.mubr.msk.f32.mxu0 %vm790_vm4, %v682_v49  ;;  %v745_v49 = vld [vmem:[%s19400_s2 + $0x298] sm:$0xff] }
 0x22a   :  { %12642 = vmatmul.mubr.msk.f32.gmra.mrb[44].mxu0 %vm790_vm4, %v683_v50  ;;  %v746_v50 = vld [vmem:[%s19400_s2 + $0x2a0] sm:$0xff] }
 0x22b   :  { %12644 = vmatprep.mubr.msk.f32.mxu0 %vm790_vm4, %v684_v51  ;;  %v747_v51 = vld [vmem:[%s19400_s2 + $0x2a8] sm:$0xff] }
 0x22e   :  { %12645 = vmatmul.mubr.msk.f32.gmra.mrb[46].mxu0 %vm790_vm4, %v685_v52  ;;  %v748_v52 = vld [vmem:[%s19400_s2 + $0x2b0] sm:$0xff] }
 0x22f   :  { %12647 = vmatprep.mubr.msk.f32.mxu0 %vm790_vm4, %v686_v53  ;;  %v749_v53 = vld [vmem:[%s19400_s2 + $0x2b8] sm:$0xff] }
 0x232   :  { %12648 = vmatmul.mubr.msk.f32.gmra.mrb[48].mxu0 %vm790_vm4, %v687_v54  ;;  %v750_v54 = vld [vmem:[%s19400_s2 + $0x2c0] sm:$0xff] }
 0x233   :  { %12650 = vmatprep.mubr.msk.f32.mxu0 %vm790_vm4, %v688_v55  ;;  %v751_v55 = vld [vmem:[%s19400_s2 + $0x2c8] sm:$0xff] }
 0x236   :  { %12651 = vmatmul.mubr.msk.f32.gmra.mrb[50].mxu0 %vm790_vm4, %v689_v56  ;;  %v752_v56 = vld [vmem:[%s19400_s2 + $0x2d0] sm:$0xff] }
 0x237   :  { %12653 = vmatprep.mubr.msk.f32.mxu0 %vm790_vm4, %v690_v6  ;;  %v753_v6 = vld [vmem:[%s19400_s2 + $0x2d8] sm:$0xff] }
 0x23a   :  { %12654 = vmatmul.mubr.msk.f32.gmra.mrb[52].mxu0 %vm790_vm4, %v691_v57  ;;  %v11209_v57 = vld [vmem:[%s19401_s3 + $0x108] sm:$0xff] }
 0x23b   :  { %12656 = vmatprep.mubr.msk.f32.mxu0 %vm790_vm4, %v692_v58  ;;  %v11211_v58 = vld [vmem:[%s19401_s3 + $0x118] sm:$0xff] }
 0x23e   :  { %12657 = vmatmul.mubr.msk.f32.gmra.mrb[54].mxu0 %vm790_vm4, %v693_v59  ;;  %v11208_v59 = vld [vmem:[%s19401_s3 + $0x100] sm:$0xff] }
 0x23f   :  { %12659 = vmatprep.mubr.msk.f32.mxu0 %vm790_vm4, %v694_v60  ;;  %v754_v60 = vld [vmem:[%s19400_s2 + $0x2e0] sm:$0xff] }
 0x242   :  { %12660 = vmatmul.mubr.msk.f32.gmra.mrb[56].mxu0 %vm790_vm4, %v695_v61  ;;  %v13692_v61 = vpack.c.bf16 %v11211_v58, %v11209_v57  ;;  %v770_v58 = vld [vmem:[%s19400_s2 + $0x360] sm:$0xff] }
 0x243   :  { %12662 = vmatprep.mubr.msk.f32.mxu0 %vm790_vm4, %v696_v62  ;;  %v11210_v62 = vld [vmem:[%s19401_s3 + $0x110] sm:$0xff] }
 0x244   :  { %13693 = vmatprep.subr.bf16.mxu0 %v13692_v61  ;;  %14140 = vmatprep.subr.bf16.mxu1 %v13692_v61  ;;  %v771_v61 = vld [vmem:[%s19400_s2 + $0x368] sm:$0xff] }
 0x246   :  { %12663 = vmatmul.mubr.msk.f32.gmra.mrb[58].mxu0 %vm790_vm4, %v697_v63  ;;  %v13694_v63 = vpack.c.bf16 %v11210_v62, %v11208_v59  ;;  %v772_v62 = vld [vmem:[%s19400_s2 + $0x370] sm:$0xff] }
 0x247   :  { %12665 = vmatprep.mubr.msk.f32.mxu0 %vm790_vm4, %v698_v1  ;;  %v11213_v1 = vld [vmem:[%s19401_s3 + $0x128] sm:$0xff] }
 0x248   :  { %13695 = vmatpush1.bf16.msra.mxu0 %v13694_v63  ;;  %14148 = vmatpush1.bf16.msra.mxu1 %v13694_v63 }
 0x24a   :  { %12666 = vmatmul.mubr.msk.f32.gmra.mrb[60].mxu0 %vm790_vm4, %v699_v2  ;;  %v11215_v2 = vld [vmem:[%s19401_s3 + $0x138] sm:$0xff] }
 0x24b   :  { %12668 = vmatprep.mubr.msk.f32.mxu0 %vm790_vm4, %v700_v3  ;;  %v11212_v3 = vld [vmem:[%s19401_s3 + $0x120] sm:$0xff] }
 0x24e   :  { %12669 = vmatmul.mubr.msk.f32.gmra.mrb[62].mxu0 %vm790_vm4, %v701_v4  ;;  %v755_v4 = vld [vmem:[%s19400_s2 + $0x2e8] sm:$0xff] }
 0x24f   :  { %12671 = vmatprep.mubr.msk.f32.mxu0 %vm790_vm4, %v702_v5  ;;  %v13696_v5 = vpack.c.bf16 %v11215_v2, %v11213_v1  ;;  %v773_v2 = vld [vmem:[%s19400_s2 + $0x378] sm:$0xff] }
 0x251   :  { %13697 = vmatprep.subr.bf16.mxu0 %v13696_v5  ;;  %14141 = vmatprep.subr.bf16.mxu1 %v13696_v5 }
 0x252   :  { %12672 = vmatmul.mubr.msk.f32.gmra.mrb[64].mxu0 %vm790_vm4, %v703_v18  ;;  %v11214_v18 = vld [vmem:[%s19401_s3 + $0x130] sm:$0xff] }
 0x253   :  { %12674 = vmatprep.mubr.msk.f32.mxu0 %vm790_vm4, %v704_v7  ;;  %v756_v7 = vld [vmem:[%s19400_s2 + $0x2f0] sm:$0xff] }
 0x256   :  { %12675 = vmatmul.mubr.msk.f32.gmra.mrb[66].mxu0 %vm790_vm4, %v705_v8  ;;  %v13698_v8 = vpack.c.bf16 %v11214_v18, %v11212_v3  ;;  %v774_v3 = vld [vmem:[%s19400_s2 + $0x380] sm:$0xff]  ;;  %v775_v18 = vld [vmem:[%s19400_s2 + $0x388] sm:$0xff] }
 0x257   :  { %12677 = vmatprep.mubr.msk.f32.mxu0 %vm790_vm4, %v706_v9  ;;  %v11217_v9 = vld [vmem:[%s19401_s3 + $0x148] sm:$0xff] }
 0x258   :  { %13699 = vmatpush1.bf16.msra.mxu0 %v13698_v8  ;;  %14149 = vmatpush1.bf16.msra.mxu1 %v13698_v8 }
 0x25a   :  { %12678 = vmatmul.mubr.msk.f32.gmra.mrb[68].mxu0 %vm790_vm4, %v707_v30  ;;  %v11219_v30 = vld [vmem:[%s19401_s3 + $0x158] sm:$0xff] }
 0x25b   :  { %12680 = vmatprep.mubr.msk.f32.mxu0 %vm790_vm4, %v708_v31  ;;  %v11216_v31 = vld [vmem:[%s19401_s3 + $0x140] sm:$0xff] }
 0x25e   :  { %12681 = vmatmul.mubr.msk.f32.gmra.mrb[70].mxu0 %vm790_vm4, %v709_v10  ;;  %v757_v10 = vld [vmem:[%s19400_s2 + $0x2f8] sm:$0xff] }
 0x25f   :  { %12683 = vmatprep.mubr.msk.f32.mxu0 %vm790_vm4, %v710_v11  ;;  %v13700_v11 = vpack.c.bf16 %v11219_v30, %v11217_v9  ;;  %v777_v30 = vld [vmem:[%s19400_s2 + $0x398] sm:$0xff] }
 0x261   :  { %13701 = vmatprep.subr.bf16.mxu0 %v13700_v11  ;;  %14142 = vmatprep.subr.bf16.mxu1 %v13700_v11 }
 0x262   :  { %12684 = vmatmul.mubr.msk.f32.gmra.mrb[72].mxu0 %vm790_vm4, %v711_v12  ;;  %v11218_v12 = vld [vmem:[%s19401_s3 + $0x150] sm:$0xff] }
 0x263   :  { %12686 = vmatprep.mubr.msk.f32.mxu0 %vm790_vm4, %v712_v14  ;;  %v758_v14 = vld [vmem:[%s19400_s2 + $0x300] sm:$0xff] }
 0x266   :  { %12687 = vmatmul.mubr.msk.f32.gmra.mrb[74].mxu0 %vm790_vm4, %v713_v15  ;;  %v13702_v15 = vpack.c.bf16 %v11218_v12, %v11216_v31  ;;  %v778_v31 = vld [vmem:[%s19400_s2 + $0x3a0] sm:$0xff]  ;;  %v779_v12 = vld [vmem:[%s19400_s2 + $0x3a8] sm:$0xff] }
 0x267   :  { %12689 = vmatprep.mubr.msk.f32.mxu0 %vm790_vm4, %v714_v16  ;;  %v11221_v16 = vld [vmem:[%s19401_s3 + $0x168] sm:$0xff] }
 0x268   :  { %13703 = vmatpush1.bf16.msra.mxu0 %v13702_v15  ;;  %14150 = vmatpush1.bf16.msra.mxu1 %v13702_v15 }
 0x26a   :  { %12690 = vmatmul.mubr.msk.f32.gmra.mrb[76].mxu0 %vm790_vm4, %v715_v17  ;;  %v11223_v17 = vld [vmem:[%s19401_s3 + $0x178] sm:$0xff] }
 0x26b   :  { %12692 = vmatprep.mubr.msk.f32.mxu0 %vm790_vm4, %v716_v19  ;;  %v759_v19 = vld [vmem:[%s19400_s2 + $0x308] sm:$0xff] }
 0x26e   :  { %12693 = vmatmul.mubr.msk.f32.gmra.mrb[78].mxu0 %vm790_vm4, %v717_v20  ;;  %v13704_v20 = vpack.c.bf16 %v11223_v17, %v11221_v16  ;;  %v781_v17 = vld [vmem:[%s19400_s2 + $0x3b8] sm:$0xff] }
 0x26f   :  { %12695 = vmatprep.mubr.msk.f32.mxu0 %vm790_vm4, %v718_v21  ;;  %v11220_v21 = vld [vmem:[%s19401_s3 + $0x160] sm:$0xff] }
 0x270   :  { %13705 = vmatprep.subr.bf16.mxu0 %v13704_v20  ;;  %14143 = vmatprep.subr.bf16.mxu1 %v13704_v20 }
 0x272   :  { %12696 = vmatmul.mubr.msk.f32.gmra.mrb[80].mxu0 %vm790_vm4, %v719_v22  ;;  %v11222_v22 = vld [vmem:[%s19401_s3 + $0x170] sm:$0xff] }
 0x273   :  { %12698 = vmatprep.mubr.msk.f32.mxu0 %vm790_vm4, %v720_v23  ;;  %v760_v23 = vld [vmem:[%s19400_s2 + $0x310] sm:$0xff] }
 0x276   :  { %12699 = vmatmul.mubr.msk.f32.gmra.mrb[82].mxu0 %vm790_vm4, %v721_v24  ;;  %v13706_v24 = vpack.c.bf16 %v11222_v22, %v11220_v21  ;;  %v783_v22 = vld [vmem:[%s19400_s2 + $0x3c8] sm:$0xff] }
 0x277   :  { %12701 = vmatprep.mubr.msk.f32.mxu0 %vm790_vm4, %v722_v25  ;;  %v11225_v25 = vld [vmem:[%s19401_s3 + $0x188] sm:$0xff] }
 0x278   :  { %13707 = vmatpush1.bf16.msra.mxu0 %v13706_v24  ;;  %14151 = vmatpush1.bf16.msra.mxu1 %v13706_v24 }
 0x27a   :  { %12702 = vmatmul.mubr.msk.f32.gmra.mrb[84].mxu0 %vm790_vm4, %v723_v26  ;;  %v11227_v26 = vld [vmem:[%s19401_s3 + $0x198] sm:$0xff] }
 0x27b   :  { %12704 = vmatprep.mubr.msk.f32.mxu0 %vm790_vm4, %v724_v27  ;;  %v761_v27 = vld [vmem:[%s19400_s2 + $0x318] sm:$0xff] }
 0x27e   :  { %12705 = vmatmul.mubr.msk.f32.gmra.mrb[86].mxu0 %vm790_vm4, %v725_v28  ;;  %v13708_v28 = vpack.c.bf16 %v11227_v26, %v11225_v25  ;;  %v785_v26 = vld [vmem:[%s19400_s2 + $0x3d8] sm:$0xff] }
 0x27f   :  { %12707 = vmatprep.mubr.msk.f32.mxu0 %vm790_vm4, %v726_v29  ;;  %v11224_v29 = vld [vmem:[%s19401_s3 + $0x180] sm:$0xff] }
 0x280   :  { %13709 = vmatprep.subr.bf16.mxu0 %v13708_v28  ;;  %14144 = vmatprep.subr.bf16.mxu1 %v13708_v28  ;;  %v1887_v28 = vld [vmem:[%s19401_s3 + $0x18] sm:$0xff] }
 0x282   :  { %12708 = vmatmul.mubr.msk.f32.gmra.mrb[88].mxu0 %vm790_vm4, %v727_v32  ;;  %v11226_v32 = vld [vmem:[%s19401_s3 + $0x190] sm:$0xff] }
 0x283   :  { %12710 = vmatprep.mubr.msk.f32.mxu0 %vm790_vm4, %v728_v33  ;;  %v762_v33 = vld [vmem:[%s19400_s2 + $0x320] sm:$0xff] }
 0x286   :  { %12711 = vmatmul.mubr.msk.f32.gmra.mrb[90].mxu0 %vm790_vm4, %v729_v34  ;;  %v13710_v34 = vpack.c.bf16 %v11226_v32, %v11224_v29  ;;  %v786_v29 = vld [vmem:[%s19400_s2 + $0x3e0] sm:$0xff] }
 0x287   :  { %12713 = vmatprep.mubr.msk.f32.mxu0 %vm790_vm4, %v730_v35  ;;  %v11229_v35 = vld [vmem:[%s19401_s3 + $0x1a8] sm:$0xff] }
 0x288   :  { %13711 = vmatpush1.bf16.msra.mxu0 %v13710_v34  ;;  %14152 = vmatpush1.bf16.msra.mxu1 %v13710_v34 }
 0x28a   :  { %12714 = vmatmul.mubr.msk.f32.gmra.mrb[92].mxu0 %vm790_vm4, %v731_v36  ;;  %v11231_v36 = vld [vmem:[%s19401_s3 + $0x1b8] sm:$0xff] }
 0x28b   :  { %12716 = vmatprep.mubr.msk.f32.mxu0 %vm790_vm4, %v732_v37  ;;  %v763_v37 = vld [vmem:[%s19400_s2 + $0x328] sm:$0xff] }
 0x28e   :  { %12717 = vmatmul.mubr.msk.f32.gmra.mrb[94].mxu0 %vm790_vm4, %v733_v38  ;;  %v13712_v38 = vpack.c.bf16 %v11231_v36, %v11229_v35  ;;  %v787_v35 = vld [vmem:[%s19400_s2 + $0x3e8] sm:$0xff]  ;;  %v788_v36 = vld [vmem:[%s19400_s2 + $0x3f0] sm:$0xff] }
 0x28f   :  { %12719 = vmatprep.mubr.msk.f32.mxu0 %vm790_vm4, %v734_v39  ;;  %v11228_v39 = vld [vmem:[%s19401_s3 + $0x1a0] sm:$0xff] }
 0x290   :  { %13713 = vmatprep.subr.bf16.mxu0 %v13712_v38  ;;  %14145 = vmatprep.subr.bf16.mxu1 %v13712_v38 }
 0x292   :  { %12720 = vmatmul.mubr.msk.f32.gmra.mrb[96].mxu0 %vm790_vm4, %v735_v40  ;;  %v11230_v40 = vld [vmem:[%s19401_s3 + $0x1b0] sm:$0xff] }
 0x293   :  { %12722 = vmatprep.mubr.msk.f32.mxu0 %vm790_vm4, %v736_v13  ;;  %v764_v13 = vld [vmem:[%s19400_s2 + $0x330] sm:$0xff] }
 0x296   :  { %12723 = vmatmul.mubr.msk.f32.gmra.mrb[98].mxu0 %vm790_vm4, %v737_v41  ;;  %v13714_v41 = vpack.c.bf16 %v11230_v40, %v11228_v39  ;;  %v789_v39 = vld [vmem:[%s19400_s2 + $0x3f8] sm:$0xff] }
 0x297   :  { %12725 = vmatprep.mubr.msk.f32.mxu0 %vm790_vm4, %v738_v42  ;;  %v11233_v42 = vld [vmem:[%s19401_s3 + $0x1c8] sm:$0xff] }
 0x298   :  { %13715 = vmatpush1.bf16.msra.mxu0 %v13714_v41  ;;  %14153 = vmatpush1.bf16.msra.mxu1 %v13714_v41 }
 0x29a   :  { %12726 = vmatmul.mubr.msk.f32.gmra.mrb[100].mxu0 %vm790_vm4, %v739_v43  ;;  %v11235_v43 = vld [vmem:[%s19401_s3 + $0x1d8] sm:$0xff] }
 0x29b   :  { %12728 = vmatprep.mubr.msk.f32.mxu0 %vm790_vm4, %v740_v44  ;;  %v765_v44 = vld [vmem:[%s19400_s2 + $0x338] sm:$0xff] }
 0x29e   :  { %12729 = vmatmul.mubr.msk.f32.gmra.mrb[102].mxu0 %vm790_vm4, %v741_v45  ;;  %v13716_v45 = vpack.c.bf16 %v11235_v43, %v11233_v42 }
 0x29f   :  { %12731 = vmatprep.mubr.msk.f32.mxu0 %vm790_vm4, %v742_v46  ;;  %v11232_v46 = vld [vmem:[%s19401_s3 + $0x1c0] sm:$0xff] }
 0x2a0   :  { %13717 = vmatprep.subr.bf16.mxu0 %v13716_v45  ;;  %14146 = vmatprep.subr.bf16.mxu1 %v13716_v45 }
 0x2a2   :  { %12732 = vmatmul.mubr.msk.f32.gmra.mrb[104].mxu0 %vm790_vm4, %v743_v47  ;;  %v11234_v47 = vld [vmem:[%s19401_s3 + $0x1d0] sm:$0xff] }
 0x2a3   :  { %12734 = vmatprep.mubr.msk.f32.mxu0 %vm790_vm4, %v744_v48  ;;  %v766_v48 = vld [vmem:[%s19400_s2 + $0x340] sm:$0xff] }
 0x2a6   :  { %12735 = vmatmul.mubr.msk.f32.gmra.mrb[106].mxu0 %vm790_vm4, %v745_v49  ;;  %v13718_v49 = vpack.c.bf16 %v11234_v47, %v11232_v46 }
 0x2a7   :  { %12737 = vmatprep.mubr.msk.f32.mxu0 %vm790_vm4, %v746_v50  ;;  %v767_v50 = vld [vmem:[%s19400_s2 + $0x348] sm:$0xff] }
 0x2a8   :  { %13719 = vmatpush1.bf16.msra.mxu0 %v13718_v49  ;;  %14154 = vmatpush1.bf16.msra.mxu1 %v13718_v49 }
 0x2aa   :  { %12738 = vmatmul.mubr.msk.f32.gmra.mrb[108].mxu0 %vm790_vm4, %v747_v51  ;;  %v768_v51 = vld [vmem:[%s19400_s2 + $0x350] sm:$0xff] }
 0x2ab   :  { %12740 = vmatprep.mubr.msk.f32.mxu0 %vm790_vm4, %v748_v52  ;;  %v11237_v52 = vld [vmem:[%s19401_s3 + $0x1e8] sm:$0xff] }
 0x2ae   :  { %12741 = vmatmul.mubr.msk.f32.gmra.mrb[110].mxu0 %vm790_vm4, %v749_v53  ;;  %v11239_v53 = vld [vmem:[%s19401_s3 + $0x1f8] sm:$0xff] }
 0x2af   :  { %12743 = vmatprep.mubr.msk.f32.mxu0 %vm790_vm4, %v750_v54  ;;  %v13720_v54 = vpack.c.bf16 %v11239_v53, %v11237_v52 }
 0x2b1   :  { %13721 = vmatprep.subr.bf16.mxu0 %v13720_v54  ;;  %14147 = vmatprep.subr.bf16.mxu1 %v13720_v54 }
 0x2b2   :  { %12744 = vmatmul.mubr.msk.f32.gmra.mrb[112].mxu0 %vm790_vm4, %v751_v55  ;;  %v11236_v55 = vld [vmem:[%s19401_s3 + $0x1e0] sm:$0xff] }
 0x2b3   :  { %12746 = vmatprep.mubr.msk.f32.mxu0 %vm790_vm4, %v752_v56  ;;  %v11238_v56 = vld [vmem:[%s19401_s3 + $0x1f0] sm:$0xff] }
 0x2b4   :  { %v13722_v57 = vpack.c.bf16 %v11238_v56, %v11236_v55 }
 0x2b6   :  { %12747 = vmatmul.mubr.msk.f32.gmra.mrb[114].mxu0 %vm790_vm4, %v753_v6  ;;  %v769_v6 = vld [vmem:[%s19400_s2 + $0x358] sm:$0xff]  ;;  %14155 = vmatpush1.bf16.msra.mxu1 %v13722_v57 }
 0x2b7   :  { %12749 = vmatprep.mubr.msk.f32.mxu0 %vm790_vm4, %v754_v60  ;;  %13723 = vmatpush1.bf16.msra.mxu0 %v13722_v57 }
 0x2ba   :  { %12750 = vmatmul.mubr.msk.f32.gmra.mrb[116].mxu0 %vm790_vm4, %v755_v4 }
 0x2bb   :  { %12752 = vmatprep.mubr.msk.f32.mxu0 %vm790_vm4, %v756_v7  ;;  %v776_v7 = vld [vmem:[%s19400_s2 + $0x390] sm:$0xff] }
 0x2be   :  { %12753 = vmatmul.mubr.msk.f32.gmra.mrb[118].mxu0 %vm790_vm4, %v757_v10 }
 0x2bf   :  { %12755 = vmatprep.mubr.msk.f32.mxu0 %vm790_vm4, %v758_v14  ;;  %v780_v14 = vld [vmem:[%s19400_s2 + $0x3b0] sm:$0xff] }
 0x2c2   :  { %12756 = vmatmul.mubr.msk.f32.gmra.mrb[120].mxu0 %vm790_vm4, %v759_v19  ;;  %v782_v19 = vld [vmem:[%s19400_s2 + $0x3c0] sm:$0xff] }
 0x2c3   :  { %12758 = vmatprep.mubr.msk.f32.mxu0 %vm790_vm4, %v760_v23  ;;  %v784_v23 = vld [vmem:[%s19400_s2 + $0x3d0] sm:$0xff] }
 0x2c6   :  { %12759 = vmatmul.mubr.msk.f32.gmra.mrb[122].mxu0 %vm790_vm4, %v761_v27  ;;  %v1885_v27 = vld [vmem:[%s19401_s3 + $0x8] sm:$0xff] }
 0x2c7   :  { %12761 = vmatprep.mubr.msk.f32.mxu0 %vm790_vm4, %v762_v33  ;;  %v13724_v32 = vpack.c.bf16 %v1887_v28, %v1885_v27 }
 0x2c9   :  { %13725 = vmatprep.subr.bf16.mxu1 %v13724_v32 }
 0x2ca   :  { %12762 = vmatmul.mubr.msk.f32.gmra.mrb[124].mxu0 %vm790_vm4, %v763_v37 }
 0x2cb   :  { %12764 = vmatprep.mubr.msk.f32.mxu0 %vm790_vm4, %v764_v13 }
 0x2ce   :  { %12765 = vmatmul.mubr.msk.f32.gmra.mrb[126].mxu0 %vm790_vm4, %v765_v44 }
 0x2cf   :  { %12767 = vmatprep.mubr.msk.f32.mxu0 %vm790_vm4, %v766_v48 }
 0x2d2   :  { %12768 = vmatmul.mubr.msk.f32.gmra.mrb[128].mxu0 %vm790_vm4, %v767_v50 }
 0x2d3   :  { %12770 = vmatprep.mubr.msk.f32.mxu0 %vm790_vm4, %v768_v51 }
 0x2d5   :  { %v15884_v59 = vpop.f32.mrb[24].mxu0 }
 0x2d6   :  { %v15886_v60 = vpop.f32.mrb[25].mxu0  ;;  %12771 = vmatmul.mubr.msk.f32.gmra.mrb[130].mxu0 %vm790_vm4, %v769_v6 }
 0x2d7   :  { %12773 = vmatprep.mubr.msk.f32.mxu0 %vm790_vm4, %v770_v58 }
 0x2d9   :  { %v15896_v63 = vpop.f32.mrb[26].mxu0 }
 0x2da   :  { %v15898_v1 = vpop.f32.mrb[27].mxu0  ;;  %12774 = vmatmul.mubr.msk.f32.gmra.mrb[132].mxu0 %vm790_vm4, %v771_v61 }
 0x2db   :  { %12776 = vmatprep.mubr.msk.f32.mxu0 %vm790_vm4, %v772_v62 }
 0x2dd   :  { %v15908_v4 = vpop.f32.mrb[28].mxu0 }
 0x2de   :  { %v15910_v5 = vpop.f32.mrb[29].mxu0  ;;  %12777 = vmatmul.mubr.msk.f32.gmra.mrb[134].mxu0 %vm790_vm4, %v773_v2 }
 0x2df   :  { %12779 = vmatprep.mubr.msk.f32.mxu0 %vm790_vm4, %v774_v3 }
 0x2e1   :  { %v15920_v8 = vpop.f32.mrb[30].mxu0 }
 0x2e2   :  { %v15922_v9 = vpop.f32.mrb[31].mxu0  ;;  %12780 = vmatmul.mubr.msk.f32.gmra.mrb[136].mxu0 %vm790_vm4, %v775_v18 }
 0x2e3   :  { %12782 = vmatprep.mubr.msk.f32.mxu0 %vm790_vm4, %v776_v7 }
 0x2e5   :  { %v15932_v10 = vpop.f32.mrb[32].mxu0 }
 0x2e6   :  { %v15934_v11 = vpop.f32.mrb[33].mxu0  ;;  %12783 = vmatmul.mubr.msk.f32.gmra.mrb[138].mxu0 %vm790_vm4, %v777_v30 }
 0x2e7   :  { %12785 = vmatprep.mubr.msk.f32.mxu0 %vm790_vm4, %v778_v31 }
 0x2e9   :  { %v15944_v15 = vpop.f32.mrb[34].mxu0 }
 0x2ea   :  { %v15946_v16 = vpop.f32.mrb[35].mxu0  ;;  %12786 = vmatmul.mubr.msk.f32.gmra.mrb[140].mxu0 %vm790_vm4, %v779_v12 }
 0x2eb   :  { %12788 = vmatprep.mubr.msk.f32.mxu0 %vm790_vm4, %v780_v14 }
 0x2ed   :  { %v15956_v20 = vpop.f32.mrb[36].mxu0 }
 0x2ee   :  { %v15958_v21 = vpop.f32.mrb[37].mxu0  ;;  %12789 = vmatmul.mubr.msk.f32.gmra.mrb[142].mxu0 %vm790_vm4, %v781_v17 }
 0x2ef   :  { %12791 = vmatprep.mubr.msk.f32.mxu0 %vm790_vm4, %v782_v19 }
 0x2f1   :  { %v15968_v24 = vpop.f32.mrb[38].mxu0 }
 0x2f2   :  { %v15970_v25 = vpop.f32.mrb[39].mxu0  ;;  %12792 = vmatmul.mubr.msk.f32.gmra.mrb[144].mxu0 %vm790_vm4, %v783_v22 }
 0x2f3   :  { %12794 = vmatprep.mubr.msk.f32.mxu0 %vm790_vm4, %v784_v23 }
 0x2f5   :  { %v15986_v33 = vpop.f32.mrb[40].mxu0 }
 0x2f6   :  { %v15988_v34 = vpop.f32.mrb[41].mxu0  ;;  %12795 = vmatmul.mubr.msk.f32.gmra.mrb[146].mxu0 %vm790_vm4, %v785_v26 }
 0x2f7   :  { %12797 = vmatprep.mubr.msk.f32.mxu0 %vm790_vm4, %v786_v29 }
 0x2f9   :  { %v15998_v37 = vpop.f32.mrb[42].mxu0 }
 0x2fa   :  { %v16000_v38 = vpop.f32.mrb[43].mxu0  ;;  %12798 = vmatmul.mubr.msk.f32.gmra.mrb[148].mxu0 %vm790_vm4, %v787_v35 }
 0x2fb   :  { %12800 = vmatprep.mubr.msk.f32.mxu0 %vm790_vm4, %v788_v36 }
 0x2fd   :  { %v16007_v40 = vpop.f32.mrb[44].mxu0 }
 0x2fe   :  { %v16009_v13 = vpop.f32.mrb[45].mxu0  ;;  %12801 = vmatmul.mubr.msk.f32.gmra.mrb[150].mxu0 %vm790_vm4, %v789_v39 }
 0x2ff   :  { %2013 = vmatprep.mubr.f32.mxu0 %v19406_v0 }
 0x301   :  { %v16013_v41 = vpop.f32.mrb[46].mxu0 }
 0x302   :  { %v16015_v42 = vpop.f32.mrb[47].mxu0 }
 0x305   :  { %v16017_v43 = vpop.f32.mrb[48].mxu0 }
 0x306   :  { %v16019_v44 = vpop.f32.mrb[49].mxu0 }
 0x309   :  { %v16021_v45 = vpop.f32.mrb[50].mxu0 }
 0x30a   :  { %v16023_v46 = vpop.f32.mrb[51].mxu0 }
 0x30d   :  { %v16025_v47 = vpop.f32.mrb[52].mxu0 }
 0x30e   :  { %v16027_v48 = vpop.f32.mrb[53].mxu0 }
 0x311   :  { %v16029_v49 = vpop.f32.mrb[54].mxu0 }
 0x312   :  { %v16031_v50 = vpop.f32.mrb[55].mxu0 }
 0x315   :  { %v16033_v51 = vpop.f32.mrb[56].mxu0 }
 0x316   :  { %19463 = vst [vmem:[#allocation3_spill] sm:$0xff] %v16033_v51  ;;  %v16035_v52 = vpop.f32.mrb[57].mxu0 }
 0x317   :  { %19464 = vst [vmem:[#allocation4_spill] sm:$0xff] %v16035_v52 }
 0x319   :  { %v16037_v53 = vpop.f32.mrb[58].mxu0 }
 0x31a   :  { %19465 = vst [vmem:[#allocation5_spill] sm:$0xff] %v16037_v53  ;;  %v16039_v54 = vpop.f32.mrb[59].mxu0 }
 0x31b   :  { %19466 = vst [vmem:[#allocation6_spill] sm:$0xff] %v16039_v54 }
 0x31d   :  { %v16041_v55 = vpop.f32.mrb[60].mxu0 }
 0x31e   :  { %19467 = vst [vmem:[#allocation7_spill] sm:$0xff] %v16041_v55  ;;  %v16043_v56 = vpop.f32.mrb[61].mxu0 }
 0x31f   :  { %19468 = vst [vmem:[#allocation8_spill] sm:$0xff] %v16043_v56 }
 0x321   :  { %v16045_v6 = vpop.f32.mrb[62].mxu0 }
 0x322   :  { %19469 = vst [vmem:[#allocation9_spill] sm:$0xff] %v16045_v6  ;;  %v16047_v57 = vpop.f32.mrb[63].mxu0  ;;  %v1914_v6 = vld [vmem:[%s19401_s3 + $0xf0] sm:$0xff] }
 0x323   :  { %19470 = vst [vmem:[#allocation10_spill] sm:$0xff] %v16047_v57 }
 0x325   :  { %v16049_v58 = vpop.f32.mrb[64].mxu0 }
 0x326   :  { %19471 = vst [vmem:[#allocation11_spill] sm:$0xff] %v16049_v58  ;;  %v16051_v61 = vpop.f32.mrb[65].mxu0 }
 0x327   :  { %19472 = vst [vmem:[#allocation12_spill] sm:$0xff] %v16051_v61  ;;  %v1912_v61 = vld [vmem:[%s19401_s3 + $0xe0] sm:$0xff] }
 0x328   :  { %v13754_v57 = vpack.c.bf16 %v1914_v6, %v1912_v61 }
 0x329   :  { %v16053_v62 = vpop.f32.mrb[66].mxu0 }
 0x32a   :  { %19473 = vst [vmem:[#allocation13_spill] sm:$0xff] %v16053_v62  ;;  %v16055_v2 = vpop.f32.mrb[67].mxu0 }
 0x32b   :  { %19474 = vst [vmem:[#allocation14_spill] sm:$0xff] %v16055_v2 }
 0x32d   :  { %v16057_v3 = vpop.f32.mrb[68].mxu0 }
 0x32e   :  { %19475 = vst [vmem:[#allocation15_spill] sm:$0xff] %v16057_v3  ;;  %v16059_v18 = vpop.f32.mrb[69].mxu0  ;;  %v1897_v3 = vld [vmem:[%s19401_s3 + $0x68] sm:$0xff] }
 0x32f   :  { %19476 = vst [vmem:[#allocation16_spill] sm:$0xff] %v16059_v18 }
 0x331   :  { %v16061_v7 = vpop.f32.mrb[70].mxu0 }
 0x332   :  { %19477 = vst [vmem:[#allocation17_spill] sm:$0xff] %v16061_v7  ;;  %v16063_v30 = vpop.f32.mrb[71].mxu0  ;;  %v1893_v7 = vld [vmem:[%s19401_s3 + $0x48] sm:$0xff] }
 0x333   :  { %19478 = vst [vmem:[#allocation18_spill] sm:$0xff] %v16063_v30 }
 0x335   :  { %v16065_v31 = vpop.f32.mrb[72].mxu0 }
 0x336   :  { %19479 = vst [vmem:[#allocation19_spill] sm:$0xff] %v16065_v31  ;;  %v16067_v12 = vpop.f32.mrb[73].mxu0 }
 0x337   :  { %19480 = vst [vmem:[#allocation20_spill] sm:$0xff] %v16067_v12  ;;  %v1888_v12 = vld [vmem:[%s19401_s3 + $0x20] sm:$0xff] }
 0x339   :  { %v16069_v14 = vpop.f32.mrb[74].mxu0 }
 0x33a   :  { %19481 = vst [vmem:[#allocation21_spill] sm:$0xff] %v16069_v14  ;;  %v16071_v17 = vpop.f32.mrb[75].mxu0 }
 0x33b   :  { %19482 = vst [vmem:[#allocation22_spill] sm:$0xff] %v16071_v17 }
 0x33d   :  { %v16073_v19 = vpop.f32.mrb[76].mxu0 }
 0x33e   :  { %19483 = vst [vmem:[#allocation23_spill] sm:$0xff] %v16073_v19  ;;  %v16075_v22 = vpop.f32.mrb[77].mxu0 }
 0x33f   :  { %19484 = vst [vmem:[#allocation24_spill] sm:$0xff] %v16075_v22 }
 0x341   :  { %v16077_v23 = vpop.f32.mrb[78].mxu0 }
 0x342   :  { %19485 = vst [vmem:[#allocation25_spill] sm:$0xff] %v16077_v23  ;;  %v16079_v26 = vpop.f32.mrb[79].mxu0 }
 0x343   :  { %19486 = vst [vmem:[#allocation26_spill] sm:$0xff] %v16079_v26  ;;  %v19495_v26 = vmov 0.0  }
 0x345   :  { %v16081_v27 = vpop.f32.mrb[80].mxu0 }
 0x346   :  { %19487 = vst [vmem:[#allocation27_spill] sm:$0xff] %v16081_v27  ;;  %v16083_v28 = vpop.f32.mrb[81].mxu0 }
 0x347   :  { %19488 = vst [vmem:[#allocation28_spill] sm:$0xff] %v16083_v28 }
 0x349   :  { %v16085_v29 = vpop.f32.mrb[82].mxu0 }
 0x34a   :  { %19489 = vst [vmem:[#allocation29_spill] sm:$0xff] %v16085_v29  ;;  %v16087_v32 = vpop.f32.mrb[83].mxu0 }
 0x34b   :  { %19490 = vst [vmem:[#allocation30_spill] sm:$0xff] %v16087_v32 }
 0x34d   :  { %v16089_v35 = vpop.f32.mrb[84].mxu0 }
 0x34e   :  { %19491 = vst [vmem:[#allocation31_spill] sm:$0xff] %v16089_v35  ;;  %v16091_v36 = vpop.f32.mrb[85].mxu0 }
 0x34f   :  { %19492 = vst [vmem:[#allocation32_spill] sm:$0xff] %v16091_v36 }
 0x351   :  { %v16093_v39 = vpop.f32.mrb[86].mxu0 }
 0x352   :  { %19493 = vst [vmem:[#allocation33_spill] sm:$0xff] %v16093_v39  ;;  %v16095_v0 = vpop.f32.mrb[87].mxu0 }
 0x353   :  { %19494 = vst [vmem:[#allocation34_spill] sm:$0xff] %v16095_v0  ;;  %v1884_v0 = vld [vmem:[%s19401_s3] sm:$0xff] }
 0x355   :  { %v12709_v19 = vpop.f32.mrb[88].mxu0 }
 0x356   :  { %v1565_v23 = vpop.f32.mrb[89].mxu0 }
 0x357   :  { %2014 = vmatmul.mubr.f32.vlgmr.msra.gmra.mrb[152].mxu0 %v1565_v23 }
 0x358   :  { %2019 = vmatprep.mubr.f32.mxu0 %v19495_v26 }
 0x359   :  { %v12712_v27 = vpop.f32.mrb[90].mxu0 }
 0x35a   :  { %v1575_v22 = vpop.f32.mrb[91].mxu0 }
 0x35b   :  { %2020 = vmatmul.mubr.f32.gmra.mrb[154].mxu0 %v12709_v19  ;;  %v1886_v19 = vld [vmem:[%s19401_s3 + $0x10] sm:$0xff] }
 0x35c   :  { %2025 = vmatprep.mubr.f32.mxu0 %v19495_v26  ;;  %v13726_v14 = vpack.c.bf16 %v1886_v19, %v1884_v0  ;;  %v1895_v0 = vld [vmem:[%s19401_s3 + $0x58] sm:$0xff] }
 0x35d   :  { %v12715_v29 = vpop.f32.mrb[92].mxu0  ;;  %v13732_v30 = vpack.c.bf16 %v1895_v0, %v1893_v7  ;;  %v1901_v0 = vld [vmem:[%s19401_s3 + $0x88] sm:$0xff] }
 0x35e   :  { %v1585_v32 = vpop.f32.mrb[93].mxu0 }
 0x35f   :  { %2026 = vmatmul.mubr.f32.gmra.mrb[156].mxu0 %v1575_v22  ;;  %v1889_v22 = vld [vmem:[%s19401_s3 + $0x28] sm:$0xff] }
 0x360   :  { %2031 = vmatprep.mubr.f32.mxu0 %v19495_v26 }
 0x361   :  { %v12718_v35 = vpop.f32.mrb[94].mxu0 }
 0x362   :  { %v1595_v36 = vpop.f32.mrb[95].mxu0 }
 0x363   :  { %2032 = vmatmul.mubr.f32.gmra.mrb[158].mxu0 %v12712_v27  ;;  %v1891_v27 = vld [vmem:[%s19401_s3 + $0x38] sm:$0xff] }
 0x364   :  { %2037 = vmatprep.mubr.f32.mxu0 %v19495_v26  ;;  %v13728_v31 = vpack.c.bf16 %v1891_v27, %v1889_v22 }
 0x365   :  { %v16101_v39 = vpop.f32.mrb[96].mxu0 }
 0x366   :  { %v1605_v23 = vpop.f32.mrb[97].mxu0 }
 0x367   :  { %2038 = vmatmul.mubr.f32.gmra.mrb[160].mxu0 %v1585_v32  ;;  %v1890_v32 = vld [vmem:[%s19401_s3 + $0x30] sm:$0xff] }
 0x368   :  { %2043 = vmatprep.mubr.f32.mxu0 %v19495_v26  ;;  %v13730_v22 = vpack.c.bf16 %v1890_v32, %v1888_v12  ;;  %v1899_v12 = vld [vmem:[%s19401_s3 + $0x78] sm:$0xff] }
 0x369   :  { %v12724_v28 = vpop.f32.mrb[98].mxu0  ;;  %v13736_v32 = vpack.c.bf16 %v1899_v12, %v1897_v3  ;;  %v1905_v12 = vld [vmem:[%s19401_s3 + $0xa8] sm:$0xff] }
 0x36a   :  { %v1615_v17 = vpop.f32.mrb[99].mxu0 }
 0x36b   :  { %2044 = vmatmul.mubr.f32.gmra.mrb[162].mxu0 %v12715_v29  ;;  %2074 = vmatmul.mubr.f32.vlgmr.msra.gmra.mrb[18].mxu1 %v1615_v17  ;;  %v1892_v17 = vld [vmem:[%s19401_s3 + $0x40] sm:$0xff]  ;;  %v1894_v29 = vld [vmem:[%s19401_s3 + $0x50] sm:$0xff] }
 0x36c   :  { %2049 = vmatprep.mubr.f32.mxu0 %v19495_v26  ;;  %2079 = vmatprep.mubr.f32.mxu1 %v19495_v26 }
 0x36d   :  { %v12727_v19 = vpop.f32.mrb[100].mxu0  ;;  %13727 = vmatpush1.bf16.msra.mxu1 %v13726_v14 }
 0x36e   :  { %v1625_v27 = vpop.f32.mrb[101].mxu0  ;;  %13729 = vmatprep.subr.bf16.mxu1 %v13728_v31  ;;  %v13734_v31 = vpack.c.bf16 %v1894_v29, %v1892_v17 }
 0x36f   :  { %2050 = vmatmul.mubr.f32.gmra.mrb[164].mxu0 %v1595_v36  ;;  %2080 = vmatmul.mubr.f32.gmra.mrb[20].mxu1 %v12724_v28  ;;  %v1896_v28 = vld [vmem:[%s19401_s3 + $0x60] sm:$0xff]  ;;  %v1898_v36 = vld [vmem:[%s19401_s3 + $0x70] sm:$0xff] }
 0x370   :  { %2055 = vmatprep.mubr.f32.mxu0 %v19495_v26  ;;  %2085 = vmatprep.mubr.f32.mxu1 %v19495_v26 }
 0x371   :  { %v12730_v7 = vpop.f32.mrb[102].mxu0  ;;  %13731 = vmatpush1.bf16.msra.mxu1 %v13730_v22  ;;  %v1903_v22 = vld [vmem:[%s19401_s3 + $0x98] sm:$0xff] }
 0x372   :  { %v1635_v14 = vpop.f32.mrb[103].mxu0  ;;  %13733 = vmatprep.subr.bf16.mxu1 %v13732_v30  ;;  %v13738_v30 = vpack.c.bf16 %v1898_v36, %v1896_v28  ;;  %v13740_v29 = vpack.c.bf16 %v1903_v22, %v1901_v0 }
 0x373   :  { %2056 = vmatmul.mubr.f32.gmra.mrb[166].mxu0 %v12718_v35  ;;  %2086 = vmatmul.mubr.f32.gmra.mrb[22].mxu1 %v1625_v27  ;;  %v1900_v35 = vld [vmem:[%s19401_s3 + $0x80] sm:$0xff]  ;;  %v1902_v27 = vld [vmem:[%s19401_s3 + $0x90] sm:$0xff] }
 0x374   :  { %2061 = vmatprep.mubr.f32.mxu0 %v19495_v26  ;;  %2091 = vmatprep.mubr.f32.mxu1 %v19495_v26  ;;  %v13742_v28 = vpack.c.bf16 %v1902_v27, %v1900_v35 }
 0x375   :  { %v12733_v3 = vpop.f32.mrb[104].mxu0  ;;  %13735 = vmatpush1.bf16.msra.mxu1 %v13734_v31  ;;  %v1907_v31 = vld [vmem:[%s19401_s3 + $0xb8] sm:$0xff] }
 0x376   :  { %v1645_v17 = vpop.f32.mrb[105].mxu0  ;;  %13737 = vmatprep.subr.bf16.mxu1 %v13736_v32  ;;  %v13744_v0 = vpack.c.bf16 %v1907_v31, %v1905_v12 }
 0x377   :  { %2062 = vmatmul.mubr.f32.gmra.mrb[168].mxu0 %v1605_v23  ;;  %2092 = vmatmul.mubr.f32.gmra.mrb[24].mxu1 %v12727_v19  ;;  %v1904_v23 = vld [vmem:[%s19401_s3 + $0xa0] sm:$0xff]  ;;  %v1906_v19 = vld [vmem:[%s19401_s3 + $0xb0] sm:$0xff] }
 0x378   :  { %2067 = vmatprep.mubr.f32.mxu0 %v19495_v26  ;;  %2097 = vmatprep.mubr.f32.mxu1 %v19495_v26 }
 0x379   :  { %v12736_v32 = vpop.f32.mrb[106].mxu0  ;;  %13739 = vmatpush1.bf16.msra.mxu1 %v13738_v30  ;;  %v13746_v30 = vpack.c.bf16 %v1906_v19, %v1904_v23  ;;  %v1910_v19 = vld [vmem:[%s19401_s3 + $0xd0] sm:$0xff] }
 0x37a   :  { %v1655_v36 = vpop.f32.mrb[107].mxu0  ;;  %13741 = vmatprep.subr.bf16.mxu1 %v13740_v29 }
 0x37b   :  { %2068 = vmatmul.mubr.f32.gmra.mrb[170].mxu0 %v16101_v39  ;;  %2098 = vmatmul.mubr.f32.gmra.mrb[26].mxu1 %v1635_v14 }
 0x37c   :  { %2103 = vmatprep.mubr.f32.mxu1 %v19495_v26  ;;  %3051 = vmatprep.mubr.f32.mxu0 %v19495_v26 }
 0x37d   :  { %v12739_v22 = vpop.f32.mrb[108].mxu0  ;;  %13743 = vmatpush1.bf16.msra.mxu1 %v13742_v28 }
 0x37e   :  { %v1665_v29 = vpop.f32.mrb[109].mxu0  ;;  %13745 = vmatprep.subr.bf16.mxu1 %v13744_v0 }
 0x37f   :  { %2104 = vmatmul.mubr.f32.gmra.mrb[28].mxu1 %v12730_v7 }
 0x380   :  { %2109 = vmatprep.mubr.f32.mxu1 %v19495_v26 }
 0x381   :  { %v12742_v39 = vpop.f32.mrb[110].mxu0  ;;  %13747 = vmatpush1.bf16.msra.mxu1 %v13746_v30 }
 0x382   :  { %v1675_v14 = vpop.f32.mrb[111].mxu0 }
 0x383   :  { %2110 = vmatmul.mubr.f32.gmra.mrb[30].mxu1 %v1645_v17  ;;  %v1909_v17 = vld [vmem:[%s19401_s3 + $0xc8] sm:$0xff] }
 0x384   :  { %2115 = vmatprep.mubr.f32.mxu1 %v19495_v26 }
 0x385   :  { %v12745_v35 = vpop.f32.mrb[112].mxu0 }
 0x386   :  { %v1685_v27 = vpop.f32.mrb[113].mxu0 }
 0x387   :  { %2116 = vmatmul.mubr.f32.gmra.mrb[32].mxu1 %v12733_v3  ;;  %v1911_v3 = vld [vmem:[%s19401_s3 + $0xd8] sm:$0xff] }
 0x388   :  { %2121 = vmatprep.mubr.f32.mxu1 %v19495_v26 }
 0x389   :  { %v12748_v12 = vpop.f32.mrb[114].mxu0 }
 0x38a   :  { %v1695_v31 = vpop.f32.mrb[115].mxu0 }
 0x38b   :  { %2122 = vmatmul.mubr.f32.gmra.mrb[34].mxu1 %v1655_v36  ;;  %v13748_v36 = vpack.c.bf16 %v1911_v3, %v1909_v17 }
 0x38c   :  { %2127 = vmatprep.mubr.f32.mxu1 %v19495_v26 }
 0x38d   :  { %v12751_v28 = vpop.f32.mrb[116].mxu0  ;;  %13749 = vmatprep.subr.bf16.mxu1 %v13748_v36 }
 0x38e   :  { %v1705_v7 = vpop.f32.mrb[117].mxu0 }
 0x38f   :  { %2128 = vmatmul.mubr.f32.gmra.mrb[36].mxu1 %v12736_v32  ;;  %v1908_v32 = vld [vmem:[%s19401_s3 + $0xc0] sm:$0xff] }
 0x390   :  { %2133 = vmatprep.mubr.f32.mxu1 %v19495_v26 }
 0x391   :  { %v12754_v0 = vpop.f32.mrb[118].mxu0 }
 0x392   :  { %v1715_v23 = vpop.f32.mrb[119].mxu0 }
 0x393   :  { %2134 = vmatmul.mubr.f32.gmra.mrb[38].mxu1 %v1665_v29  ;;  %v13750_v29 = vpack.c.bf16 %v1910_v19, %v1908_v32 }
 0x394   :  { %2139 = vmatprep.mubr.f32.mxu1 %v19495_v26 }
 0x395   :  { %v12757_v30 = vpop.f32.mrb[120].mxu0  ;;  %13751 = vmatpush1.bf16.msra.mxu1 %v13750_v29 }
 0x396   :  { %v1725_v18 = vpop.f32.mrb[121].mxu0 }
 0x397   :  { %2140 = vmatmul.mubr.f32.gmra.mrb[40].mxu1 %v12739_v22 }
 0x398   :  { %2145 = vmatprep.mubr.f32.mxu1 %v19495_v26 }
 0x399   :  { %v12760_v62 = vpop.f32.mrb[122].mxu0 }
 0x39a   :  { %v1735_v2 = vpop.f32.mrb[123].mxu0 }
 0x39b   :  { %2146 = vmatmul.mubr.f32.gmra.mrb[42].mxu1 %v1675_v14 }
 0x39c   :  { %2151 = vmatprep.mubr.f32.mxu1 %v19495_v26 }
 0x39d   :  { %v16201_v17 = vpop.f32.mrb[124].mxu0 }
 0x39e   :  { %v1745_v3 = vpop.f32.mrb[125].mxu0 }
 0x39f   :  { %2152 = vmatmul.mubr.f32.gmra.mrb[44].mxu1 %v12742_v39 }
 0x3a0   :  { %2157 = vmatprep.mubr.f32.mxu1 %v19495_v26 }
 0x3a1   :  { %v16204_v58 = vpop.f32.mrb[126].mxu0 }
 0x3a2   :  { %v1755_v32 = vpop.f32.mrb[127].mxu0 }
 0x3a3   :  { %2158 = vmatmul.mubr.f32.gmra.mrb[46].mxu1 %v1685_v27  ;;  %v1913_v27 = vld [vmem:[%s19401_s3 + $0xe8] sm:$0xff] }
 0x3a4   :  { %2163 = vmatprep.mubr.f32.mxu1 %v19495_v26 }
 0x3a5   :  { %v16207_v22 = vpop.f32.mrb[128].mxu0 }
 0x3a6   :  { %v1765_v36 = vpop.f32.mrb[129].mxu0 }
 0x3a7   :  { %2164 = vmatmul.mubr.f32.gmra.mrb[48].mxu1 %v12745_v35  ;;  %v1915_v35 = vld [vmem:[%s19401_s3 + $0xf8] sm:$0xff] }
 0x3a8   :  { %2169 = vmatprep.mubr.f32.mxu1 %v19495_v26 }
 0x3a9   :  { %v16210_v14 = vpop.f32.mrb[130].mxu0 }
 0x3aa   :  { %v1775_v19 = vpop.f32.mrb[131].mxu0 }
 0x3ab   :  { %2170 = vmatmul.mubr.f32.gmra.mrb[50].mxu1 %v1695_v31  ;;  %v13752_v31 = vpack.c.bf16 %v1915_v35, %v1913_v27 }
 0x3ac   :  { %2175 = vmatprep.mubr.f32.mxu1 %v19495_v26 }
 0x3ad   :  { %v16213_v39 = vpop.f32.mrb[132].mxu0  ;;  %13753 = vmatprep.subr.bf16.mxu1 %v13752_v31 }
 0x3ae   :  { %v1785_v29 = vpop.f32.mrb[133].mxu0  ;;  %13755 = vmatpush1.bf16.msra.mxu1 %v13754_v57 }
 0x3af   :  { %2176 = vmatmul.mubr.f32.gmra.mrb[52].mxu1 %v12748_v12 }
 0x3b0   :  { %2181 = vmatprep.mubr.f32.mxu1 %v19495_v26 }
 0x3b1   :  { %v12778_v12 = vpop.f32.mrb[134].mxu0 }
 0x3b2   :  { %v1795_v55 = vpop.f32.mrb[135].mxu0 }
 0x3b3   :  { %2182 = vmatmul.mubr.f32.gmra.mrb[54].mxu1 %v1705_v7 }
 0x3b4   :  { %2187 = vmatprep.mubr.f32.mxu1 %v19495_v26 }
 0x3b5   :  { %v12781_v56 = vpop.f32.mrb[136].mxu0 }
 0x3b6   :  { %v1805_v53 = vpop.f32.mrb[137].mxu0 }
 0x3b7   :  { %2188 = vmatmul.mubr.f32.gmra.mrb[56].mxu1 %v12751_v28 }
 0x3b8   :  { %2193 = vmatprep.mubr.f32.mxu1 %v19495_v26 }
 0x3b9   :  { %v12784_v54 = vpop.f32.mrb[138].mxu0 }
 0x3ba   :  { %v1815_v51 = vpop.f32.mrb[139].mxu0 }
 0x3bb   :  { %2194 = vmatmul.mubr.f32.gmra.mrb[58].mxu1 %v1715_v23 }
 0x3bc   :  { %2199 = vmatprep.mubr.f32.mxu1 %v19495_v26 }
 0x3bd   :  { %v12787_v27 = vpop.f32.mrb[140].mxu0 }
 0x3be   :  { %v1825_v35 = vpop.f32.mrb[141].mxu0 }
 0x3bf   :  { %2200 = vmatmul.mubr.f32.gmra.mrb[60].mxu1 %v12754_v0 }
 0x3c0   :  { %2205 = vmatprep.mubr.f32.mxu1 %v19495_v26 }
 0x3c1   :  { %v12790_v6 = vpop.f32.mrb[142].mxu0 }
 0x3c2   :  { %v1835_v61 = vpop.f32.mrb[143].mxu0 }
 0x3c3   :  { %2206 = vmatmul.mubr.f32.gmra.mrb[62].mxu1 %v1725_v18 }
 0x3c4   :  { %2211 = vmatprep.mubr.f32.mxu1 %v19495_v26 }
 0x3c5   :  { %v12793_v57 = vpop.f32.mrb[144].mxu0 }
 0x3c6   :  { %v1845_v7 = vpop.f32.mrb[145].mxu0 }
 0x3c7   :  { %2212 = vmatmul.mubr.f32.gmra.mrb[64].mxu1 %v12757_v30 }
 0x3c8   :  { %2217 = vmatprep.mubr.f32.mxu1 %v19495_v26 }
 0x3c9   :  { %v12796_v28 = vpop.f32.mrb[146].mxu0 }
 0x3ca   :  { %v1855_v31 = vpop.f32.mrb[147].mxu0 }
 0x3cb   :  { %2218 = vmatmul.mubr.f32.gmra.mrb[66].mxu1 %v1735_v2 }
 0x3cc   :  { %2223 = vmatprep.mubr.f32.mxu1 %v19495_v26 }
 0x3cd   :  { %v16235_v23 = vpop.f32.mrb[148].mxu0 }
 0x3ce   :  { %v1865_v0 = vpop.f32.mrb[149].mxu0 }
 0x3cf   :  { %2224 = vmatmul.mubr.f32.gmra.mrb[68].mxu1 %v12760_v62 }
 0x3d0   :  { %2229 = vmatprep.mubr.f32.mxu1 %v19495_v26 }
 0x3d1   :  { %v16238_v52 = vpop.f32.mrb[150].mxu0 }
 0x3d2   :  { %v1875_v18 = vpop.f32.mrb[151].mxu0 }
 0x3d3   :  { %2230 = vmatmul.mubr.f32.gmra.mrb[70].mxu1 %v1745_v3 }
 0x3d4   :  { %2235 = vmatprep.mubr.f32.mxu1 %v19495_v26 }
 0x3d7   :  { %2236 = vmatmul.mubr.f32.gmra.mrb[72].mxu1 %v16201_v17 }
 0x3d8   :  { %2241 = vmatprep.mubr.f32.mxu1 %v19495_v26 }
 0x3db   :  { %2242 = vmatmul.mubr.f32.gmra.mrb[74].mxu1 %v1755_v32 }
 0x3dc   :  { %2247 = vmatprep.mubr.f32.mxu1 %v19495_v26 }
 0x3df   :  { %2248 = vmatmul.mubr.f32.gmra.mrb[76].mxu1 %v16204_v58 }
 0x3e0   :  { %2253 = vmatprep.mubr.f32.mxu1 %v19495_v26 }
 0x3e3   :  { %2254 = vmatmul.mubr.f32.gmra.mrb[78].mxu1 %v1765_v36 }
 0x3e4   :  { %2259 = vmatprep.mubr.f32.mxu1 %v19495_v26 }
 0x3e7   :  { %2260 = vmatmul.mubr.f32.gmra.mrb[80].mxu1 %v16207_v22 }
 0x3e8   :  { %2265 = vmatprep.mubr.f32.mxu1 %v19495_v26 }
 0x3eb   :  { %2266 = vmatmul.mubr.f32.gmra.mrb[82].mxu1 %v1775_v19 }
 0x3ec   :  { %2271 = vmatprep.mubr.f32.mxu1 %v19495_v26 }
 0x3ef   :  { %2272 = vmatmul.mubr.f32.gmra.mrb[84].mxu1 %v16210_v14 }
 0x3f0   :  { %2277 = vmatprep.mubr.f32.mxu1 %v19495_v26 }
 0x3f3   :  { %2278 = vmatmul.mubr.f32.gmra.mrb[86].mxu1 %v1785_v29 }
 0x3f4   :  { %2283 = vmatprep.mubr.f32.mxu1 %v19495_v26 }
 0x3f7   :  { %2284 = vmatmul.mubr.f32.gmra.mrb[88].mxu1 %v16213_v39 }
 0x3f8   :  { %2289 = vmatprep.mubr.f32.mxu1 %v19495_v26 }
 0x3fb   :  { %2290 = vmatmul.mubr.f32.gmra.mrb[90].mxu1 %v1795_v55 }
 0x3fc   :  { %2295 = vmatprep.mubr.f32.mxu1 %v19495_v26 }
 0x3ff   :  { %2296 = vmatmul.mubr.f32.gmra.mrb[92].mxu1 %v12778_v12 }
 0x400   :  { %2301 = vmatprep.mubr.f32.mxu1 %v19495_v26 }
 0x403   :  { %2302 = vmatmul.mubr.f32.gmra.mrb[94].mxu1 %v1805_v53 }
 0x404   :  { %2307 = vmatprep.mubr.f32.mxu1 %v19495_v26 }
 0x407   :  { %2308 = vmatmul.mubr.f32.gmra.mrb[96].mxu1 %v12781_v56 }
 0x408   :  { %2313 = vmatprep.mubr.f32.mxu1 %v19495_v26 }
 0x40b   :  { %2314 = vmatmul.mubr.f32.gmra.mrb[98].mxu1 %v1815_v51 }
 0x40c   :  { %2319 = vmatprep.mubr.f32.mxu1 %v19495_v26 }
 0x40f   :  { %2320 = vmatmul.mubr.f32.gmra.mrb[100].mxu1 %v12784_v54 }
 0x410   :  { %2325 = vmatprep.mubr.f32.mxu1 %v19495_v26 }
 0x413   :  { %2326 = vmatmul.mubr.f32.gmra.mrb[102].mxu1 %v1825_v35 }
 0x414   :  { %2331 = vmatprep.mubr.f32.mxu1 %v19495_v26 }
 0x417   :  { %2332 = vmatmul.mubr.f32.gmra.mrb[104].mxu1 %v12787_v27 }
 0x418   :  { %2337 = vmatprep.mubr.f32.mxu1 %v19495_v26 }
 0x41b   :  { %2338 = vmatmul.mubr.f32.gmra.mrb[106].mxu1 %v1835_v61 }
 0x41c   :  { %2343 = vmatprep.mubr.f32.mxu1 %v19495_v26 }
 0x41f   :  { %2344 = vmatmul.mubr.f32.gmra.mrb[108].mxu1 %v12790_v6 }
 0x420   :  { %2349 = vmatprep.mubr.f32.mxu1 %v19495_v26 }
 0x423   :  { %2350 = vmatmul.mubr.f32.gmra.mrb[110].mxu1 %v1845_v7 }
 0x424   :  { %2355 = vmatprep.mubr.f32.mxu1 %v19495_v26 }
 0x427   :  { %2356 = vmatmul.mubr.f32.gmra.mrb[112].mxu1 %v12793_v57 }
 0x428   :  { %2361 = vmatprep.mubr.f32.mxu1 %v19495_v26 }
 0x42a   :  { %v16267_v51 = vpop.f32.mrb[152].mxu0 }
 0x42b   :  { %2362 = vmatmul.mubr.f32.gmra.mrb[114].mxu1 %v1855_v31  ;;  %v16269_v53 = vpop.f32.mrb[153].mxu0  ;;  %v19519_v31 = vld [vmem:[#allocation25_spill] sm:$0xff] }
 0x42c   :  { %2367 = vmatprep.mubr.f32.mxu1 %v19495_v26 }
 0x42e   :  { %v16272_v54 = vpop.f32.mrb[154].mxu0 }
 0x42f   :  { %v16274_v55 = vpop.f32.mrb[155].mxu0  ;;  %2368 = vmatmul.mubr.f32.gmra.mrb[116].mxu1 %v12796_v28 }
 0x430   :  { %2373 = vmatprep.mubr.f32.mxu1 %v19495_v26 }
 0x432   :  { %v16277_v56 = vpop.f32.mrb[156].mxu0 }
 0x433   :  { %v16279_v58 = vpop.f32.mrb[157].mxu0  ;;  %2374 = vmatmul.mubr.f32.gmra.mrb[118].mxu1 %v1865_v0 }
 0x434   :  { %2379 = vmatprep.mubr.f32.mxu1 %v19495_v26 }
 0x436   :  { %v16282_v62 = vpop.f32.mrb[158].mxu0 }
 0x437   :  { %v16284_v2 = vpop.f32.mrb[159].mxu0  ;;  %2380 = vmatmul.mubr.f32.gmra.mrb[120].mxu1 %v16235_v23 }
 0x438   :  { %2385 = vmatprep.mubr.f32.mxu1 %v19495_v26 }
 0x43a   :  { %v16288_v30 = vpop.f32.mrb[160].mxu0 }
 0x43b   :  { %v16290_v17 = vpop.f32.mrb[161].mxu0  ;;  %2386 = vmatmul.mubr.f32.gmra.mrb[122].mxu1 %v1875_v18 }
 0x43c   :  { %2391 = vmatprep.mubr.f32.mxu1 %v19495_v26 }
 0x43e   :  { %v16293_v3 = vpop.f32.mrb[162].mxu0 }
 0x43f   :  { %v16295_v32 = vpop.f32.mrb[163].mxu0  ;;  %2392 = vmatmul.mubr.f32.gmra.mrb[124].mxu1 %v16238_v52 }
 0x440   :  { %2462 = vmatprep.mubr.f32.mxu1 %v19495_v26 }
 0x442   :  { %v16299_v22 = vpop.f32.mrb[164].mxu0 }
 0x443   :  { %v16301_v36 = vpop.f32.mrb[165].mxu0  ;;  %2463 = vmatmul.mubr.f32.vlgmr.msra.gmra.mrb[126].mxu1 %v15886_v60 }
 0x444   :  { %2468 = vmatprep.mubr.f32.mxu1 %v19495_v26 }
 0x446   :  { %v16305_v14 = vpop.f32.mrb[166].mxu0 }
 0x447   :  { %v16307_v19 = vpop.f32.mrb[167].mxu0  ;;  %2469 = vmatmul.mubr.f32.gmra.mrb[128].mxu1 %v15884_v59  ;;  %v19496_v59 = vld [vmem:[#allocation4_spill] sm:$0xff] }
 0x448   :  { %2474 = vmatprep.mubr.f32.mxu1 %v19495_v26 }
 0x44a   :  { %v16311_v39 = vpop.f32.mrb[168].mxu0 }
 0x44b   :  { %v16313_v52 = vpop.f32.mrb[169].mxu0  ;;  %2475 = vmatmul.mubr.f32.gmra.mrb[130].mxu1 %v15898_v1  ;;  %v19498_v1 = vld [vmem:[#allocation6_spill] sm:$0xff] }
 0x44c   :  { %2480 = vmatprep.mubr.f32.mxu1 %v19495_v26 }
 0x44e   :  { %v16317_v29 = vpop.f32.mrb[170].mxu0 }
 0x44f   :  { %v16319_v60 = vpop.f32.mrb[171].mxu0  ;;  %2481 = vmatmul.mubr.f32.gmra.mrb[132].mxu1 %v15896_v63  ;;  %v19497_v63 = vld [vmem:[#allocation3_spill] sm:$0xff] }
 0x450   :  { %2486 = vmatprep.mubr.f32.mxu1 %v19495_v26 }
 0x453   :  { %2487 = vmatmul.mubr.f32.gmra.mrb[134].mxu1 %v15910_v5  ;;  %v19500_v5 = vld [vmem:[#allocation8_spill] sm:$0xff] }
 0x454   :  { %2492 = vmatprep.mubr.f32.mxu1 %v19495_v26 }
 0x457   :  { %2493 = vmatmul.mubr.f32.gmra.mrb[136].mxu1 %v15908_v4  ;;  %v19499_v4 = vld [vmem:[#allocation5_spill] sm:$0xff] }
 0x458   :  { %2498 = vmatprep.mubr.f32.mxu1 %v19495_v26 }
 0x45b   :  { %2499 = vmatmul.mubr.f32.gmra.mrb[138].mxu1 %v15922_v9  ;;  %v19502_v9 = vld [vmem:[#allocation10_spill] sm:$0xff] }
 0x45c   :  { %2504 = vmatprep.mubr.f32.mxu1 %v19495_v26 }
 0x45f   :  { %2505 = vmatmul.mubr.f32.gmra.mrb[140].mxu1 %v15920_v8  ;;  %v19501_v8 = vld [vmem:[#allocation7_spill] sm:$0xff] }
 0x460   :  { %2510 = vmatprep.mubr.f32.mxu1 %v19495_v26 }
 0x463   :  { %2511 = vmatmul.mubr.f32.gmra.mrb[142].mxu1 %v15934_v11  ;;  %v19504_v11 = vld [vmem:[#allocation12_spill] sm:$0xff] }
 0x464   :  { %2516 = vmatprep.mubr.f32.mxu1 %v19495_v26 }
 0x467   :  { %2517 = vmatmul.mubr.f32.gmra.mrb[144].mxu1 %v15932_v10  ;;  %v19503_v10 = vld [vmem:[#allocation9_spill] sm:$0xff] }
 0x468   :  { %2522 = vmatprep.mubr.f32.mxu1 %v19495_v26 }
 0x46b   :  { %2523 = vmatmul.mubr.f32.gmra.mrb[18].mxu1 %v15946_v16  ;;  %v19506_v16 = vld [vmem:[#allocation14_spill] sm:$0xff] }
 0x46c   :  { %2528 = vmatprep.mubr.f32.mxu1 %v19495_v26 }
 0x46f   :  { %2529 = vmatmul.mubr.f32.gmra.mrb[20].mxu1 %v15944_v15  ;;  %v19505_v15 = vld [vmem:[#allocation11_spill] sm:$0xff] }
 0x470   :  { %2534 = vmatprep.mubr.f32.mxu1 %v19495_v26 }
 0x473   :  { %2535 = vmatmul.mubr.f32.gmra.mrb[22].mxu1 %v15958_v21  ;;  %v19508_v21 = vld [vmem:[#allocation16_spill] sm:$0xff] }
 0x474   :  { %2540 = vmatprep.mubr.f32.mxu1 %v19495_v26 }
 0x477   :  { %2541 = vmatmul.mubr.f32.gmra.mrb[24].mxu1 %v15956_v20  ;;  %v19507_v20 = vld [vmem:[#allocation13_spill] sm:$0xff] }
 0x478   :  { %2546 = vmatprep.mubr.f32.mxu1 %v19495_v26 }
 0x47b   :  { %2547 = vmatmul.mubr.f32.gmra.mrb[26].mxu1 %v15970_v25  ;;  %v19510_v25 = vld [vmem:[#allocation18_spill] sm:$0xff] }
 0x47c   :  { %2552 = vmatprep.mubr.f32.mxu1 %v19495_v26 }
 0x47f   :  { %2553 = vmatmul.mubr.f32.gmra.mrb[28].mxu1 %v15968_v24  ;;  %v19509_v24 = vld [vmem:[#allocation15_spill] sm:$0xff] }
 0x480   :  { %2558 = vmatprep.mubr.f32.mxu1 %v19495_v26 }
 0x483   :  { %2559 = vmatmul.mubr.f32.gmra.mrb[30].mxu1 %v15988_v34  ;;  %v19512_v34 = vld [vmem:[#allocation20_spill] sm:$0xff] }
 0x484   :  { %2564 = vmatprep.mubr.f32.mxu1 %v19495_v26 }
 0x487   :  { %2565 = vmatmul.mubr.f32.gmra.mrb[32].mxu1 %v15986_v33  ;;  %v19511_v33 = vld [vmem:[#allocation17_spill] sm:$0xff] }
 0x488   :  { %2570 = vmatprep.mubr.f32.mxu1 %v19495_v26 }
 0x48b   :  { %2571 = vmatmul.mubr.f32.gmra.mrb[34].mxu1 %v16000_v38  ;;  %v19514_v38 = vld [vmem:[#allocation22_spill] sm:$0xff] }
 0x48c   :  { %2576 = vmatprep.mubr.f32.mxu1 %v19495_v26 }
 0x48f   :  { %2577 = vmatmul.mubr.f32.gmra.mrb[36].mxu1 %v15998_v37  ;;  %v19513_v37 = vld [vmem:[#allocation19_spill] sm:$0xff] }
 0x490   :  { %2582 = vmatprep.mubr.f32.mxu1 %v19495_v26 }
 0x493   :  { %2583 = vmatmul.mubr.f32.gmra.mrb[38].mxu1 %v16009_v13  ;;  %v19516_v13 = vld [vmem:[#allocation24_spill] sm:$0xff] }
 0x494   :  { %2588 = vmatprep.mubr.f32.mxu1 %v19495_v26 }
 0x497   :  { %2589 = vmatmul.mubr.f32.gmra.mrb[40].mxu1 %v16007_v40  ;;  %v19515_v40 = vld [vmem:[#allocation21_spill] sm:$0xff] }
 0x498   :  { %2594 = vmatprep.mubr.f32.mxu1 %v19495_v26 }
 0x49b   :  { %2595 = vmatmul.mubr.f32.gmra.mrb[42].mxu1 %v16015_v42 }
 0x49c   :  { %2600 = vmatprep.mubr.f32.mxu1 %v19495_v26 }
 0x49f   :  { %2601 = vmatmul.mubr.f32.gmra.mrb[44].mxu1 %v16013_v41 }
 0x4a0   :  { %2606 = vmatprep.mubr.f32.mxu1 %v19495_v26 }
 0x4a3   :  { %2607 = vmatmul.mubr.f32.gmra.mrb[46].mxu1 %v16019_v44  ;;  %v19517_v44 = vld [vmem:[#allocation23_spill] sm:$0xff] }
 0x4a4   :  { %2612 = vmatprep.mubr.f32.mxu1 %v19495_v26 }
 0x4a7   :  { %2613 = vmatmul.mubr.f32.gmra.mrb[48].mxu1 %v16017_v43 }
 0x4a8   :  { %2618 = vmatprep.mubr.f32.mxu1 %v19495_v26 }
 0x4ab   :  { %2619 = vmatmul.mubr.f32.gmra.mrb[50].mxu1 %v16023_v46 }
 0x4ac   :  { %2624 = vmatprep.mubr.f32.mxu1 %v19495_v26 }
 0x4af   :  { %2625 = vmatmul.mubr.f32.gmra.mrb[52].mxu1 %v16021_v45 }
 0x4b0   :  { %2630 = vmatprep.mubr.f32.mxu1 %v19495_v26 }
 0x4b3   :  { %2631 = vmatmul.mubr.f32.gmra.mrb[54].mxu1 %v16027_v48 }
 0x4b4   :  { %2636 = vmatprep.mubr.f32.mxu1 %v19495_v26 }
 0x4b7   :  { %2637 = vmatmul.mubr.f32.gmra.mrb[56].mxu1 %v16025_v47 }
 0x4b8   :  { %2642 = vmatprep.mubr.f32.mxu1 %v19495_v26 }
 0x4bb   :  { %2643 = vmatmul.mubr.f32.gmra.mrb[58].mxu1 %v16031_v50 }
 0x4bc   :  { %2648 = vmatprep.mubr.f32.mxu1 %v19495_v26 }
 0x4bf   :  { %2649 = vmatmul.mubr.f32.gmra.mrb[60].mxu1 %v16029_v49  ;;  %v19518_v49 = vld [vmem:[#allocation26_spill] sm:$0xff] }
 0x4c0   :  { %2654 = vmatprep.mubr.f32.mxu1 %v19495_v26 }
 0x4c3   :  { %2655 = vmatmul.mubr.f32.gmra.mrb[62].mxu1 %v19496_v59 }
 0x4c4   :  { %2660 = vmatprep.mubr.f32.mxu1 %v19495_v26 }
 0x4c7   :  { %2661 = vmatmul.mubr.f32.gmra.mrb[64].mxu1 %v19497_v63 }
 0x4c8   :  { %2666 = vmatprep.mubr.f32.mxu1 %v19495_v26 }
 0x4cb   :  { %2667 = vmatmul.mubr.f32.gmra.mrb[66].mxu1 %v19498_v1 }
 0x4cc   :  { %2672 = vmatprep.mubr.f32.mxu1 %v19495_v26 }
 0x4cf   :  { %2673 = vmatmul.mubr.f32.gmra.mrb[68].mxu1 %v19499_v4 }
 0x4d0   :  { %2678 = vmatprep.mubr.f32.mxu1 %v19495_v26 }
 0x4d3   :  { %2679 = vmatmul.mubr.f32.gmra.mrb[70].mxu1 %v19500_v5 }
 0x4d4   :  { %2684 = vmatprep.mubr.f32.mxu1 %v19495_v26 }
 0x4d7   :  { %2685 = vmatmul.mubr.f32.gmra.mrb[72].mxu1 %v19501_v8 }
 0x4d8   :  { %2690 = vmatprep.mubr.f32.mxu1 %v19495_v26 }
 0x4db   :  { %2691 = vmatmul.mubr.f32.gmra.mrb[74].mxu1 %v19502_v9  ;;  %v19521_v9 = vld [vmem:[#allocation27_spill] sm:$0xff] }
 0x4dc   :  { %2696 = vmatprep.mubr.f32.mxu1 %v19495_v26 }
 0x4df   :  { %2697 = vmatmul.mubr.f32.gmra.mrb[76].mxu1 %v19503_v10 }
 0x4e0   :  { %2702 = vmatprep.mubr.f32.mxu1 %v19495_v26 }
 0x4e3   :  { %2703 = vmatmul.mubr.f32.gmra.mrb[78].mxu1 %v19504_v11 }
 0x4e4   :  { %2708 = vmatprep.mubr.f32.mxu1 %v19495_v26 }
 0x4e7   :  { %2709 = vmatmul.mubr.f32.gmra.mrb[80].mxu1 %v19505_v15 }
 0x4e8   :  { %2714 = vmatprep.mubr.f32.mxu1 %v19495_v26 }
 0x4eb   :  { %2715 = vmatmul.mubr.f32.gmra.mrb[82].mxu1 %v19506_v16  ;;  %v19522_v16 = vld [vmem:[#allocation30_spill] sm:$0xff] }
 0x4ec   :  { %2720 = vmatprep.mubr.f32.mxu1 %v19495_v26 }
 0x4ef   :  { %2721 = vmatmul.mubr.f32.gmra.mrb[84].mxu1 %v19507_v20 }
 0x4f0   :  { %2726 = vmatprep.mubr.f32.mxu1 %v19495_v26 }
 0x4f3   :  { %2727 = vmatmul.mubr.f32.gmra.mrb[86].mxu1 %v19508_v21 }
 0x4f4   :  { %2732 = vmatprep.mubr.f32.mxu1 %v19495_v26 }
 0x4f7   :  { %2733 = vmatmul.mubr.f32.gmra.mrb[88].mxu1 %v19509_v24 }
 0x4f8   :  { %2738 = vmatprep.mubr.f32.mxu1 %v19495_v26 }
 0x4fb   :  { %2739 = vmatmul.mubr.f32.gmra.mrb[90].mxu1 %v19510_v25 }
 0x4fc   :  { %2744 = vmatprep.mubr.f32.mxu1 %v19495_v26 }
 0x4ff   :  { %2745 = vmatmul.mubr.f32.gmra.mrb[92].mxu1 %v19511_v33 }
 0x500   :  { %2750 = vmatprep.mubr.f32.mxu1 %v19495_v26 }
 0x503   :  { %2751 = vmatmul.mubr.f32.gmra.mrb[94].mxu1 %v19512_v34 }
 0x504   :  { %2756 = vmatprep.mubr.f32.mxu1 %v19495_v26 }
 0x507   :  { %2757 = vmatmul.mubr.f32.gmra.mrb[96].mxu1 %v19513_v37 }
 0x508   :  { %2762 = vmatprep.mubr.f32.mxu1 %v19495_v26 }
 0x50b   :  { %2763 = vmatmul.mubr.f32.gmra.mrb[98].mxu1 %v19514_v38  ;;  %v19523_v38 = vld [vmem:[#allocation29_spill] sm:$0xff] }
 0x50c   :  { %2768 = vmatprep.mubr.f32.mxu1 %v19495_v26 }
 0x50f   :  { %2769 = vmatmul.mubr.f32.gmra.mrb[100].mxu1 %v19515_v40 }
 0x510   :  { %2774 = vmatprep.mubr.f32.mxu1 %v19495_v26 }
 0x513   :  { %2775 = vmatmul.mubr.f32.gmra.mrb[102].mxu1 %v19516_v13 }
 0x514   :  { %2780 = vmatprep.mubr.f32.mxu1 %v19495_v26 }
 0x516   :  { %v2464_v41 = vpop.f32.mrb[126].mxu1 }
 0x517   :  { %v2465_v42 = vadd.f32 %v2464_v41, %v16267_v51  ;;  %v2466_v43 = vpop.f32.mrb[127].mxu1  ;;  %2781 = vmatmul.mubr.f32.gmra.mrb[104].mxu1 %v19517_v44 }
 0x518   :  { %v2467_v45 = vadd.f32 %v2466_v43, %v16269_v53  ;;  %2786 = vmatprep.mubr.f32.mxu1 %v19495_v26 }
 0x519   :  { %v2847_v12 = vmax.f32 %v2465_v42, 0.0  ;;  %v19524_v42 = vld [vmem:[#allocation32_spill] sm:$0xff] }
 0x51a   :  { %v2470_v46 = vpop.f32.mrb[128].mxu1  ;;  %v2848_v35 = vmax.f32 %v2467_v45, 0.0 }
 0x51b   :  { %v2471_v47 = vadd.f32 %v2470_v46, %v16272_v54  ;;  %v2472_v48 = vpop.f32.mrb[129].mxu1  ;;  %2787 = vmatmul.mubr.f32.gmra.mrb[106].mxu1 %v19518_v49  ;;  %v19520_v54 = vld [vmem:[#allocation28_spill] sm:$0xff] }
 0x51c   :  { %v2473_v50 = vadd.f32 %v2472_v48, %v16274_v55  ;;  %2792 = vmatprep.mubr.f32.mxu1 %v19495_v26 }
 0x51d   :  { %v2849_v27 = vmax.f32 %v2471_v47, 0.0 }
 0x51e   :  { %v2850_v6 = vmax.f32 %v2473_v50, 0.0  ;;  %v2476_v61 = vpop.f32.mrb[130].mxu1  ;;  %v19525_v50 = vld [vmem:[#allocation31_spill] sm:$0xff] }
 0x51f   :  { %v13758_v57 = vpack.c.bf16 %v2849_v27, %v2847_v12  ;;  %v2477_v7 = vadd.f32 %v2476_v61, %v16277_v56  ;;  %v2478_v28 = vpop.f32.mrb[131].mxu1  ;;  %2793 = vmatmul.mubr.f32.gmra.mrb[108].mxu1 %v19519_v31 }
 0x520   :  { %v13756_v23 = vpack.c.bf16 %v2850_v6, %v2848_v35  ;;  %v2479_v0 = vadd.f32 %v2478_v28, %v16279_v58  ;;  %2798 = vmatprep.mubr.f32.mxu1 %v19495_v26  ;;  %v19526_v6 = vld [vmem:[#allocation34_spill] sm:$0xff] }
 0x521   :  { %v2851_v56 = vmax.f32 %v2477_v7, 0.0 }
 0x522   :  { %v2482_v18 = vpop.f32.mrb[132].mxu1  ;;  %13757 = vmatprep.subr.bf16.mxu0 %v13756_v23  ;;  %v2852_v63 = vmax.f32 %v2479_v0, 0.0  ;;  %v19527_v0 = vld [vmem:[#allocation33_spill] sm:$0xff] }
 0x523   :  { %v2483_v51 = vadd.f32 %v2482_v18, %v16282_v62  ;;  %v2484_v53 = vpop.f32.mrb[133].mxu1  ;;  %2799 = vmatmul.mubr.f32.gmra.mrb[110].mxu1 %v19520_v54  ;;  %13759 = vmatpush1.bf16.msra.mxu0 %v13758_v57 }
 0x524   :  { %v2485_v55 = vadd.f32 %v2484_v53, %v16284_v2  ;;  %2804 = vmatprep.mubr.f32.mxu1 %v19495_v26 }
 0x525   :  { %v2853_v59 = vmax.f32 %v2483_v51, 0.0 }
 0x526   :  { %v2854_v1 = vmax.f32 %v2485_v55, 0.0  ;;  %v2488_v4 = vpop.f32.mrb[134].mxu1 }
 0x527   :  { %v13762_v58 = vpack.c.bf16 %v2853_v59, %v2851_v56  ;;  %v2489_v5 = vadd.f32 %v2488_v4, %v16288_v30  ;;  %v2490_v8 = vpop.f32.mrb[135].mxu1  ;;  %2805 = vmatmul.mubr.f32.gmra.mrb[112].mxu1 %v19521_v9 }
 0x528   :  { %v13760_v62 = vpack.c.bf16 %v2854_v1, %v2852_v63  ;;  %v2491_v10 = vadd.f32 %v2490_v8, %v16290_v17  ;;  %2810 = vmatprep.mubr.f32.mxu1 %v19495_v26 }
 0x529   :  { %v2855_v30 = vmax.f32 %v2489_v5, 0.0 }
 0x52a   :  { %v2494_v11 = vpop.f32.mrb[136].mxu1  ;;  %13761 = vmatprep.subr.bf16.mxu0 %v13760_v62  ;;  %v2856_v24 = vmax.f32 %v2491_v10, 0.0 }
 0x52b   :  { %v2495_v2 = vadd.f32 %v2494_v11, %v16293_v3  ;;  %v2496_v15 = vpop.f32.mrb[137].mxu1  ;;  %2811 = vmatmul.mubr.f32.gmra.mrb[114].mxu1 %v19522_v16  ;;  %13763 = vmatpush1.bf16.msra.mxu0 %v13762_v58 }
 0x52c   :  { %v2497_v20 = vadd.f32 %v2496_v15, %v16295_v32  ;;  %2816 = vmatprep.mubr.f32.mxu1 %v19495_v26 }
 0x52d   :  { %v2857_v21 = vmax.f32 %v2495_v2, 0.0 }
 0x52e   :  { %v2858_v25 = vmax.f32 %v2497_v20, 0.0  ;;  %v2500_v33 = vpop.f32.mrb[138].mxu1 }
 0x52f   :  { %v13766_v17 = vpack.c.bf16 %v2857_v21, %v2855_v30  ;;  %v2501_v34 = vadd.f32 %v2500_v33, %v16299_v22  ;;  %v2502_v37 = vpop.f32.mrb[139].mxu1  ;;  %2817 = vmatmul.mubr.f32.gmra.mrb[116].mxu1 %v19523_v38  ;;  %v16465_v38 = vld [vmem:[%s19402_s4] sm:$0xff] }
 0x530   :  { %v13764_v3 = vpack.c.bf16 %v2858_v25, %v2856_v24  ;;  %v2503_v40 = vadd.f32 %v2502_v37, %v16301_v36  ;;  %2822 = vmatprep.mubr.f32.mxu1 %v19495_v26 }
 0x531   :  { %v2859_v22 = vmax.f32 %v2501_v34, 0.0 }
 0x532   :  { %v2506_v13 = vpop.f32.mrb[140].mxu1  ;;  %13765 = vmatprep.subr.bf16.mxu0 %v13764_v3  ;;  %v2860_v45 = vmax.f32 %v2503_v40, 0.0 }
 0x533   :  { %v2507_v32 = vadd.f32 %v2506_v13, %v16305_v14  ;;  %v2508_v41 = vpop.f32.mrb[141].mxu1  ;;  %2823 = vmatmul.mubr.f32.gmra.mrb[118].mxu1 %v19524_v42  ;;  %13767 = vmatpush1.bf16.msra.mxu0 %v13766_v17 }
 0x534   :  { %v2509_v43 = vadd.f32 %v2508_v41, %v16307_v19  ;;  %2828 = vmatprep.mubr.f32.mxu1 %v19495_v26 }
 0x535   :  { %v2861_v44 = vmax.f32 %v2507_v32, 0.0 }
 0x536   :  { %v2862_v46 = vmax.f32 %v2509_v43, 0.0  ;;  %v2512_v47 = vpop.f32.mrb[142].mxu1 }
 0x537   :  { %v13770_v36 = vpack.c.bf16 %v2861_v44, %v2859_v22  ;;  %v2513_v48 = vadd.f32 %v2512_v47, %v16311_v39  ;;  %v2514_v49 = vpop.f32.mrb[143].mxu1  ;;  %2829 = vmatmul.mubr.f32.gmra.mrb[120].mxu1 %v19525_v50  ;;  %v16472_v22 = vld [vmem:[%s19402_s4 + $0x8] sm:$0xff]  ;;  %v16479_v47 = vld [vmem:[%s19402_s4 + $0x10] sm:$0xff] }
 0x538   :  { %v13768_v14 = vpack.c.bf16 %v2862_v46, %v2860_v45  ;;  %v2515_v12 = vadd.f32 %v2514_v49, %v16313_v52  ;;  %2834 = vmatprep.mubr.f32.mxu1 %v19495_v26 }
 0x539   :  { %v2863_v39 = vmax.f32 %v2513_v48, 0.0 }
 0x53a   :  { %v2518_v27 = vpop.f32.mrb[144].mxu1  ;;  %13769 = vmatprep.subr.bf16.mxu0 %v13768_v14  ;;  %v2864_v7 = vmax.f32 %v2515_v12, 0.0 }
 0x53b   :  { %v2519_v19 = vadd.f32 %v2518_v27, %v16317_v29  ;;  %v2520_v35 = vpop.f32.mrb[145].mxu1  ;;  %2835 = vmatmul.mubr.f32.gmra.mrb[122].mxu1 %v19526_v6  ;;  %13771 = vmatpush1.bf16.msra.mxu0 %v13770_v36 }
 0x53c   :  { %v2521_v61 = vadd.f32 %v2520_v35, %v16319_v60  ;;  %2840 = vmatprep.mubr.f32.mxu1 %v19495_v26 }
 0x53d   :  { %v2865_v57 = vmax.f32 %v2519_v19, 0.0  ;;  %v16486_v19 = vld [vmem:[%s19402_s4 + $0x18] sm:$0xff] }
 0x53e   :  { %v2866_v28 = vmax.f32 %v2521_v61, 0.0  ;;  %v2524_v31 = vpop.f32.mrb[18].mxu1 }
 0x53f   :  { %v13774_v52 = vpack.c.bf16 %v2865_v57, %v2863_v39  ;;  %v2526_v23 = vpop.f32.mrb[19].mxu1  ;;  %2841 = vmatmul.mubr.f32.gmra.mrb[124].mxu1 %v19527_v0  ;;  %v2867_v29 = vmax.f32 %v2524_v31, 0.0  ;;  %v16493_v39 = vld [vmem:[%s19402_s4 + $0x20] sm:$0xff] }
 0x540   :  { %v13772_v18 = vpack.c.bf16 %v2866_v28, %v2864_v7  ;;  %v2868_v55 = vmax.f32 %v2526_v23, 0.0 }
 0x542   :  { %v2530_v51 = vpop.f32.mrb[20].mxu1  ;;  %13773 = vmatprep.subr.bf16.mxu0 %v13772_v18  ;;  %v16500_v18 = vld [vmem:[%s19402_s4 + $0x28] sm:$0xff] }
 0x543   :  { %v2869_v53 = vmax.f32 %v2530_v51, 0.0  ;;  %v2532_v54 = vpop.f32.mrb[21].mxu1  ;;  %13775 = vmatpush1.bf16.msra.mxu0 %v13774_v52 }
 0x544   :  { %v2870_v60 = vmax.f32 %v2532_v54, 0.0  ;;  %v16507_v54 = vld [vmem:[%s19402_s4 + $0x30] sm:$0xff] }
 0x545   :  { %v13778_v56 = vpack.c.bf16 %v2869_v53, %v2867_v29 }
 0x546   :  { %v13776_v59 = vpack.c.bf16 %v2870_v60, %v2868_v55  ;;  %v2536_v63 = vpop.f32.mrb[22].mxu1 }
 0x547   :  { %v2538_v1 = vpop.f32.mrb[23].mxu1  ;;  %v2871_v58 = vmax.f32 %v2536_v63, 0.0 }
 0x548   :  { %13777 = vmatprep.subr.bf16.mxu0 %v13776_v59  ;;  %v2872_v9 = vmax.f32 %v2538_v1, 0.0 }
 0x549   :  { %13779 = vmatpush1.bf16.msra.mxu0 %v13778_v56 }
 0x54a   :  { %v2542_v4 = vpop.f32.mrb[24].mxu1 }
 0x54b   :  { %v2873_v5 = vmax.f32 %v2542_v4, 0.0  ;;  %v2544_v8 = vpop.f32.mrb[25].mxu1 }
 0x54c   :  { %v2874_v62 = vmax.f32 %v2544_v8, 0.0 }
 0x54d   :  { %v13782_v10 = vpack.c.bf16 %v2873_v5, %v2871_v58  ;;  %v16514_v58 = vld [vmem:[%s19402_s4 + $0x38] sm:$0xff] }
 0x54e   :  { %v13780_v11 = vpack.c.bf16 %v2874_v62, %v2872_v9  ;;  %v2548_v2 = vpop.f32.mrb[26].mxu1  ;;  %v16521_v62 = vld [vmem:[%s19402_s4 + $0x40] sm:$0xff] }
 0x54f   :  { %v2550_v15 = vpop.f32.mrb[27].mxu1  ;;  %v2875_v20 = vmax.f32 %v2548_v2, 0.0 }
 0x550   :  { %13781 = vmatprep.subr.bf16.mxu0 %v13780_v11  ;;  %v2876_v24 = vmax.f32 %v2550_v15, 0.0 }
 0x551   :  { %13783 = vmatpush1.bf16.msra.mxu0 %v13782_v10 }
 0x552   :  { %v2554_v16 = vpop.f32.mrb[28].mxu1 }
 0x553   :  { %v2877_v30 = vmax.f32 %v2554_v16, 0.0  ;;  %v2556_v21 = vpop.f32.mrb[29].mxu1 }
 0x554   :  { %v2878_v25 = vmax.f32 %v2556_v21, 0.0  ;;  %v16528_v21 = vld [vmem:[%s19402_s4 + $0x48] sm:$0xff] }
 0x555   :  { %v13786_v33 = vpack.c.bf16 %v2877_v30, %v2875_v20 }
 0x556   :  { %v13784_v17 = vpack.c.bf16 %v2878_v25, %v2876_v24  ;;  %v2560_v34 = vpop.f32.mrb[30].mxu1 }
 0x557   :  { %v2562_v37 = vpop.f32.mrb[31].mxu1  ;;  %v2879_v40 = vmax.f32 %v2560_v34, 0.0 }
 0x558   :  { %13785 = vmatprep.subr.bf16.mxu0 %v13784_v17  ;;  %v2880_v41 = vmax.f32 %v2562_v37, 0.0  ;;  %v16535_v17 = vld [vmem:[%s19402_s4 + $0x50] sm:$0xff] }
 0x559   :  { %13787 = vmatpush1.bf16.msra.mxu0 %v13786_v33 }
 0x55a   :  { %v2566_v3 = vpop.f32.mrb[32].mxu1 }
 0x55b   :  { %v2881_v13 = vmax.f32 %v2566_v3, 0.0  ;;  %v2568_v32 = vpop.f32.mrb[33].mxu1 }
 0x55c   :  { %v2882_v42 = vmax.f32 %v2568_v32, 0.0  ;;  %3052 = vmatmul.mubr.f32.vlgmr.msra.gmra.mrb[172].mxu0 %v16465_v38 }
 0x55d   :  { %v13790_v43 = vpack.c.bf16 %v2881_v13, %v2879_v40  ;;  %3057 = vmatprep.mubr.f32.mxu0 %v19495_v26 }
 0x55e   :  { %v13788_v44 = vpack.c.bf16 %v2882_v42, %v2880_v41  ;;  %v2572_v45 = vpop.f32.mrb[34].mxu1  ;;  %v16542_v42 = vld [vmem:[%s19402_s4 + $0x58] sm:$0xff] }
 0x55f   :  { %v2574_v46 = vpop.f32.mrb[35].mxu1  ;;  %v2883_v48 = vmax.f32 %v2572_v45, 0.0 }
 0x560   :  { %13789 = vmatprep.subr.bf16.mxu0 %v13788_v44  ;;  %3058 = vmatmul.mubr.f32.gmra.mrb[174].mxu0 %v16472_v22  ;;  %v2884_v14 = vmax.f32 %v2574_v46, 0.0 }
 0x561   :  { %13791 = vmatpush1.bf16.msra.mxu0 %v13790_v43  ;;  %3063 = vmatprep.mubr.f32.mxu0 %v19495_v26 }
 0x562   :  { %v2578_v36 = vpop.f32.mrb[36].mxu1 }
 0x563   :  { %v2885_v49 = vmax.f32 %v2578_v36, 0.0  ;;  %v2580_v50 = vpop.f32.mrb[37].mxu1 }
 0x564   :  { %v2886_v12 = vmax.f32 %v2580_v50, 0.0  ;;  %3064 = vmatmul.mubr.f32.gmra.mrb[176].mxu0 %v16479_v47 }
 0x565   :  { %v13794_v27 = vpack.c.bf16 %v2885_v49, %v2883_v48  ;;  %3069 = vmatprep.mubr.f32.mxu0 %v19495_v26 }
 0x566   :  { %v13792_v35 = vpack.c.bf16 %v2886_v12, %v2884_v14  ;;  %v2584_v6 = vpop.f32.mrb[38].mxu1 }
 0x567   :  { %v2586_v61 = vpop.f32.mrb[39].mxu1  ;;  %v2887_v7 = vmax.f32 %v2584_v6, 0.0 }
 0x568   :  { %13793 = vmatprep.subr.bf16.mxu0 %v13792_v35  ;;  %3070 = vmatmul.mubr.f32.gmra.mrb[178].mxu0 %v16486_v19  ;;  %v2888_v52 = vmax.f32 %v2586_v61, 0.0 }
 0x569   :  { %13795 = vmatpush1.bf16.msra.mxu0 %v13794_v27  ;;  %3075 = vmatprep.mubr.f32.mxu0 %v19495_v26 }
 0x56a   :  { %v2590_v57 = vpop.f32.mrb[40].mxu1 }
 0x56b   :  { %v2889_v28 = vmax.f32 %v2590_v57, 0.0  ;;  %v2592_v31 = vpop.f32.mrb[41].mxu1 }
 0x56c   :  { %v2890_v23 = vmax.f32 %v2592_v31, 0.0  ;;  %3076 = vmatmul.mubr.f32.gmra.mrb[180].mxu0 %v16493_v39 }
 0x56d   :  { %v13798_v0 = vpack.c.bf16 %v2889_v28, %v2887_v7  ;;  %3081 = vmatprep.mubr.f32.mxu0 %v19495_v26 }
 0x56e   :  { %v13796_v51 = vpack.c.bf16 %v2890_v23, %v2888_v52  ;;  %v2596_v29 = vpop.f32.mrb[42].mxu1 }
 0x56f   :  { %v2598_v53 = vpop.f32.mrb[43].mxu1  ;;  %v2891_v60 = vmax.f32 %v2596_v29, 0.0 }
 0x570   :  { %13797 = vmatprep.subr.bf16.mxu0 %v13796_v51  ;;  %3082 = vmatmul.mubr.f32.gmra.mrb[182].mxu0 %v16500_v18  ;;  %v2892_v63 = vmax.f32 %v2598_v53, 0.0 }
 0x571   :  { %13799 = vmatpush1.bf16.msra.mxu0 %v13798_v0  ;;  %3087 = vmatprep.mubr.f32.mxu0 %v19495_v26 }
 0x572   :  { %v2602_v55 = vpop.f32.mrb[44].mxu1 }
 0x573   :  { %v2893_v56 = vmax.f32 %v2602_v55, 0.0  ;;  %v2604_v59 = vpop.f32.mrb[45].mxu1 }
 0x574   :  { %v2894_v1 = vmax.f32 %v2604_v59, 0.0  ;;  %3088 = vmatmul.mubr.f32.gmra.mrb[184].mxu0 %v16507_v54 }
 0x575   :  { %v13802_v4 = vpack.c.bf16 %v2893_v56, %v2891_v60  ;;  %3093 = vmatprep.mubr.f32.mxu0 %v19495_v26 }
 0x576   :  { %v13800_v5 = vpack.c.bf16 %v2894_v1, %v2892_v63  ;;  %v2608_v8 = vpop.f32.mrb[46].mxu1 }
 0x577   :  { %v2610_v9 = vpop.f32.mrb[47].mxu1  ;;  %v2895_v11 = vmax.f32 %v2608_v8, 0.0 }
 0x578   :  { %13801 = vmatprep.subr.bf16.mxu0 %v13800_v5  ;;  %3094 = vmatmul.mubr.f32.gmra.mrb[186].mxu0 %v16514_v58  ;;  %v2896_v16 = vmax.f32 %v2610_v9, 0.0 }
 0x579   :  { %13803 = vmatpush1.bf16.msra.mxu0 %v13802_v4  ;;  %3099 = vmatprep.mubr.f32.mxu0 %v19495_v26 }
 0x57a   :  { %v2614_v10 = vpop.f32.mrb[48].mxu1 }
 0x57b   :  { %v2897_v2 = vmax.f32 %v2614_v10, 0.0  ;;  %v2616_v15 = vpop.f32.mrb[49].mxu1 }
 0x57c   :  { %v2898_v20 = vmax.f32 %v2616_v15, 0.0  ;;  %3100 = vmatmul.mubr.f32.gmra.mrb[188].mxu0 %v16521_v62 }
 0x57d   :  { %v13806_v30 = vpack.c.bf16 %v2897_v2, %v2895_v11  ;;  %3105 = vmatprep.mubr.f32.mxu0 %v19495_v26 }
 0x57e   :  { %v13804_v24 = vpack.c.bf16 %v2898_v20, %v2896_v16  ;;  %v2620_v25 = vpop.f32.mrb[50].mxu1 }
 0x57f   :  { %v2622_v33 = vpop.f32.mrb[51].mxu1  ;;  %v2899_v37 = vmax.f32 %v2620_v25, 0.0 }
 0x580   :  { %13805 = vmatprep.subr.bf16.mxu0 %v13804_v24  ;;  %3106 = vmatmul.mubr.f32.gmra.mrb[190].mxu0 %v16528_v21  ;;  %v2900_v13 = vmax.f32 %v2622_v33, 0.0 }
 0x581   :  { %13807 = vmatpush1.bf16.msra.mxu0 %v13806_v30  ;;  %3111 = vmatprep.mubr.f32.mxu0 %v19495_v26 }
 0x582   :  { %v2626_v34 = vpop.f32.mrb[52].mxu1 }
 0x583   :  { %v2901_v3 = vmax.f32 %v2626_v34, 0.0  ;;  %v2628_v40 = vpop.f32.mrb[53].mxu1 }
 0x584   :  { %v2902_v32 = vmax.f32 %v2628_v40, 0.0  ;;  %3112 = vmatmul.mubr.f32.gmra.mrb[192].mxu0 %v16535_v17 }
 0x585   :  { %v13810_v41 = vpack.c.bf16 %v2901_v3, %v2899_v37  ;;  %3117 = vmatprep.mubr.f32.mxu0 %v19495_v26 }
 0x586   :  { %v13808_v43 = vpack.c.bf16 %v2902_v32, %v2900_v13  ;;  %v2632_v44 = vpop.f32.mrb[54].mxu1 }
 0x587   :  { %v2634_v45 = vpop.f32.mrb[55].mxu1  ;;  %v2903_v36 = vmax.f32 %v2632_v44, 0.0 }
 0x588   :  { %13809 = vmatprep.subr.bf16.mxu0 %v13808_v43  ;;  %3118 = vmatmul.mubr.f32.gmra.mrb[194].mxu0 %v16542_v42  ;;  %v2904_v50 = vmax.f32 %v2634_v45, 0.0 }
 0x589   :  { %13811 = vmatpush1.bf16.msra.mxu0 %v13810_v41  ;;  %3224 = vmatprep.mubr.f32.mxu0 %v19495_v26 }
 0x58a   :  { %v2638_v46 = vpop.f32.mrb[56].mxu1 }
 0x58b   :  { %v2905_v48 = vmax.f32 %v2638_v46, 0.0  ;;  %v2640_v49 = vpop.f32.mrb[57].mxu1 }
 0x58c   :  { %v2906_v14 = vmax.f32 %v2640_v49, 0.0 }
 0x58d   :  { %v13814_v12 = vpack.c.bf16 %v2905_v48, %v2903_v36 }
 0x58e   :  { %v13812_v27 = vpack.c.bf16 %v2906_v14, %v2904_v50  ;;  %v2644_v35 = vpop.f32.mrb[58].mxu1 }
 0x58f   :  { %v2646_v6 = vpop.f32.mrb[59].mxu1  ;;  %v2907_v57 = vmax.f32 %v2644_v35, 0.0 }
 0x590   :  { %13813 = vmatprep.subr.bf16.mxu0 %v13812_v27  ;;  %v2908_v31 = vmax.f32 %v2646_v6, 0.0 }
 0x591   :  { %13815 = vmatpush1.bf16.msra.mxu0 %v13814_v12 }
 0x592   :  { %v2650_v61 = vpop.f32.mrb[60].mxu1 }
 0x593   :  { %v2909_v7 = vmax.f32 %v2650_v61, 0.0  ;;  %v2652_v28 = vpop.f32.mrb[61].mxu1 }
 0x594   :  { %v2910_v52 = vmax.f32 %v2652_v28, 0.0 }
 0x595   :  { %v13818_v23 = vpack.c.bf16 %v2909_v7, %v2907_v57 }
 0x596   :  { %v13816_v0 = vpack.c.bf16 %v2910_v52, %v2908_v31  ;;  %v2656_v51 = vpop.f32.mrb[62].mxu1 }
 0x597   :  { %v2658_v29 = vpop.f32.mrb[63].mxu1  ;;  %v2911_v55 = vmax.f32 %v2656_v51, 0.0 }
 0x598   :  { %13817 = vmatprep.subr.bf16.mxu0 %v13816_v0  ;;  %v2912_v59 = vmax.f32 %v2658_v29, 0.0 }
 0x599   :  { %13819 = vmatpush1.bf16.msra.mxu0 %v13818_v23 }
 0x59a   :  { %v2662_v53 = vpop.f32.mrb[64].mxu1 }
 0x59b   :  { %v2913_v60 = vmax.f32 %v2662_v53, 0.0  ;;  %v2664_v56 = vpop.f32.mrb[65].mxu1 }
 0x59c   :  { %v2914_v63 = vmax.f32 %v2664_v56, 0.0  ;;  %3225 = vmatmul.mubr.f32.vlgmr.msra.gmra.mrb[196].mxu0 %v16465_v38 }
 0x59d   :  { %v13822_v1 = vpack.c.bf16 %v2913_v60, %v2911_v55  ;;  %3230 = vmatprep.mubr.f32.mxu0 %v19495_v26 }
 0x59e   :  { %v13820_v4 = vpack.c.bf16 %v2914_v63, %v2912_v59  ;;  %v2668_v5 = vpop.f32.mrb[66].mxu1 }
 0x59f   :  { %v2670_v8 = vpop.f32.mrb[67].mxu1  ;;  %v2915_v10 = vmax.f32 %v2668_v5, 0.0 }
 0x5a0   :  { %13821 = vmatprep.subr.bf16.mxu0 %v13820_v4  ;;  %3231 = vmatmul.mubr.f32.gmra.mrb[198].mxu0 %v16472_v22  ;;  %v2916_v15 = vmax.f32 %v2670_v8, 0.0 }
 0x5a1   :  { %13823 = vmatpush1.bf16.msra.mxu0 %v13822_v1  ;;  %3236 = vmatprep.mubr.f32.mxu0 %v19495_v26 }
 0x5a2   :  { %v2674_v9 = vpop.f32.mrb[68].mxu1 }
 0x5a3   :  { %v2917_v11 = vmax.f32 %v2674_v9, 0.0  ;;  %v2676_v2 = vpop.f32.mrb[69].mxu1 }
 0x5a4   :  { %v2918_v16 = vmax.f32 %v2676_v2, 0.0  ;;  %3237 = vmatmul.mubr.f32.gmra.mrb[200].mxu0 %v16479_v47 }
 0x5a5   :  { %v13826_v20 = vpack.c.bf16 %v2917_v11, %v2915_v10  ;;  %3242 = vmatprep.mubr.f32.mxu0 %v19495_v26 }
 0x5a6   :  { %v13824_v30 = vpack.c.bf16 %v2918_v16, %v2916_v15  ;;  %v2680_v24 = vpop.f32.mrb[70].mxu1 }
 0x5a7   :  { %v2682_v25 = vpop.f32.mrb[71].mxu1  ;;  %v2919_v34 = vmax.f32 %v2680_v24, 0.0 }
 0x5a8   :  { %13825 = vmatprep.subr.bf16.mxu0 %v13824_v30  ;;  %3243 = vmatmul.mubr.f32.gmra.mrb[202].mxu0 %v16486_v19  ;;  %v2920_v40 = vmax.f32 %v2682_v25, 0.0 }
 0x5a9   :  { %13827 = vmatpush1.bf16.msra.mxu0 %v13826_v20  ;;  %3248 = vmatprep.mubr.f32.mxu0 %v19495_v26 }
 0x5aa   :  { %v2686_v33 = vpop.f32.mrb[72].mxu1 }
 0x5ab   :  { %v2921_v37 = vmax.f32 %v2686_v33, 0.0  ;;  %v2688_v3 = vpop.f32.mrb[73].mxu1 }
 0x5ac   :  { %v2922_v13 = vmax.f32 %v2688_v3, 0.0  ;;  %3249 = vmatmul.mubr.f32.gmra.mrb[204].mxu0 %v16493_v39 }
 0x5ad   :  { %v13830_v32 = vpack.c.bf16 %v2921_v37, %v2919_v34  ;;  %3254 = vmatprep.mubr.f32.mxu0 %v19495_v26 }
 0x5ae   :  { %v13828_v41 = vpack.c.bf16 %v2922_v13, %v2920_v40  ;;  %v2692_v43 = vpop.f32.mrb[74].mxu1 }
 0x5af   :  { %v2694_v44 = vpop.f32.mrb[75].mxu1  ;;  %v2923_v46 = vmax.f32 %v2692_v43, 0.0 }
 0x5b0   :  { %13829 = vmatprep.subr.bf16.mxu0 %v13828_v41  ;;  %3255 = vmatmul.mubr.f32.gmra.mrb[206].mxu0 %v16500_v18  ;;  %v2924_v49 = vmax.f32 %v2694_v44, 0.0 }
 0x5b1   :  { %13831 = vmatpush1.bf16.msra.mxu0 %v13830_v32  ;;  %3260 = vmatprep.mubr.f32.mxu0 %v19495_v26 }
 0x5b2   :  { %v2698_v45 = vpop.f32.mrb[76].mxu1 }
 0x5b3   :  { %v2925_v36 = vmax.f32 %v2698_v45, 0.0  ;;  %v2700_v48 = vpop.f32.mrb[77].mxu1 }
 0x5b4   :  { %v2926_v50 = vmax.f32 %v2700_v48, 0.0  ;;  %3261 = vmatmul.mubr.f32.gmra.mrb[208].mxu0 %v16507_v54 }
 0x5b5   :  { %v13834_v14 = vpack.c.bf16 %v2925_v36, %v2923_v46  ;;  %3266 = vmatprep.mubr.f32.mxu0 %v19495_v26 }
 0x5b6   :  { %v13832_v12 = vpack.c.bf16 %v2926_v50, %v2924_v49  ;;  %v2704_v27 = vpop.f32.mrb[78].mxu1 }
 0x5b7   :  { %v2706_v35 = vpop.f32.mrb[79].mxu1  ;;  %v2927_v61 = vmax.f32 %v2704_v27, 0.0 }
 0x5b8   :  { %13833 = vmatprep.subr.bf16.mxu0 %v13832_v12  ;;  %3267 = vmatmul.mubr.f32.gmra.mrb[210].mxu0 %v16514_v58  ;;  %v2928_v28 = vmax.f32 %v2706_v35, 0.0 }
 0x5b9   :  { %13835 = vmatpush1.bf16.msra.mxu0 %v13834_v14  ;;  %3272 = vmatprep.mubr.f32.mxu0 %v19495_v26 }
 0x5ba   :  { %v2710_v6 = vpop.f32.mrb[80].mxu1 }
 0x5bb   :  { %v2929_v57 = vmax.f32 %v2710_v6, 0.0  ;;  %v2712_v7 = vpop.f32.mrb[81].mxu1 }
 0x5bc   :  { %v2930_v31 = vmax.f32 %v2712_v7, 0.0  ;;  %3273 = vmatmul.mubr.f32.gmra.mrb[212].mxu0 %v16521_v62 }
 0x5bd   :  { %v13838_v52 = vpack.c.bf16 %v2929_v57, %v2927_v61  ;;  %3278 = vmatprep.mubr.f32.mxu0 %v19495_v26 }
 0x5be   :  { %v13836_v23 = vpack.c.bf16 %v2930_v31, %v2928_v28  ;;  %v2716_v0 = vpop.f32.mrb[82].mxu1 }
 0x5bf   :  { %v2718_v51 = vpop.f32.mrb[83].mxu1  ;;  %v2931_v53 = vmax.f32 %v2716_v0, 0.0 }
 0x5c0   :  { %13837 = vmatprep.subr.bf16.mxu0 %v13836_v23  ;;  %3279 = vmatmul.mubr.f32.gmra.mrb[214].mxu0 %v16528_v21  ;;  %v2932_v56 = vmax.f32 %v2718_v51, 0.0 }
 0x5c1   :  { %13839 = vmatpush1.bf16.msra.mxu0 %v13838_v52  ;;  %3284 = vmatprep.mubr.f32.mxu0 %v19495_v26 }
 0x5c2   :  { %v2722_v29 = vpop.f32.mrb[84].mxu1 }
 0x5c3   :  { %v2933_v55 = vmax.f32 %v2722_v29, 0.0  ;;  %v2724_v60 = vpop.f32.mrb[85].mxu1 }
 0x5c4   :  { %v2934_v59 = vmax.f32 %v2724_v60, 0.0  ;;  %3285 = vmatmul.mubr.f32.gmra.mrb[216].mxu0 %v16535_v17 }
 0x5c5   :  { %v13842_v63 = vpack.c.bf16 %v2933_v55, %v2931_v53  ;;  %3290 = vmatprep.mubr.f32.mxu0 %v19495_v26 }
 0x5c6   :  { %v13840_v1 = vpack.c.bf16 %v2934_v59, %v2932_v56  ;;  %v2728_v4 = vpop.f32.mrb[86].mxu1 }
 0x5c7   :  { %v2730_v5 = vpop.f32.mrb[87].mxu1  ;;  %v2935_v9 = vmax.f32 %v2728_v4, 0.0 }
 0x5c8   :  { %13841 = vmatprep.subr.bf16.mxu0 %v13840_v1  ;;  %3291 = vmatmul.mubr.f32.gmra.mrb[218].mxu0 %v16542_v42  ;;  %v2936_v2 = vmax.f32 %v2730_v5, 0.0  ;;  %v3691_v5 = vld [vmem:[%s19403_s5] sm:$0xff] }
 0x5c9   :  { %13843 = vmatpush1.bf16.msra.mxu0 %v13842_v63  ;;  %3397 = vmatprep.mubr.f32.mxu0 %v19495_v26 }
 0x5ca   :  { %v2734_v8 = vpop.f32.mrb[88].mxu1 }
 0x5cb   :  { %v2937_v10 = vmax.f32 %v2734_v8, 0.0  ;;  %v2736_v11 = vpop.f32.mrb[89].mxu1  ;;  %v3692_v8 = vld [vmem:[%s19403_s5 + $0x8] sm:$0xff] }
 0x5cc   :  { %v2938_v15 = vmax.f32 %v2736_v11, 0.0 }
 0x5cd   :  { %v13846_v16 = vpack.c.bf16 %v2937_v10, %v2935_v9  ;;  %v16588_v10 = vpack.c.bf16 %v3692_v8, %v3691_v5 }
 0x5ce   :  { %v13844_v20 = vpack.c.bf16 %v2938_v15, %v2936_v2  ;;  %v2740_v30 = vpop.f32.mrb[90].mxu1 }
 0x5cf   :  { %v2742_v24 = vpop.f32.mrb[91].mxu1  ;;  %v2939_v33 = vmax.f32 %v2740_v30, 0.0  ;;  %v3693_v30 = vld [vmem:[%s19403_s5 + $0x10] sm:$0xff]  ;;  %13917 = vmatprep.subr.bf16.mxu1 %v16588_v10 }
 0x5d0   :  { %13845 = vmatprep.subr.bf16.mxu0 %v13844_v20  ;;  %v2940_v3 = vmax.f32 %v2742_v24, 0.0  ;;  %v3694_v24 = vld [vmem:[%s19403_s5 + $0x18] sm:$0xff]  ;;  %13919 = vmatpush3.bf16.msra.mxu1 %v16588_v10 }
 0x5d1   :  { %13847 = vmatpush1.bf16.msra.mxu0 %v13846_v16 }
 0x5d2   :  { %v2746_v25 = vpop.f32.mrb[92].mxu1 }
 0x5d3   :  { %v2941_v34 = vmax.f32 %v2746_v25, 0.0  ;;  %v2748_v37 = vpop.f32.mrb[93].mxu1 }
 0x5d4   :  { %v2942_v40 = vmax.f32 %v2748_v37, 0.0 }
 0x5d5   :  { %v13850_v13 = vpack.c.bf16 %v2941_v34, %v2939_v33  ;;  %v16599_v33 = vpack.c.bf16 %v3694_v24, %v3693_v30 }
 0x5d6   :  { %v13848_v32 = vpack.c.bf16 %v2942_v40, %v2940_v3  ;;  %v2752_v41 = vpop.f32.mrb[94].mxu1 }
 0x5d7   :  { %v2754_v43 = vpop.f32.mrb[95].mxu1  ;;  %v2943_v45 = vmax.f32 %v2752_v41, 0.0  ;;  %13921 = vmatprep.subr.bf16.mxu1 %v16599_v33 }
 0x5d8   :  { %13849 = vmatprep.subr.bf16.mxu0 %v13848_v32  ;;  %v2944_v48 = vmax.f32 %v2754_v43, 0.0  ;;  %13923 = vmatpush3.bf16.msra.mxu1 %v16599_v33 }
 0x5d9   :  { %13851 = vmatpush1.bf16.msra.mxu0 %v13850_v13 }
 0x5da   :  { %v2758_v44 = vpop.f32.mrb[96].mxu1 }
 0x5db   :  { %v2945_v46 = vmax.f32 %v2758_v44, 0.0  ;;  %v2760_v36 = vpop.f32.mrb[97].mxu1 }
 0x5dc   :  { %v2946_v49 = vmax.f32 %v2760_v36, 0.0  ;;  %3398 = vmatmul.mubr.f32.vlgmr.msra.gmra.mrb[220].mxu0 %v16465_v38 }
 0x5dd   :  { %v13854_v50 = vpack.c.bf16 %v2945_v46, %v2943_v45  ;;  %3403 = vmatprep.mubr.f32.mxu0 %v19495_v26 }
 0x5de   :  { %v13852_v14 = vpack.c.bf16 %v2946_v49, %v2944_v48  ;;  %v2764_v12 = vpop.f32.mrb[98].mxu1 }
 0x5df   :  { %v2766_v27 = vpop.f32.mrb[99].mxu1  ;;  %v2947_v6 = vmax.f32 %v2764_v12, 0.0 }
 0x5e0   :  { %13853 = vmatprep.subr.bf16.mxu0 %v13852_v14  ;;  %3404 = vmatmul.mubr.f32.gmra.mrb[222].mxu0 %v16472_v22  ;;  %v2948_v7 = vmax.f32 %v2766_v27, 0.0 }
 0x5e1   :  { %13855 = vmatpush1.bf16.msra.mxu0 %v13854_v50  ;;  %3409 = vmatprep.mubr.f32.mxu0 %v19495_v26 }
 0x5e2   :  { %v2770_v35 = vpop.f32.mrb[100].mxu1 }
 0x5e3   :  { %v2949_v61 = vmax.f32 %v2770_v35, 0.0  ;;  %v2772_v57 = vpop.f32.mrb[101].mxu1 }
 0x5e4   :  { %v2950_v28 = vmax.f32 %v2772_v57, 0.0  ;;  %3410 = vmatmul.mubr.f32.gmra.mrb[224].mxu0 %v16479_v47 }
 0x5e5   :  { %v13858_v31 = vpack.c.bf16 %v2949_v61, %v2947_v6  ;;  %3415 = vmatprep.mubr.f32.mxu0 %v19495_v26 }
 0x5e6   :  { %v13856_v52 = vpack.c.bf16 %v2950_v28, %v2948_v7  ;;  %v2776_v23 = vpop.f32.mrb[102].mxu1 }
 0x5e7   :  { %v2778_v0 = vpop.f32.mrb[103].mxu1  ;;  %v2951_v29 = vmax.f32 %v2776_v23, 0.0 }
 0x5e8   :  { %13857 = vmatprep.subr.bf16.mxu0 %v13856_v52  ;;  %3416 = vmatmul.mubr.f32.gmra.mrb[226].mxu0 %v16486_v19  ;;  %v2952_v60 = vmax.f32 %v2778_v0, 0.0 }
 0x5e9   :  { %13859 = vmatpush1.bf16.msra.mxu0 %v13858_v31  ;;  %3421 = vmatprep.mubr.f32.mxu0 %v19495_v26 }
 0x5ea   :  { %v2782_v51 = vpop.f32.mrb[104].mxu1 }
 0x5eb   :  { %v2953_v53 = vmax.f32 %v2782_v51, 0.0  ;;  %v2784_v55 = vpop.f32.mrb[105].mxu1 }
 0x5ec   :  { %v2954_v56 = vmax.f32 %v2784_v55, 0.0  ;;  %3422 = vmatmul.mubr.f32.gmra.mrb[228].mxu0 %v16493_v39 }
 0x5ed   :  { %v13862_v59 = vpack.c.bf16 %v2953_v53, %v2951_v29  ;;  %3427 = vmatprep.mubr.f32.mxu0 %v19495_v26 }
 0x5ee   :  { %v13860_v63 = vpack.c.bf16 %v2954_v56, %v2952_v60  ;;  %v2788_v1 = vpop.f32.mrb[106].mxu1 }
 0x5ef   :  { %v2790_v4 = vpop.f32.mrb[107].mxu1  ;;  %v2955_v11 = vmax.f32 %v2788_v1, 0.0 }
 0x5f0   :  { %13861 = vmatprep.subr.bf16.mxu0 %v13860_v63  ;;  %3428 = vmatmul.mubr.f32.gmra.mrb[230].mxu0 %v16500_v18  ;;  %v2956_v16 = vmax.f32 %v2790_v4, 0.0 }
 0x5f1   :  { %13863 = vmatpush1.bf16.msra.mxu0 %v13862_v59  ;;  %3433 = vmatprep.mubr.f32.mxu0 %v19495_v26 }
 0x5f2   :  { %v2794_v9 = vpop.f32.mrb[108].mxu1 }
 0x5f3   :  { %v2957_v2 = vmax.f32 %v2794_v9, 0.0  ;;  %v2796_v15 = vpop.f32.mrb[109].mxu1 }
 0x5f4   :  { %v2958_v20 = vmax.f32 %v2796_v15, 0.0  ;;  %3434 = vmatmul.mubr.f32.gmra.mrb[232].mxu0 %v16507_v54 }
 0x5f5   :  { %v13866_v25 = vpack.c.bf16 %v2957_v2, %v2955_v11  ;;  %3439 = vmatprep.mubr.f32.mxu0 %v19495_v26 }
 0x5f6   :  { %v13864_v34 = vpack.c.bf16 %v2958_v20, %v2956_v16  ;;  %v2800_v37 = vpop.f32.mrb[110].mxu1 }
 0x5f7   :  { %v2802_v3 = vpop.f32.mrb[111].mxu1  ;;  %v2959_v13 = vmax.f32 %v2800_v37, 0.0 }
 0x5f8   :  { %13865 = vmatprep.subr.bf16.mxu0 %v13864_v34  ;;  %3440 = vmatmul.mubr.f32.gmra.mrb[234].mxu0 %v16514_v58  ;;  %v2960_v43 = vmax.f32 %v2802_v3, 0.0 }
 0x5f9   :  { %13867 = vmatpush1.bf16.msra.mxu0 %v13866_v25  ;;  %3445 = vmatprep.mubr.f32.mxu0 %v19495_v26 }
 0x5fa   :  { %v2806_v40 = vpop.f32.mrb[112].mxu1 }
 0x5fb   :  { %v2961_v32 = vmax.f32 %v2806_v40, 0.0  ;;  %v2808_v41 = vpop.f32.mrb[113].mxu1 }
 0x5fc   :  { %v2962_v44 = vmax.f32 %v2808_v41, 0.0  ;;  %3446 = vmatmul.mubr.f32.gmra.mrb[236].mxu0 %v16521_v62 }
 0x5fd   :  { %v13870_v45 = vpack.c.bf16 %v2961_v32, %v2959_v13  ;;  %3451 = vmatprep.mubr.f32.mxu0 %v19495_v26 }
 0x5fe   :  { %v13868_v46 = vpack.c.bf16 %v2962_v44, %v2960_v43  ;;  %v2812_v36 = vpop.f32.mrb[114].mxu1 }
 0x5ff   :  { %v2814_v48 = vpop.f32.mrb[115].mxu1  ;;  %v2963_v50 = vmax.f32 %v2812_v36, 0.0 }
 0x600   :  { %13869 = vmatprep.subr.bf16.mxu0 %v13868_v46  ;;  %3452 = vmatmul.mubr.f32.gmra.mrb[238].mxu0 %v16528_v21  ;;  %v2964_v27 = vmax.f32 %v2814_v48, 0.0  ;;  %v11253_v46 = vld [vmem:[%s19403_s5 + $0x28] sm:$0xff] }
 0x601   :  { %13871 = vmatpush1.bf16.msra.mxu0 %v13870_v45  ;;  %3457 = vmatprep.mubr.f32.mxu0 %v19495_v26  ;;  %v11252_v45 = vld [vmem:[%s19403_s5 + $0x20] sm:$0xff] }
 0x602   :  { %v2818_v49 = vpop.f32.mrb[116].mxu1  ;;  %v16771_v48 = vpack.c.bf16 %v11253_v46, %v11252_v45 }
 0x603   :  { %v2965_v14 = vmax.f32 %v2818_v49, 0.0  ;;  %v2820_v12 = vpop.f32.mrb[117].mxu1 }
 0x604   :  { %v2966_v35 = vmax.f32 %v2820_v12, 0.0  ;;  %3458 = vmatmul.mubr.f32.gmra.mrb[240].mxu0 %v16535_v17  ;;  %13925 = vmatprep.subr.bf16.mxu1 %v16771_v48 }
 0x605   :  { %v13874_v6 = vpack.c.bf16 %v2965_v14, %v2963_v50  ;;  %3463 = vmatprep.mubr.f32.mxu0 %v19495_v26  ;;  %v11254_v50 = vld [vmem:[%s19403_s5 + $0x30] sm:$0xff]  ;;  %v11255_v14 = vld [vmem:[%s19403_s5 + $0x38] sm:$0xff] }
 0x606   :  { %v13872_v61 = vpack.c.bf16 %v2966_v35, %v2964_v27  ;;  %v2824_v57 = vpop.f32.mrb[118].mxu1  ;;  %v16790_v27 = vpack.c.bf16 %v11255_v14, %v11254_v50 }
 0x607   :  { %v2826_v7 = vpop.f32.mrb[119].mxu1  ;;  %v2967_v31 = vmax.f32 %v2824_v57, 0.0 }
 0x608   :  { %13873 = vmatprep.subr.bf16.mxu0 %v13872_v61  ;;  %3464 = vmatmul.mubr.f32.gmra.mrb[242].mxu0 %v16542_v42  ;;  %v2968_v0 = vmax.f32 %v2826_v7, 0.0 }
 0x609   :  { %13875 = vmatpush1.bf16.msra.mxu0 %v13874_v6  ;;  %3570 = vmatprep.mubr.f32.mxu0 %v19495_v26 }
 0x60a   :  { %v2830_v28 = vpop.f32.mrb[120].mxu1 }
 0x60b   :  { %v2969_v52 = vmax.f32 %v2830_v28, 0.0  ;;  %v2832_v23 = vpop.f32.mrb[121].mxu1 }
 0x60c   :  { %v2970_v51 = vmax.f32 %v2832_v23, 0.0 }
 0x60d   :  { %v13878_v29 = vpack.c.bf16 %v2969_v52, %v2967_v31 }
 0x60e   :  { %v13876_v53 = vpack.c.bf16 %v2970_v51, %v2968_v0  ;;  %v2836_v55 = vpop.f32.mrb[122].mxu1  ;;  %v11268_v0 = vld [vmem:[%s19403_s5 + $0x40] sm:$0xff]  ;;  %v11269_v51 = vld [vmem:[%s19403_s5 + $0x48] sm:$0xff] }
 0x60f   :  { %v2838_v60 = vpop.f32.mrb[123].mxu1  ;;  %v2971_v59 = vmax.f32 %v2836_v55, 0.0 }
 0x610   :  { %13877 = vmatprep.subr.bf16.mxu0 %v13876_v53  ;;  %v2972_v4 = vmax.f32 %v2838_v60, 0.0  ;;  %v16840_v53 = vpack.c.bf16 %v11269_v51, %v11268_v0 }
 0x611   :  { %13879 = vmatpush1.bf16.msra.mxu0 %v13878_v29 }
 0x612   :  { %v2842_v56 = vpop.f32.mrb[124].mxu1 }
 0x613   :  { %v2973_v63 = vmax.f32 %v2842_v56, 0.0  ;;  %v2844_v1 = vpop.f32.mrb[125].mxu1 }
 0x614   :  { %v2974_v5 = vmax.f32 %v2844_v1, 0.0 }
 0x615   :  { %v13882_v8 = vpack.c.bf16 %v2973_v63, %v2971_v59 }
 0x616   :  { %v13880_v9 = vpack.c.bf16 %v2974_v5, %v2972_v4 }
 0x618   :  { %13881 = vmatprep.subr.bf16.mxu0 %v13880_v9 }
 0x619   :  { %13883 = vmatpush1.bf16.msra.mxu0 %v13882_v8 }
 0x61a   :  { %13885 = vmatprep.subr.bf16.mxu0 %v16588_v10 }
 0x61c   :  { %3571 = vmatmul.mubr.f32.vlgmr.msra.gmra.mrb[244].mxu0 %v16465_v38 }
 0x61d   :  { %3576 = vmatprep.mubr.f32.mxu0 %v19495_v26  ;;  %13887 = vmatpush3.bf16.msra.mxu0 %v16588_v10 }
 0x61e   :  { %13889 = vmatprep.subr.bf16.mxu0 %v16599_v33 }
 0x620   :  { %3577 = vmatmul.mubr.f32.gmra.mrb[246].mxu0 %v16472_v22 }
 0x621   :  { %3582 = vmatprep.mubr.f32.mxu0 %v19495_v26  ;;  %13891 = vmatpush3.bf16.msra.mxu0 %v16599_v33 }
 0x622   :  { %13893 = vmatprep.subr.bf16.mxu0 %v16771_v48 }
 0x624   :  { %3583 = vmatmul.mubr.f32.gmra.mrb[248].mxu0 %v16479_v47 }
 0x625   :  { %3588 = vmatprep.mubr.f32.mxu0 %v19495_v26 }
 0x628   :  { %3589 = vmatmul.mubr.f32.gmra.mrb[250].mxu0 %v16486_v19 }
 0x629   :  { %3594 = vmatprep.mubr.f32.mxu0 %v19495_v26 }
 0x62c   :  { %3595 = vmatmul.mubr.f32.gmra.mrb[252].mxu0 %v16493_v39 }
 0x62d   :  { %3600 = vmatprep.mubr.f32.mxu0 %v19495_v26 }
 0x62f   :  { %v3053_v38 = vpop.f32.mrb[172].mxu0 }
 0x630   :  { %3601 = vmatmul.mubr.f32.gmra.mrb[254].mxu0 %v16500_v18  ;;  %4563 = vrot.lane.b32.xlu0 %v3053_v38, %s15071_s11  ;;  %v16630_v22 = vpop.f32.mrb[173].mxu0 }
 0x631   :  { %19528 = vst [vmem:[#allocation4_spill] sm:$0xff] %v16630_v22  ;;  %3606 = vmatprep.mubr.f32.mxu0 %v19495_v26  ;;  %6459 = vrot.lane.b32.xlu1 %v3053_v38, %s15072_s12 }
 0x633   :  { %v16634_v47 = vpop.f32.mrb[174].mxu0 }
 0x634   :  { %3607 = vmatmul.mubr.f32.gmra.mrb[0].mxu0 %v16507_v54  ;;  %5511 = vrot.lane.b32.xlu0 %v3053_v38, %s15073_s13  ;;  %v16638_v19 = vpop.f32.mrb[175].mxu0 }
 0x635   :  { %3612 = vmatprep.mubr.f32.mxu0 %v19495_v26  ;;  %6467 = vrot.lane.b32.xlu1 %v16634_v47, %s15072_s12 }
 0x637   :  { %v16643_v39 = vpop.f32.mrb[176].mxu0 }
 0x638   :  { %3613 = vmatmul.mubr.f32.gmra.mrb[2].mxu0 %v16514_v58  ;;  %8259 = vrot.lane.b32.xlu0 %v16630_v22, %s15071_s11  ;;  %v16648_v18 = vpop.f32.mrb[177].mxu0 }
 0x639   :  { %3618 = vmatprep.mubr.f32.mxu0 %v19495_v26  ;;  %6475 = vrot.lane.b32.xlu1 %v16643_v39, %s15072_s12 }
 0x63b   :  { %v16653_v54 = vpop.f32.mrb[178].mxu0 }
 0x63c   :  { %3619 = vmatmul.mubr.f32.gmra.mrb[4].mxu0 %v16521_v62  ;;  %4571 = vrot.lane.b32.xlu0 %v16634_v47, %s15071_s11  ;;  %v16658_v11 = vpop.f32.mrb[179].mxu0 }
 0x63d   :  { %3624 = vmatprep.mubr.f32.mxu0 %v19495_v26  ;;  %6672 = vrot.lane.b32.xlu1 %v16653_v54, %s15072_s12 }
 0x63f   :  { %v16663_v58 = vpop.f32.mrb[180].mxu0 }
 0x640   :  { %3625 = vmatmul.mubr.f32.gmra.mrb[6].mxu0 %v16528_v21  ;;  %5519 = vrot.lane.b32.xlu0 %v16634_v47, %s15073_s13  ;;  %v16668_v2 = vpop.f32.mrb[181].mxu0 }
 0x641   :  { %19529 = vst [vmem:[#allocation3_spill] sm:$0xff] %v16668_v2  ;;  %3630 = vmatprep.mubr.f32.mxu0 %v19495_v26  ;;  %6680 = vrot.lane.b32.xlu1 %v16663_v58, %s15072_s12 }
 0x643   :  { %v16673_v62 = vpop.f32.mrb[182].mxu0 }
 0x644   :  { %3631 = vmatmul.mubr.f32.gmra.mrb[8].mxu0 %v16535_v17  ;;  %4579 = vrot.lane.b32.xlu0 %v16643_v39, %s15071_s11  ;;  %v16678_v15 = vpop.f32.mrb[183].mxu0 }
 0x645   :  { %19530 = vst [vmem:[#allocation6_spill] sm:$0xff] %v16678_v15  ;;  %3636 = vmatprep.mubr.f32.mxu0 %v19495_v26  ;;  %6688 = vrot.lane.b32.xlu1 %v16673_v62, %s15072_s12 }
 0x647   :  { %v16683_v21 = vpop.f32.mrb[184].mxu0 }
 0x648   :  { %3637 = vmatmul.mubr.f32.gmra.mrb[10].mxu0 %v16542_v42  ;;  %5527 = vrot.lane.b32.xlu0 %v16643_v39, %s15073_s13  ;;  %v16688_v16 = vpop.f32.mrb[185].mxu0 }
 0x649   :  { %19531 = vst [vmem:[#allocation5_spill] sm:$0xff] %v16688_v16  ;;  %12811 = vmatprep.mubr.msk.f32.mxu0 %vm3695_vm6, %v3053_v38  ;;  %6885 = vrot.lane.b32.xlu1 %v16683_v21, %s15072_s12 }
 0x64b   :  { %v16693_v17 = vpop.f32.mrb[186].mxu0 }
 0x64c   :  { %4776 = vrot.lane.b32.xlu0 %v16653_v54, %s15071_s11  ;;  %v16697_v26 = vpop.f32.mrb[187].mxu0 }
 0x64d   :  { %19532 = vst [vmem:[#allocation8_spill] sm:$0xff] %v16697_v26  ;;  %6893 = vrot.lane.b32.xlu1 %v16693_v17, %s15072_s12 }
 0x64f   :  { %v16701_v42 = vpop.f32.mrb[188].mxu0 }
 0x650   :  { %5724 = vrot.lane.b32.xlu0 %v16653_v54, %s15073_s13  ;;  %v16705_v20 = vpop.f32.mrb[189].mxu0 }
 0x651   :  { %19533 = vst [vmem:[#allocation7_spill] sm:$0xff] %v16705_v20  ;;  %6901 = vrot.lane.b32.xlu1 %v16701_v42, %s15072_s12 }
 0x653   :  { %v16709_v30 = vpop.f32.mrb[190].mxu0 }
 0x654   :  { %4784 = vrot.lane.b32.xlu0 %v16663_v58, %s15071_s11  ;;  %v16713_v24 = vpop.f32.mrb[191].mxu0 }
 0x655   :  { %19534 = vst [vmem:[#allocation10_spill] sm:$0xff] %v16713_v24  ;;  %7098 = vrot.lane.b32.xlu1 %v16709_v30, %s15072_s12 }
 0x657   :  { %v16717_v25 = vpop.f32.mrb[192].mxu0 }
 0x658   :  { %5732 = vrot.lane.b32.xlu0 %v16663_v58, %s15073_s13  ;;  %v16721_v34 = vpop.f32.mrb[193].mxu0 }
 0x659   :  { %19535 = vst [vmem:[#allocation9_spill] sm:$0xff] %v16721_v34  ;;  %7106 = vrot.lane.b32.xlu1 %v16717_v25, %s15072_s12 }
 0x65b   :  { %v16725_v37 = vpop.f32.mrb[194].mxu0 }
 0x65c   :  { %4792 = vrot.lane.b32.xlu0 %v16673_v62, %s15071_s11  ;;  %v16729_v3 = vpop.f32.mrb[195].mxu0 }
 0x65d   :  { %19536 = vst [vmem:[#allocation12_spill] sm:$0xff] %v16729_v3  ;;  %7114 = vrot.lane.b32.xlu1 %v16725_v37, %s15072_s12 }
 0x660   :  { %5740 = vrot.lane.b32.xlu0 %v16673_v62, %s15073_s13 }
 0x664   :  { %4989 = vrot.lane.b32.xlu0 %v16683_v21, %s15071_s11 }
 0x668   :  { %5937 = vrot.lane.b32.xlu0 %v16683_v21, %s15073_s13 }
 0x66c   :  { %4997 = vrot.lane.b32.xlu0 %v16693_v17, %s15071_s11 }
 0x66f   :  { %v3226_v40 = vpop.f32.mrb[196].mxu0 }
 0x670   :  { %5945 = vrot.lane.b32.xlu0 %v16693_v17, %s15073_s13  ;;  %6461 = vrot.lane.b32.xlu1 %v3226_v40, %s15072_s12  ;;  %v16744_v13 = vpop.f32.mrb[197].mxu0 }
 0x671   :  { %19537 = vst [vmem:[#allocation11_spill] sm:$0xff] %v16744_v13  ;;  %12812 = vmatmul.mubr.msk.f32.vlgmr.msra.gmra.mrb[12].mxu0 %vm3695_vm6, %v3226_v40 }
 0x672   :  { %13895 = vmatpush3.bf16.msra.mxu0 %v16771_v48 }
 0x673   :  { %v16747_v32 = vpop.f32.mrb[198].mxu0  ;;  %13897 = vmatprep.subr.bf16.mxu0 %v16790_v27 }
 0x674   :  { %5005 = vrot.lane.b32.xlu0 %v16701_v42, %s15071_s11  ;;  %8261 = vrot.lane.b32.xlu1 %v16744_v13, %s15071_s11  ;;  %v16753_v41 = vpop.f32.mrb[199].mxu0 }
 0x676   :  { %13899 = vmatpush3.bf16.msra.mxu0 %v16790_v27 }
 0x677   :  { %v16755_v43 = vpop.f32.mrb[200].mxu0  ;;  %13901 = vmatprep.subr.bf16.mxu0 %v16840_v53 }
 0x678   :  { %5953 = vrot.lane.b32.xlu0 %v16701_v42, %s15073_s13  ;;  %4573 = vrot.lane.b32.xlu1 %v16747_v32, %s15071_s11  ;;  %v16761_v44 = vpop.f32.mrb[201].mxu0 }
 0x67b   :  { %v16769_v36 = vpop.f32.mrb[202].mxu0 }
 0x67c   :  { %5202 = vrot.lane.b32.xlu0 %v16709_v30, %s15071_s11  ;;  %6469 = vrot.lane.b32.xlu1 %v16747_v32, %s15072_s12  ;;  %v16777_v49 = vpop.f32.mrb[203].mxu0 }
 0x67f   :  { %v16788_v12 = vpop.f32.mrb[204].mxu0 }
 0x680   :  { %6150 = vrot.lane.b32.xlu0 %v16709_v30, %s15073_s13  ;;  %4581 = vrot.lane.b32.xlu1 %v16755_v43, %s15071_s11  ;;  %v16796_v35 = vpop.f32.mrb[205].mxu0 }
 0x681   :  { %19538 = vst [vmem:[#allocation14_spill] sm:$0xff] %v16796_v35 }
 0x683   :  { %v16800_v6 = vpop.f32.mrb[206].mxu0 }
 0x684   :  { %5210 = vrot.lane.b32.xlu0 %v16717_v25, %s15071_s11  ;;  %6477 = vrot.lane.b32.xlu1 %v16755_v43, %s15072_s12  ;;  %v16806_v61 = vpop.f32.mrb[207].mxu0 }
 0x685   :  { %19539 = vst [vmem:[#allocation13_spill] sm:$0xff] %v16806_v61 }
 0x687   :  { %v16808_v57 = vpop.f32.mrb[208].mxu0 }
 0x688   :  { %6158 = vrot.lane.b32.xlu0 %v16717_v25, %s15073_s13  ;;  %4778 = vrot.lane.b32.xlu1 %v16769_v36, %s15071_s11  ;;  %v16814_v7 = vpop.f32.mrb[209].mxu0 }
 0x689   :  { %19540 = vst [vmem:[#allocation16_spill] sm:$0xff] %v16814_v7 }
 0x68b   :  { %v16816_v28 = vpop.f32.mrb[210].mxu0 }
 0x68c   :  { %5218 = vrot.lane.b32.xlu0 %v16725_v37, %s15071_s11  ;;  %6674 = vrot.lane.b32.xlu1 %v16769_v36, %s15072_s12  ;;  %v16822_v31 = vpop.f32.mrb[211].mxu0 }
 0x68d   :  { %19541 = vst [vmem:[#allocation15_spill] sm:$0xff] %v16822_v31 }
 0x68f   :  { %v16824_v52 = vpop.f32.mrb[212].mxu0 }
 0x690   :  { %6166 = vrot.lane.b32.xlu0 %v16725_v37, %s15073_s13  ;;  %4786 = vrot.lane.b32.xlu1 %v16788_v12, %s15071_s11  ;;  %v16830_v23 = vpop.f32.mrb[213].mxu0 }
 0x691   :  { %19542 = vst [vmem:[#allocation18_spill] sm:$0xff] %v16830_v23 }
 0x693   :  { %v16838_v29 = vpop.f32.mrb[214].mxu0 }
 0x694   :  { %4565 = vrot.lane.b32.xlu0 %v3226_v40, %s15071_s11  ;;  %6682 = vrot.lane.b32.xlu1 %v16788_v12, %s15072_s12  ;;  %v16845_v55 = vpop.f32.mrb[215].mxu0 }
 0x695   :  { %19543 = vst [vmem:[#allocation17_spill] sm:$0xff] %v16845_v55 }
 0x697   :  { %v16848_v60 = vpop.f32.mrb[216].mxu0 }
 0x698   :  { %5513 = vrot.lane.b32.xlu0 %v3226_v40, %s15073_s13  ;;  %4794 = vrot.lane.b32.xlu1 %v16800_v6, %s15071_s11  ;;  %v16853_v56 = vpop.f32.mrb[217].mxu0 }
 0x699   :  { %19544 = vst [vmem:[#allocation20_spill] sm:$0xff] %v16853_v56 }
 0x69b   :  { %v16855_v59 = vpop.f32.mrb[218].mxu0 }
 0x69c   :  { %5521 = vrot.lane.b32.xlu0 %v16747_v32, %s15073_s13  ;;  %6690 = vrot.lane.b32.xlu1 %v16800_v6, %s15072_s12  ;;  %v16861_v63 = vpop.f32.mrb[219].mxu0 }
 0x69d   :  { %19545 = vst [vmem:[#allocation19_spill] sm:$0xff] %v16861_v63 }
 0x6a0   :  { %5529 = vrot.lane.b32.xlu0 %v16755_v43, %s15073_s13  ;;  %4991 = vrot.lane.b32.xlu1 %v16808_v57, %s15071_s11 }
 0x6a2   :  { %v4564_v1 = vpop.permute.xlu0 %4563 }
 0x6a3   :  { %v16867_v4 = vpop.permute.xlu1 %6459  ;;  %12915 = vmatprep.mubr.msk.f32.mxu1 %vm3695_vm6, %v4564_v1 }
 0x6a4   :  { %19546 = vst [vmem:[#allocation22_spill] sm:$0xff] %v16867_v4  ;;  %5726 = vrot.lane.b32.xlu0 %v16769_v36, %s15073_s13  ;;  %6887 = vrot.lane.b32.xlu1 %v16808_v57, %s15072_s12 }
 0x6a6   :  { %v16874_v5 = vpop.permute.xlu0 %5511 }
 0x6a7   :  { %v16876_v8 = vpop.permute.xlu1 %6467 }
 0x6a8   :  { %19547 = vst [vmem:[#allocation21_spill] sm:$0xff] %v16876_v8  ;;  %5734 = vrot.lane.b32.xlu0 %v16788_v12, %s15073_s13  ;;  %4999 = vrot.lane.b32.xlu1 %v16816_v28, %s15071_s11 }
 0x6aa   :  { %v16882_v9 = vpop.permute.xlu0 %8259 }
 0x6ab   :  { %19548 = vst [vmem:[#allocation24_spill] sm:$0xff] %v16882_v9  ;;  %v16884_v38 = vpop.permute.xlu1 %6475 }
 0x6ac   :  { %19549 = vst [vmem:[#allocation23_spill] sm:$0xff] %v16884_v38  ;;  %5742 = vrot.lane.b32.xlu0 %v16800_v6, %s15073_s13  ;;  %6895 = vrot.lane.b32.xlu1 %v16816_v28, %s15072_s12 }
 0x6ae   :  { %v16890_v40 = vpop.permute.xlu0 %4571 }
 0x6af   :  { %v16892_v45 = vpop.permute.xlu1 %6672  ;;  %v3399_v46 = vpop.f32.mrb[220].mxu0 }
 0x6b0   :  { %19550 = vst [vmem:[#allocation26_spill] sm:$0xff] %v16892_v45  ;;  %5939 = vrot.lane.b32.xlu0 %v16808_v57, %s15073_s13  ;;  %5007 = vrot.lane.b32.xlu1 %v16824_v52, %s15071_s11  ;;  %v16898_v50 = vpop.f32.mrb[221].mxu0 }
 0x6b1   :  { %19551 = vst [vmem:[#allocation25_spill] sm:$0xff] %v16898_v50  ;;  %12814 = vmatprep.mubr.msk.f32.mxu0 %vm3695_vm6, %v3399_v46 }
 0x6b2   :  { %v16901_v14 = vpop.permute.xlu0 %5519 }
 0x6b3   :  { %19552 = vst [vmem:[#allocation28_spill] sm:$0xff] %v16901_v14  ;;  %v16903_v0 = vpop.permute.xlu1 %6680  ;;  %v16905_v51 = vpop.f32.mrb[222].mxu0 }
 0x6b4   :  { %19553 = vst [vmem:[#allocation27_spill] sm:$0xff] %v16903_v0  ;;  %5947 = vrot.lane.b32.xlu0 %v16816_v28, %s15073_s13  ;;  %6903 = vrot.lane.b32.xlu1 %v16824_v52, %s15072_s12  ;;  %v16911_v1 = vpop.f32.mrb[223].mxu0 }
 0x6b6   :  { %v16913_v9 = vpop.permute.xlu0 %4579 }
 0x6b7   :  { %19554 = vst [vmem:[#allocation30_spill] sm:$0xff] %v16913_v9  ;;  %v16915_v45 = vpop.f32.mrb[224].mxu0  ;;  %v16921_v0 = vpop.permute.xlu1 %6688 }
 0x6b8   :  { %5955 = vrot.lane.b32.xlu0 %v16824_v52, %s15073_s13  ;;  %5204 = vrot.lane.b32.xlu1 %v16838_v29, %s15071_s11  ;;  %19555 = vst [vmem:[#allocation29_spill] sm:$0xff] %v16921_v0  ;;  %v16923_v38 = vpop.f32.mrb[225].mxu0 }
 0x6ba   :  { %v16925_v8 = vpop.permute.xlu0 %5527 }
 0x6bb   :  { %19556 = vst [vmem:[#allocation32_spill] sm:$0xff] %v16925_v8  ;;  %v16927_v4 = vpop.f32.mrb[226].mxu0  ;;  %v16937_v22 = vpop.permute.xlu1 %6885 }
 0x6bc   :  { %6152 = vrot.lane.b32.xlu0 %v16838_v29, %s15073_s13  ;;  %7100 = vrot.lane.b32.xlu1 %v16838_v29, %s15072_s12  ;;  %v16933_v63 = vpop.f32.mrb[227].mxu0  ;;  %19558 = vst [vmem:[#allocation34_spill] sm:$0xff] %v16937_v22 }
 0x6be   :  { %v16935_v13 = vpop.permute.xlu0 %4776 }
 0x6bf   :  { %19557 = vst [vmem:[#allocation31_spill] sm:$0xff] %v16935_v13  ;;  %v16939_v56 = vpop.f32.mrb[228].mxu0  ;;  %v16955_v22 = vpop.permute.xlu1 %6893 }
 0x6c0   :  { %6160 = vrot.lane.b32.xlu0 %v16848_v60, %s15073_s13  ;;  %5212 = vrot.lane.b32.xlu1 %v16848_v60, %s15071_s11  ;;  %v16945_v0 = vpop.f32.mrb[229].mxu0  ;;  %19561 = vst [vmem:[#allocation36_spill] sm:$0xff] %v16955_v22 }
 0x6c1   :  { %19559 = vst [vmem:[#allocation33_spill] sm:$0xff] %v16945_v0 }
 0x6c2   :  { %v16947_v8 = vpop.permute.xlu0 %5724 }
 0x6c3   :  { %19560 = vst [vmem:[#allocation35_spill] sm:$0xff] %v16947_v8  ;;  %v16949_v55 = vpop.f32.mrb[230].mxu0  ;;  %v16970_v31 = vpop.permute.xlu1 %6901 }
 0x6c4   :  { %7108 = vrot.lane.b32.xlu1 %v16848_v60, %s15072_s12  ;;  %6168 = vrot.lane.b32.xlu0 %v16855_v59, %s15073_s13  ;;  %v16957_v3 = vpop.f32.mrb[231].mxu0  ;;  %19566 = vst [vmem:[#allocation41_spill] sm:$0xff] %v16970_v31 }
 0x6c5   :  { %19562 = vst [vmem:[#allocation37_spill] sm:$0xff] %v16957_v3 }
 0x6c6   :  { %v16959_v14 = vpop.permute.xlu0 %4784 }
 0x6c7   :  { %19563 = vst [vmem:[#allocation38_spill] sm:$0xff] %v16959_v14  ;;  %v16961_v23 = vpop.f32.mrb[232].mxu0  ;;  %v16987_v31 = vpop.permute.xlu1 %7098 }
 0x6c8   :  { %5220 = vrot.lane.b32.xlu1 %v16855_v59, %s15071_s11  ;;  %5515 = vrot.lane.b32.xlu0 %v3399_v46, %s15073_s13  ;;  %v16966_v8 = vpop.f32.mrb[233].mxu0  ;;  %19569 = vst [vmem:[#allocation44_spill] sm:$0xff] %v16987_v31 }
 0x6c9   :  { %19564 = vst [vmem:[#allocation39_spill] sm:$0xff] %v16966_v8 }
 0x6ca   :  { %v16968_v34 = vpop.permute.xlu0 %5732 }
 0x6cb   :  { %19565 = vst [vmem:[#allocation40_spill] sm:$0xff] %v16968_v34  ;;  %v16972_v24 = vpop.f32.mrb[234].mxu0 }
 0x6cc   :  { %7116 = vrot.lane.b32.xlu1 %v16855_v59, %s15072_s12  ;;  %8263 = vrot.lane.b32.xlu0 %v16898_v50, %s15071_s11  ;;  %v16978_v22 = vpop.f32.mrb[235].mxu0 }
 0x6cd   :  { %19567 = vst [vmem:[#allocation42_spill] sm:$0xff] %v16978_v22  ;;  %v17002_v22 = vpop.permute.xlu1 %7106 }
 0x6ce   :  { %v16980_v14 = vpop.permute.xlu0 %4792  ;;  %19574 = vst [vmem:[#allocation49_spill] sm:$0xff] %v17002_v22 }
 0x6cf   :  { %19568 = vst [vmem:[#allocation43_spill] sm:$0xff] %v16980_v14  ;;  %v16982_v7 = vpop.f32.mrb[236].mxu0 }
 0x6d0   :  { %4567 = vrot.lane.b32.xlu1 %v3399_v46, %s15071_s11  ;;  %4575 = vrot.lane.b32.xlu0 %v16905_v51, %s15071_s11  ;;  %v16989_v34 = vpop.f32.mrb[237].mxu0 }
 0x6d1   :  { %19570 = vst [vmem:[#allocation45_spill] sm:$0xff] %v16989_v34  ;;  %v17020_v22 = vpop.permute.xlu1 %7114 }
 0x6d2   :  { %v16991_v20 = vpop.permute.xlu0 %5740  ;;  %19577 = vst [vmem:[#allocation52_spill] sm:$0xff] %v17020_v22 }
 0x6d3   :  { %19571 = vst [vmem:[#allocation46_spill] sm:$0xff] %v16991_v20  ;;  %v16993_v13 = vpop.f32.mrb[238].mxu0 }
 0x6d4   :  { %6463 = vrot.lane.b32.xlu1 %v3399_v46, %s15072_s12  ;;  %5523 = vrot.lane.b32.xlu0 %v16905_v51, %s15073_s13  ;;  %v16998_v50 = vpop.f32.mrb[239].mxu0 }
 0x6d5   :  { %19572 = vst [vmem:[#allocation47_spill] sm:$0xff] %v16998_v50 }
 0x6d6   :  { %v17000_v14 = vpop.permute.xlu0 %4989 }
 0x6d7   :  { %19573 = vst [vmem:[#allocation48_spill] sm:$0xff] %v17000_v14  ;;  %v17004_v61 = vpop.f32.mrb[240].mxu0 }
 0x6d8   :  { %6471 = vrot.lane.b32.xlu1 %v16905_v51, %s15072_s12  ;;  %4583 = vrot.lane.b32.xlu0 %v16915_v45, %s15071_s11  ;;  %v17010_v31 = vpop.f32.mrb[241].mxu0 }
 0x6d9   :  { %19575 = vst [vmem:[#allocation50_spill] sm:$0xff] %v17010_v31 }
 0x6da   :  { %v17012_v46 = vpop.permute.xlu0 %5937 }
 0x6db   :  { %19576 = vst [vmem:[#allocation51_spill] sm:$0xff] %v17012_v46  ;;  %v17014_v20 = vpop.f32.mrb[242].mxu0 }
 0x6dc   :  { %6479 = vrot.lane.b32.xlu1 %v16915_v45, %s15072_s12  ;;  %5531 = vrot.lane.b32.xlu0 %v16915_v45, %s15073_s13  ;;  %v17022_v14 = vpop.f32.mrb[243].mxu0 }
 0x6dd   :  { %19578 = vst [vmem:[#allocation53_spill] sm:$0xff] %v17022_v14 }
 0x6de   :  { %v17024_v50 = vpop.permute.xlu0 %4997 }
 0x6df   :  { %19579 = vst [vmem:[#allocation54_spill] sm:$0xff] %v17024_v50 }
 0x6e0   :  { %6676 = vrot.lane.b32.xlu1 %v16927_v4, %s15072_s12  ;;  %4780 = vrot.lane.b32.xlu0 %v16927_v4, %s15071_s11 }
 0x6e2   :  { %v17030_v46 = vpop.permute.xlu0 %5945  ;;  %v17032_v31 = vpop.permute.xlu1 %6461 }
 0x6e3   :  { %19580 = vst [vmem:[#allocation55_spill] sm:$0xff] %v17030_v46  ;;  %19581 = vst [vmem:[#allocation56_spill] sm:$0xff] %v17032_v31 }
 0x6e4   :  { %5728 = vrot.lane.b32.xlu0 %v16927_v4, %s15073_s13  ;;  %6684 = vrot.lane.b32.xlu1 %v16939_v56, %s15072_s12 }
 0x6e6   :  { %v17038_v22 = vpop.permute.xlu0 %5005  ;;  %v17040_v14 = vpop.permute.xlu1 %8261 }
 0x6e7   :  { %19582 = vst [vmem:[#allocation57_spill] sm:$0xff] %v17038_v22  ;;  %19583 = vst [vmem:[#allocation58_spill] sm:$0xff] %v17040_v14 }
 0x6e8   :  { %4788 = vrot.lane.b32.xlu0 %v16939_v56, %s15071_s11  ;;  %6692 = vrot.lane.b32.xlu1 %v16949_v55, %s15072_s12 }
 0x6ea   :  { %v17046_v50 = vpop.permute.xlu0 %5953  ;;  %v17048_v46 = vpop.permute.xlu1 %4573 }
 0x6eb   :  { %19584 = vst [vmem:[#allocation59_spill] sm:$0xff] %v17046_v50 }
 0x6ec   :  { %5736 = vrot.lane.b32.xlu0 %v16939_v56, %s15073_s13  ;;  %6889 = vrot.lane.b32.xlu1 %v16961_v23, %s15072_s12 }
 0x6ee   :  { %v17054_v31 = vpop.permute.xlu0 %5202  ;;  %v17056_v22 = vpop.permute.xlu1 %6469 }
 0x6ef   :  { %19585 = vst [vmem:[#allocation60_spill] sm:$0xff] %v17054_v31  ;;  %19586 = vst [vmem:[#allocation61_spill] sm:$0xff] %v17056_v22  ;;  %v17058_v14 = vpop.f32.mrb[244].mxu0 }
 0x6f0   :  { %4796 = vrot.lane.b32.xlu0 %v16949_v55, %s15071_s11  ;;  %6897 = vrot.lane.b32.xlu1 %v16972_v24, %s15072_s12  ;;  %v17064_v50 = vpop.f32.mrb[245].mxu0 }
 0x6f1   :  { %12815 = vmatmul.mubr.msk.f32.gmra.mrb[14].mxu0 %vm3695_vm6, %v17058_v14 }
 0x6f2   :  { %12817 = vmatprep.mubr.msk.f32.mxu0 %vm3695_vm6, %v16634_v47  ;;  %v17070_v34 = vpop.permute.xlu0 %6150  ;;  %v17072_v31 = vpop.permute.xlu1 %4581 }
 0x6f3   :  { %19587 = vst [vmem:[#allocation62_spill] sm:$0xff] %v17070_v34  ;;  %19588 = vst [vmem:[#allocation63_spill] sm:$0xff] %v17072_v31  ;;  %v17074_v22 = vpop.f32.mrb[246].mxu0 }
 0x6f4   :  { %5744 = vrot.lane.b32.xlu0 %v16949_v55, %s15073_s13  ;;  %6905 = vrot.lane.b32.xlu1 %v16982_v7, %s15072_s12  ;;  %v17080_v26 = vpop.f32.mrb[247].mxu0 }
 0x6f5   :  { %12818 = vmatmul.mubr.msk.f32.gmra.mrb[16].mxu0 %vm3695_vm6, %v16747_v32 }
 0x6f6   :  { %12820 = vmatprep.mubr.msk.f32.mxu0 %vm3695_vm6, %v16905_v51  ;;  %v17086_v47 = vpop.permute.xlu0 %5210  ;;  %v17088_v34 = vpop.permute.xlu1 %6477 }
 0x6f7   :  { %19589 = vst [vmem:[#allocation64_spill] sm:$0xff] %v17086_v47  ;;  %19590 = vst [vmem:[#allocation65_spill] sm:$0xff] %v17088_v34  ;;  %v17090_v31 = vpop.f32.mrb[248].mxu0 }
 0x6f8   :  { %4993 = vrot.lane.b32.xlu0 %v16961_v23, %s15071_s11  ;;  %7102 = vrot.lane.b32.xlu1 %v16993_v13, %s15072_s12  ;;  %v17096_v8 = vpop.f32.mrb[249].mxu0 }
 0x6f9   :  { %12821 = vmatmul.mubr.msk.f32.gmra.mrb[18].mxu0 %vm3695_vm6, %v17074_v22 }
 0x6fa   :  { %12823 = vmatprep.mubr.msk.f32.mxu0 %vm3695_vm6, %v16643_v39  ;;  %v17102_v32 = vpop.permute.xlu0 %6158  ;;  %v17104_v51 = vpop.permute.xlu1 %4778 }
 0x6fb   :  { %19591 = vst [vmem:[#allocation66_spill] sm:$0xff] %v17102_v32  ;;  %19592 = vst [vmem:[#allocation67_spill] sm:$0xff] %v17104_v51  ;;  %v17106_v34 = vpop.f32.mrb[250].mxu0 }
 0x6fc   :  { %5941 = vrot.lane.b32.xlu0 %v16961_v23, %s15073_s13  ;;  %7110 = vrot.lane.b32.xlu1 %v17004_v61, %s15072_s12  ;;  %v17112_v47 = vpop.f32.mrb[251].mxu0 }
 0x6fd   :  { %12824 = vmatmul.mubr.msk.f32.gmra.mrb[20].mxu0 %vm3695_vm6, %v16755_v43  ;;  %v11270_v43 = vld [vmem:[%s19403_s5 + $0x50] sm:$0xff] }
 0x6fe   :  { %12826 = vmatprep.mubr.msk.f32.mxu0 %vm3695_vm6, %v16915_v45  ;;  %v17118_v39 = vpop.permute.xlu0 %5218  ;;  %v17120_v32 = vpop.permute.xlu1 %6674  ;;  %v11271_v45 = vld [vmem:[%s19403_s5 + $0x58] sm:$0xff] }
 0x6ff   :  { %19593 = vst [vmem:[#allocation68_spill] sm:$0xff] %v17118_v39  ;;  %19594 = vst [vmem:[#allocation69_spill] sm:$0xff] %v17120_v32  ;;  %v17122_v51 = vpop.f32.mrb[252].mxu0 }
 0x700   :  { %5001 = vrot.lane.b32.xlu0 %v16972_v24, %s15071_s11  ;;  %7118 = vrot.lane.b32.xlu1 %v17014_v20, %s15072_s12  ;;  %v17128_v9 = vpop.f32.mrb[253].mxu0 }
 0x701   :  { %19595 = vst [vmem:[#allocation70_spill] sm:$0xff] %v17128_v9  ;;  %12827 = vmatmul.mubr.msk.f32.gmra.mrb[22].mxu0 %vm3695_vm6, %v17090_v31  ;;  %v17146_v9 = vpack.c.bf16 %v11271_v45, %v11270_v43 }
 0x702   :  { %12837 = vmatprep.mubr.msk.f32.mxu0 %vm3695_vm6, %v16653_v54  ;;  %v17140_v32 = vpop.permute.xlu0 %6166  ;;  %v17142_v39 = vpop.permute.xlu1 %4786  ;;  %v11284_v54 = vld [vmem:[%s19403_s5 + $0x60] sm:$0xff] }
 0x703   :  { %19596 = vst [vmem:[#allocation71_spill] sm:$0xff] %v17140_v32  ;;  %19597 = vst [vmem:[#allocation72_spill] sm:$0xff] %v17142_v39  ;;  %v17144_v35 = vpop.f32.mrb[254].mxu0  ;;  %v11285_v32 = vld [vmem:[%s19403_s5 + $0x68] sm:$0xff] }
 0x704   :  { %5949 = vrot.lane.b32.xlu0 %v16972_v24, %s15073_s13  ;;  %4569 = vrot.lane.b32.xlu1 %v17058_v14, %s15071_s11  ;;  %v17152_v16 = vpop.f32.mrb[255].mxu0 }
 0x705   :  { %19598 = vst [vmem:[#allocation73_spill] sm:$0xff] %v17152_v16  ;;  %12838 = vmatmul.mubr.msk.f32.vlgmr.msra.gmra.mrb[12].mxu0 %vm3695_vm6, %v16769_v36  ;;  %v17171_v16 = vpack.c.bf16 %v11285_v32, %v11284_v54 }
 0x706   :  { %12840 = vmatprep.mubr.msk.f32.mxu0 %vm3695_vm6, %v16927_v4  ;;  %v4566_v43 = vpop.permute.xlu0 %4565  ;;  %v17164_v45 = vpop.permute.xlu1 %6682  ;;  %13903 = vmatpush3.bf16.msra.mxu0 %v16840_v53 }
 0x707   :  { %19599 = vst [vmem:[#allocation74_spill] sm:$0xff] %v17164_v45  ;;  %12916 = vmatmul.mubr.msk.f32.vlgmr.msra.gmra.mrb[146].mxu1 %vm3695_vm6, %v4566_v43  ;;  %13905 = vmatprep.subr.bf16.mxu0 %v17146_v9  ;;  %v17169_v39 = vpop.f32.mrb[0].mxu0 }
 0x708   :  { %5009 = vrot.lane.b32.xlu0 %v16982_v7, %s15071_s11  ;;  %6465 = vrot.lane.b32.xlu1 %v17058_v14, %s15072_s12  ;;  %v17177_v36 = vpop.f32.mrb[1].mxu0 }
 0x709   :  { %19600 = vst [vmem:[#allocation75_spill] sm:$0xff] %v17177_v36  ;;  %12841 = vmatmul.mubr.msk.f32.gmra.mrb[14].mxu0 %vm3695_vm6, %v17106_v34  ;;  %13927 = vmatpush3.bf16.msra.mxu1 %v16771_v48 }
 0x70a   :  { %12843 = vmatprep.mubr.msk.f32.mxu0 %vm3695_vm6, %v16663_v58  ;;  %v17184_v4 = vpop.permute.xlu0 %5513  ;;  %v17186_v32 = vpop.permute.xlu1 %4794  ;;  %13907 = vmatpush3.bf16.msra.mxu0 %v17146_v9 }
 0x70b   :  { %19601 = vst [vmem:[#allocation76_spill] sm:$0xff] %v17186_v32  ;;  %v17189_v54 = vpop.f32.mrb[2].mxu0  ;;  %13909 = vmatprep.subr.bf16.mxu0 %v17171_v16  ;;  %13929 = vmatprep.subr.bf16.mxu1 %v16790_v27 }
 0x70c   :  { %5957 = vrot.lane.b32.xlu0 %v16982_v7, %s15073_s13  ;;  %4577 = vrot.lane.b32.xlu1 %v17074_v22, %s15071_s11  ;;  %v17197_v43 = vpop.f32.mrb[3].mxu0 }
 0x70d   :  { %19602 = vst [vmem:[#allocation77_spill] sm:$0xff] %v17197_v43  ;;  %12844 = vmatmul.mubr.msk.f32.gmra.mrb[16].mxu0 %vm3695_vm6, %v16788_v12  ;;  %13931 = vmatpush3.bf16.msra.mxu1 %v16790_v27 }
 0x70e   :  { %12846 = vmatprep.mubr.msk.f32.mxu0 %vm3695_vm6, %v16939_v56  ;;  %v17204_v58 = vpop.permute.xlu0 %5521  ;;  %v17206_v45 = vpop.permute.xlu1 %6690  ;;  %13933 = vmatprep.subr.bf16.mxu1 %v16840_v53 }
 0x70f   :  { %19603 = vst [vmem:[#allocation78_spill] sm:$0xff] %v17204_v58  ;;  %19604 = vst [vmem:[#allocation79_spill] sm:$0xff] %v17206_v45  ;;  %v17209_v32 = vpop.f32.mrb[4].mxu0 }
 0x710   :  { %5206 = vrot.lane.b32.xlu0 %v16993_v13, %s15071_s11  ;;  %6473 = vrot.lane.b32.xlu1 %v17074_v22, %s15072_s12  ;;  %v17215_v12 = vpop.f32.mrb[5].mxu0 }
 0x711   :  { %19605 = vst [vmem:[#allocation80_spill] sm:$0xff] %v17215_v12  ;;  %12847 = vmatmul.mubr.msk.f32.gmra.mrb[18].mxu0 %vm3695_vm6, %v17122_v51 }
 0x712   :  { %12849 = vmatprep.mubr.msk.f32.mxu0 %vm3695_vm6, %v16673_v62  ;;  %v17221_v56 = vpop.permute.xlu0 %5529  ;;  %v17223_v45 = vpop.permute.xlu1 %4991 }
 0x713   :  { %19606 = vst [vmem:[#allocation81_spill] sm:$0xff] %v17221_v56  ;;  %19607 = vst [vmem:[#allocation82_spill] sm:$0xff] %v17223_v45  ;;  %v17225_v58 = vpop.f32.mrb[6].mxu0 }
 0x714   :  { %6154 = vrot.lane.b32.xlu0 %v16993_v13, %s15073_s13  ;;  %4585 = vrot.lane.b32.xlu1 %v17090_v31, %s15071_s11  ;;  %v17231_v43 = vpop.f32.mrb[7].mxu0 }
 0x715   :  { %19608 = vst [vmem:[#allocation83_spill] sm:$0xff] %v17231_v43  ;;  %12850 = vmatmul.mubr.msk.f32.gmra.mrb[20].mxu0 %vm3695_vm6, %v16800_v6  ;;  %v11286_v43 = vld [vmem:[%s19403_s5 + $0x70] sm:$0xff]  ;;  %v11287_v6 = vld [vmem:[%s19403_s5 + $0x78] sm:$0xff] }
 0x716   :  { %12852 = vmatprep.mubr.msk.f32.mxu0 %vm3695_vm6, %v16949_v55  ;;  %v17237_v62 = vpop.permute.xlu0 %5726  ;;  %v17239_v56 = vpop.permute.xlu1 %6887  ;;  %v17263_v12 = vpack.c.bf16 %v11287_v6, %v11286_v43 }
 0x717   :  { %19609 = vst [vmem:[#allocation84_spill] sm:$0xff] %v17237_v62  ;;  %19610 = vst [vmem:[#allocation85_spill] sm:$0xff] %v17239_v56  ;;  %v17241_v45 = vpop.f32.mrb[8].mxu0 }
 0x718   :  { %5214 = vrot.lane.b32.xlu0 %v17004_v61, %s15071_s11  ;;  %6481 = vrot.lane.b32.xlu1 %v17090_v31, %s15072_s12  ;;  %v17253_v55 = vpop.f32.mrb[9].mxu0 }
 0x719   :  { %19611 = vst [vmem:[#allocation86_spill] sm:$0xff] %v17253_v55  ;;  %12853 = vmatmul.mubr.msk.f32.gmra.mrb[22].mxu0 %vm3695_vm6, %v17144_v35 }
 0x71a   :  { %12863 = vmatprep.mubr.msk.f32.mxu0 %vm3695_vm6, %v16683_v21  ;;  %v17259_v56 = vpop.permute.xlu0 %5734  ;;  %v17261_v62 = vpop.permute.xlu1 %4999 }
 0x71b   :  { %v17265_v36 = vpop.f32.mrb[10].mxu0 }
 0x71c   :  { %6162 = vrot.lane.b32.xlu0 %v17004_v61, %s15073_s13  ;;  %4782 = vrot.lane.b32.xlu1 %v17106_v34, %s15071_s11  ;;  %v17271_v55 = vpop.f32.mrb[11].mxu0 }
 0x71d   :  { %19612 = vst [vmem:[#allocation87_spill] sm:$0xff] %v17271_v55  ;;  %12864 = vmatmul.mubr.msk.f32.vlgmr.msra.gmra.mrb[12].mxu0 %vm3695_vm6, %v16808_v57 }
 0x71e   :  { %12866 = vmatprep.mubr.msk.f32.mxu0 %vm3695_vm6, %v16961_v23  ;;  %v17277_v21 = vpop.permute.xlu0 %5742  ;;  %v17279_v43 = vpop.permute.xlu1 %6895  ;;  %13911 = vmatpush3.bf16.msra.mxu0 %v17171_v16 }
 0x71f   :  { %19613 = vst [vmem:[#allocation88_spill] sm:$0xff] %v17279_v43  ;;  %13913 = vmatprep.subr.bf16.mxu0 %v17263_v12 }
 0x720   :  { %5222 = vrot.lane.b32.xlu0 %v17014_v20, %s15071_s11  ;;  %6678 = vrot.lane.b32.xlu1 %v17106_v34, %s15072_s12 }
 0x721   :  { %12867 = vmatmul.mubr.msk.f32.gmra.mrb[14].mxu0 %vm3695_vm6, %v17169_v39 }
 0x722   :  { %12869 = vmatprep.mubr.msk.f32.mxu0 %vm3695_vm6, %v16693_v17  ;;  %v17291_v57 = vpop.permute.xlu0 %5939  ;;  %v17293_v23 = vpop.permute.xlu1 %5007  ;;  %13915 = vmatpush3.bf16.msra.mxu0 %v17263_v12 }
 0x723   :  { %13949 = vmatprep.subr.bf16.mxu0 %v16588_v10 }
 0x724   :  { %6170 = vrot.lane.b32.xlu0 %v17014_v20, %s15073_s13  ;;  %4790 = vrot.lane.b32.xlu1 %v17122_v51, %s15071_s11 }
 0x725   :  { %12870 = vmatmul.mubr.msk.f32.gmra.mrb[16].mxu0 %vm3695_vm6, %v16816_v28 }
 0x726   :  { %12872 = vmatprep.mubr.msk.f32.mxu0 %vm3695_vm6, %v16972_v24  ;;  %v17305_v17 = vpop.permute.xlu0 %5947  ;;  %v17307_v6 = vpop.permute.xlu1 %6903 }
 0x727   :  { %19614 = vst [vmem:[#allocation89_spill] sm:$0xff] %v17307_v6 }
 0x728   :  { %5517 = vrot.lane.b32.xlu0 %v17058_v14, %s15073_s13  ;;  %6686 = vrot.lane.b32.xlu1 %v17122_v51, %s15072_s12 }
 0x729   :  { %12873 = vmatmul.mubr.msk.f32.gmra.mrb[18].mxu0 %vm3695_vm6, %v17189_v54 }
 0x72a   :  { %12875 = vmatprep.mubr.msk.f32.mxu0 %vm3695_vm6, %v16701_v42  ;;  %v17317_v28 = vpop.permute.xlu0 %5955  ;;  %v17319_v55 = vpop.permute.xlu1 %5204 }
 0x72c   :  { %5525 = vrot.lane.b32.xlu0 %v17074_v22, %s15073_s13  ;;  %4798 = vrot.lane.b32.xlu1 %v17144_v35, %s15071_s11 }
 0x72d   :  { %12876 = vmatmul.mubr.msk.f32.gmra.mrb[20].mxu0 %vm3695_vm6, %v16824_v52 }
 0x72e   :  { %12878 = vmatprep.mubr.msk.f32.mxu0 %vm3695_vm6, %v16982_v7  ;;  %v17329_v24 = vpop.permute.xlu0 %6152  ;;  %v17331_v14 = vpop.permute.xlu1 %7100 }
 0x72f   :  { %19615 = vst [vmem:[#allocation90_spill] sm:$0xff] %v17331_v14 }
 0x730   :  { %5533 = vrot.lane.b32.xlu0 %v17090_v31, %s15073_s13  ;;  %6694 = vrot.lane.b32.xlu1 %v17144_v35, %s15072_s12 }
 0x731   :  { %12879 = vmatmul.mubr.msk.f32.gmra.mrb[22].mxu0 %vm3695_vm6, %v17209_v32 }
 0x732   :  { %12889 = vmatprep.mubr.msk.f32.mxu0 %vm3695_vm6, %v16709_v30  ;;  %v17341_v22 = vpop.permute.xlu0 %6160  ;;  %v17343_v42 = vpop.permute.xlu1 %5212 }
 0x734   :  { %5730 = vrot.lane.b32.xlu0 %v17106_v34, %s15073_s13  ;;  %4995 = vrot.lane.b32.xlu1 %v17169_v39, %s15071_s11 }
 0x735   :  { %12890 = vmatmul.mubr.msk.f32.vlgmr.msra.gmra.mrb[12].mxu0 %vm3695_vm6, %v16838_v29 }
 0x736   :  { %12892 = vmatprep.mubr.msk.f32.mxu0 %vm3695_vm6, %v16993_v13  ;;  %v17353_v7 = vpop.permute.xlu1 %7108  ;;  %v17355_v31 = vpop.permute.xlu0 %6168  ;;  %13951 = vmatpush3.bf16.msra.mxu0 %v16588_v10 }
 0x737   :  { %19616 = vst [vmem:[#allocation91_spill] sm:$0xff] %v17353_v7  ;;  %19617 = vst [vmem:[#allocation92_spill] sm:$0xff] %v17355_v31  ;;  %13953 = vmatprep.subr.bf16.mxu0 %v16599_v33  ;;  %v19651_v31 = vld [vmem:[#allocation47_spill] sm:$0xff] }
 0x738   :  { %5738 = vrot.lane.b32.xlu0 %v17122_v51, %s15073_s13  ;;  %6891 = vrot.lane.b32.xlu1 %v17169_v39, %s15072_s12 }
 0x739   :  { %12893 = vmatmul.mubr.msk.f32.gmra.mrb[14].mxu0 %vm3695_vm6, %v17225_v58 }
 0x73a   :  { %12895 = vmatprep.mubr.msk.f32.mxu0 %vm3695_vm6, %v16717_v25  ;;  %v17367_v30 = vpop.permute.xlu1 %5220  ;;  %v5516_v34 = vpop.permute.xlu0 %5515  ;;  %13955 = vmatpush3.bf16.msra.mxu0 %v16599_v33 }
 0x73b   :  { %13957 = vmatprep.subr.bf16.mxu0 %v16771_v48 }
 0x73c   :  { %5746 = vrot.lane.b32.xlu0 %v17144_v35, %s15073_s13  ;;  %5003 = vrot.lane.b32.xlu1 %v17189_v54, %s15071_s11 }
 0x73d   :  { %12896 = vmatmul.mubr.msk.f32.gmra.mrb[16].mxu0 %vm3695_vm6, %v16848_v60 }
 0x73e   :  { %12898 = vmatprep.mubr.msk.f32.mxu0 %vm3695_vm6, %v17004_v61  ;;  %v17379_v10 = vpop.permute.xlu1 %7116  ;;  %v17381_v25 = vpop.permute.xlu0 %8263 }
 0x73f   :  { %19618 = vst [vmem:[#allocation93_spill] sm:$0xff] %v17379_v10  ;;  %19619 = vst [vmem:[#allocation94_spill] sm:$0xff] %v17381_v25 }
 0x740   :  { %5943 = vrot.lane.b32.xlu0 %v17169_v39, %s15073_s13  ;;  %6899 = vrot.lane.b32.xlu1 %v17189_v54, %s15072_s12 }
 0x741   :  { %12899 = vmatmul.mubr.msk.f32.gmra.mrb[18].mxu0 %vm3695_vm6, %v17241_v45 }
 0x742   :  { %12901 = vmatprep.mubr.msk.f32.mxu0 %vm3695_vm6, %v16725_v37  ;;  %v4568_v33 = vpop.permute.xlu1 %4567  ;;  %v17391_v13 = vpop.permute.xlu0 %4575 }
 0x743   :  { %12918 = vmatprep.mubr.msk.f32.mxu1 %vm3695_vm6, %v4568_v33 }
 0x744   :  { %5951 = vrot.lane.b32.xlu0 %v17189_v54, %s15073_s13  ;;  %5011 = vrot.lane.b32.xlu1 %v17209_v32, %s15071_s11 }
 0x745   :  { %12902 = vmatmul.mubr.msk.f32.gmra.mrb[20].mxu0 %vm3695_vm6, %v16855_v59 }
 0x746   :  { %12904 = vmatprep.mubr.msk.f32.mxu0 %vm3695_vm6, %v17014_v20  ;;  %v17402_v35 = vpop.permute.xlu1 %6463  ;;  %v17404_v37 = vpop.permute.xlu0 %5523 }
 0x748   :  { %5959 = vrot.lane.b32.xlu0 %v17209_v32, %s15073_s13  ;;  %6907 = vrot.lane.b32.xlu1 %v17209_v32, %s15072_s12 }
 0x749   :  { %12905 = vmatmul.mubr.msk.f32.gmra.mrb[22].mxu0 %vm3695_vm6, %v17265_v36 }
 0x74a   :  { %13019 = vmatprep.mubr.msk.f32.mxu0 %vm3695_vm6, %v16874_v5  ;;  %v17414_v61 = vpop.permute.xlu1 %6471  ;;  %v17416_v52 = vpop.permute.xlu0 %4583 }
 0x74c   :  { %6156 = vrot.lane.b32.xlu0 %v17225_v58, %s15073_s13  ;;  %5208 = vrot.lane.b32.xlu1 %v17225_v58, %s15071_s11 }
 0x74d   :  { %13020 = vmatmul.mubr.msk.f32.vlgmr.msra.gmra.mrb[24].mxu0 %vm3695_vm6, %v17184_v4 }
 0x74e   :  { %13022 = vmatprep.mubr.msk.f32.mxu0 %vm3695_vm6, %v5516_v34  ;;  %v17425_v20 = vpop.permute.xlu1 %6479  ;;  %v17427_v29 = vpop.permute.xlu0 %5531  ;;  %13959 = vmatpush3.bf16.msra.mxu0 %v16771_v48 }
 0x74f   :  { %13961 = vmatprep.subr.bf16.mxu0 %v16790_v27 }
 0x750   :  { %7104 = vrot.lane.b32.xlu1 %v17225_v58, %s15072_s12  ;;  %6164 = vrot.lane.b32.xlu0 %v17241_v45, %s15073_s13 }
 0x752   :  { %v17435_v60 = vpop.permute.xlu1 %6676  ;;  %v17437_v59 = vpop.permute.xlu0 %4780  ;;  %13963 = vmatpush3.bf16.msra.mxu0 %v16790_v27 }
 0x753   :  { %19620 = vst [vmem:[#allocation95_spill] sm:$0xff] %v17435_v60  ;;  %13965 = vmatprep.subr.bf16.mxu0 %v16840_v53 }
 0x754   :  { %8267 = vrot.lane.b32.xlu0 %v16638_v19, %s15071_s11  ;;  %5216 = vrot.lane.b32.xlu1 %v17241_v45, %s15071_s11 }
 0x756   :  { %v17445_v5 = vpop.permute.xlu0 %5728  ;;  %v17447_v51 = vpop.permute.xlu1 %6684 }
 0x757   :  { %19621 = vst [vmem:[#allocation96_spill] sm:$0xff] %v17447_v51  ;;  %v19638_v51 = vld [vmem:[#allocation42_spill] sm:$0xff] }
 0x758   :  { %8271 = vrot.lane.b32.xlu0 %v16911_v1, %s15071_s11  ;;  %7112 = vrot.lane.b32.xlu1 %v17241_v45, %s15072_s12 }
 0x75a   :  { %v17453_v39 = vpop.permute.xlu0 %4788  ;;  %v17455_v4 = vpop.permute.xlu1 %6692 }
 0x75b   :  { %19622 = vst [vmem:[#allocation97_spill] sm:$0xff] %v17455_v4  ;;  %v19634_v4 = vld [vmem:[#allocation63_spill] sm:$0xff] }
 0x75c   :  { %8275 = vrot.lane.b32.xlu0 %v16648_v18, %s15071_s11  ;;  %5224 = vrot.lane.b32.xlu1 %v17265_v36, %s15071_s11 }
 0x75e   :  { %v17461_v32 = vpop.permute.xlu0 %5736  ;;  %v17463_v54 = vpop.permute.xlu1 %6889 }
 0x75f   :  { %19623 = vst [vmem:[#allocation98_spill] sm:$0xff] %v17463_v54  ;;  %v19631_v54 = vld [vmem:[#allocation30_spill] sm:$0xff] }
 0x760   :  { %8279 = vrot.lane.b32.xlu0 %v16923_v38, %s15071_s11  ;;  %8265 = vrot.lane.b32.xlu1 %v17064_v50, %s15071_s11 }
 0x762   :  { %v17469_v45 = vpop.permute.xlu0 %4796  ;;  %v17471_v58 = vpop.permute.xlu1 %6897 }
 0x763   :  { %19624 = vst [vmem:[#allocation99_spill] sm:$0xff] %v17471_v58 }
 0x764   :  { %8472 = vrot.lane.b32.xlu0 %v16658_v11, %s15071_s11  ;;  %8269 = vrot.lane.b32.xlu1 %v16753_v41, %s15071_s11 }
 0x766   :  { %v17477_v34 = vpop.permute.xlu0 %5744  ;;  %v17479_v33 = vpop.permute.xlu1 %6905 }
 0x767   :  { %19625 = vst [vmem:[#allocation100_spill] sm:$0xff] %v17479_v33 }
 0x768   :  { %8476 = vrot.lane.b32.xlu0 %v16933_v63, %s15071_s11  ;;  %8273 = vrot.lane.b32.xlu1 %v17080_v26, %s15071_s11 }
 0x76a   :  { %v17485_v25 = vpop.permute.xlu0 %4993  ;;  %v17487_v10 = vpop.permute.xlu1 %7102 }
 0x76b   :  { %19626 = vst [vmem:[#allocation101_spill] sm:$0xff] %v17487_v10 }
 0x76c   :  { %8480 = vrot.lane.b32.xlu0 %v16668_v2, %s15071_s11  ;;  %8277 = vrot.lane.b32.xlu1 %v16761_v44, %s15071_s11  ;;  %v19647_v2 = vld [vmem:[#allocation72_spill] sm:$0xff] }
 0x76e   :  { %v17493_v7 = vpop.permute.xlu0 %5941  ;;  %v17495_v14 = vpop.permute.xlu1 %7110 }
 0x76f   :  { %19627 = vst [vmem:[#allocation102_spill] sm:$0xff] %v17495_v14 }
 0x770   :  { %8484 = vrot.lane.b32.xlu0 %v16945_v0, %s15071_s11  ;;  %8281 = vrot.lane.b32.xlu1 %v17096_v8, %s15071_s11 }
 0x772   :  { %v17501_v33 = vpop.permute.xlu0 %5001  ;;  %v17503_v6 = vpop.permute.xlu1 %7118 }
 0x773   :  { %19628 = vst [vmem:[#allocation103_spill] sm:$0xff] %v17503_v6 }
 0x774   :  { %8488 = vrot.lane.b32.xlu0 %v16678_v15, %s15071_s11  ;;  %8474 = vrot.lane.b32.xlu1 %v16777_v49, %s15071_s11  ;;  %v19632_v15 = vld [vmem:[#allocation39_spill] sm:$0xff] }
 0x776   :  { %v17509_v10 = vpop.permute.xlu0 %5949  ;;  %v4570_v58 = vpop.permute.xlu1 %4569 }
 0x777   :  { %12919 = vmatmul.mubr.msk.f32.gmra.mrb[148].mxu1 %vm3695_vm6, %v4570_v58  ;;  %v19629_v58 = vld [vmem:[#allocation5_spill] sm:$0xff] }
 0x778   :  { %12921 = vmatprep.mubr.msk.f32.mxu1 %vm3695_vm6, %v16890_v40  ;;  %8492 = vrot.lane.b32.xlu0 %v16957_v3, %s15071_s11  ;;  %v19630_v40 = vld [vmem:[#allocation14_spill] sm:$0xff] }
 0x779   :  { %8478 = vrot.lane.b32.xlu1 %v17112_v47, %s15071_s11 }
 0x77a   :  { %v17518_v6 = vpop.permute.xlu0 %5009  ;;  %v17520_v14 = vpop.permute.xlu1 %6465 }
 0x77b   :  { %12922 = vmatmul.mubr.msk.f32.gmra.mrb[150].mxu1 %vm3695_vm6, %v17048_v46  ;;  %v19633_v46 = vld [vmem:[#allocation70_spill] sm:$0xff] }
 0x77c   :  { %12924 = vmatprep.mubr.msk.f32.mxu1 %vm3695_vm6, %v17391_v13  ;;  %8685 = vrot.lane.b32.xlu0 %v19629_v58, %s15071_s11 }
 0x77d   :  { %8482 = vrot.lane.b32.xlu1 %v19630_v40, %s15071_s11  ;;  %v19640_v40 = vld [vmem:[#allocation67_spill] sm:$0xff] }
 0x77e   :  { %v17530_v43 = vpop.permute.xlu0 %5957  ;;  %v4578_v3 = vpop.permute.xlu1 %4577 }
 0x77f   :  { %12925 = vmatmul.mubr.msk.f32.gmra.mrb[152].mxu1 %vm3695_vm6, %v4578_v3  ;;  %v19635_v3 = vld [vmem:[#allocation8_spill] sm:$0xff] }
 0x780   :  { %12927 = vmatprep.mubr.msk.f32.mxu1 %vm3695_vm6, %v19631_v54  ;;  %8689 = vrot.lane.b32.xlu0 %v19632_v15, %s15071_s11  ;;  %v19636_v54 = vld [vmem:[#allocation13_spill] sm:$0xff] }
 0x781   :  { %8486 = vrot.lane.b32.xlu1 %v19633_v46, %s15071_s11  ;;  %v19637_v46 = vld [vmem:[#allocation31_spill] sm:$0xff] }
 0x782   :  { %v17539_v13 = vpop.permute.xlu0 %5206  ;;  %v17541_v58 = vpop.permute.xlu1 %6473 }
 0x783   :  { %12928 = vmatmul.mubr.msk.f32.gmra.mrb[154].mxu1 %vm3695_vm6, %v19634_v4  ;;  %v19639_v4 = vld [vmem:[#allocation73_spill] sm:$0xff] }
 0x784   :  { %12930 = vmatprep.mubr.msk.f32.mxu1 %vm3695_vm6, %v17416_v52  ;;  %8693 = vrot.lane.b32.xlu0 %v19635_v3, %s15071_s11 }
 0x785   :  { %8490 = vrot.lane.b32.xlu1 %v19636_v54, %s15071_s11  ;;  %v19643_v54 = vld [vmem:[#allocation38_spill] sm:$0xff] }
 0x786   :  { %v17551_v15 = vpop.permute.xlu0 %6154  ;;  %v4586_v0 = vpop.permute.xlu1 %4585 }
 0x787   :  { %12931 = vmatmul.mubr.msk.f32.gmra.mrb[156].mxu1 %vm3695_vm6, %v4586_v0  ;;  %v19641_v0 = vld [vmem:[#allocation7_spill] sm:$0xff] }
 0x788   :  { %12941 = vmatprep.mubr.msk.f32.mxu1 %vm3695_vm6, %v19637_v46  ;;  %8697 = vrot.lane.b32.xlu0 %v19638_v51, %s15071_s11  ;;  %v19642_v46 = vld [vmem:[#allocation16_spill] sm:$0xff] }
 0x789   :  { %8494 = vrot.lane.b32.xlu1 %v19639_v4, %s15071_s11 }
 0x78a   :  { %v17560_v52 = vpop.permute.xlu0 %5214  ;;  %v17562_v3 = vpop.permute.xlu1 %6481 }
 0x78b   :  { %12942 = vmatmul.mubr.msk.f32.vlgmr.msra.gmra.mrb[146].mxu1 %vm3695_vm6, %v19640_v40  ;;  %v19645_v40 = vld [vmem:[#allocation75_spill] sm:$0xff] }
 0x78c   :  { %12944 = vmatprep.mubr.msk.f32.mxu1 %vm3695_vm6, %v17437_v59  ;;  %8701 = vrot.lane.b32.xlu0 %v19641_v0, %s15071_s11  ;;  %v19644_v59 = vld [vmem:[#allocation45_spill] sm:$0xff] }
 0x78d   :  { %8687 = vrot.lane.b32.xlu1 %v19642_v46, %s15071_s11  ;;  %13935 = vmatpush3.bf16.msra.mxu1 %v16840_v53 }
 0x78e   :  { %v17573_v51 = vpop.permute.xlu0 %6162  ;;  %v4783_v4 = vpop.permute.xlu1 %4782  ;;  %13937 = vmatprep.subr.bf16.mxu1 %v17146_v9 }
 0x78f   :  { %12945 = vmatmul.mubr.msk.f32.gmra.mrb[148].mxu1 %vm3695_vm6, %v4783_v4  ;;  %v19649_v4 = vld [vmem:[#allocation15_spill] sm:$0xff] }
 0x790   :  { %12947 = vmatprep.mubr.msk.f32.mxu1 %vm3695_vm6, %v19643_v54  ;;  %8705 = vrot.lane.b32.xlu0 %v19644_v59, %s15071_s11  ;;  %v19648_v54 = vld [vmem:[#allocation10_spill] sm:$0xff] }
 0x791   :  { %8691 = vrot.lane.b32.xlu1 %v19645_v40, %s15071_s11  ;;  %13939 = vmatpush3.bf16.msra.mxu1 %v17146_v9 }
 0x792   :  { %v17584_v0 = vpop.permute.xlu0 %5222  ;;  %v17586_v46 = vpop.permute.xlu1 %6678  ;;  %13941 = vmatprep.subr.bf16.mxu1 %v17171_v16 }
 0x793   :  { %19646 = vst [vmem:[#allocation30_spill] sm:$0xff] %v17586_v46  ;;  %12948 = vmatmul.mubr.msk.f32.gmra.mrb[150].mxu1 %vm3695_vm6, %v19647_v2  ;;  %v19650_v46 = vld [vmem:[#allocation43_spill] sm:$0xff]  ;;  %v19652_v2 = vld [vmem:[#allocation77_spill] sm:$0xff] }
 0x794   :  { %12950 = vmatprep.mubr.msk.f32.mxu1 %vm3695_vm6, %v17453_v39  ;;  %8898 = vrot.lane.b32.xlu0 %v19648_v54, %s15071_s11  ;;  %v19654_v54 = vld [vmem:[#allocation76_spill] sm:$0xff] }
 0x795   :  { %8695 = vrot.lane.b32.xlu1 %v19649_v4, %s15071_s11 }
 0x796   :  { %v17597_v59 = vpop.permute.xlu0 %6170  ;;  %v4791_v40 = vpop.permute.xlu1 %4790 }
 0x797   :  { %12951 = vmatmul.mubr.msk.f32.gmra.mrb[152].mxu1 %vm3695_vm6, %v4791_v40  ;;  %v19655_v40 = vld [vmem:[#allocation9_spill] sm:$0xff] }
 0x798   :  { %12953 = vmatprep.mubr.msk.f32.mxu1 %vm3695_vm6, %v19650_v46  ;;  %8902 = vrot.lane.b32.xlu0 %v19651_v31, %s15071_s11  ;;  %v19656_v46 = vld [vmem:[#allocation18_spill] sm:$0xff]  ;;  %v19657_v31 = vld [vmem:[#allocation28_spill] sm:$0xff] }
 0x799   :  { %8699 = vrot.lane.b32.xlu1 %v19652_v2, %s15071_s11 }
 0x79a   :  { %v5518_v39 = vpop.permute.xlu0 %5517  ;;  %v17606_v60 = vpop.permute.xlu1 %6686 }
 0x79b   :  { %19653 = vst [vmem:[#allocation63_spill] sm:$0xff] %v17606_v60  ;;  %12954 = vmatmul.mubr.msk.f32.gmra.mrb[154].mxu1 %vm3695_vm6, %v19654_v54  ;;  %13023 = vmatmul.mubr.msk.f32.gmra.mrb[26].mxu0 %vm3695_vm6, %v5518_v39  ;;  %v19658_v60 = vld [vmem:[#allocation78_spill] sm:$0xff]  ;;  %v19659_v54 = vld [vmem:[#allocation48_spill] sm:$0xff] }
 0x79c   :  { %12956 = vmatprep.mubr.msk.f32.mxu1 %vm3695_vm6, %v17469_v45  ;;  %8906 = vrot.lane.b32.xlu0 %v19655_v40, %s15071_s11  ;;  %v19660_v45 = vld [vmem:[#allocation50_spill] sm:$0xff]  ;;  %v19661_v39 = vld [vmem:[#allocation80_spill] sm:$0xff] }
 0x79d   :  { %8703 = vrot.lane.b32.xlu1 %v19656_v46, %s15071_s11  ;;  %13025 = vmatprep.mubr.msk.f32.mxu0 %vm3695_vm6, %v19657_v31  ;;  %v19662_v46 = vld [vmem:[#allocation82_spill] sm:$0xff] }
 0x79e   :  { %v5526_v2 = vpop.permute.xlu0 %5525  ;;  %v4799_v4 = vpop.permute.xlu1 %4798 }
 0x79f   :  { %12957 = vmatmul.mubr.msk.f32.gmra.mrb[156].mxu1 %vm3695_vm6, %v4799_v4  ;;  %13026 = vmatmul.mubr.msk.f32.gmra.mrb[28].mxu0 %vm3695_vm6, %v19658_v60  ;;  %v19663_v60 = vld [vmem:[#allocation12_spill] sm:$0xff]  ;;  %v19664_v4 = vld [vmem:[#allocation17_spill] sm:$0xff] }
 0x7a0   :  { %12967 = vmatprep.mubr.msk.f32.mxu1 %vm3695_vm6, %v19659_v54  ;;  %8910 = vrot.lane.b32.xlu0 %v19660_v45, %s15071_s11  ;;  %v19665_v54 = vld [vmem:[#allocation32_spill] sm:$0xff] }
 0x7a1   :  { %8707 = vrot.lane.b32.xlu1 %v19661_v39, %s15071_s11  ;;  %13028 = vmatprep.mubr.msk.f32.mxu0 %vm3695_vm6, %v17404_v37  ;;  %v19674_v39 = vld [vmem:[#allocation4_spill] sm:$0xff] }
 0x7a2   :  { %v5534_v31 = vpop.permute.xlu0 %5533  ;;  %v17630_v40 = vpop.permute.xlu1 %6694 }
 0x7a3   :  { %12968 = vmatmul.mubr.msk.f32.vlgmr.msra.gmra.mrb[146].mxu1 %vm3695_vm6, %v19662_v46  ;;  %13029 = vmatmul.mubr.msk.f32.gmra.mrb[30].mxu0 %vm3695_vm6, %v5526_v2  ;;  %v19666_v46 = vld [vmem:[#allocation81_spill] sm:$0xff]  ;;  %v19667_v2 = vld [vmem:[#allocation54_spill] sm:$0xff] }
 0x7a4   :  { %12970 = vmatprep.mubr.msk.f32.mxu1 %vm3695_vm6, %v17485_v25  ;;  %8914 = vrot.lane.b32.xlu0 %v19663_v60, %s15071_s11  ;;  %v19668_v25 = vld [vmem:[#allocation53_spill] sm:$0xff]  ;;  %v19669_v60 = vld [vmem:[#allocation83_spill] sm:$0xff] }
 0x7a5   :  { %8900 = vrot.lane.b32.xlu1 %v19664_v4, %s15071_s11  ;;  %13031 = vmatprep.mubr.msk.f32.mxu0 %vm3695_vm6, %v19665_v54 }
 0x7a6   :  { %v5731_v37 = vpop.permute.xlu0 %5730  ;;  %v4996_v45 = vpop.permute.xlu1 %4995  ;;  %13943 = vmatpush3.bf16.msra.mxu1 %v17171_v16 }
 0x7a7   :  { %12971 = vmatmul.mubr.msk.f32.gmra.mrb[148].mxu1 %vm3695_vm6, %v4996_v45  ;;  %13032 = vmatmul.mubr.msk.f32.gmra.mrb[32].mxu0 %vm3695_vm6, %v19666_v46  ;;  %v6443_v45 = vld [vmem:[%s19403_s5] sm:$0xff]  ;;  %v6444_v46 = vld [vmem:[%s19403_s5 + $0x8] sm:$0xff] }
 0x7a8   :  { %12973 = vmatprep.mubr.msk.f32.mxu1 %vm3695_vm6, %v19667_v2  ;;  %8918 = vrot.lane.b32.xlu0 %v19668_v25, %s15071_s11  ;;  %v17676_v25 = vpack.c.bf16 %v6444_v46, %v6443_v45  ;;  %v19678_v46 = vld [vmem:[#allocation40_spill] sm:$0xff] }
 0x7a9   :  { %8904 = vrot.lane.b32.xlu1 %v19669_v60, %s15071_s11  ;;  %13034 = vmatprep.mubr.msk.f32.mxu0 %vm3695_vm6, %v17427_v29  ;;  %v19670_v29 = vld [vmem:[#allocation20_spill] sm:$0xff] }
 0x7aa   :  { %v5739_v54 = vpop.permute.xlu0 %5738  ;;  %v17655_v4 = vpop.permute.xlu1 %6891  ;;  %13945 = vmatprep.subr.bf16.mxu1 %v17263_v12  ;;  %v19672_v60 = vld [vmem:[#allocation84_spill] sm:$0xff] }
 0x7ab   :  { %12974 = vmatmul.mubr.msk.f32.gmra.mrb[150].mxu1 %vm3695_vm6, %v17261_v62  ;;  %13035 = vmatmul.mubr.msk.f32.gmra.mrb[34].mxu0 %vm3695_vm6, %v5534_v31  ;;  %v19671_v62 = vld [vmem:[#allocation35_spill] sm:$0xff] }
 0x7ac   :  { %12976 = vmatprep.mubr.msk.f32.mxu1 %vm3695_vm6, %v17501_v33  ;;  %6172 = vrot.lane.b32.xlu0 %v17265_v36, %s15073_s13  ;;  %v19673_v33 = vld [vmem:[#allocation57_spill] sm:$0xff] }
 0x7ad   :  { %8908 = vrot.lane.b32.xlu1 %v19670_v29, %s15071_s11  ;;  %13045 = vmatprep.mubr.msk.f32.mxu0 %vm3695_vm6, %v19671_v62  ;;  %v19675_v29 = vld [vmem:[#allocation86_spill] sm:$0xff] }
 0x7ae   :  { %v5747_v31 = vpop.permute.xlu0 %5746  ;;  %v5004_v2 = vpop.permute.xlu1 %5003  ;;  %13947 = vmatpush3.bf16.msra.mxu1 %v17263_v12 }
 0x7af   :  { %12977 = vmatmul.mubr.msk.f32.gmra.mrb[152].mxu1 %vm3695_vm6, %v5004_v2  ;;  %13046 = vmatmul.mubr.msk.f32.vlgmr.msra.gmra.mrb[24].mxu0 %vm3695_vm6, %v19672_v60  ;;  %v19676_v60 = vld [vmem:[#allocation11_spill] sm:$0xff] }
 0x7b0   :  { %12979 = vmatprep.mubr.msk.f32.mxu1 %vm3695_vm6, %v19673_v33  ;;  %9207 = vrot.lane.b32.xlu0 %v19674_v39, %s15073_s13 }
 0x7b1   :  { %8912 = vrot.lane.b32.xlu1 %v19675_v29, %s15071_s11  ;;  %13048 = vmatprep.mubr.msk.f32.mxu0 %vm3695_vm6, %v17445_v5  ;;  %v19677_v5 = vld [vmem:[#allocation19_spill] sm:$0xff] }
 0x7b2   :  { %v17689_v62 = vpop.permute.xlu0 %5943  ;;  %v17691_v45 = vpop.permute.xlu1 %6899  ;;  %13967 = vmatpush3.bf16.msra.mxu0 %v16840_v53  ;;  %13981 = vmatprep.subr.bf16.mxu1 %v17676_v25 }
 0x7b3   :  { %12980 = vmatmul.mubr.msk.f32.gmra.mrb[154].mxu1 %vm3695_vm6, %v17293_v23  ;;  %13049 = vmatmul.mubr.msk.f32.gmra.mrb[26].mxu0 %vm3695_vm6, %v5731_v37  ;;  %v19679_v23 = vld [vmem:[#allocation60_spill] sm:$0xff] }
 0x7b4   :  { %12982 = vmatprep.mubr.msk.f32.mxu1 %vm3695_vm6, %v17518_v6  ;;  %9209 = vrot.lane.b32.xlu0 %v19676_v60, %s15073_s13  ;;  %v19680_v6 = vld [vmem:[#allocation25_spill] sm:$0xff] }
 0x7b5   :  { %8916 = vrot.lane.b32.xlu1 %v19677_v5, %s15071_s11  ;;  %13051 = vmatprep.mubr.msk.f32.mxu0 %vm3695_vm6, %v19678_v46  ;;  %v18071_v5 = vld [vmem:[%s19404_s6 + $0x18] sm:$0xff] }
 0x7b6   :  { %v17706_v2 = vpop.permute.xlu0 %5951  ;;  %v5012_v33 = vpop.permute.xlu1 %5011  ;;  %13969 = vmatprep.subr.bf16.mxu0 %v17146_v9  ;;  %19739 = vst [vmem:[#allocation25_spill] sm:$0xff] %v18071_v5 }
 0x7b7   :  { %12983 = vmatmul.mubr.msk.f32.gmra.mrb[156].mxu1 %vm3695_vm6, %v5012_v33  ;;  %13052 = vmatmul.mubr.msk.f32.gmra.mrb[28].mxu0 %vm3695_vm6, %v17259_v56  ;;  %v6445_v56 = vld [vmem:[%s19403_s5 + $0x10] sm:$0xff]  ;;  %v6446_v33 = vld [vmem:[%s19403_s5 + $0x18] sm:$0xff] }
 0x7b8   :  { %12993 = vmatprep.mubr.msk.f32.mxu1 %vm3695_vm6, %v19679_v23  ;;  %9211 = vrot.lane.b32.xlu0 %v19680_v6, %s15073_s13  ;;  %v17745_v23 = vpack.c.bf16 %v6446_v33, %v6445_v56 }
 0x7b9   :  { %10155 = vrot.lane.b32.xlu1 %v19674_v39, %s15072_s12  ;;  %13054 = vmatprep.mubr.msk.f32.mxu0 %vm3695_vm6, %v17461_v32 }
 0x7ba   :  { %v17720_v37 = vpop.permute.xlu0 %5959  ;;  %v17722_v46 = vpop.permute.xlu1 %6907  ;;  %13971 = vmatpush3.bf16.msra.mxu0 %v17146_v9 }
 0x7bb   :  { %12994 = vmatmul.mubr.msk.f32.vlgmr.msra.gmra.mrb[146].mxu1 %vm3695_vm6, %v17319_v55  ;;  %13055 = vmatmul.mubr.msk.f32.gmra.mrb[30].mxu0 %vm3695_vm6, %v5739_v54  ;;  %v19681_v55 = vld [vmem:[#allocation46_spill] sm:$0xff] }
 0x7bc   :  { %12996 = vmatprep.mubr.msk.f32.mxu1 %vm3695_vm6, %v17539_v13  ;;  %9213 = vrot.lane.b32.xlu0 %v17064_v50, %s15073_s13  ;;  %v19682_v13 = vld [vmem:[#allocation64_spill] sm:$0xff] }
 0x7bd   :  { %7120 = vrot.lane.b32.xlu1 %v17265_v36, %s15072_s12  ;;  %13057 = vmatprep.mubr.msk.f32.mxu0 %vm3695_vm6, %v19681_v55 }
 0x7be   :  { %v17742_v32 = vpop.permute.xlu0 %6156  ;;  %v5209_v54 = vpop.permute.xlu1 %5208  ;;  %13983 = vmatpush3.bf16.msra.mxu1 %v17676_v25  ;;  %13973 = vmatprep.subr.bf16.mxu0 %v17171_v16 }
 0x7bf   :  { %12997 = vmatmul.mubr.msk.f32.gmra.mrb[148].mxu1 %vm3695_vm6, %v5209_v54  ;;  %13058 = vmatmul.mubr.msk.f32.gmra.mrb[32].mxu0 %vm3695_vm6, %v17277_v21  ;;  %v19683_v21 = vld [vmem:[#allocation51_spill] sm:$0xff] }
 0x7c0   :  { %12999 = vmatprep.mubr.msk.f32.mxu1 %vm3695_vm6, %v19682_v13  ;;  %9215 = vrot.lane.b32.xlu0 %v16638_v19, %s15073_s13 }
 0x7c1   :  { %10157 = vrot.lane.b32.xlu1 %v19676_v60, %s15072_s12  ;;  %13060 = vmatprep.mubr.msk.f32.mxu0 %vm3695_vm6, %v17477_v34 }
 0x7c2   :  { %v17759_v36 = vpop.permute.xlu1 %7104  ;;  %v17761_v56 = vpop.permute.xlu0 %6164  ;;  %13985 = vmatprep.subr.bf16.mxu1 %v17745_v23 }
 0x7c3   :  { %13000 = vmatmul.mubr.msk.f32.gmra.mrb[150].mxu1 %vm3695_vm6, %v17343_v42  ;;  %13061 = vmatmul.mubr.msk.f32.gmra.mrb[34].mxu0 %vm3695_vm6, %v5747_v31  ;;  %v19684_v42 = vld [vmem:[#allocation68_spill] sm:$0xff] }
 0x7c4   :  { %13002 = vmatprep.mubr.msk.f32.mxu1 %vm3695_vm6, %v17560_v52  ;;  %9217 = vrot.lane.b32.xlu0 %v16753_v41, %s15073_s13 }
 0x7c5   :  { %10159 = vrot.lane.b32.xlu1 %v19680_v6, %s15072_s12  ;;  %13071 = vmatprep.mubr.msk.f32.mxu0 %vm3695_vm6, %v19683_v21 }
 0x7c6   :  { %v17775_v34 = vpop.permute.xlu0 %8267  ;;  %v5217_v33 = vpop.permute.xlu1 %5216  ;;  %13987 = vmatpush3.bf16.msra.mxu1 %v17745_v23 }
 0x7c7   :  { %13003 = vmatmul.mubr.msk.f32.gmra.mrb[152].mxu1 %vm3695_vm6, %v5217_v33  ;;  %13072 = vmatmul.mubr.msk.f32.vlgmr.msra.gmra.mrb[24].mxu0 %vm3695_vm6, %v17291_v57  ;;  %v19685_v57 = vld [vmem:[#allocation55_spill] sm:$0xff] }
 0x7c8   :  { %13005 = vmatprep.mubr.msk.f32.mxu1 %vm3695_vm6, %v19684_v42  ;;  %9219 = vrot.lane.b32.xlu0 %v16911_v1, %s15073_s13 }
 0x7c9   :  { %10161 = vrot.lane.b32.xlu1 %v17064_v50, %s15072_s12  ;;  %13074 = vmatprep.mubr.msk.f32.mxu0 %vm3695_vm6, %v17493_v7 }
 0x7ca   :  { %v17789_v52 = vpop.permute.xlu0 %8271  ;;  %v17791_v31 = vpop.permute.xlu1 %7112  ;;  %13975 = vmatpush3.bf16.msra.mxu0 %v17171_v16  ;;  %13989 = vmatprep.subr.bf16.mxu1 %v16771_v48 }
 0x7cb   :  { %13006 = vmatmul.mubr.msk.f32.gmra.mrb[154].mxu1 %vm3695_vm6, %v17367_v30  ;;  %13075 = vmatmul.mubr.msk.f32.gmra.mrb[26].mxu0 %vm3695_vm6, %v17689_v62  ;;  %v19686_v30 = vld [vmem:[#allocation22_spill] sm:$0xff] }
 0x7cc   :  { %13008 = vmatprep.mubr.msk.f32.mxu1 %vm3695_vm6, %v17584_v0  ;;  %9221 = vrot.lane.b32.xlu0 %v17080_v26, %s15073_s13 }
 0x7cd   :  { %10163 = vrot.lane.b32.xlu1 %v16638_v19, %s15072_s12  ;;  %13077 = vmatprep.mubr.msk.f32.mxu0 %vm3695_vm6, %v19685_v57  ;;  %v19699_v57 = vld [vmem:[#allocation69_spill] sm:$0xff] }
 0x7ce   :  { %v17807_v7 = vpop.permute.xlu0 %8275  ;;  %v5225_v55 = vpop.permute.xlu1 %5224  ;;  %13977 = vmatprep.subr.bf16.mxu0 %v17263_v12 }
 0x7cf   :  { %13009 = vmatmul.mubr.msk.f32.gmra.mrb[156].mxu1 %vm3695_vm6, %v5225_v55  ;;  %13078 = vmatmul.mubr.msk.f32.gmra.mrb[28].mxu0 %vm3695_vm6, %v17305_v17  ;;  %v19687_v17 = vld [vmem:[#allocation56_spill] sm:$0xff]  ;;  %v19701_v55 = vld [vmem:[#allocation95_spill] sm:$0xff] }
 0x7d0   :  { %9223 = vrot.lane.b32.xlu0 %v16648_v18, %s15073_s13  ;;  %13080 = vmatprep.mubr.msk.f32.mxu0 %vm3695_vm6, %v17509_v10  ;;  %v19688_v10 = vld [vmem:[#allocation59_spill] sm:$0xff] }
 0x7d1   :  { %10165 = vrot.lane.b32.xlu1 %v16753_v41, %s15072_s12  ;;  %13123 = vmatprep.mubr.msk.f32.mxu1 %vm3695_vm6, %v19686_v30 }
 0x7d2   :  { %v17821_v0 = vpop.permute.xlu0 %8279  ;;  %v17823_v62 = vpop.permute.xlu1 %8265  ;;  %13979 = vmatpush3.bf16.msra.mxu0 %v17263_v12 }
 0x7d3   :  { %13081 = vmatmul.mubr.msk.f32.gmra.mrb[30].mxu0 %vm3695_vm6, %v17706_v2  ;;  %13124 = vmatmul.mubr.msk.f32.vlgmr.msra.gmra.mrb[158].mxu1 %vm3695_vm6, %v19687_v17  ;;  %v19703_v17 = vld [vmem:[#allocation92_spill] sm:$0xff] }
 0x7d4   :  { %9225 = vrot.lane.b32.xlu0 %v16761_v44, %s15073_s13  ;;  %13083 = vmatprep.mubr.msk.f32.mxu0 %vm3695_vm6, %v19688_v10  ;;  %v19704_v10 = vld [vmem:[#allocation30_spill] sm:$0xff] }
 0x7d5   :  { %10167 = vrot.lane.b32.xlu1 %v16911_v1, %s15072_s12  ;;  %13126 = vmatprep.mubr.msk.f32.mxu1 %vm3695_vm6, %v17402_v35  ;;  %v19689_v35 = vld [vmem:[#allocation21_spill] sm:$0xff] }
 0x7d6   :  { %v17838_v54 = vpop.permute.xlu0 %8472  ;;  %v17840_v12 = vpop.permute.xlu1 %8269  ;;  %13991 = vmatpush3.bf16.msra.mxu1 %v16771_v48  ;;  %14013 = vmatprep.subr.bf16.mxu0 %v17676_v25 }
 0x7d7   :  { %13084 = vmatmul.mubr.msk.f32.gmra.mrb[32].mxu0 %vm3695_vm6, %v17317_v28  ;;  %13127 = vmatmul.mubr.msk.f32.gmra.mrb[160].mxu1 %vm3695_vm6, %v17520_v14  ;;  %v19690_v28 = vld [vmem:[#allocation61_spill] sm:$0xff] }
 0x7d8   :  { %9227 = vrot.lane.b32.xlu0 %v16923_v38, %s15073_s13  ;;  %13086 = vmatprep.mubr.msk.f32.mxu0 %vm3695_vm6, %v17530_v43  ;;  %v19691_v43 = vld [vmem:[#allocation62_spill] sm:$0xff] }
 0x7d9   :  { %10169 = vrot.lane.b32.xlu1 %v17080_v26, %s15072_s12  ;;  %13129 = vmatprep.mubr.msk.f32.mxu1 %vm3695_vm6, %v19689_v35  ;;  %v19705_v35 = vld [vmem:[#allocation3_spill] sm:$0xff] }
 0x7da   :  { %v17856_v48 = vpop.permute.xlu0 %8476  ;;  %v17858_v2 = vpop.permute.xlu1 %8273  ;;  %13993 = vmatprep.subr.bf16.mxu1 %v16790_v27 }
 0x7db   :  { %13087 = vmatmul.mubr.msk.f32.gmra.mrb[34].mxu0 %vm3695_vm6, %v17720_v37  ;;  %13130 = vmatmul.mubr.msk.f32.gmra.mrb[162].mxu1 %vm3695_vm6, %v19690_v28 }
 0x7dc   :  { %9229 = vrot.lane.b32.xlu0 %v17096_v8, %s15073_s13  ;;  %13097 = vmatprep.mubr.msk.f32.mxu0 %vm3695_vm6, %v19691_v43 }
 0x7dd   :  { %10171 = vrot.lane.b32.xlu1 %v16648_v18, %s15072_s12  ;;  %13132 = vmatprep.mubr.msk.f32.mxu1 %vm3695_vm6, %v17414_v61  ;;  %v19692_v61 = vld [vmem:[#allocation23_spill] sm:$0xff] }
 0x7de   :  { %v17873_v14 = vpop.permute.xlu0 %8480  ;;  %v17875_v13 = vpop.permute.xlu1 %8277  ;;  %13995 = vmatpush3.bf16.msra.mxu1 %v16790_v27 }
 0x7df   :  { %13098 = vmatmul.mubr.msk.f32.vlgmr.msra.gmra.mrb[24].mxu0 %vm3695_vm6, %v17329_v24  ;;  %13133 = vmatmul.mubr.msk.f32.gmra.mrb[164].mxu1 %vm3695_vm6, %v17541_v58  ;;  %v19694_v24 = vld [vmem:[#allocation65_spill] sm:$0xff] }
 0x7e0   :  { %9420 = vrot.lane.b32.xlu0 %v16658_v11, %s15073_s13  ;;  %13100 = vmatprep.mubr.msk.f32.mxu0 %vm3695_vm6, %v17551_v15  ;;  %v19695_v15 = vld [vmem:[#allocation66_spill] sm:$0xff] }
 0x7e1   :  { %10173 = vrot.lane.b32.xlu1 %v16761_v44, %s15072_s12  ;;  %13135 = vmatprep.mubr.msk.f32.mxu1 %vm3695_vm6, %v19692_v61  ;;  %v19709_v61 = vld [vmem:[#allocation74_spill] sm:$0xff] }
 0x7e2   :  { %v17890_v37 = vpop.permute.xlu0 %8484  ;;  %v17892_v27 = vpop.permute.xlu1 %8281  ;;  %13997 = vmatprep.subr.bf16.mxu1 %v16840_v53  ;;  %14015 = vmatpush3.bf16.msra.mxu0 %v17676_v25 }
 0x7e3   :  { %19693 = vst [vmem:[#allocation31_spill] sm:$0xff] %v17890_v37  ;;  %13101 = vmatmul.mubr.msk.f32.gmra.mrb[26].mxu0 %vm3695_vm6, %v17742_v32  ;;  %13136 = vmatmul.mubr.msk.f32.gmra.mrb[166].mxu1 %vm3695_vm6, %v19694_v24  ;;  %v11540_v32 = vld [vmem:[%s19403_s5 + $0x20] sm:$0xff]  ;;  %v19710_v24 = vld [vmem:[#allocation14_spill] sm:$0xff] }
 0x7e4   :  { %9422 = vrot.lane.b32.xlu0 %v16777_v49, %s15073_s13  ;;  %13103 = vmatprep.mubr.msk.f32.mxu0 %vm3695_vm6, %v19695_v15  ;;  %v19711_v15 = vld [vmem:[#allocation96_spill] sm:$0xff] }
 0x7e5   :  { %10175 = vrot.lane.b32.xlu1 %v16923_v38, %s15072_s12  ;;  %13138 = vmatprep.mubr.msk.f32.mxu1 %vm3695_vm6, %v17425_v20  ;;  %v11541_v20 = vld [vmem:[%s19403_s5 + $0x28] sm:$0xff] }
 0x7e6   :  { %v17908_v58 = vpop.permute.xlu0 %8488  ;;  %v17910_v21 = vpop.permute.xlu1 %8474  ;;  %14017 = vmatprep.subr.bf16.mxu0 %v17745_v23  ;;  %v17934_v33 = vpack.c.bf16 %v11541_v20, %v11540_v32  ;;  %v19714_v20 = vld [vmem:[#allocation63_spill] sm:$0xff] }
 0x7e7   :  { %19696 = vst [vmem:[#allocation67_spill] sm:$0xff] %v17908_v58  ;;  %13104 = vmatmul.mubr.msk.f32.gmra.mrb[28].mxu0 %vm3695_vm6, %v17341_v22  ;;  %13139 = vmatmul.mubr.msk.f32.gmra.mrb[168].mxu1 %vm3695_vm6, %v17562_v3  ;;  %v19697_v22 = vld [vmem:[#allocation26_spill] sm:$0xff] }
 0x7e8   :  { %9424 = vrot.lane.b32.xlu0 %v16933_v63, %s15073_s13  ;;  %13106 = vmatprep.mubr.msk.f32.mxu0 %vm3695_vm6, %v17573_v51  ;;  %v19700_v51 = vld [vmem:[#allocation71_spill] sm:$0xff] }
 0x7e9   :  { %10177 = vrot.lane.b32.xlu1 %v17096_v8, %s15072_s12  ;;  %13149 = vmatprep.mubr.msk.f32.mxu1 %vm3695_vm6, %v19697_v22  ;;  %v19715_v22 = vld [vmem:[#allocation33_spill] sm:$0xff] }
 0x7ea   :  { %v17931_v3 = vpop.permute.xlu0 %8492  ;;  %14019 = vmatpush3.bf16.msra.mxu0 %v17745_v23 }
 0x7eb   :  { %19698 = vst [vmem:[#allocation38_spill] sm:$0xff] %v17931_v3  ;;  %v17936_v42 = vpop.permute.xlu1 %8478  ;;  %13107 = vmatmul.mubr.msk.f32.gmra.mrb[30].mxu0 %vm3695_vm6, %v17761_v56  ;;  %13150 = vmatmul.mubr.msk.f32.vlgmr.msra.gmra.mrb[158].mxu1 %vm3695_vm6, %v19699_v57  ;;  %v19716_v57 = vld [vmem:[#allocation29_spill] sm:$0xff] }
 0x7ec   :  { %9426 = vrot.lane.b32.xlu0 %v17112_v47, %s15073_s13  ;;  %13109 = vmatprep.mubr.msk.f32.mxu0 %vm3695_vm6, %v19700_v51 }
 0x7ed   :  { %10368 = vrot.lane.b32.xlu1 %v16658_v11, %s15072_s12  ;;  %13152 = vmatprep.mubr.msk.f32.mxu1 %vm3695_vm6, %v19701_v55  ;;  %v19719_v55 = vld [vmem:[#allocation79_spill] sm:$0xff] }
 0x7ee   :  { %v17950_v30 = vpop.permute.xlu0 %8685  ;;  %13999 = vmatpush3.bf16.msra.mxu1 %v16840_v53  ;;  %14021 = vmatprep.subr.bf16.mxu0 %v17934_v33  ;;  %v19706_v53 = vld [vmem:[#allocation27_spill] sm:$0xff] }
 0x7ef   :  { %19702 = vst [vmem:[#allocation72_spill] sm:$0xff] %v17950_v30  ;;  %v17954_v56 = vpop.permute.xlu1 %8482  ;;  %13110 = vmatmul.mubr.msk.f32.gmra.mrb[32].mxu0 %vm3695_vm6, %v19703_v17  ;;  %13153 = vmatmul.mubr.msk.f32.gmra.mrb[160].mxu1 %vm3695_vm6, %v19704_v10  ;;  %v19720_v17 = vld [vmem:[#allocation70_spill] sm:$0xff]  ;;  %v19721_v10 = vld [vmem:[#allocation97_spill] sm:$0xff]  ;;  %v19744_v30 = vld [vmem:[#allocation99_spill] sm:$0xff] }
 0x7f0   :  { %9428 = vrot.lane.b32.xlu0 %v19705_v35, %s15073_s13  ;;  %13112 = vmatprep.mubr.msk.f32.mxu0 %vm3695_vm6, %v17597_v59 }
 0x7f1   :  { %10370 = vrot.lane.b32.xlu1 %v16777_v49, %s15072_s12  ;;  %13155 = vmatprep.mubr.msk.f32.mxu1 %vm3695_vm6, %v19706_v53 }
 0x7f2   :  { %v17968_v28 = vpop.permute.xlu0 %8689  ;;  %14001 = vmatprep.subr.bf16.mxu1 %v17146_v9 }
 0x7f3   :  { %19707 = vst [vmem:[#allocation43_spill] sm:$0xff] %v17968_v28  ;;  %v17971_v43 = vpop.permute.xlu1 %8486  ;;  %13156 = vmatmul.mubr.msk.f32.gmra.mrb[162].mxu1 %vm3695_vm6, %v19709_v61  ;;  %v19731_v28 = vld [vmem:[#allocation98_spill] sm:$0xff] }
 0x7f4   :  { %19708 = vst [vmem:[#allocation76_spill] sm:$0xff] %v17971_v43  ;;  %9430 = vrot.lane.b32.xlu0 %v19710_v24, %s15073_s13  ;;  %13158 = vmatprep.mubr.msk.f32.mxu1 %vm3695_vm6, %v19711_v15  ;;  %v11502_v15 = vld [vmem:[%s19403_s5 + $0x70] sm:$0xff] }
 0x7f5   :  { %10372 = vrot.lane.b32.xlu1 %v16933_v63, %s15072_s12  ;;  %14003 = vmatpush3.bf16.msra.mxu1 %v17146_v9 }
 0x7f6   :  { %v17982_v59 = vpop.permute.xlu0 %8693  ;;  %14005 = vmatprep.subr.bf16.mxu1 %v17171_v16 }
 0x7f7   :  { %19712 = vst [vmem:[#allocation28_spill] sm:$0xff] %v17982_v59  ;;  %v17985_v32 = vpop.permute.xlu1 %8490  ;;  %13159 = vmatmul.mubr.msk.f32.gmra.mrb[164].mxu1 %vm3695_vm6, %v19714_v20  ;;  %v11503_v20 = vld [vmem:[%s19403_s5 + $0x78] sm:$0xff]  ;;  %v19730_v59 = vld [vmem:[#allocation13_spill] sm:$0xff] }
 0x7f8   :  { %19713 = vst [vmem:[#allocation78_spill] sm:$0xff] %v17985_v32  ;;  %9432 = vrot.lane.b32.xlu0 %v19715_v22, %s15073_s13  ;;  %13161 = vmatprep.mubr.msk.f32.mxu1 %vm3695_vm6, %v19716_v57  ;;  %v19724_v57 = vld [vmem:[#allocation6_spill] sm:$0xff] }
 0x7f9   :  { %10374 = vrot.lane.b32.xlu1 %v17112_v47, %s15072_s12 }
 0x7fa   :  { %v17995_v51 = vpop.permute.xlu0 %8697 }
 0x7fb   :  { %19717 = vst [vmem:[#allocation48_spill] sm:$0xff] %v17995_v51  ;;  %v17997_v9 = vpop.permute.xlu1 %8494  ;;  %13162 = vmatmul.mubr.msk.f32.gmra.mrb[166].mxu1 %vm3695_vm6, %v19719_v55  ;;  %v19725_v55 = vld [vmem:[#allocation34_spill] sm:$0xff]  ;;  %v19729_v51 = vld [vmem:[#allocation85_spill] sm:$0xff] }
 0x7fc   :  { %19718 = vst [vmem:[#allocation82_spill] sm:$0xff] %v17997_v9  ;;  %9434 = vrot.lane.b32.xlu0 %v19720_v17, %s15073_s13  ;;  %13164 = vmatprep.mubr.msk.f32.mxu1 %vm3695_vm6, %v19721_v10 }
 0x7fd   :  { %10376 = vrot.lane.b32.xlu1 %v19705_v35, %s15072_s12 }
 0x7fe   :  { %v18007_v53 = vpop.permute.xlu0 %8701 }
 0x7ff   :  { %19722 = vst [vmem:[#allocation32_spill] sm:$0xff] %v18007_v53  ;;  %v18009_v61 = vpop.permute.xlu1 %8687  ;;  %13165 = vmatmul.mubr.msk.f32.gmra.mrb[168].mxu1 %vm3695_vm6, %v17630_v40  ;;  %v18027_v40 = vpack.c.bf16 %v11503_v20, %v11502_v15  ;;  %v18045_v15 = vld [vmem:[%s19404_s6 + $0x8] sm:$0xff]  ;;  %v19736_v20 = vld [vmem:[#allocation37_spill] sm:$0xff] }
 0x800   :  { %19723 = vst [vmem:[#allocation81_spill] sm:$0xff] %v18009_v61  ;;  %9436 = vrot.lane.b32.xlu0 %v19724_v57, %s15073_s13  ;;  %13175 = vmatprep.mubr.msk.f32.mxu1 %vm3695_vm6, %v19725_v55  ;;  %19733 = vst [vmem:[#allocation4_spill] sm:$0xff] %v18045_v15 }
 0x801   :  { %10378 = vrot.lane.b32.xlu1 %v19710_v24, %s15072_s12  ;;  %19727 = vst [vmem:[#allocation35_spill] sm:$0xff] %v18027_v40 }
 0x802   :  { %v18025_v10 = vpop.permute.xlu0 %8705 }
 0x803   :  { %19726 = vst [vmem:[#allocation54_spill] sm:$0xff] %v18025_v10  ;;  %v18029_v53 = vpop.permute.xlu1 %8691  ;;  %13176 = vmatmul.mubr.msk.f32.vlgmr.msra.gmra.mrb[158].mxu1 %vm3695_vm6, %v19729_v51 }
 0x804   :  { %19728 = vst [vmem:[#allocation84_spill] sm:$0xff] %v18029_v53  ;;  %9438 = vrot.lane.b32.xlu0 %v19730_v59, %s15073_s13  ;;  %13178 = vmatprep.mubr.msk.f32.mxu1 %vm3695_vm6, %v19731_v28  ;;  %v18055_v28 = vld [vmem:[%s19404_s6] sm:$0xff] }
 0x805   :  { %10380 = vrot.lane.b32.xlu1 %v19715_v22, %s15072_s12  ;;  %14007 = vmatpush3.bf16.msra.mxu1 %v17171_v16  ;;  %19735 = vst [vmem:[#allocation40_spill] sm:$0xff] %v18055_v28 }
 0x806   :  { %v18040_v55 = vpop.permute.xlu0 %8898  ;;  %14009 = vmatprep.subr.bf16.mxu1 %v18027_v40 }
 0x807   :  { %19732 = vst [vmem:[#allocation57_spill] sm:$0xff] %v18040_v55  ;;  %v18048_v51 = vpop.permute.xlu1 %8695  ;;  %13179 = vmatmul.mubr.msk.f32.gmra.mrb[160].mxu1 %vm3695_vm6, %v17655_v4  ;;  %v19737_v55 = vld [vmem:[#allocation36_spill] sm:$0xff] }
 0x808   :  { %19734 = vst [vmem:[#allocation11_spill] sm:$0xff] %v18048_v51  ;;  %v12891_v16 = vpop.f32.mrb[12].mxu0  ;;  %9440 = vrot.lane.b32.xlu0 %v19736_v20, %s15073_s13  ;;  %13181 = vmatprep.mubr.msk.f32.mxu1 %vm3695_vm6, %v19737_v55 }
 0x809   :  { %v14176_v10 = vadd.f32 %v12891_v16, %v18045_v15  ;;  %10382 = vrot.lane.b32.xlu1 %v19720_v17, %s15072_s12  ;;  %v4368_v51 = vpop.f32.mrb[13].mxu0  ;;  %14011 = vmatpush3.bf16.msra.mxu1 %v18027_v40  ;;  %v19741_v16 = vld [vmem:[#allocation88_spill] sm:$0xff]  ;;  %v18081_v15 = vld [vmem:[%s19404_s6 + $0x10] sm:$0xff] }
 0x80a   :  { %v14177_v4 = vadd.f32 %v4368_v51, %v18055_v28  ;;  %v18066_v53 = vpop.permute.xlu0 %8902  ;;  %14045 = vmatprep.subr.bf16.mxu1 %v17676_v25  ;;  %19742 = vst [vmem:[#allocation64_spill] sm:$0xff] %v18081_v15 }
 0x80b   :  { %19738 = vst [vmem:[#allocation60_spill] sm:$0xff] %v18066_v53  ;;  %v11301_v55 = vmul.f32 -1.442695, %v14176_v10  ;;  %v18074_v61 = vpop.permute.xlu1 %8699  ;;  %13182 = vmatmul.mubr.msk.f32.gmra.mrb[162].mxu1 %vm3695_vm6, %v19741_v16  ;;  %v19743_v53 = vld [vmem:[#allocation73_spill] sm:$0xff] }
 0x80c   :  { %19740 = vst [vmem:[#allocation46_spill] sm:$0xff] %v18074_v61  ;;  %v11300_v51 = vmul.f32 -1.442695, %v14177_v4  ;;  %v12894_v28 = vpop.f32.mrb[14].mxu0  ;;  %9442 = vrot.lane.b32.xlu0 %v19743_v53, %s15073_s13  ;;  %13184 = vmatprep.mubr.msk.f32.mxu1 %vm3695_vm6, %v19744_v30  ;;  %v18096_v4 = vld [vmem:[%s19404_s6 + $0x28] sm:$0xff]  ;;  %v18105_v30 = vld [vmem:[%s19404_s6 + $0x20] sm:$0xff] }
 0x80d   :  { %14675 = vpow2.f32 %v11301_v55  ;;  %v14178_v10 = vadd.f32 %v12894_v28, %v18071_v5  ;;  %10384 = vrot.lane.b32.xlu1 %v19724_v57, %s15072_s12  ;;  %v4378_v16 = vpop.f32.mrb[15].mxu0  ;;  %19746 = vst [vmem:[#allocation68_spill] sm:$0xff] %v18096_v4  ;;  %19748 = vst [vmem:[#allocation22_spill] sm:$0xff] %v18105_v30 }
 0x80e   :  { %14677 = vpow2.f32 %v11300_v51  ;;  %v14179_v61 = vadd.f32 %v4378_v16, %v18081_v15  ;;  %v18091_v9 = vpop.permute.xlu0 %8906  ;;  %v19749_v51 = vld [vmem:[#allocation5_spill] sm:$0xff] }
 0x80f   :  { %19745 = vst [vmem:[#allocation51_spill] sm:$0xff] %v18091_v9  ;;  %v11303_v3 = vmul.f32 -1.442695, %v14178_v10  ;;  %v18098_v29 = vpop.permute.xlu1 %8703  ;;  %13185 = vmatmul.mubr.msk.f32.gmra.mrb[164].mxu1 %vm3695_vm6, %v17691_v45  ;;  %v19750_v16 = vld [vmem:[#allocation41_spill] sm:$0xff] }
 0x810   :  { %19747 = vst [vmem:[#allocation55_spill] sm:$0xff] %v18098_v29  ;;  %v11302_v28 = vmul.f32 -1.442695, %v14179_v61  ;;  %v12897_v55 = vpop.f32.mrb[16].mxu0  ;;  %9633 = vrot.lane.b32.xlu0 %v19749_v51, %s15073_s13  ;;  %13187 = vmatprep.mubr.msk.f32.mxu1 %vm3695_vm6, %v19750_v16  ;;  %v18120_v61 = vld [vmem:[%s19404_s6 + $0x38] sm:$0xff] }
 0x811   :  { %14679 = vpow2.f32 %v11303_v3  ;;  %v14180_v10 = vadd.f32 %v12897_v55, %v18096_v4  ;;  %10386 = vrot.lane.b32.xlu1 %v19730_v59, %s15072_s12  ;;  %v4388_v45 = vpop.f32.mrb[17].mxu0  ;;  %19752 = vst [vmem:[#allocation59_spill] sm:$0xff] %v18120_v61  ;;  %v19754_v3 = vld [vmem:[#allocation89_spill] sm:$0xff] }
 0x812   :  { %14681 = vpow2.f32 %v11302_v28  ;;  %v14181_v15 = vadd.f32 %v4388_v45, %v18105_v30  ;;  %v18115_v5 = vpop.permute.xlu0 %8910  ;;  %v18129_v55 = vld [vmem:[%s19404_s6 + $0x30] sm:$0xff]  ;;  %v19756_v45 = vld [vmem:[#allocation16_spill] sm:$0xff] }
 0x813   :  { %19751 = vst [vmem:[#allocation56_spill] sm:$0xff] %v18115_v5  ;;  %v11305_v9 = vmul.f32 -1.442695, %v14180_v10  ;;  %v18122_v29 = vpop.permute.xlu1 %8707  ;;  %13188 = vmatmul.mubr.msk.f32.gmra.mrb[166].mxu1 %vm3695_vm6, %v19754_v3  ;;  %19755 = vst [vmem:[#allocation61_spill] sm:$0xff] %v18129_v55  ;;  %v19757_v30 = vld [vmem:[#allocation100_spill] sm:$0xff] }
 0x814   :  { %19753 = vst [vmem:[#allocation21_spill] sm:$0xff] %v18122_v29  ;;  %v11304_v28 = vmul.f32 -1.442695, %v14181_v15  ;;  %v12900_v16 = vpop.f32.mrb[18].mxu0  ;;  %9635 = vrot.lane.b32.xlu0 %v19756_v45, %s15073_s13  ;;  %13190 = vmatprep.mubr.msk.f32.mxu1 %vm3695_vm6, %v19757_v30  ;;  %v18144_v15 = vld [vmem:[%s19404_s6 + $0x48] sm:$0xff] }
 0x815   :  { %14683 = vpow2.f32 %v11305_v9  ;;  %v14182_v10 = vadd.f32 %v12900_v16, %v18120_v61  ;;  %10388 = vrot.lane.b32.xlu1 %v19736_v20, %s15072_s12  ;;  %v4398_v3 = vpop.f32.mrb[19].mxu0  ;;  %19759 = vst [vmem:[#allocation23_spill] sm:$0xff] %v18144_v15  ;;  %v18153_v9 = vld [vmem:[%s19404_s6 + $0x40] sm:$0xff] }
 0x816   :  { %14685 = vpow2.f32 %v11304_v28  ;;  %v14183_v4 = vadd.f32 %v4398_v3, %v18129_v55  ;;  %v18139_v5 = vpop.permute.xlu0 %8914  ;;  %19761 = vst [vmem:[#allocation66_spill] sm:$0xff] %v18153_v9  ;;  %v19762_v61 = vld [vmem:[#allocation39_spill] sm:$0xff] }
 0x817   :  { %19758 = vst [vmem:[#allocation62_spill] sm:$0xff] %v18139_v5  ;;  %v14676_v29 = vpop.eup %14675  ;;  %v11307_v32 = vmul.f32 -1.442695, %v14182_v10  ;;  %v18146_v30 = vpop.permute.xlu1 %8900  ;;  %13191 = vmatmul.mubr.msk.f32.gmra.mrb[168].mxu1 %vm3695_vm6, %v17722_v46  ;;  %v19763_v5 = vld [vmem:[#allocation44_spill] sm:$0xff] }
 0x818   :  { %19760 = vst [vmem:[#allocation65_spill] sm:$0xff] %v18146_v30  ;;  %v14678_v28 = vpop.eup %14677  ;;  %v4476_v16 = vadd.f32 1.0, %v14676_v29  ;;  %v11306_v3 = vmul.f32 -1.442695, %v14183_v4  ;;  %v12903_v55 = vpop.f32.mrb[20].mxu0  ;;  %9637 = vrot.lane.b32.xlu0 %v19762_v61, %s15073_s13  ;;  %13201 = vmatprep.mubr.msk.f32.mxu1 %vm3695_vm6, %v19763_v5  ;;  %v18168_v4 = vld [vmem:[%s19404_s6 + $0x58] sm:$0xff] }
 0x819   :  { %v4475_v10 = vadd.f32 1.0, %v14678_v28  ;;  %14687 = vpow2.f32 %v11307_v32  ;;  %v14184_v30 = vadd.f32 %v12903_v55, %v18144_v15  ;;  %10390 = vrot.lane.b32.xlu1 %v19743_v53, %s15072_s12  ;;  %v4408_v46 = vpop.f32.mrb[21].mxu0  ;;  %v19766_v55 = vld [vmem:[#allocation90_spill] sm:$0xff]  ;;  %v18177_v28 = vld [vmem:[%s19404_s6 + $0x50] sm:$0xff] }
 0x81a   :  { %14689 = vrcp.f32 %v4476_v16  ;;  %v14185_v58 = vadd.f32 %v4408_v46, %v18153_v9  ;;  %v18163_v29 = vpop.permute.xlu0 %8918  ;;  %19767 = vst [vmem:[#allocation71_spill] sm:$0xff] %v18177_v28 }
 0x81b   :  { %19764 = vst [vmem:[#allocation26_spill] sm:$0xff] %v18163_v29  ;;  %v14680_v43 = vpop.eup %14679  ;;  %14691 = vrcp.f32 %v4475_v10  ;;  %v11309_v5 = vmul.f32 -1.442695, %v14184_v30  ;;  %v18170_v32 = vpop.permute.xlu1 %8904  ;;  %13202 = vmatmul.mubr.msk.f32.vlgmr.msra.gmra.mrb[158].mxu1 %vm3695_vm6, %v19766_v55  ;;  %v19768_v29 = vld [vmem:[#allocation75_spill] sm:$0xff]  ;;  %v19769_v10 = vld [vmem:[#allocation101_spill] sm:$0xff] }
 0x81c   :  { %19765 = vst [vmem:[#allocation69_spill] sm:$0xff] %v18170_v32  ;;  %v14682_v16 = vpop.eup %14681  ;;  %v4478_v46 = vadd.f32 1.0, %v14680_v43  ;;  %14693 = vpow2.f32 %v11306_v3  ;;  %v11308_v9 = vmul.f32 -1.442695, %v14185_v58  ;;  %v12906_v15 = vpop.f32.mrb[22].mxu0  ;;  %9639 = vrot.lane.b32.xlu0 %v19768_v29, %s15073_s13  ;;  %13204 = vmatprep.mubr.msk.f32.mxu1 %vm3695_vm6, %v19769_v10  ;;  %v19770_v32 = vld [vmem:[#allocation87_spill] sm:$0xff] }
 0x81d   :  { %v4477_v30 = vadd.f32 1.0, %v14682_v16  ;;  %14695 = vpow2.f32 %v11309_v5  ;;  %v14186_v55 = vadd.f32 %v12906_v15, %v18168_v4  ;;  %8920 = vrot.lane.b32.xlu1 %v19770_v32, %s15071_s11  ;;  %v4418_v40 = vpop.f32.mrb[23].mxu0  ;;  %14047 = vmatpush3.bf16.msra.mxu1 %v17676_v25  ;;  %v19771_v16 = vld [vmem:[#allocation8_spill] sm:$0xff] }
 0x81e   :  { %14697 = vrcp.f32 %v4478_v46  ;;  %v14187_v58 = vadd.f32 %v4418_v40, %v18177_v28  ;;  %v6173_v43 = vpop.permute.xlu0 %6172  ;;  %14049 = vmatprep.subr.bf16.mxu1 %v17745_v23  ;;  %v19772_v40 = vld [vmem:[#allocation49_spill] sm:$0xff] }
 0x81f   :  { %v14684_v3 = vpop.eup %14683  ;;  %14699 = vrcp.f32 %v4477_v30  ;;  %v11311_v37 = vmul.f32 -1.442695, %v14186_v55  ;;  %v18189_v10 = vpop.permute.xlu1 %8908  ;;  %13113 = vmatmul.mubr.msk.f32.gmra.mrb[34].mxu0 %vm3695_vm6, %v6173_v43  ;;  %13205 = vmatmul.mubr.msk.f32.gmra.mrb[160].mxu1 %vm3695_vm6, %v17759_v36  ;;  %v19773_v55 = vld [vmem:[#allocation91_spill] sm:$0xff] }
 0x820   :  { %v14686_v15 = vpop.eup %14685  ;;  %v4480_v5 = vadd.f32 1.0, %v14684_v3  ;;  %14701 = vpow2.f32 %v11308_v9  ;;  %v11310_v25 = vmul.f32 -1.442695, %v14187_v58  ;;  %9641 = vrot.lane.b32.xlu0 %v19771_v16, %s15073_s13  ;;  %13207 = vmatprep.mubr.msk.f32.mxu1 %vm3695_vm6, %v19772_v40  ;;  %v19774_v43 = vld [vmem:[#allocation15_spill] sm:$0xff]  ;;  %v19775_v3 = vld [vmem:[#allocation102_spill] sm:$0xff] }
 0x821   :  { %v4479_v46 = vadd.f32 1.0, %v14686_v15  ;;  %14703 = vpow2.f32 %v11311_v37  ;;  %13227 = vmatprep.mubr.msk.f32.mxu0 %vm3695_vm6, %v19674_v39  ;;  %10581 = vrot.lane.b32.xlu1 %v19749_v51, %s15072_s12  ;;  %v11542_v39 = vld [vmem:[%s19403_s5 + $0x30] sm:$0xff]  ;;  %v11543_v37 = vld [vmem:[%s19403_s5 + $0x38] sm:$0xff] }
 0x822   :  { %14705 = vrcp.f32 %v4480_v5  ;;  %v18202_v36 = vpop.permute.xlu0 %9207  ;;  %14051 = vmatpush3.bf16.msra.mxu1 %v17745_v23 }
 0x823   :  { %v14688_v9 = vpop.eup %14687  ;;  %14707 = vrcp.f32 %v4479_v46  ;;  %v18205_v30 = vpop.permute.xlu1 %8912  ;;  %13208 = vmatmul.mubr.msk.f32.gmra.mrb[162].mxu1 %vm3695_vm6, %v19773_v55  ;;  %13228 = vmatmul.mubr.msk.f32.vlgmr.msra.gmra.mrb[36].mxu0 %vm3695_vm6, %v19676_v60 }
 0x824   :  { %v14690_v58 = vpop.eup %14689  ;;  %v4482_v23 = vadd.f32 1.0, %v14688_v9  ;;  %14709 = vpow2.f32 %v11310_v25  ;;  %9643 = vrot.lane.b32.xlu0 %v19774_v43, %s15073_s13  ;;  %13210 = vmatprep.mubr.msk.f32.mxu1 %vm3695_vm6, %v19775_v3  ;;  %v18234_v25 = vpack.c.bf16 %v11543_v37, %v11542_v39  ;;  %v11556_v39 = vld [vmem:[%s19403_s5 + $0x40] sm:$0xff]  ;;  %v11557_v37 = vld [vmem:[%s19403_s5 + $0x48] sm:$0xff] }
 0x825   :  { %v14692_v15 = vpop.eup %14691  ;;  %4512 = vst [vmem:[%s19405_s9 + $0x8] sm:$0xff] %v14690_v58  ;;  %13230 = vmatprep.mubr.msk.f32.mxu0 %vm3695_vm6, %v19680_v6  ;;  %10583 = vrot.lane.b32.xlu1 %v19756_v45, %s15072_s12  ;;  %v19776_v58 = vld [vmem:[#allocation42_spill] sm:$0xff] }
 0x826   :  { %v14694_v60 = vpop.eup %14693  ;;  %4511 = vst [vmem:[%s19405_s9] sm:$0xff] %v14692_v15  ;;  %14711 = vrcp.f32 %v4482_v23  ;;  %v18231_v5 = vpop.permute.xlu0 %9209  ;;  %14023 = vmatpush3.bf16.msra.mxu0 %v17934_v33  ;;  %14053 = vmatprep.subr.bf16.mxu1 %v17934_v33  ;;  %v19777_v23 = vld [vmem:[#allocation52_spill] sm:$0xff] }
 0x827   :  { %v14696_v40 = vpop.eup %14695  ;;  %v4481_v46 = vadd.f32 1.0, %v14694_v60  ;;  %v18237_v6 = vpop.permute.xlu1 %8916  ;;  %13211 = vmatmul.mubr.msk.f32.gmra.mrb[164].mxu1 %vm3695_vm6, %v17791_v31  ;;  %13231 = vmatmul.mubr.msk.f32.gmra.mrb[38].mxu0 %vm3695_vm6, %v17064_v50 }
 0x828   :  { %v14698_v9 = vpop.eup %14697  ;;  %v4484_v55 = vadd.f32 1.0, %v14696_v40  ;;  %9645 = vrot.lane.b32.xlu0 %v19776_v58, %s15073_s13  ;;  %13213 = vmatprep.mubr.msk.f32.mxu1 %vm3695_vm6, %v19777_v23 }
 0x829   :  { %v14700_v31 = vpop.eup %14699  ;;  %4514 = vst [vmem:[%s19405_s9 + $0x18] sm:$0xff] %v14698_v9  ;;  %14713 = vrcp.f32 %v4481_v46  ;;  %13233 = vmatprep.mubr.msk.f32.mxu0 %vm3695_vm6, %v16638_v19  ;;  %10585 = vrot.lane.b32.xlu1 %v19762_v61, %s15072_s12  ;;  %v19778_v46 = vld [vmem:[#allocation93_spill] sm:$0xff]  ;;  %v18272_v19 = vpack.c.bf16 %v11557_v37, %v11556_v39 }
 0x82a   :  { %v14702_v50 = vpop.eup %14701  ;;  %4513 = vst [vmem:[%s19405_s9 + $0x10] sm:$0xff] %v14700_v31  ;;  %14715 = vrcp.f32 %v4484_v55  ;;  %v18263_v3 = vpop.permute.xlu0 %9211  ;;  %14025 = vmatprep.subr.bf16.mxu0 %v18234_v25  ;;  %v19779_v55 = vld [vmem:[#allocation77_spill] sm:$0xff]  ;;  %v19780_v31 = vld [vmem:[#allocation103_spill] sm:$0xff] }
 0x82b   :  { %v14704_v15 = vpop.eup %14703  ;;  %v4483_v60 = vadd.f32 1.0, %v14702_v50  ;;  %v18266_v40 = vpop.permute.xlu1 %10155  ;;  %13214 = vmatmul.mubr.msk.f32.gmra.mrb[166].mxu1 %vm3695_vm6, %v19778_v46  ;;  %13234 = vmatmul.mubr.msk.f32.gmra.mrb[40].mxu0 %vm3695_vm6, %v16753_v41 }
 0x82c   :  { %v14706_v9 = vpop.eup %14705  ;;  %v4486_v23 = vadd.f32 1.0, %v14704_v15  ;;  %9647 = vrot.lane.b32.xlu0 %v19779_v55, %s15073_s13  ;;  %13216 = vmatprep.mubr.msk.f32.mxu1 %vm3695_vm6, %v19780_v31  ;;  %v19781_v15 = vld [vmem:[#allocation7_spill] sm:$0xff]  ;;  %v19785_v31 = vld [vmem:[#allocation94_spill] sm:$0xff] }
 0x82d   :  { %v14708_v28 = vpop.eup %14707  ;;  %4516 = vst [vmem:[%s19405_s9 + $0x28] sm:$0xff] %v14706_v9  ;;  %14717 = vrcp.f32 %v4483_v60  ;;  %13236 = vmatprep.mubr.msk.f32.mxu0 %vm3695_vm6, %v16911_v1  ;;  %10587 = vrot.lane.b32.xlu1 %v19768_v29, %s15072_s12 }
 0x82e   :  { %v14710_v41 = vpop.eup %14709  ;;  %4515 = vst [vmem:[%s19405_s9 + $0x20] sm:$0xff] %v14708_v28  ;;  %14719 = vrcp.f32 %v4486_v23  ;;  %v18288_v39 = vpop.permute.xlu0 %9213  ;;  %14027 = vmatpush3.bf16.msra.mxu0 %v18234_v25  ;;  %v19782_v28 = vld [vmem:[#allocation24_spill] sm:$0xff]  ;;  %v19784_v23 = vld [vmem:[#allocation18_spill] sm:$0xff] }
 0x82f   :  { %v4485_v37 = vadd.f32 1.0, %v14710_v41  ;;  %v7121_v50 = vpop.permute.xlu1 %7120  ;;  %13237 = vmatmul.mubr.msk.f32.gmra.mrb[42].mxu0 %vm3695_vm6, %v17080_v26  ;;  %14029 = vmatprep.subr.bf16.mxu0 %v18272_v19 }
 0x830   :  { %v14712_v1 = vpop.eup %14711  ;;  %13217 = vmatmul.mubr.msk.f32.gmra.mrb[168].mxu1 %vm3695_vm6, %v7121_v50  ;;  %9649 = vrot.lane.b32.xlu0 %v19781_v15, %s15073_s13 }
 0x831   :  { %4518 = vst [vmem:[%s19405_s9 + $0x38] sm:$0xff] %v14712_v1  ;;  %14721 = vrcp.f32 %v4485_v37  ;;  %13239 = vmatprep.mubr.msk.f32.mxu0 %vm3695_vm6, %v16648_v18  ;;  %13331 = vmatprep.mubr.msk.f32.mxu1 %vm3695_vm6, %v19782_v28  ;;  %v19783_v18 = vld [vmem:[#allocation58_spill] sm:$0xff]  ;;  %v11558_v1 = vld [vmem:[%s19403_s5 + $0x50] sm:$0xff] }
 0x832   :  { %10589 = vrot.lane.b32.xlu1 %v19771_v16, %s15072_s12  ;;  %v18306_v26 = vpop.permute.xlu0 %9215 }
 0x833   :  { %v14714_v60 = vpop.eup %14713  ;;  %v18308_v46 = vpop.permute.xlu1 %10157  ;;  %13240 = vmatmul.mubr.msk.f32.gmra.mrb[44].mxu0 %vm3695_vm6, %v16761_v44 }
 0x834   :  { %v14716_v9 = vpop.eup %14715  ;;  %4517 = vst [vmem:[%s19405_s9 + $0x30] sm:$0xff] %v14714_v60  ;;  %13332 = vmatmul.mubr.msk.f32.vlgmr.msra.gmra.mrb[170].mxu1 %vm3695_vm6, %v19783_v18  ;;  %9651 = vrot.lane.b32.xlu0 %v19784_v23, %s15073_s13 }
 0x835   :  { %4520 = vst [vmem:[%s19405_s9 + $0x48] sm:$0xff] %v14716_v9  ;;  %13242 = vmatprep.mubr.msk.f32.mxu0 %vm3695_vm6, %v16923_v38  ;;  %13334 = vmatprep.mubr.msk.f32.mxu1 %vm3695_vm6, %v19785_v31  ;;  %v19786_v38 = vld [vmem:[#allocation45_spill] sm:$0xff] }
 0x836   :  { %10591 = vrot.lane.b32.xlu1 %v19774_v43, %s15072_s12  ;;  %v18328_v44 = vpop.permute.xlu0 %9217  ;;  %14055 = vmatpush3.bf16.msra.mxu1 %v17934_v33 }
 0x837   :  { %v14718_v41 = vpop.eup %14717  ;;  %v18331_v37 = vpop.permute.xlu1 %10159  ;;  %13243 = vmatmul.mubr.msk.f32.gmra.mrb[46].mxu0 %vm3695_vm6, %v17096_v8  ;;  %14057 = vmatprep.subr.bf16.mxu1 %v18234_v25  ;;  %v11559_v8 = vld [vmem:[%s19403_s5 + $0x58] sm:$0xff] }
 0x838   :  { %v14720_v50 = vpop.eup %14719  ;;  %4519 = vst [vmem:[%s19405_s9 + $0x40] sm:$0xff] %v14718_v41  ;;  %13335 = vmatmul.mubr.msk.f32.gmra.mrb[172].mxu1 %vm3695_vm6, %v17823_v62  ;;  %9653 = vrot.lane.b32.xlu0 %v19786_v38, %s15073_s13  ;;  %v18365_v9 = vpack.c.bf16 %v11559_v8, %v11558_v1  ;;  %v19798_v41 = vld [vmem:[#allocation67_spill] sm:$0xff]  ;;  %v19799_v1 = vld [vmem:[#allocation78_spill] sm:$0xff] }
 0x839   :  { %4522 = vst [vmem:[%s19405_s9 + $0x58] sm:$0xff] %v14720_v50  ;;  %13253 = vmatprep.mubr.msk.f32.mxu0 %vm3695_vm6, %v16658_v11  ;;  %13337 = vmatprep.mubr.msk.f32.mxu1 %vm3695_vm6, %v17775_v34  ;;  %v19787_v11 = vld [vmem:[#allocation80_spill] sm:$0xff]  ;;  %v11572_v34 = vld [vmem:[%s19403_s5 + $0x60] sm:$0xff]  ;;  %v19801_v8 = vld [vmem:[#allocation38_spill] sm:$0xff] }
 0x83a   :  { %10593 = vrot.lane.b32.xlu1 %v19776_v58, %s15072_s12  ;;  %v18358_v62 = vpop.permute.xlu0 %9219  ;;  %14059 = vmatpush3.bf16.msra.mxu1 %v18234_v25 }
 0x83b   :  { %v14722_v28 = vpop.eup %14721  ;;  %v18361_v60 = vpop.permute.xlu1 %10161  ;;  %13254 = vmatmul.mubr.msk.f32.vlgmr.msra.gmra.mrb[36].mxu0 %vm3695_vm6, %v16777_v49  ;;  %14061 = vmatprep.subr.bf16.mxu1 %v18272_v19  ;;  %v11573_v49 = vld [vmem:[%s19403_s5 + $0x68] sm:$0xff] }
 0x83c   :  { %4521 = vst [vmem:[%s19405_s9 + $0x50] sm:$0xff] %v14722_v28  ;;  %13338 = vmatmul.mubr.msk.f32.gmra.mrb[174].mxu1 %vm3695_vm6, %v17840_v12  ;;  %9655 = vrot.lane.b32.xlu0 %v19787_v11, %s15073_s13  ;;  %v18395_v31 = vpack.c.bf16 %v11573_v49, %v11572_v34  ;;  %v19802_v34 = vld [vmem:[#allocation82_spill] sm:$0xff]  ;;  %v19803_v49 = vld [vmem:[#allocation12_spill] sm:$0xff] }
 0x83d   :  { %13256 = vmatprep.mubr.msk.f32.mxu0 %vm3695_vm6, %v16933_v63  ;;  %13340 = vmatprep.mubr.msk.f32.mxu1 %vm3695_vm6, %v17789_v52  ;;  %v19788_v63 = vld [vmem:[#allocation10_spill] sm:$0xff] }
 0x83e   :  { %10595 = vrot.lane.b32.xlu1 %v19779_v55, %s15072_s12  ;;  %v18387_v12 = vpop.permute.xlu0 %9221  ;;  %14031 = vmatpush3.bf16.msra.mxu0 %v18272_v19 }
 0x83f   :  { %v18390_v18 = vpop.permute.xlu1 %10163  ;;  %13257 = vmatmul.mubr.msk.f32.gmra.mrb[38].mxu0 %vm3695_vm6, %v17112_v47  ;;  %14033 = vmatprep.subr.bf16.mxu0 %v18365_v9 }
 0x840   :  { %13341 = vmatmul.mubr.msk.f32.gmra.mrb[176].mxu1 %vm3695_vm6, %v17858_v2  ;;  %9846 = vrot.lane.b32.xlu0 %v19788_v63, %s15073_s13  ;;  %v19789_v2 = vld [vmem:[#allocation17_spill] sm:$0xff] }
 0x841   :  { %13259 = vmatprep.mubr.msk.f32.mxu0 %vm3695_vm6, %v19705_v35  ;;  %13343 = vmatprep.mubr.msk.f32.mxu1 %vm3695_vm6, %v17807_v7 }
 0x842   :  { %10597 = vrot.lane.b32.xlu1 %v19781_v15, %s15072_s12  ;;  %v18407_v47 = vpop.permute.xlu0 %9223  ;;  %14035 = vmatpush3.bf16.msra.mxu0 %v18365_v9 }
 0x843   :  { %v18410_v52 = vpop.permute.xlu1 %10165  ;;  %13260 = vmatmul.mubr.msk.f32.gmra.mrb[40].mxu0 %vm3695_vm6, %v19710_v24  ;;  %14037 = vmatprep.subr.bf16.mxu0 %v18395_v31 }
 0x844   :  { %13344 = vmatmul.mubr.msk.f32.gmra.mrb[178].mxu1 %vm3695_vm6, %v17875_v13  ;;  %9848 = vrot.lane.b32.xlu0 %v19789_v2, %s15073_s13  ;;  %v19790_v13 = vld [vmem:[#allocation47_spill] sm:$0xff] }
 0x845   :  { %13262 = vmatprep.mubr.msk.f32.mxu0 %vm3695_vm6, %v19715_v22  ;;  %13346 = vmatprep.mubr.msk.f32.mxu1 %vm3695_vm6, %v17821_v0 }
 0x846   :  { %10599 = vrot.lane.b32.xlu1 %v19784_v23, %s15072_s12  ;;  %v18425_v7 = vpop.permute.xlu0 %9225 }
 0x847   :  { %v18427_v35 = vpop.permute.xlu1 %10167  ;;  %13263 = vmatmul.mubr.msk.f32.gmra.mrb[42].mxu0 %vm3695_vm6, %v19720_v17  ;;  %v9192_v17 = vld [vmem:[%s19403_s5 + $0x8] sm:$0xff] }
 0x848   :  { %13347 = vmatmul.mubr.msk.f32.gmra.mrb[180].mxu1 %vm3695_vm6, %v17892_v27  ;;  %9850 = vrot.lane.b32.xlu0 %v19790_v13, %s15073_s13  ;;  %v19791_v27 = vld [vmem:[#allocation83_spill] sm:$0xff] }
 0x849   :  { %13265 = vmatprep.mubr.msk.f32.mxu0 %vm3695_vm6, %v19724_v57  ;;  %13357 = vmatprep.mubr.msk.f32.mxu1 %vm3695_vm6, %v17838_v54 }
 0x84a   :  { %10601 = vrot.lane.b32.xlu1 %v19786_v38, %s15072_s12  ;;  %v18441_v0 = vpop.permute.xlu0 %9227 }
 0x84b   :  { %v18443_v24 = vpop.permute.xlu1 %10169  ;;  %13266 = vmatmul.mubr.msk.f32.gmra.mrb[44].mxu0 %vm3695_vm6, %v19730_v59 }
 0x84c   :  { %13358 = vmatmul.mubr.msk.f32.vlgmr.msra.gmra.mrb[170].mxu1 %vm3695_vm6, %v17910_v21  ;;  %9852 = vrot.lane.b32.xlu0 %v19791_v27, %s15073_s13  ;;  %v19792_v21 = vld [vmem:[#allocation9_spill] sm:$0xff] }
 0x84d   :  { %13268 = vmatprep.mubr.msk.f32.mxu0 %vm3695_vm6, %v19736_v20  ;;  %13360 = vmatprep.mubr.msk.f32.mxu1 %vm3695_vm6, %v17856_v48  ;;  %v19795_v20 = vld [vmem:[#allocation35_spill] sm:$0xff] }
 0x84e   :  { %10603 = vrot.lane.b32.xlu1 %v19787_v11, %s15072_s12  ;;  %v18457_v54 = vpop.permute.xlu0 %9229  ;;  %14063 = vmatpush3.bf16.msra.mxu1 %v18272_v19 }
 0x84f   :  { %v18460_v59 = vpop.permute.xlu1 %10171  ;;  %13269 = vmatmul.mubr.msk.f32.gmra.mrb[46].mxu0 %vm3695_vm6, %v19743_v53  ;;  %14065 = vmatprep.subr.bf16.mxu1 %v18365_v9  ;;  %v19794_v53 = vld [vmem:[#allocation31_spill] sm:$0xff] }
 0x850   :  { %13361 = vmatmul.mubr.msk.f32.gmra.mrb[172].mxu1 %vm3695_vm6, %v17936_v42  ;;  %9854 = vrot.lane.b32.xlu0 %v19792_v21, %s15073_s13  ;;  %v19793_v42 = vld [vmem:[#allocation20_spill] sm:$0xff] }
 0x851   :  { %13279 = vmatprep.mubr.msk.f32.mxu0 %vm3695_vm6, %v19749_v51  ;;  %13363 = vmatprep.mubr.msk.f32.mxu1 %vm3695_vm6, %v17873_v14  ;;  %v9191_v14 = vld [vmem:[%s19403_s5] sm:$0xff] }
 0x852   :  { %10794 = vrot.lane.b32.xlu1 %v19788_v63, %s15072_s12  ;;  %v18475_v48 = vpop.permute.xlu0 %9420  ;;  %14067 = vmatpush3.bf16.msra.mxu1 %v18365_v9  ;;  %v18507_v51 = vpack.c.bf16 %v9192_v17, %v9191_v14 }
 0x853   :  { %v18478_v22 = vpop.permute.xlu1 %10173  ;;  %13280 = vmatmul.mubr.msk.f32.vlgmr.msra.gmra.mrb[36].mxu0 %vm3695_vm6, %v19756_v45  ;;  %14069 = vmatprep.subr.bf16.mxu1 %v18395_v31  ;;  %v19797_v45 = vld [vmem:[#allocation50_spill] sm:$0xff] }
 0x854   :  { %13364 = vmatmul.mubr.msk.f32.gmra.mrb[174].mxu1 %vm3695_vm6, %v17954_v56  ;;  %9856 = vrot.lane.b32.xlu0 %v19793_v42, %s15073_s13 }
 0x855   :  { %13282 = vmatprep.mubr.msk.f32.mxu0 %vm3695_vm6, %v19762_v61  ;;  %13366 = vmatprep.mubr.msk.f32.mxu1 %vm3695_vm6, %v19794_v53  ;;  %v19796_v61 = vld [vmem:[#allocation76_spill] sm:$0xff]  ;;  %v19806_v53 = vld [vmem:[#allocation19_spill] sm:$0xff] }
 0x856   :  { %10796 = vrot.lane.b32.xlu1 %v19789_v2, %s15072_s12  ;;  %v18499_v56 = vpop.permute.xlu0 %9422  ;;  %14039 = vmatpush3.bf16.msra.mxu0 %v18395_v31 }
 0x857   :  { %v18502_v57 = vpop.permute.xlu1 %10175  ;;  %13283 = vmatmul.mubr.msk.f32.gmra.mrb[38].mxu0 %vm3695_vm6, %v19768_v29  ;;  %14041 = vmatprep.subr.bf16.mxu0 %v19795_v20 }
 0x858   :  { %13367 = vmatmul.mubr.msk.f32.gmra.mrb[176].mxu1 %vm3695_vm6, %v19796_v61  ;;  %9858 = vrot.lane.b32.xlu0 %v19797_v45, %s15073_s13 }
 0x859   :  { %13285 = vmatprep.mubr.msk.f32.mxu0 %vm3695_vm6, %v19771_v16  ;;  %13369 = vmatprep.mubr.msk.f32.mxu1 %vm3695_vm6, %v19798_v41  ;;  %v19800_v16 = vld [vmem:[#allocation86_spill] sm:$0xff]  ;;  %v19808_v41 = vld [vmem:[#allocation84_spill] sm:$0xff] }
 0x85a   :  { %10798 = vrot.lane.b32.xlu1 %v19790_v13, %s15072_s12  ;;  %v18519_v29 = vpop.permute.xlu0 %9424  ;;  %14043 = vmatpush3.bf16.msra.mxu0 %v19795_v20 }
 0x85b   :  { %v18522_v50 = vpop.permute.xlu1 %10177  ;;  %13286 = vmatmul.mubr.msk.f32.gmra.mrb[40].mxu0 %vm3695_vm6, %v19774_v43  ;;  %14077 = vmatprep.subr.bf16.mxu0 %v18507_v51 }
 0x85c   :  { %13370 = vmatmul.mubr.msk.f32.gmra.mrb[178].mxu1 %vm3695_vm6, %v19799_v1  ;;  %9860 = vrot.lane.b32.xlu0 %v19800_v16, %s15073_s13  ;;  %v9193_v1 = vld [vmem:[%s19403_s5 + $0x10] sm:$0xff] }
 0x85d   :  { %13288 = vmatprep.mubr.msk.f32.mxu0 %vm3695_vm6, %v19776_v58  ;;  %13372 = vmatprep.mubr.msk.f32.mxu1 %vm3695_vm6, %v19801_v8  ;;  %v19804_v58 = vld [vmem:[#allocation72_spill] sm:$0xff]  ;;  %v9194_v8 = vld [vmem:[%s19403_s5 + $0x18] sm:$0xff] }
 0x85e   :  { %10800 = vrot.lane.b32.xlu1 %v19791_v27, %s15072_s12  ;;  %v18537_v28 = vpop.permute.xlu0 %9426 }
 0x85f   :  { %v18539_v43 = vpop.permute.xlu1 %10368  ;;  %13289 = vmatmul.mubr.msk.f32.gmra.mrb[42].mxu0 %vm3695_vm6, %v19779_v55  ;;  %v19805_v55 = vld [vmem:[#allocation81_spill] sm:$0xff] }
 0x860   :  { %13373 = vmatmul.mubr.msk.f32.gmra.mrb[180].mxu1 %vm3695_vm6, %v19802_v34  ;;  %9862 = vrot.lane.b32.xlu0 %v19803_v49, %s15073_s13 }
 0x861   :  { %13291 = vmatprep.mubr.msk.f32.mxu0 %vm3695_vm6, %v19781_v15  ;;  %13383 = vmatprep.mubr.msk.f32.mxu1 %vm3695_vm6, %v19804_v58  ;;  %v19807_v15 = vld [vmem:[#allocation43_spill] sm:$0xff] }
 0x862   :  { %10802 = vrot.lane.b32.xlu1 %v19792_v21, %s15072_s12  ;;  %v18553_v14 = vpop.permute.xlu0 %9428 }
 0x863   :  { %v18555_v17 = vpop.permute.xlu1 %10370  ;;  %13292 = vmatmul.mubr.msk.f32.gmra.mrb[44].mxu0 %vm3695_vm6, %v19784_v23 }
 0x864   :  { %13384 = vmatmul.mubr.msk.f32.vlgmr.msra.gmra.mrb[170].mxu1 %vm3695_vm6, %v19805_v55  ;;  %9864 = vrot.lane.b32.xlu0 %v19806_v53, %s15073_s13  ;;  %v14080_v55 = vpack.c.bf16 %v9194_v8, %v9193_v1 }
 0x865   :  { %13294 = vmatprep.mubr.msk.f32.mxu0 %vm3695_vm6, %v19786_v38  ;;  %13386 = vmatprep.mubr.msk.f32.mxu1 %vm3695_vm6, %v19807_v15  ;;  %v19809_v38 = vld [vmem:[#allocation53_spill] sm:$0xff]  ;;  %v19811_v15 = vld [vmem:[#allocation11_spill] sm:$0xff] }
 0x866   :  { %10804 = vrot.lane.b32.xlu1 %v19793_v42, %s15072_s12  ;;  %v18569_v61 = vpop.permute.xlu0 %9430  ;;  %14071 = vmatpush3.bf16.msra.mxu1 %v18395_v31 }
 0x867   :  { %v18572_v23 = vpop.permute.xlu1 %10372  ;;  %13295 = vmatmul.mubr.msk.f32.gmra.mrb[46].mxu0 %vm3695_vm6, %v19787_v11  ;;  %14073 = vmatprep.subr.bf16.mxu1 %v19795_v20  ;;  %v19810_v11 = vld [vmem:[#allocation28_spill] sm:$0xff] }
 0x868   :  { %13387 = vmatmul.mubr.msk.f32.gmra.mrb[172].mxu1 %vm3695_vm6, %v19808_v41  ;;  %9866 = vrot.lane.b32.xlu0 %v19809_v38, %s15073_s13  ;;  %v19814_v41 = vld [vmem:[#allocation32_spill] sm:$0xff] }
 0x869   :  { %13305 = vmatprep.mubr.msk.f32.mxu0 %vm3695_vm6, %v19788_v63  ;;  %13389 = vmatprep.mubr.msk.f32.mxu1 %vm3695_vm6, %v19810_v11  ;;  %v19812_v63 = vld [vmem:[#allocation48_spill] sm:$0xff] }
 0x86a   :  { %10806 = vrot.lane.b32.xlu1 %v19797_v45, %s15072_s12  ;;  %v18593_v34 = vpop.permute.xlu0 %9432  ;;  %14075 = vmatpush3.bf16.msra.mxu1 %v19795_v20 }
 0x86b   :  { %v18596_v58 = vpop.permute.xlu1 %10374  ;;  %13306 = vmatmul.mubr.msk.f32.vlgmr.msra.gmra.mrb[36].mxu0 %vm3695_vm6, %v19789_v2  ;;  %14109 = vmatprep.subr.bf16.mxu1 %v18507_v51 }
 0x86c   :  { %13390 = vmatmul.mubr.msk.f32.gmra.mrb[174].mxu1 %vm3695_vm6, %v19811_v15  ;;  %13308 = vmatprep.mubr.msk.f32.mxu0 %vm3695_vm6, %v19790_v13  ;;  %v19813_v13 = vld [vmem:[#allocation46_spill] sm:$0xff] }
 0x86d   :  { %13392 = vmatprep.mubr.msk.f32.mxu1 %vm3695_vm6, %v19812_v63  ;;  %9868 = vrot.lane.b32.xlu0 %v19770_v32, %s15073_s13 }
 0x86e   :  { %10808 = vrot.lane.b32.xlu1 %v19800_v16, %s15072_s12  ;;  %v18611_v20 = vpop.permute.xlu0 %9434  ;;  %14079 = vmatpush3.bf16.msra.mxu0 %v18507_v51 }
 0x86f   :  { %v18614_v2 = vpop.permute.xlu1 %10376  ;;  %13309 = vmatmul.mubr.msk.f32.gmra.mrb[38].mxu0 %vm3695_vm6, %v19791_v27  ;;  %14081 = vmatprep.subr.bf16.mxu0 %v14080_v55  ;;  %v19815_v27 = vld [vmem:[#allocation55_spill] sm:$0xff] }
 0x870   :  { %13393 = vmatmul.mubr.msk.f32.gmra.mrb[176].mxu1 %vm3695_vm6, %v19813_v13  ;;  %13311 = vmatprep.mubr.msk.f32.mxu0 %vm3695_vm6, %v19792_v21  ;;  %v19816_v21 = vld [vmem:[#allocation54_spill] sm:$0xff] }
 0x871   :  { %13395 = vmatprep.mubr.msk.f32.mxu1 %vm3695_vm6, %v19814_v41 }
 0x872   :  { %10810 = vrot.lane.b32.xlu1 %v19803_v49, %s15072_s12  ;;  %v18626_v1 = vpop.permute.xlu0 %9436  ;;  %14083 = vmatpush3.bf16.msra.mxu0 %v14080_v55 }
 0x873   :  { %v18628_v8 = vpop.permute.xlu1 %10378  ;;  %13312 = vmatmul.mubr.msk.f32.gmra.mrb[40].mxu0 %vm3695_vm6, %v19793_v42  ;;  %14085 = vmatprep.subr.bf16.mxu0 %v17934_v33  ;;  %v19817_v42 = vld [vmem:[#allocation21_spill] sm:$0xff] }
 0x874   :  { %13396 = vmatmul.mubr.msk.f32.gmra.mrb[178].mxu1 %vm3695_vm6, %v19815_v27  ;;  %13314 = vmatprep.mubr.msk.f32.mxu0 %vm3695_vm6, %v19797_v45  ;;  %v19818_v45 = vld [vmem:[#allocation57_spill] sm:$0xff] }
 0x875   :  { %13398 = vmatprep.mubr.msk.f32.mxu1 %vm3695_vm6, %v19816_v21 }
 0x876   :  { %10812 = vrot.lane.b32.xlu1 %v19806_v53, %s15072_s12  ;;  %v18641_v11 = vpop.permute.xlu0 %9438 }
 0x877   :  { %v18643_v15 = vpop.permute.xlu1 %10380  ;;  %13315 = vmatmul.mubr.msk.f32.gmra.mrb[42].mxu0 %vm3695_vm6, %v19800_v16  ;;  %v19819_v16 = vld [vmem:[#allocation65_spill] sm:$0xff] }
 0x878   :  { %13399 = vmatmul.mubr.msk.f32.gmra.mrb[180].mxu1 %vm3695_vm6, %v19817_v42  ;;  %13317 = vmatprep.mubr.msk.f32.mxu0 %vm3695_vm6, %v19803_v49  ;;  %v19820_v49 = vld [vmem:[#allocation60_spill] sm:$0xff] }
 0x879   :  { %13409 = vmatprep.mubr.msk.f32.mxu1 %vm3695_vm6, %v19818_v45  ;;  %v19826_v42 = vld [vmem:[#allocation4_spill] sm:$0xff] }
 0x87a   :  { %10814 = vrot.lane.b32.xlu1 %v19809_v38, %s15072_s12  ;;  %v18655_v63 = vpop.permute.xlu0 %9440 }
 0x87b   :  { %v18657_v13 = vpop.permute.xlu1 %10382  ;;  %13318 = vmatmul.mubr.msk.f32.gmra.mrb[44].mxu0 %vm3695_vm6, %v19806_v53  ;;  %v19821_v53 = vld [vmem:[#allocation69_spill] sm:$0xff] }
 0x87c   :  { %13410 = vmatmul.mubr.msk.f32.vlgmr.msra.gmra.mrb[170].mxu1 %vm3695_vm6, %v19819_v16  ;;  %13320 = vmatprep.mubr.msk.f32.mxu0 %vm3695_vm6, %v19809_v38  ;;  %v19822_v38 = vld [vmem:[#allocation51_spill] sm:$0xff] }
 0x87d   :  { %13412 = vmatprep.mubr.msk.f32.mxu1 %vm3695_vm6, %v19820_v49  ;;  %14111 = vmatpush3.bf16.msra.mxu1 %v18507_v51 }
 0x87e   :  { %10816 = vrot.lane.b32.xlu1 %v19770_v32, %s15072_s12  ;;  %v18670_v41 = vpop.permute.xlu0 %9442  ;;  %14113 = vmatprep.subr.bf16.mxu1 %v14080_v55 }
 0x87f   :  { %v18672_v27 = vpop.permute.xlu1 %10384  ;;  %13321 = vmatmul.mubr.msk.f32.gmra.mrb[46].mxu0 %vm3695_vm6, %v19770_v32  ;;  %v19823_v32 = vld [vmem:[#allocation56_spill] sm:$0xff] }
 0x880   :  { %13413 = vmatmul.mubr.msk.f32.gmra.mrb[172].mxu1 %vm3695_vm6, %v19821_v53  ;;  %13435 = vmatprep.mubr.msk.f32.mxu0 %vm3695_vm6, %v18202_v36 }
 0x881   :  { %13415 = vmatprep.mubr.msk.f32.mxu1 %vm3695_vm6, %v19822_v38  ;;  %14115 = vmatpush3.bf16.msra.mxu1 %v14080_v55 }
 0x882   :  { %v18682_v51 = vpop.permute.xlu0 %9633  ;;  %14117 = vmatprep.subr.bf16.mxu1 %v17934_v33 }
 0x883   :  { %v18685_v21 = vpop.permute.xlu1 %10386  ;;  %13436 = vmatmul.mubr.msk.f32.vlgmr.msra.gmra.mrb[48].mxu0 %vm3695_vm6, %v18231_v5 }
 0x884   :  { %13416 = vmatmul.mubr.msk.f32.gmra.mrb[174].mxu1 %vm3695_vm6, %v18189_v10  ;;  %13438 = vmatprep.mubr.msk.f32.mxu0 %vm3695_vm6, %v18263_v3  ;;  %v19824_v10 = vld [vmem:[#allocation62_spill] sm:$0xff] }
 0x885   :  { %13418 = vmatprep.mubr.msk.f32.mxu1 %vm3695_vm6, %v19823_v32  ;;  %14087 = vmatpush3.bf16.msra.mxu0 %v17934_v33 }
 0x886   :  { %v18696_v36 = vpop.permute.xlu0 %9635  ;;  %14089 = vmatprep.subr.bf16.mxu0 %v18234_v25 }
 0x887   :  { %v18699_v55 = vpop.permute.xlu1 %10388  ;;  %13439 = vmatmul.mubr.msk.f32.gmra.mrb[50].mxu0 %vm3695_vm6, %v18288_v39 }
 0x888   :  { %13419 = vmatmul.mubr.msk.f32.gmra.mrb[176].mxu1 %vm3695_vm6, %v18205_v30  ;;  %13441 = vmatprep.mubr.msk.f32.mxu0 %vm3695_vm6, %v18306_v26  ;;  %v19825_v30 = vld [vmem:[#allocation26_spill] sm:$0xff] }
 0x889   :  { %13421 = vmatprep.mubr.msk.f32.mxu1 %vm3695_vm6, %v19824_v10  ;;  %14091 = vmatpush3.bf16.msra.mxu0 %v18234_v25  ;;  %v19828_v10 = vld [vmem:[#allocation25_spill] sm:$0xff] }
 0x88a   :  { %v18710_v5 = vpop.permute.xlu0 %9637  ;;  %14093 = vmatprep.subr.bf16.mxu0 %v18272_v19 }
 0x88b   :  { %v18713_v3 = vpop.permute.xlu1 %10390  ;;  %13442 = vmatmul.mubr.msk.f32.gmra.mrb[52].mxu0 %vm3695_vm6, %v18328_v44  ;;  %v19827_v44 = vld [vmem:[#allocation40_spill] sm:$0xff] }
 0x88c   :  { %13422 = vmatmul.mubr.msk.f32.gmra.mrb[178].mxu1 %vm3695_vm6, %v18237_v6  ;;  %13444 = vmatprep.mubr.msk.f32.mxu0 %vm3695_vm6, %v18358_v62 }
 0x88d   :  { %13424 = vmatprep.mubr.msk.f32.mxu1 %vm3695_vm6, %v19825_v30 }
 0x88e   :  { %v12995_v39 = vpop.f32.mrb[146].mxu1  ;;  %v18723_v26 = vpop.permute.xlu0 %9639 }
 0x88f   :  { %v14188_v45 = vadd.f32 %v12995_v39, %v19826_v42  ;;  %v8921_v16 = vpop.permute.xlu1 %8920  ;;  %v5316_v49 = vpop.f32.mrb[147].mxu1  ;;  %13445 = vmatmul.mubr.msk.f32.gmra.mrb[54].mxu0 %vm3695_vm6, %v18387_v12  ;;  %v19829_v42 = vld [vmem:[#allocation64_spill] sm:$0xff] }
 0x890   :  { %v14189_v53 = vadd.f32 %v5316_v49, %v19827_v44  ;;  %13425 = vmatmul.mubr.msk.f32.gmra.mrb[180].mxu1 %vm3695_vm6, %v8921_v16  ;;  %13447 = vmatprep.mubr.msk.f32.mxu0 %vm3695_vm6, %v18407_v47 }
 0x891   :  { %v11373_v6 = vmul.f32 -1.442695, %v14188_v45  ;;  %13539 = vmatprep.mubr.msk.f32.mxu1 %vm3695_vm6, %v18266_v40 }
 0x892   :  { %v11372_v62 = vmul.f32 -1.442695, %v14189_v53  ;;  %v12998_v38 = vpop.f32.mrb[148].mxu1  ;;  %v18734_v32 = vpop.permute.xlu0 %9641 }
 0x893   :  { %14723 = vpow2.f32 %v11373_v6  ;;  %v14190_v30 = vadd.f32 %v12998_v38, %v19828_v10  ;;  %v18737_v39 = vpop.permute.xlu1 %10581  ;;  %v5326_v12 = vpop.f32.mrb[149].mxu1  ;;  %13448 = vmatmul.mubr.msk.f32.gmra.mrb[56].mxu0 %vm3695_vm6, %v18425_v7  ;;  %v19830_v7 = vld [vmem:[#allocation68_spill] sm:$0xff] }
 0x894   :  { %14725 = vpow2.f32 %v11372_v62  ;;  %v14191_v47 = vadd.f32 %v5326_v12, %v19829_v42  ;;  %13540 = vmatmul.mubr.msk.f32.vlgmr.msra.gmra.mrb[182].mxu1 %vm3695_vm6, %v18308_v46  ;;  %13450 = vmatprep.mubr.msk.f32.mxu0 %vm3695_vm6, %v18441_v0  ;;  %v19831_v0 = vld [vmem:[#allocation22_spill] sm:$0xff] }
 0x895   :  { %v11375_v40 = vmul.f32 -1.442695, %v14190_v30  ;;  %13542 = vmatprep.mubr.msk.f32.mxu1 %vm3695_vm6, %v18331_v37  ;;  %14119 = vmatpush3.bf16.msra.mxu1 %v17934_v33 }
 0x896   :  { %v11374_v45 = vmul.f32 -1.442695, %v14191_v47  ;;  %v13001_v16 = vpop.f32.mrb[150].mxu1  ;;  %v18749_v49 = vpop.permute.xlu0 %9643  ;;  %14121 = vmatprep.subr.bf16.mxu1 %v18234_v25 }
 0x897   :  { %14727 = vpow2.f32 %v11375_v40  ;;  %v14192_v44 = vadd.f32 %v13001_v16, %v19830_v7  ;;  %v18753_v53 = vpop.permute.xlu1 %10583  ;;  %v5336_v46 = vpop.f32.mrb[151].mxu1  ;;  %13451 = vmatmul.mubr.msk.f32.gmra.mrb[58].mxu0 %vm3695_vm6, %v18457_v54  ;;  %v19832_v54 = vld [vmem:[#allocation59_spill] sm:$0xff] }
 0x898   :  { %14729 = vpow2.f32 %v11374_v45  ;;  %v14193_v37 = vadd.f32 %v5336_v46, %v19831_v0  ;;  %13543 = vmatmul.mubr.msk.f32.gmra.mrb[184].mxu1 %vm3695_vm6, %v18361_v60  ;;  %13461 = vmatprep.mubr.msk.f32.mxu0 %vm3695_vm6, %v18475_v48  ;;  %v19833_v48 = vld [vmem:[#allocation61_spill] sm:$0xff] }
 0x899   :  { %v11377_v33 = vmul.f32 -1.442695, %v14192_v44  ;;  %13545 = vmatprep.mubr.msk.f32.mxu1 %vm3695_vm6, %v18390_v18  ;;  %14123 = vmatpush3.bf16.msra.mxu1 %v18234_v25 }
 0x89a   :  { %v11376_v6 = vmul.f32 -1.442695, %v14193_v37  ;;  %v13004_v62 = vpop.f32.mrb[152].mxu1  ;;  %v18765_v38 = vpop.permute.xlu0 %9645  ;;  %14125 = vmatprep.subr.bf16.mxu1 %v18272_v19 }
 0x89b   :  { %14731 = vpow2.f32 %v11377_v33  ;;  %v14194_v10 = vadd.f32 %v13004_v62, %v19832_v54  ;;  %v18769_v30 = vpop.permute.xlu1 %10585  ;;  %v5346_v60 = vpop.f32.mrb[153].mxu1  ;;  %13462 = vmatmul.mubr.msk.f32.vlgmr.msra.gmra.mrb[48].mxu0 %vm3695_vm6, %v18499_v56 }
 0x89c   :  { %14733 = vpow2.f32 %v11376_v6  ;;  %v14195_v18 = vadd.f32 %v5346_v60, %v19833_v48  ;;  %13546 = vmatmul.mubr.msk.f32.gmra.mrb[186].mxu1 %vm3695_vm6, %v18410_v52  ;;  %13464 = vmatprep.mubr.msk.f32.mxu0 %vm3695_vm6, %v18519_v29  ;;  %v19834_v52 = vld [vmem:[#allocation23_spill] sm:$0xff] }
 0x89d   :  { %v14724_v25 = vpop.eup %14723  ;;  %v11379_v12 = vmul.f32 -1.442695, %v14194_v10  ;;  %13548 = vmatprep.mubr.msk.f32.mxu1 %vm3695_vm6, %v18427_v35  ;;  %14095 = vmatpush3.bf16.msra.mxu0 %v18272_v19  ;;  %v19835_v35 = vld [vmem:[#allocation66_spill] sm:$0xff]  ;;  %v19836_v60 = vld [vmem:[#allocation71_spill] sm:$0xff] }
 0x89e   :  { %v14726_v42 = vpop.eup %14725  ;;  %v5424_v47 = vadd.f32 1.0, %v14724_v25  ;;  %v11378_v40 = vmul.f32 -1.442695, %v14195_v18  ;;  %v13007_v56 = vpop.f32.mrb[154].mxu1  ;;  %14097 = vmatprep.subr.bf16.mxu0 %v18365_v9 }
 0x89f   :  { %v18781_v45 = vpop.permute.xlu0 %9647  ;;  %v5423_v16 = vadd.f32 1.0, %v14726_v42  ;;  %14735 = vpow2.f32 %v11379_v12  ;;  %v14196_v7 = vadd.f32 %v13007_v56, %v19834_v52  ;;  %v18785_v29 = vpop.permute.xlu1 %10587  ;;  %13465 = vmatmul.mubr.msk.f32.gmra.mrb[50].mxu0 %vm3695_vm6, %v18537_v28 }
 0x8a0   :  { %v5356_v44 = vpop.f32.mrb[155].mxu1  ;;  %14737 = vrcp.f32 %v5424_v47  ;;  %13549 = vmatmul.mubr.msk.f32.gmra.mrb[188].mxu1 %vm3695_vm6, %v18443_v24  ;;  %13467 = vmatprep.mubr.msk.f32.mxu0 %vm3695_vm6, %v18553_v14 }
 0x8a1   :  { %v14197_v46 = vadd.f32 %v5356_v44, %v19835_v35  ;;  %v14728_v0 = vpop.eup %14727  ;;  %14739 = vrcp.f32 %v5423_v16  ;;  %v11381_v37 = vmul.f32 -1.442695, %v14196_v7  ;;  %13551 = vmatprep.mubr.msk.f32.mxu1 %vm3695_vm6, %v18460_v59  ;;  %14099 = vmatpush3.bf16.msra.mxu0 %v18365_v9 }
 0x8a2   :  { %v14730_v33 = vpop.eup %14729  ;;  %v5426_v6 = vadd.f32 1.0, %v14728_v0  ;;  %14741 = vpow2.f32 %v11378_v40  ;;  %v13010_v54 = vpop.f32.mrb[156].mxu1  ;;  %14101 = vmatprep.subr.bf16.mxu0 %v18395_v31  ;;  %v18876_v0 = vld [vmem:[%s19404_s6] sm:$0xff] }
 0x8a3   :  { %v11380_v28 = vmul.f32 -1.442695, %v14197_v46  ;;  %v18797_v62 = vpop.permute.xlu0 %9649  ;;  %v5425_v24 = vadd.f32 1.0, %v14730_v33  ;;  %14743 = vpow2.f32 %v11381_v37  ;;  %v14198_v14 = vadd.f32 %v13010_v54, %v18168_v4  ;;  %v5366_v10 = vpop.f32.mrb[157].mxu1  ;;  %13468 = vmatmul.mubr.msk.f32.gmra.mrb[52].mxu0 %vm3695_vm6, %v18569_v61 }
 0x8a4   :  { %14745 = vrcp.f32 %v5426_v6  ;;  %v18803_v59 = vpop.permute.xlu1 %10589  ;;  %v14199_v48 = vadd.f32 %v5366_v10, %v19836_v60  ;;  %13552 = vmatmul.mubr.msk.f32.gmra.mrb[190].mxu1 %vm3695_vm6, %v18478_v22  ;;  %13470 = vmatprep.mubr.msk.f32.mxu0 %vm3695_vm6, %v18593_v34 }
 0x8a5   :  { %v14732_v18 = vpop.eup %14731  ;;  %14747 = vrcp.f32 %v5425_v24  ;;  %v11383_v25 = vmul.f32 -1.442695, %v14198_v14  ;;  %13554 = vmatprep.mubr.msk.f32.mxu1 %vm3695_vm6, %v18502_v57 }
 0x8a6   :  { %v14734_v4 = vpop.eup %14733  ;;  %v5428_v12 = vadd.f32 1.0, %v14732_v18  ;;  %14749 = vpow2.f32 %v11380_v28  ;;  %v11382_v61 = vmul.f32 -1.442695, %v14199_v48  ;;  %v18910_v48 = vld [vmem:[%s19404_s6 + $0x10] sm:$0xff] }
 0x8a7   :  { %v18812_v42 = vpop.permute.xlu0 %9651  ;;  %v5427_v47 = vadd.f32 1.0, %v14734_v4  ;;  %14751 = vpow2.f32 %v11383_v25  ;;  %13471 = vmatmul.mubr.msk.f32.gmra.mrb[54].mxu0 %vm3695_vm6, %v18611_v20 }
 0x8a8   :  { %14753 = vrcp.f32 %v5428_v12  ;;  %v18816_v22 = vpop.permute.xlu1 %10591  ;;  %13555 = vmatmul.mubr.msk.f32.gmra.mrb[192].mxu1 %vm3695_vm6, %v18522_v50  ;;  %13473 = vmatprep.mubr.msk.f32.mxu0 %vm3695_vm6, %v18626_v1 }
 0x8a9   :  { %v14736_v57 = vpop.eup %14735  ;;  %14755 = vrcp.f32 %v5427_v47  ;;  %13565 = vmatprep.mubr.msk.f32.mxu1 %vm3695_vm6, %v18539_v43  ;;  %v18932_v47 = vld [vmem:[%s19404_s6 + $0x28] sm:$0xff] }
 0x8aa   :  { %v14738_v34 = vpop.eup %14737  ;;  %v5430_v40 = vadd.f32 1.0, %v14736_v57  ;;  %14757 = vpow2.f32 %v11382_v61 }
 0x8ab   :  { %v18824_v56 = vpop.permute.xlu0 %9653  ;;  %v14740_v20 = vpop.eup %14739  ;;  %5460 = vst [vmem:[%s19405_s9 + $0x68] sm:$0xff] %v14738_v34  ;;  %13474 = vmatmul.mubr.msk.f32.gmra.mrb[56].mxu0 %vm3695_vm6, %v18641_v11 }
 0x8ac   :  { %v14742_v50 = vpop.eup %14741  ;;  %5459 = vst [vmem:[%s19405_s9 + $0x60] sm:$0xff] %v14740_v20  ;;  %14759 = vrcp.f32 %v5430_v40  ;;  %v18834_v43 = vpop.permute.xlu1 %10593  ;;  %13566 = vmatmul.mubr.msk.f32.vlgmr.msra.gmra.mrb[182].mxu1 %vm3695_vm6, %v18555_v17  ;;  %13476 = vmatprep.mubr.msk.f32.mxu0 %vm3695_vm6, %v18655_v63  ;;  %v11718_v17 = vld [vmem:[%s19403_s5 + $0x70] sm:$0xff] }
 0x8ad   :  { %v14744_v1 = vpop.eup %14743  ;;  %v5429_v16 = vadd.f32 1.0, %v14742_v50  ;;  %13568 = vmatprep.mubr.msk.f32.mxu1 %vm3695_vm6, %v18572_v23  ;;  %14127 = vmatpush3.bf16.msra.mxu1 %v18272_v19  ;;  %v11719_v19 = vld [vmem:[%s19403_s5 + $0x78] sm:$0xff] }
 0x8ae   :  { %v14746_v11 = vpop.eup %14745  ;;  %v5432_v52 = vadd.f32 1.0, %v14744_v1  ;;  %14129 = vmatprep.subr.bf16.mxu1 %v18365_v9  ;;  %v18881_v6 = vpack.c.bf16 %v11719_v19, %v11718_v17 }
 0x8af   :  { %v18843_v7 = vpop.permute.xlu0 %9655  ;;  %v14748_v44 = vpop.eup %14747  ;;  %5462 = vst [vmem:[%s19405_s9 + $0x78] sm:$0xff] %v14746_v11  ;;  %14761 = vrcp.f32 %v5429_v16  ;;  %13477 = vmatmul.mubr.msk.f32.gmra.mrb[58].mxu0 %vm3695_vm6, %v18670_v41  ;;  %v18869_v41 = vld [vmem:[%s19404_s6 + $0x8] sm:$0xff]  ;;  %v18963_v11 = vld [vmem:[%s19404_s6 + $0x38] sm:$0xff] }
 0x8b0   :  { %v14750_v23 = vpop.eup %14749  ;;  %5461 = vst [vmem:[%s19405_s9 + $0x70] sm:$0xff] %v14748_v44  ;;  %14763 = vrcp.f32 %v5432_v52  ;;  %v18860_v63 = vpop.permute.xlu1 %10595  ;;  %13569 = vmatmul.mubr.msk.f32.gmra.mrb[184].mxu1 %vm3695_vm6, %v18596_v58  ;;  %13487 = vmatprep.mubr.msk.f32.mxu0 %vm3695_vm6, %v18682_v51 }
 0x8b1   :  { %v14752_v35 = vpop.eup %14751  ;;  %v5431_v46 = vadd.f32 1.0, %v14750_v23  ;;  %13571 = vmatprep.mubr.msk.f32.mxu1 %vm3695_vm6, %v18614_v2  ;;  %14131 = vmatpush3.bf16.msra.mxu1 %v18365_v9 }
 0x8b2   :  { %v14754_v58 = vpop.eup %14753  ;;  %v5434_v37 = vadd.f32 1.0, %v14752_v35  ;;  %v13099_v33 = vpop.f32.mrb[24].mxu0  ;;  %14133 = vmatprep.subr.bf16.mxu1 %v18395_v31 }
 0x8b3   :  { %v18879_v51 = vpop.permute.xlu0 %9846  ;;  %v14756_v28 = vpop.eup %14755  ;;  %5464 = vst [vmem:[%s19405_s9 + $0x88] sm:$0xff] %v14754_v58  ;;  %14765 = vrcp.f32 %v5431_v46  ;;  %v14200_v2 = vadd.f32 %v13099_v33, %v18869_v41  ;;  %13488 = vmatmul.mubr.msk.f32.vlgmr.msra.gmra.mrb[48].mxu0 %vm3695_vm6, %v18696_v36  ;;  %v18903_v36 = vld [vmem:[%s19404_s6 + $0x18] sm:$0xff]  ;;  %v18993_v58 = vld [vmem:[%s19404_s6 + $0x48] sm:$0xff] }
 0x8b4   :  { %v6264_v54 = vpop.f32.mrb[25].mxu0  ;;  %v14758_v9 = vpop.eup %14757  ;;  %5463 = vst [vmem:[%s19405_s9 + $0x80] sm:$0xff] %v14756_v28  ;;  %14767 = vrcp.f32 %v5434_v37  ;;  %13572 = vmatmul.mubr.msk.f32.gmra.mrb[186].mxu1 %vm3695_vm6, %v18628_v8  ;;  %13490 = vmatprep.mubr.msk.f32.mxu0 %vm3695_vm6, %v18710_v5 }
 0x8b5   :  { %v18893_v24 = vpop.permute.xlu1 %10597  ;;  %v14201_v14 = vadd.f32 %v6264_v54, %v18876_v0  ;;  %v5433_v10 = vadd.f32 1.0, %v14758_v9  ;;  %v11445_v60 = vmul.f32 -1.442695, %v14200_v2  ;;  %13574 = vmatprep.mubr.msk.f32.mxu1 %vm3695_vm6, %v18643_v15  ;;  %14103 = vmatpush3.bf16.msra.mxu0 %v18395_v31 }
 0x8b6   :  { %v14760_v8 = vpop.eup %14759  ;;  %v13102_v25 = vpop.f32.mrb[26].mxu0  ;;  %14105 = vmatprep.subr.bf16.mxu0 %v18881_v6 }
 0x8b7   :  { %v11444_v18 = vmul.f32 -1.442695, %v14201_v14  ;;  %v18913_v5 = vpop.permute.xlu0 %9848  ;;  %5466 = vst [vmem:[%s19405_s9 + $0x98] sm:$0xff] %v14760_v8  ;;  %14769 = vrcp.f32 %v5433_v10  ;;  %v14202_v15 = vadd.f32 %v13102_v25, %v18903_v36  ;;  %v6274_v4 = vpop.f32.mrb[27].mxu0  ;;  %13491 = vmatmul.mubr.msk.f32.gmra.mrb[50].mxu0 %vm3695_vm6, %v18723_v26  ;;  %v18939_v26 = vld [vmem:[%s19404_s6 + $0x20] sm:$0xff] }
 0x8b8   :  { %14771 = vpow2.f32 %v11445_v60  ;;  %v14203_v61 = vadd.f32 %v6274_v4, %v18910_v48  ;;  %13575 = vmatmul.mubr.msk.f32.gmra.mrb[188].mxu1 %vm3695_vm6, %v18657_v13  ;;  %13493 = vmatprep.mubr.msk.f32.mxu0 %vm3695_vm6, %v18734_v32 }
 0x8b9   :  { %v18922_v12 = vpop.permute.xlu1 %10599  ;;  %v14762_v57 = vpop.eup %14761  ;;  %14773 = vpow2.f32 %v11444_v18  ;;  %v11447_v34 = vmul.f32 -1.442695, %v14202_v15  ;;  %13577 = vmatprep.mubr.msk.f32.mxu1 %vm3695_vm6, %v18672_v27  ;;  %14107 = vmatpush3.bf16.msra.mxu0 %v18881_v6 }
 0x8ba   :  { %v14764_v13 = vpop.eup %14763  ;;  %5465 = vst [vmem:[%s19405_s9 + $0x90] sm:$0xff] %v14762_v57  ;;  %v11446_v32 = vmul.f32 -1.442695, %v14203_v61  ;;  %v13105_v20 = vpop.f32.mrb[28].mxu0 }
 0x8bb   :  { %v18945_v40 = vpop.permute.xlu0 %9850  ;;  %5468 = vst [vmem:[%s19405_s9 + $0xa8] sm:$0xff] %v14764_v13  ;;  %14775 = vpow2.f32 %v11447_v34  ;;  %v14204_v27 = vadd.f32 %v13105_v20, %v18932_v47  ;;  %v6284_v50 = vpop.f32.mrb[29].mxu0  ;;  %13494 = vmatmul.mubr.msk.f32.gmra.mrb[52].mxu0 %vm3695_vm6, %v18749_v49  ;;  %v18970_v49 = vld [vmem:[%s19404_s6 + $0x30] sm:$0xff] }
 0x8bc   :  { %14777 = vpow2.f32 %v11446_v32  ;;  %v14205_v16 = vadd.f32 %v6284_v50, %v18939_v26  ;;  %13578 = vmatmul.mubr.msk.f32.gmra.mrb[190].mxu1 %vm3695_vm6, %v18685_v21  ;;  %13496 = vmatprep.mubr.msk.f32.mxu0 %vm3695_vm6, %v18765_v38 }
 0x8bd   :  { %v18953_v1 = vpop.permute.xlu1 %10601  ;;  %v14766_v52 = vpop.eup %14765  ;;  %v11449_v44 = vmul.f32 -1.442695, %v14204_v27  ;;  %13580 = vmatprep.mubr.msk.f32.mxu1 %vm3695_vm6, %v18699_v55 }
 0x8be   :  { %v14768_v17 = vpop.eup %14767  ;;  %5467 = vst [vmem:[%s19405_s9 + $0xa0] sm:$0xff] %v14766_v52  ;;  %v11448_v21 = vmul.f32 -1.442695, %v14205_v16  ;;  %v13108_v19 = vpop.f32.mrb[30].mxu0 }
 0x8bf   :  { %v18975_v38 = vpop.permute.xlu0 %9852  ;;  %5470 = vst [vmem:[%s19405_s9 + $0xb8] sm:$0xff] %v14768_v17  ;;  %14779 = vpow2.f32 %v11449_v44  ;;  %v14206_v55 = vadd.f32 %v13108_v19, %v18963_v11  ;;  %v6294_v23 = vpop.f32.mrb[31].mxu0  ;;  %13497 = vmatmul.mubr.msk.f32.gmra.mrb[54].mxu0 %vm3695_vm6, %v18781_v45  ;;  %v19000_v45 = vld [vmem:[%s19404_s6 + $0x40] sm:$0xff] }
 0x8c0   :  { %14781 = vpow2.f32 %v11448_v21  ;;  %v14207_v46 = vadd.f32 %v6294_v23, %v18970_v49  ;;  %13581 = vmatmul.mubr.msk.f32.gmra.mrb[192].mxu1 %vm3695_vm6, %v18713_v3  ;;  %13499 = vmatprep.mubr.msk.f32.mxu0 %vm3695_vm6, %v18797_v62 }
 0x8c1   :  { %v18983_v35 = vpop.permute.xlu1 %10603  ;;  %v14770_v37 = vpop.eup %14769  ;;  %v11451_v33 = vmul.f32 -1.442695, %v14206_v55  ;;  %13591 = vmatprep.mubr.msk.f32.mxu1 %vm3695_vm6, %v18737_v39 }
 0x8c2   :  { %v14772_v28 = vpop.eup %14771  ;;  %5469 = vst [vmem:[%s19405_s9 + $0xb0] sm:$0xff] %v14770_v37  ;;  %v11450_v3 = vmul.f32 -1.442695, %v14207_v46  ;;  %v13111_v2 = vpop.f32.mrb[32].mxu0 }
 0x8c3   :  { %v9855_v62 = vpop.permute.xlu0 %9854  ;;  %v14774_v54 = vpop.eup %14773  ;;  %v6372_v9 = vadd.f32 1.0, %v14772_v28  ;;  %14783 = vpow2.f32 %v11451_v33  ;;  %v14208_v14 = vadd.f32 %v13111_v2, %v18993_v58  ;;  %13500 = vmatmul.mubr.msk.f32.gmra.mrb[56].mxu0 %vm3695_vm6, %v18812_v42 }
 0x8c4   :  { %v6304_v10 = vpop.f32.mrb[33].mxu0  ;;  %v6371_v39 = vadd.f32 1.0, %v14774_v54  ;;  %14785 = vpow2.f32 %v11450_v3  ;;  %13592 = vmatmul.mubr.msk.f32.vlgmr.msra.gmra.mrb[182].mxu1 %vm3695_vm6, %v18753_v53  ;;  %13502 = vmatprep.mubr.msk.f32.mxu0 %vm3695_vm6, %v18824_v56 }
 0x8c5   :  { %v19008_v60 = vpop.permute.xlu1 %10794  ;;  %v14209_v8 = vadd.f32 %v6304_v10, %v19000_v45  ;;  %v14776_v18 = vpop.eup %14775  ;;  %14787 = vrcp.f32 %v6372_v9  ;;  %v11453_v25 = vmul.f32 -1.442695, %v14208_v14  ;;  %13594 = vmatprep.mubr.msk.f32.mxu1 %vm3695_vm6, %v18769_v30  ;;  %14135 = vmatpush3.bf16.msra.mxu1 %v18395_v31  ;;  %v19106_v10 = vld [vmem:[%s19404_s6 + $0x58] sm:$0xff] }
 0x8c6   :  { %v14778_v42 = vpop.eup %14777  ;;  %14789 = vrcp.f32 %v6371_v39  ;;  %v6374_v15 = vadd.f32 1.0, %v14776_v18  ;;  %14137 = vmatprep.subr.bf16.mxu1 %v18881_v6 }
 0x8c7   :  { %v11452_v4 = vmul.f32 -1.442695, %v14209_v8  ;;  %v9857_v61 = vpop.permute.xlu0 %9856  ;;  %v6373_v57 = vadd.f32 1.0, %v14778_v42  ;;  %14791 = vpow2.f32 %v11453_v25  ;;  %13503 = vmatmul.mubr.msk.f32.gmra.mrb[58].mxu0 %vm3695_vm6, %v18843_v7 }
 0x8c8   :  { %14793 = vrcp.f32 %v6374_v15  ;;  %13595 = vmatmul.mubr.msk.f32.gmra.mrb[184].mxu1 %vm3695_vm6, %v18785_v29  ;;  %13513 = vmatprep.mubr.msk.f32.mxu0 %vm3695_vm6, %v18879_v51 }
 0x8c9   :  { %v19021_v53 = vpop.permute.xlu1 %10796  ;;  %v14780_v31 = vpop.eup %14779  ;;  %14795 = vrcp.f32 %v6373_v57  ;;  %13597 = vmatprep.mubr.msk.f32.mxu1 %vm3695_vm6, %v18803_v59  ;;  %14139 = vmatpush3.bf16.msra.mxu1 %v18881_v6 }
 0x8ca   :  { %v14782_v30 = vpop.eup %14781  ;;  %v6376_v56 = vadd.f32 1.0, %v14780_v31  ;;  %14797 = vpow2.f32 %v11452_v4 }
 0x8cb   :  { %v9859_v7 = vpop.permute.xlu0 %9858  ;;  %v6375_v34 = vadd.f32 1.0, %v14782_v30  ;;  %13514 = vmatmul.mubr.msk.f32.vlgmr.msra.gmra.mrb[48].mxu0 %vm3695_vm6, %v18913_v5 }
 0x8cc   :  { %14799 = vrcp.f32 %v6376_v56  ;;  %13598 = vmatmul.mubr.msk.f32.gmra.mrb[186].mxu1 %vm3695_vm6, %v18816_v22  ;;  %13516 = vmatprep.mubr.msk.f32.mxu0 %vm3695_vm6, %v18945_v40 }
 0x8cd   :  { %v10799_v29 = vpop.permute.xlu1 %10798  ;;  %v14784_v51 = vpop.eup %14783  ;;  %14801 = vrcp.f32 %v6375_v34  ;;  %13600 = vmatprep.mubr.msk.f32.mxu1 %vm3695_vm6, %v18834_v43 }
 0x8ce   :  { %v14786_v59 = vpop.eup %14785  ;;  %v6378_v6 = vadd.f32 1.0, %v14784_v51 }
 0x8cf   :  { %v9861_v13 = vpop.permute.xlu0 %9860  ;;  %v14788_v32 = vpop.eup %14787  ;;  %v6377_v20 = vadd.f32 1.0, %v14786_v59  ;;  %13517 = vmatmul.mubr.msk.f32.gmra.mrb[50].mxu0 %vm3695_vm6, %v18975_v38 }
 0x8d0   :  { %v14790_v5 = vpop.eup %14789  ;;  %6408 = vst [vmem:[%s19405_s9 + $0xc8] sm:$0xff] %v14788_v32  ;;  %14803 = vrcp.f32 %v6378_v6  ;;  %13601 = vmatmul.mubr.msk.f32.gmra.mrb[188].mxu1 %vm3695_vm6, %v18860_v63  ;;  %13519 = vmatprep.mubr.msk.f32.mxu0 %vm3695_vm6, %v9855_v62 }
 0x8d1   :  { %v10801_v22 = vpop.permute.xlu1 %10800  ;;  %v14792_v43 = vpop.eup %14791  ;;  %6407 = vst [vmem:[%s19405_s9 + $0xc0] sm:$0xff] %v14790_v5  ;;  %14805 = vrcp.f32 %v6377_v20  ;;  %13603 = vmatprep.mubr.msk.f32.mxu1 %vm3695_vm6, %v18893_v24 }
 0x8d2   :  { %v14794_v40 = vpop.eup %14793  ;;  %v6380_v27 = vadd.f32 1.0, %v14792_v43 }
 0x8d3   :  { %v9863_v50 = vpop.permute.xlu0 %9862  ;;  %v14796_v16 = vpop.eup %14795  ;;  %6410 = vst [vmem:[%s19405_s9 + $0xd8] sm:$0xff] %v14794_v40  ;;  %13520 = vmatmul.mubr.msk.f32.gmra.mrb[52].mxu0 %vm3695_vm6, %v9857_v61 }
 0x8d4   :  { %v14798_v63 = vpop.eup %14797  ;;  %6409 = vst [vmem:[%s19405_s9 + $0xd0] sm:$0xff] %v14796_v16  ;;  %14807 = vrcp.f32 %v6380_v27  ;;  %13604 = vmatmul.mubr.msk.f32.gmra.mrb[190].mxu1 %vm3695_vm6, %v18922_v12  ;;  %13522 = vmatprep.mubr.msk.f32.mxu0 %vm3695_vm6, %v9859_v7 }
 0x8d5   :  { %v10803_v52 = vpop.permute.xlu1 %10802  ;;  %v6379_v24 = vadd.f32 1.0, %v14798_v63  ;;  %13606 = vmatprep.mubr.msk.f32.mxu1 %vm3695_vm6, %v18953_v1 }
 0x8d6   :  { %v14800_v44 = vpop.eup %14799 }
 0x8d7   :  { %v9865_v17 = vpop.permute.xlu0 %9864  ;;  %v14802_v21 = vpop.eup %14801  ;;  %6412 = vst [vmem:[%s19405_s9 + $0xe8] sm:$0xff] %v14800_v44  ;;  %14809 = vrcp.f32 %v6379_v24  ;;  %13523 = vmatmul.mubr.msk.f32.gmra.mrb[54].mxu0 %vm3695_vm6, %v9861_v13 }
 0x8d8   :  { %6411 = vst [vmem:[%s19405_s9 + $0xe0] sm:$0xff] %v14802_v21  ;;  %13607 = vmatmul.mubr.msk.f32.gmra.mrb[192].mxu1 %vm3695_vm6, %v18983_v35  ;;  %13525 = vmatprep.mubr.msk.f32.mxu0 %vm3695_vm6, %v9863_v50 }
 0x8d9   :  { %v10805_v12 = vpop.permute.xlu1 %10804  ;;  %13617 = vmatprep.mubr.msk.f32.mxu1 %vm3695_vm6, %v19008_v60  ;;  %v19112_v60 = vld [vmem:[%s19404_s6 + $0x50] sm:$0xff] }
 0x8da   :  { %v14804_v1 = vpop.eup %14803 }
 0x8db   :  { %v9867_v38 = vpop.permute.xlu0 %9866  ;;  %v14806_v19 = vpop.eup %14805  ;;  %6414 = vst [vmem:[%s19405_s9 + $0xf8] sm:$0xff] %v14804_v1  ;;  %13526 = vmatmul.mubr.msk.f32.gmra.mrb[56].mxu0 %vm3695_vm6, %v9865_v17 }
 0x8dc   :  { %6413 = vst [vmem:[%s19405_s9 + $0xf0] sm:$0xff] %v14806_v19  ;;  %13618 = vmatmul.mubr.msk.f32.vlgmr.msra.gmra.mrb[182].mxu1 %vm3695_vm6, %v19021_v53  ;;  %13528 = vmatprep.mubr.msk.f32.mxu0 %vm3695_vm6, %v9867_v38 }
 0x8dd   :  { %v10807_v55 = vpop.permute.xlu1 %10806  ;;  %13620 = vmatprep.mubr.msk.f32.mxu1 %vm3695_vm6, %v10799_v29 }
 0x8de   :  { %v14808_v23 = vpop.eup %14807 }
 0x8df   :  { %6416 = vst [vmem:[%s19405_s9 + $0x108] sm:$0xff] %v14808_v23  ;;  %v9869_v35 = vpop.permute.xlu0 %9868 }
 0x8e0   :  { %13529 = vmatmul.mubr.msk.f32.gmra.mrb[58].mxu0 %vm3695_vm6, %v9869_v35  ;;  %13621 = vmatmul.mubr.msk.f32.gmra.mrb[184].mxu1 %vm3695_vm6, %v10801_v22 }
 0x8e1   :  { %v10809_v46 = vpop.permute.xlu1 %10808  ;;  %v14810_v37 = vpop.eup %14809  ;;  %13623 = vmatprep.mubr.msk.f32.mxu1 %vm3695_vm6, %v10803_v52 }
 0x8e2   :  { %6415 = vst [vmem:[%s19405_s9 + $0x100] sm:$0xff] %v14810_v37 }
 0x8e4   :  { %13624 = vmatmul.mubr.msk.f32.gmra.mrb[186].mxu1 %vm3695_vm6, %v10805_v12 }
 0x8e5   :  { %v10811_v33 = vpop.permute.xlu1 %10810  ;;  %13626 = vmatprep.mubr.msk.f32.mxu1 %vm3695_vm6, %v10807_v55 }
 0x8e8   :  { %13627 = vmatmul.mubr.msk.f32.gmra.mrb[188].mxu1 %vm3695_vm6, %v10809_v46 }
 0x8e9   :  { %v10813_v28 = vpop.permute.xlu1 %10812  ;;  %13629 = vmatprep.mubr.msk.f32.mxu1 %vm3695_vm6, %v10811_v33 }
 0x8ec   :  { %13630 = vmatmul.mubr.msk.f32.gmra.mrb[190].mxu1 %vm3695_vm6, %v10813_v28 }
 0x8ed   :  { %v10815_v3 = vpop.permute.xlu1 %10814 }
 0x8ee   :  { %13632 = vmatprep.mubr.msk.f32.mxu1 %vm3695_vm6, %v10815_v3  ;;  %v13203_v62 = vpop.f32.mrb[158].mxu1 }
 0x8ef   :  { %v14212_v2 = vadd.f32 %v13203_v62, %v18869_v41  ;;  %v7212_v54 = vpop.f32.mrb[159].mxu1 }
 0x8f0   :  { %v14213_v14 = vadd.f32 %v7212_v54, %v18876_v0 }
 0x8f1   :  { %v10817_v9 = vpop.permute.xlu1 %10816  ;;  %v11517_v39 = vmul.f32 -1.442695, %v14212_v2 }
 0x8f2   :  { %13633 = vmatmul.mubr.msk.f32.gmra.mrb[192].mxu1 %vm3695_vm6, %v10817_v9  ;;  %v11516_v8 = vmul.f32 -1.442695, %v14213_v14  ;;  %v13114_v18 = vpop.f32.mrb[34].mxu0  ;;  %v13206_v25 = vpop.f32.mrb[160].mxu1 }
 0x8f3   :  { %14811 = vpow2.f32 %v11517_v39  ;;  %v14210_v42 = vadd.f32 %v13114_v18, %v19106_v10  ;;  %v14214_v15 = vadd.f32 %v13206_v25, %v18903_v36  ;;  %v6314_v4 = vpop.f32.mrb[35].mxu0  ;;  %v7222_v61 = vpop.f32.mrb[161].mxu1 }
 0x8f4   :  { %14813 = vpow2.f32 %v11516_v8  ;;  %v14211_v57 = vadd.f32 %v6314_v4, %v19112_v60  ;;  %v14215_v53 = vadd.f32 %v7222_v61, %v18910_v48 }
 0x8f5   :  { %v11455_v31 = vmul.f32 -1.442695, %v14210_v42  ;;  %v11519_v30 = vmul.f32 -1.442695, %v14214_v15 }
 0x8f6   :  { %v11454_v56 = vmul.f32 -1.442695, %v14211_v57  ;;  %v11518_v7 = vmul.f32 -1.442695, %v14215_v53  ;;  %v13209_v34 = vpop.f32.mrb[162].mxu1 }
 0x8f7   :  { %14815 = vpow2.f32 %v11455_v31  ;;  %v14216_v29 = vadd.f32 %v13209_v34, %v18932_v47  ;;  %v7232_v51 = vpop.f32.mrb[163].mxu1 }
 0x8f8   :  { %14817 = vpow2.f32 %v11519_v30  ;;  %v14217_v59 = vadd.f32 %v7232_v51, %v18939_v26 }
 0x8f9   :  { %14819 = vpow2.f32 %v11454_v56  ;;  %v11521_v6 = vmul.f32 -1.442695, %v14216_v29 }
 0x8fa   :  { %14821 = vpow2.f32 %v11518_v7  ;;  %v11520_v13 = vmul.f32 -1.442695, %v14217_v59  ;;  %v13212_v32 = vpop.f32.mrb[164].mxu1 }
 0x8fb   :  { %14823 = vpow2.f32 %v11521_v6  ;;  %v14218_v20 = vadd.f32 %v13212_v32, %v18963_v11  ;;  %v7242_v5 = vpop.f32.mrb[165].mxu1 }
 0x8fc   :  { %14825 = vpow2.f32 %v11520_v13  ;;  %v14219_v22 = vadd.f32 %v7242_v5, %v18970_v49 }
 0x8fd   :  { %v14812_v43 = vpop.eup %14811  ;;  %v11523_v40 = vmul.f32 -1.442695, %v14218_v20 }
 0x8fe   :  { %v14814_v27 = vpop.eup %14813  ;;  %v7320_v50 = vadd.f32 1.0, %v14812_v43  ;;  %v11522_v16 = vmul.f32 -1.442695, %v14219_v22  ;;  %v13215_v63 = vpop.f32.mrb[166].mxu1 }
 0x8ff   :  { %v7319_v52 = vadd.f32 1.0, %v14814_v27  ;;  %14827 = vpow2.f32 %v11523_v40  ;;  %v14220_v24 = vadd.f32 %v13215_v63, %v18993_v58  ;;  %v7252_v44 = vpop.f32.mrb[167].mxu1 }
 0x900   :  { %14829 = vrcp.f32 %v7320_v50  ;;  %v14221_v38 = vadd.f32 %v7252_v44, %v19000_v45 }
 0x901   :  { %v14816_v17 = vpop.eup %14815  ;;  %14831 = vrcp.f32 %v7319_v52  ;;  %v11525_v21 = vmul.f32 -1.442695, %v14220_v24 }
 0x902   :  { %v14818_v12 = vpop.eup %14817  ;;  %v6382_v1 = vadd.f32 1.0, %v14816_v17  ;;  %14833 = vpow2.f32 %v11522_v16  ;;  %v11524_v9 = vmul.f32 -1.442695, %v14221_v38 }
 0x903   :  { %v14820_v19 = vpop.eup %14819  ;;  %v7322_v55 = vadd.f32 1.0, %v14818_v12  ;;  %14835 = vpow2.f32 %v11525_v21  ;;  %v13218_v23 = vpop.f32.mrb[168].mxu1 }
 0x904   :  { %v14822_v35 = vpop.eup %14821  ;;  %14837 = vrcp.f32 %v6382_v1  ;;  %v6381_v46 = vadd.f32 1.0, %v14820_v19  ;;  %v14222_v37 = vadd.f32 %v13218_v23, %v19106_v10  ;;  %v7262_v33 = vpop.f32.mrb[169].mxu1 }
 0x905   :  { %v14824_v28 = vpop.eup %14823  ;;  %14839 = vrcp.f32 %v7322_v55  ;;  %v7321_v3 = vadd.f32 1.0, %v14822_v35  ;;  %v14223_v62 = vadd.f32 %v7262_v33, %v19112_v60 }
 0x906   :  { %v14826_v2 = vpop.eup %14825  ;;  %14841 = vrcp.f32 %v6381_v46  ;;  %v7324_v54 = vadd.f32 1.0, %v14824_v28  ;;  %v11527_v39 = vmul.f32 -1.442695, %v14222_v37 }
 0x907   :  { %14843 = vrcp.f32 %v7321_v3  ;;  %v7323_v14 = vadd.f32 1.0, %v14826_v2  ;;  %v11526_v18 = vmul.f32 -1.442695, %v14223_v62 }
 0x908   :  { %14845 = vrcp.f32 %v7324_v54 }
 0x909   :  { %v14828_v8 = vpop.eup %14827  ;;  %14847 = vrcp.f32 %v7323_v14 }
 0x90a   :  { %v14830_v25 = vpop.eup %14829  ;;  %v7326_v42 = vadd.f32 1.0, %v14828_v8  ;;  %14849 = vpow2.f32 %v11524_v9 }
 0x90b   :  { %v14832_v15 = vpop.eup %14831  ;;  %7356 = vst [vmem:[%s19405_s9 + $0x128] sm:$0xff] %v14830_v25  ;;  %14851 = vpow2.f32 %v11527_v39 }
 0x90c   :  { %v14834_v4 = vpop.eup %14833  ;;  %7355 = vst [vmem:[%s19405_s9 + $0x120] sm:$0xff] %v14832_v15  ;;  %14853 = vrcp.f32 %v7326_v42 }
 0x90d   :  { %v14836_v61 = vpop.eup %14835  ;;  %v7325_v57 = vadd.f32 1.0, %v14834_v4  ;;  %14855 = vpow2.f32 %v11526_v18 }
 0x90e   :  { %v14838_v53 = vpop.eup %14837  ;;  %v7328_v31 = vadd.f32 1.0, %v14836_v61 }
 0x90f   :  { %v14840_v30 = vpop.eup %14839  ;;  %6418 = vst [vmem:[%s19405_s9 + $0x118] sm:$0xff] %v14838_v53  ;;  %14857 = vrcp.f32 %v7325_v57 }
 0x910   :  { %v14842_v56 = vpop.eup %14841  ;;  %7358 = vst [vmem:[%s19405_s9 + $0x138] sm:$0xff] %v14840_v30  ;;  %14859 = vrcp.f32 %v7328_v31 }
 0x911   :  { %v14844_v7 = vpop.eup %14843  ;;  %6417 = vst [vmem:[%s19405_s9 + $0x110] sm:$0xff] %v14842_v56 }
 0x912   :  { %v14846_v34 = vpop.eup %14845  ;;  %7357 = vst [vmem:[%s19405_s9 + $0x130] sm:$0xff] %v14844_v7 }
 0x913   :  { %v14848_v29 = vpop.eup %14847  ;;  %7360 = vst [vmem:[%s19405_s9 + $0x148] sm:$0xff] %v14846_v34 }
 0x914   :  { %v14850_v51 = vpop.eup %14849  ;;  %7359 = vst [vmem:[%s19405_s9 + $0x140] sm:$0xff] %v14848_v29 }
 0x915   :  { %v14852_v59 = vpop.eup %14851  ;;  %v7327_v6 = vadd.f32 1.0, %v14850_v51 }
 0x916   :  { %v14854_v13 = vpop.eup %14853  ;;  %v7330_v32 = vadd.f32 1.0, %v14852_v59 }
 0x917   :  { %v14856_v20 = vpop.eup %14855  ;;  %7362 = vst [vmem:[%s19405_s9 + $0x158] sm:$0xff] %v14854_v13  ;;  %14861 = vrcp.f32 %v7327_v6 }
 0x918   :  { %14863 = vrcp.f32 %v7330_v32  ;;  %v7329_v5 = vadd.f32 1.0, %v14856_v20 }
 0x919   :  { %v14858_v22 = vpop.eup %14857 }
 0x91a   :  { %v14860_v43 = vpop.eup %14859  ;;  %7361 = vst [vmem:[%s19405_s9 + $0x150] sm:$0xff] %v14858_v22  ;;  %14865 = vrcp.f32 %v7329_v5 }
 0x91b   :  { %7364 = vst [vmem:[%s19405_s9 + $0x168] sm:$0xff] %v14860_v43 }
 0x921   :  { %v14862_v40 = vpop.eup %14861 }
 0x922   :  { %v14864_v27 = vpop.eup %14863  ;;  %7363 = vst [vmem:[%s19405_s9 + $0x160] sm:$0xff] %v14862_v40 }
 0x923   :  { %7366 = vst [vmem:[%s19405_s9 + $0x178] sm:$0xff] %v14864_v27 }
 0x924   :  { %v14866_v50 = vpop.eup %14865 }
 0x925   :  { %7365 = vst [vmem:[%s19405_s9 + $0x170] sm:$0xff] %v14866_v50 }
 0x93e   :  { %v13307_v16 = vpop.f32.mrb[36].mxu0 }
 0x93f   :  { %v14224_v63 = vadd.f32 %v13307_v16, %v18869_v41  ;;  %v8064_v52 = vpop.f32.mrb[37].mxu0 }
 0x940   :  { %v14225_v24 = vadd.f32 %v8064_v52, %v18876_v0 }
 0x941   :  { %v11589_v44 = vmul.f32 -1.442695, %v14224_v63 }
 0x942   :  { %v11588_v17 = vmul.f32 -1.442695, %v14225_v24  ;;  %v13310_v21 = vpop.f32.mrb[38].mxu0 }
 0x943   :  { %14867 = vpow2.f32 %v11589_v44  ;;  %v14226_v12 = vadd.f32 %v13310_v21, %v18903_v36  ;;  %v8074_v1 = vpop.f32.mrb[39].mxu0 }
 0x944   :  { %14869 = vpow2.f32 %v11588_v17  ;;  %v14227_v38 = vadd.f32 %v8074_v1, %v18910_v48 }
 0x945   :  { %v11591_v19 = vmul.f32 -1.442695, %v14226_v12 }
 0x946   :  { %v11590_v55 = vmul.f32 -1.442695, %v14227_v38  ;;  %v13313_v23 = vpop.f32.mrb[40].mxu0 }
 0x947   :  { %14871 = vpow2.f32 %v11591_v19  ;;  %v14228_v35 = vadd.f32 %v13313_v23, %v18932_v47  ;;  %v8084_v46 = vpop.f32.mrb[41].mxu0 }
 0x948   :  { %14873 = vpow2.f32 %v11590_v55  ;;  %v14229_v37 = vadd.f32 %v8084_v46, %v18939_v26 }
 0x949   :  { %v11593_v33 = vmul.f32 -1.442695, %v14228_v35 }
 0x94a   :  { %v11592_v28 = vmul.f32 -1.442695, %v14229_v37  ;;  %v13316_v3 = vpop.f32.mrb[42].mxu0 }
 0x94b   :  { %14875 = vpow2.f32 %v11593_v33  ;;  %v14230_v62 = vadd.f32 %v13316_v3, %v18963_v11  ;;  %v8094_v2 = vpop.f32.mrb[43].mxu0 }
 0x94c   :  { %14877 = vpow2.f32 %v11592_v28  ;;  %v14231_v54 = vadd.f32 %v8094_v2, %v18970_v49 }
 0x94d   :  { %v14868_v9 = vpop.eup %14867  ;;  %v11595_v14 = vmul.f32 -1.442695, %v14230_v62 }
 0x94e   :  { %v14870_v39 = vpop.eup %14869  ;;  %v8172_v8 = vadd.f32 1.0, %v14868_v9  ;;  %v11594_v18 = vmul.f32 -1.442695, %v14231_v54  ;;  %v13319_v25 = vpop.f32.mrb[44].mxu0 }
 0x94f   :  { %v8171_v42 = vadd.f32 1.0, %v14870_v39  ;;  %14879 = vpow2.f32 %v11595_v14  ;;  %v14232_v15 = vadd.f32 %v13319_v25, %v18993_v58  ;;  %v13411_v4 = vpop.f32.mrb[170].mxu1  ;;  %v8104_v61 = vpop.f32.mrb[45].mxu0 }
 0x950   :  { %14881 = vrcp.f32 %v8172_v8  ;;  %v14236_v57 = vadd.f32 %v13411_v4, %v18869_v41  ;;  %v14233_v53 = vadd.f32 %v8104_v61, %v19000_v45  ;;  %v9012_v31 = vpop.f32.mrb[171].mxu1 }
 0x951   :  { %v14872_v30 = vpop.eup %14871  ;;  %14883 = vrcp.f32 %v8171_v42  ;;  %v11597_v56 = vmul.f32 -1.442695, %v14232_v15  ;;  %v14237_v51 = vadd.f32 %v9012_v31, %v18876_v0 }
 0x952   :  { %v14874_v7 = vpop.eup %14873  ;;  %v8174_v34 = vadd.f32 1.0, %v14872_v30  ;;  %14885 = vpow2.f32 %v11594_v18  ;;  %v11661_v29 = vmul.f32 -1.442695, %v14236_v57  ;;  %v13322_v59 = vpop.f32.mrb[46].mxu0  ;;  %v11596_v13 = vmul.f32 -1.442695, %v14233_v53 }
 0x953   :  { %v8173_v6 = vadd.f32 1.0, %v14874_v7  ;;  %14887 = vpow2.f32 %v11597_v56  ;;  %v14234_v32 = vadd.f32 %v13322_v59, %v19106_v10  ;;  %v13414_v20 = vpop.f32.mrb[172].mxu1  ;;  %v8114_v41 = vpop.f32.mrb[47].mxu0  ;;  %v11660_v50 = vmul.f32 -1.442695, %v14237_v51 }
 0x954   :  { %14889 = vrcp.f32 %v8174_v34  ;;  %v9022_v5 = vpop.f32.mrb[173].mxu1  ;;  %v14238_v43 = vadd.f32 %v13414_v20, %v18903_v36  ;;  %v14235_v0 = vadd.f32 %v8114_v41, %v19112_v60 }
 0x955   :  { %v14876_v22 = vpop.eup %14875  ;;  %14891 = vrcp.f32 %v8173_v6  ;;  %v11599_v63 = vmul.f32 -1.442695, %v14234_v32  ;;  %v14239_v21 = vadd.f32 %v9022_v5, %v18910_v48 }
 0x956   :  { %v14878_v40 = vpop.eup %14877  ;;  %v8176_v27 = vadd.f32 1.0, %v14876_v22  ;;  %14893 = vpow2.f32 %v11661_v29  ;;  %v11663_v17 = vmul.f32 -1.442695, %v14238_v43  ;;  %v11598_v36 = vmul.f32 -1.442695, %v14235_v0 }
 0x957   :  { %v8175_v16 = vadd.f32 1.0, %v14878_v40  ;;  %14895 = vpow2.f32 %v11596_v13  ;;  %v13417_v52 = vpop.f32.mrb[174].mxu1  ;;  %v11662_v37 = vmul.f32 -1.442695, %v14239_v21 }
 0x958   :  { %14897 = vrcp.f32 %v8176_v27  ;;  %v9032_v24 = vpop.f32.mrb[175].mxu1  ;;  %v14240_v38 = vadd.f32 %v13417_v52, %v18932_v47 }
 0x959   :  { %v14880_v44 = vpop.eup %14879  ;;  %14899 = vrcp.f32 %v8175_v16  ;;  %v14241_v47 = vadd.f32 %v9032_v24, %v18939_v26 }
 0x95a   :  { %v14882_v12 = vpop.eup %14881  ;;  %v8178_v1 = vadd.f32 1.0, %v14880_v44  ;;  %14901 = vpow2.f32 %v11660_v50  ;;  %v11665_v3 = vmul.f32 -1.442695, %v14240_v38 }
 0x95b   :  { %v14884_v19 = vpop.eup %14883  ;;  %8208 = vst [vmem:[%s19405_s9 + $0x188] sm:$0xff] %v14882_v12  ;;  %14903 = vpow2.f32 %v11599_v63  ;;  %v13420_v55 = vpop.f32.mrb[176].mxu1  ;;  %v11664_v8 = vmul.f32 -1.442695, %v14241_v47 }
 0x95c   :  { %v14886_v23 = vpop.eup %14885  ;;  %8207 = vst [vmem:[%s19405_s9 + $0x180] sm:$0xff] %v14884_v19  ;;  %14905 = vrcp.f32 %v8178_v1  ;;  %v9042_v48 = vpop.f32.mrb[177].mxu1  ;;  %v14242_v62 = vadd.f32 %v13420_v55, %v18963_v11 }
 0x95d   :  { %v14888_v35 = vpop.eup %14887  ;;  %v8177_v46 = vadd.f32 1.0, %v14886_v23  ;;  %14907 = vpow2.f32 %v11663_v17  ;;  %v14243_v11 = vadd.f32 %v9042_v48, %v18970_v49 }
 0x95e   :  { %v14890_v33 = vpop.eup %14889  ;;  %v8180_v28 = vadd.f32 1.0, %v14888_v35  ;;  %14909 = vpow2.f32 %v11598_v36  ;;  %v11667_v42 = vmul.f32 -1.442695, %v14242_v62 }
 0x95f   :  { %v14892_v2 = vpop.eup %14891  ;;  %8210 = vst [vmem:[%s19405_s9 + $0x198] sm:$0xff] %v14890_v33  ;;  %14911 = vrcp.f32 %v8177_v46  ;;  %v13423_v54 = vpop.f32.mrb[178].mxu1  ;;  %v11666_v30 = vmul.f32 -1.442695, %v14243_v11 }
 0x960   :  { %v14894_v9 = vpop.eup %14893  ;;  %8209 = vst [vmem:[%s19405_s9 + $0x190] sm:$0xff] %v14892_v2  ;;  %14913 = vrcp.f32 %v8180_v28  ;;  %v9052_v26 = vpop.f32.mrb[179].mxu1  ;;  %v14244_v57 = vadd.f32 %v13423_v54, %v18993_v58 }
 0x961   :  { %v14896_v14 = vpop.eup %14895  ;;  %v9120_v39 = vadd.f32 1.0, %v14894_v9  ;;  %14915 = vpow2.f32 %v11662_v37  ;;  %v14245_v56 = vadd.f32 %v9052_v26, %v19000_v45 }
 0x962   :  { %v14898_v18 = vpop.eup %14897  ;;  %v8179_v25 = vadd.f32 1.0, %v14896_v14  ;;  %14917 = vpow2.f32 %v11665_v3  ;;  %v11669_v6 = vmul.f32 -1.442695, %v14244_v57 }
 0x963   :  { %v14900_v15 = vpop.eup %14899  ;;  %8212 = vst [vmem:[%s19405_s9 + $0x1a8] sm:$0xff] %v14898_v18  ;;  %14919 = vrcp.f32 %v9120_v39  ;;  %v13426_v4 = vpop.f32.mrb[180].mxu1  ;;  %v11668_v41 = vmul.f32 -1.442695, %v14245_v56  ;;  %v15059_v18 = vld [vmem:[%s19404_s6 + $0x8] sm:$0xff]  ;;  %v15062_v56 = vld [vmem:[%s19404_s6 + $0x10] sm:$0xff] }
 0x964   :  { %v14902_v61 = vpop.eup %14901  ;;  %8211 = vst [vmem:[%s19405_s9 + $0x1a0] sm:$0xff] %v14900_v15  ;;  %14921 = vrcp.f32 %v8179_v25  ;;  %v9062_v49 = vpop.f32.mrb[181].mxu1  ;;  %v14246_v13 = vadd.f32 %v13426_v4, %v19106_v10  ;;  %v15060_v15 = vld [vmem:[%s19404_s6] sm:$0xff] }
 0x965   :  { %v14904_v53 = vpop.eup %14903  ;;  %v9119_v31 = vadd.f32 1.0, %v14902_v61  ;;  %14923 = vpow2.f32 %v11664_v8  ;;  %v14247_v5 = vadd.f32 %v9062_v49, %v19112_v60 }
 0x966   :  { %v14906_v7 = vpop.eup %14905  ;;  %v8182_v34 = vadd.f32 1.0, %v14904_v53  ;;  %14925 = vpow2.f32 %v11667_v42  ;;  %v11671_v50 = vmul.f32 -1.442695, %v14246_v13  ;;  %v15061_v53 = vld [vmem:[%s19404_s6 + $0x18] sm:$0xff] }
 0x967   :  { %v14908_v29 = vpop.eup %14907  ;;  %8214 = vst [vmem:[%s19405_s9 + $0x1b8] sm:$0xff] %v14906_v7  ;;  %14927 = vrcp.f32 %v9119_v31  ;;  %v11670_v63 = vmul.f32 -1.442695, %v14247_v5 }
 0x968   :  { %v14910_v51 = vpop.eup %14909  ;;  %14929 = vrcp.f32 %v8182_v34  ;;  %v9122_v59 = vadd.f32 1.0, %v14908_v29 }
 0x969   :  { %v14912_v32 = vpop.eup %14911  ;;  %v8181_v20 = vadd.f32 1.0, %v14910_v51  ;;  %14931 = vpow2.f32 %v11666_v30 }
 0x96a   :  { %v14914_v22 = vpop.eup %14913  ;;  %8213 = vst [vmem:[%s19405_s9 + $0x1b0] sm:$0xff] %v14912_v32  ;;  %14933 = vrcp.f32 %v9122_v59  ;;  %v15063_v59 = vld [vmem:[%s19404_s6 + $0x28] sm:$0xff]  ;;  %v15064_v32 = vld [vmem:[%s19404_s6 + $0x20] sm:$0xff] }
 0x96b   :  { %v14916_v43 = vpop.eup %14915  ;;  %8216 = vst [vmem:[%s19405_s9 + $0x1c8] sm:$0xff] %v14914_v22  ;;  %14935 = vrcp.f32 %v8181_v20 }
 0x96c   :  { %v14918_v40 = vpop.eup %14917  ;;  %v9121_v27 = vadd.f32 1.0, %v14916_v43  ;;  %14937 = vpow2.f32 %v11669_v6  ;;  %v15065_v43 = vld [vmem:[%s19404_s6 + $0x38] sm:$0xff] }
 0x96d   :  { %v14920_v0 = vpop.eup %14919  ;;  %v9124_v16 = vadd.f32 1.0, %v14918_v40  ;;  %14939 = vpow2.f32 %v11668_v41 }
 0x96e   :  { %v14922_v52 = vpop.eup %14921  ;;  %9156 = vst [vmem:[%s19405_s9 + $0x1e8] sm:$0xff] %v14920_v0  ;;  %14941 = vrcp.f32 %v9121_v27 }
 0x96f   :  { %v14924_v24 = vpop.eup %14923  ;;  %8215 = vst [vmem:[%s19405_s9 + $0x1c0] sm:$0xff] %v14922_v52  ;;  %14943 = vrcp.f32 %v9124_v16  ;;  %v10116_v52 = vld [vmem:[%s19404_s6 + $0x8] sm:$0xff] }
 0x970   :  { %v14926_v44 = vpop.eup %14925  ;;  %v9123_v17 = vadd.f32 1.0, %v14924_v24  ;;  %14945 = vpow2.f32 %v11671_v50  ;;  %v15066_v50 = vld [vmem:[%s19404_s6 + $0x30] sm:$0xff] }
 0x971   :  { %v14928_v21 = vpop.eup %14927  ;;  %v9126_v12 = vadd.f32 1.0, %v14926_v44  ;;  %14947 = vpow2.f32 %v11670_v63 }
 0x972   :  { %v14930_v1 = vpop.eup %14929  ;;  %9155 = vst [vmem:[%s19405_s9 + $0x1e0] sm:$0xff] %v14928_v21  ;;  %14949 = vrcp.f32 %v9123_v17 }
 0x973   :  { %v14932_v36 = vpop.eup %14931  ;;  %8218 = vst [vmem:[%s19405_s9 + $0x1d8] sm:$0xff] %v14930_v1  ;;  %14951 = vrcp.f32 %v9126_v12 }
 0x974   :  { %v14934_v38 = vpop.eup %14933  ;;  %v9125_v19 = vadd.f32 1.0, %v14932_v36 }
 0x975   :  { %v14936_v55 = vpop.eup %14935  ;;  %9158 = vst [vmem:[%s19405_s9 + $0x1f8] sm:$0xff] %v14934_v38 }
 0x976   :  { %v14938_v23 = vpop.eup %14937  ;;  %8217 = vst [vmem:[%s19405_s9 + $0x1d0] sm:$0xff] %v14936_v55  ;;  %14953 = vrcp.f32 %v9125_v19  ;;  %v10115_v19 = vld [vmem:[%s19404_s6] sm:$0xff] }
 0x977   :  { %v14940_v48 = vpop.eup %14939  ;;  %v9128_v35 = vadd.f32 1.0, %v14938_v23 }
 0x978   :  { %v14942_v46 = vpop.eup %14941  ;;  %v9127_v37 = vadd.f32 1.0, %v14940_v48 }
 0x979   :  { %v14944_v47 = vpop.eup %14943  ;;  %9157 = vst [vmem:[%s19405_s9 + $0x1f0] sm:$0xff] %v14942_v46  ;;  %14955 = vrcp.f32 %v9128_v35 }
 0x97a   :  { %v14946_v33 = vpop.eup %14945  ;;  %9160 = vst [vmem:[%s19405_s9 + $0x208] sm:$0xff] %v14944_v47  ;;  %14957 = vrcp.f32 %v9127_v37 }
 0x97b   :  { %v14948_v28 = vpop.eup %14947  ;;  %v9130_v3 = vadd.f32 1.0, %v14946_v33 }
 0x97c   :  { %v14950_v62 = vpop.eup %14949  ;;  %v9129_v2 = vadd.f32 1.0, %v14948_v28 }
 0x97d   :  { %v14952_v54 = vpop.eup %14951  ;;  %9159 = vst [vmem:[%s19405_s9 + $0x200] sm:$0xff] %v14950_v62  ;;  %14959 = vrcp.f32 %v9130_v3 }
 0x97e   :  { %9162 = vst [vmem:[%s19405_s9 + $0x218] sm:$0xff] %v14952_v54  ;;  %14961 = vrcp.f32 %v9129_v2 }
 0x980   :  { %v14954_v9 = vpop.eup %14953 }
 0x981   :  { %9161 = vst [vmem:[%s19405_s9 + $0x210] sm:$0xff] %v14954_v9 }
 0x983   :  { %v14956_v26 = vpop.eup %14955 }
 0x984   :  { %v14958_v14 = vpop.eup %14957  ;;  %9164 = vst [vmem:[%s19405_s9 + $0x228] sm:$0xff] %v14956_v26 }
 0x985   :  { %9163 = vst [vmem:[%s19405_s9 + $0x220] sm:$0xff] %v14958_v14 }
 0x987   :  { %v14960_v39 = vpop.eup %14959 }
 0x988   :  { %v14962_v8 = vpop.eup %14961  ;;  %9166 = vst [vmem:[%s19405_s9 + $0x238] sm:$0xff] %v14960_v39 }
 0x989   :  { %9165 = vst [vmem:[%s19405_s9 + $0x230] sm:$0xff] %v14962_v8 }
 0x99e   :  { %v13515_v11 = vpop.f32.mrb[48].mxu0 }
 0x99f   :  { %v14248_v25 = vadd.f32 %v15059_v18, %v13515_v11  ;;  %v9960_v42 = vpop.f32.mrb[49].mxu0 }
 0x9a0   :  { %v14249_v4 = vadd.f32 %v15060_v15, %v9960_v42  ;;  %v10117_v42 = vld [vmem:[%s19404_s6 + $0x10] sm:$0xff] }
 0x9a1   :  { %v11733_v61 = vmul.f32 -1.442695, %v14248_v25 }
 0x9a2   :  { %v11732_v57 = vmul.f32 -1.442695, %v14249_v4  ;;  %v13518_v49 = vpop.f32.mrb[50].mxu0 }
 0x9a3   :  { %14963 = vpow2.f32 %v11733_v61  ;;  %v14250_v31 = vadd.f32 %v15061_v53, %v13518_v49  ;;  %v9970_v30 = vpop.f32.mrb[51].mxu0  ;;  %v10120_v61 = vld [vmem:[%s19404_s6 + $0x28] sm:$0xff] }
 0x9a4   :  { %14965 = vpow2.f32 %v11732_v57  ;;  %v14251_v7 = vadd.f32 %v15062_v56, %v9970_v30 }
 0x9a5   :  { %v11735_v34 = vmul.f32 -1.442695, %v14250_v31 }
 0x9a6   :  { %v11734_v29 = vmul.f32 -1.442695, %v14251_v7  ;;  %v13521_v51 = vpop.f32.mrb[52].mxu0 }
 0x9a7   :  { %14967 = vpow2.f32 %v11735_v34  ;;  %v14252_v6 = vadd.f32 %v15063_v59, %v13521_v51  ;;  %v9980_v13 = vpop.f32.mrb[53].mxu0  ;;  %v10119_v51 = vld [vmem:[%s19404_s6 + $0x20] sm:$0xff] }
 0x9a8   :  { %14969 = vpow2.f32 %v11734_v29  ;;  %v14253_v20 = vadd.f32 %v15064_v32, %v9980_v13 }
 0x9a9   :  { %v11737_v41 = vmul.f32 -1.442695, %v14252_v6  ;;  %v10122_v6 = vld [vmem:[%s19404_s6 + $0x38] sm:$0xff] }
 0x9aa   :  { %v11736_v5 = vmul.f32 -1.442695, %v14253_v20  ;;  %v13524_v22 = vpop.f32.mrb[54].mxu0 }
 0x9ab   :  { %14971 = vpow2.f32 %v11737_v41  ;;  %v14254_v40 = vadd.f32 %v15065_v43, %v13524_v22  ;;  %v9990_v27 = vpop.f32.mrb[55].mxu0 }
 0x9ac   :  { %14973 = vpow2.f32 %v11736_v5  ;;  %v14255_v0 = vadd.f32 %v15066_v50, %v9990_v27 }
 0x9ad   :  { %v14964_v16 = vpop.eup %14963  ;;  %v11739_v63 = vmul.f32 -1.442695, %v14254_v40 }
 0x9ae   :  { %v14966_v24 = vpop.eup %14965  ;;  %v10068_v44 = vadd.f32 1.0, %v14964_v16  ;;  %v11738_v17 = vmul.f32 -1.442695, %v14255_v0  ;;  %v13527_v21 = vpop.f32.mrb[56].mxu0  ;;  %v10121_v16 = vld [vmem:[%s19404_s6 + $0x30] sm:$0xff] }
 0x9af   :  { %v10067_v12 = vadd.f32 1.0, %v14966_v24  ;;  %14975 = vpow2.f32 %v11739_v63  ;;  %v14256_v1 = vadd.f32 %v13527_v21, %v18993_v58  ;;  %v13619_v36 = vpop.f32.mrb[182].mxu1  ;;  %v10000_v38 = vpop.f32.mrb[57].mxu0  ;;  %v10118_v58 = vld [vmem:[%s19404_s6 + $0x18] sm:$0xff] }
 0x9b0   :  { %14977 = vrcp.f32 %v10068_v44  ;;  %v14260_v55 = vadd.f32 %v13619_v36, %v10116_v52  ;;  %v14257_v23 = vadd.f32 %v10000_v38, %v19000_v45  ;;  %v10908_v48 = vpop.f32.mrb[183].mxu1  ;;  %v10124_v36 = vld [vmem:[%s19404_s6 + $0x48] sm:$0xff] }
 0x9b1   :  { %v14968_v35 = vpop.eup %14967  ;;  %14979 = vrcp.f32 %v10067_v12  ;;  %v11741_v46 = vmul.f32 -1.442695, %v14256_v1  ;;  %v14261_v28 = vadd.f32 %v10908_v48, %v10115_v19 }
 0x9b2   :  { %v14970_v37 = vpop.eup %14969  ;;  %v10070_v47 = vadd.f32 1.0, %v14968_v35  ;;  %14981 = vpow2.f32 %v11738_v17  ;;  %v11805_v33 = vmul.f32 -1.442695, %v14260_v55  ;;  %v11740_v62 = vmul.f32 -1.442695, %v14257_v23  ;;  %v10123_v23 = vld [vmem:[%s19404_s6 + $0x40] sm:$0xff] }
 0x9b3   :  { %v10069_v3 = vadd.f32 1.0, %v14970_v37  ;;  %14983 = vpow2.f32 %v11741_v46  ;;  %v13530_v2 = vpop.f32.mrb[58].mxu0  ;;  %v13622_v54 = vpop.f32.mrb[184].mxu1  ;;  %v11804_v18 = vmul.f32 -1.442695, %v14261_v28 }
 0x9b4   :  { %14985 = vrcp.f32 %v10070_v47  ;;  %v14258_v45 = vadd.f32 %v13530_v2, %v19106_v10  ;;  %v10010_v9 = vpop.f32.mrb[59].mxu0  ;;  %v10918_v26 = vpop.f32.mrb[185].mxu1  ;;  %v14262_v39 = vadd.f32 %v13622_v54, %v10118_v58 }
 0x9b5   :  { %v14972_v14 = vpop.eup %14971  ;;  %14987 = vrcp.f32 %v10069_v3  ;;  %v14259_v25 = vadd.f32 %v10010_v9, %v19112_v60  ;;  %v14263_v30 = vadd.f32 %v10918_v26, %v10117_v42 }
 0x9b6   :  { %v14974_v8 = vpop.eup %14973  ;;  %v10072_v11 = vadd.f32 1.0, %v14972_v14  ;;  %14989 = vpow2.f32 %v11805_v33  ;;  %v11743_v4 = vmul.f32 -1.442695, %v14258_v45  ;;  %v11807_v31 = vmul.f32 -1.442695, %v14262_v39 }
 0x9b7   :  { %v10071_v15 = vadd.f32 1.0, %v14974_v8  ;;  %14991 = vpow2.f32 %v11740_v62  ;;  %v13625_v57 = vpop.f32.mrb[186].mxu1  ;;  %v11742_v34 = vmul.f32 -1.442695, %v14259_v25  ;;  %v11806_v22 = vmul.f32 -1.442695, %v14263_v30 }
 0x9b8   :  { %14993 = vrcp.f32 %v10072_v11  ;;  %v10928_v49 = vpop.f32.mrb[187].mxu1  ;;  %v14264_v29 = vadd.f32 %v13625_v57, %v10120_v61 }
 0x9b9   :  { %v14976_v53 = vpop.eup %14975  ;;  %14995 = vrcp.f32 %v10071_v15  ;;  %v14265_v43 = vadd.f32 %v10928_v49, %v10119_v51 }
 0x9ba   :  { %v14978_v56 = vpop.eup %14977  ;;  %v10074_v7 = vadd.f32 1.0, %v14976_v53  ;;  %14997 = vpow2.f32 %v11804_v18  ;;  %v11809_v50 = vmul.f32 -1.442695, %v14264_v29 }
 0x9bb   :  { %v14980_v59 = vpop.eup %14979  ;;  %10104 = vst [vmem:[%s19405_s9 + $0x248] sm:$0xff] %v14978_v56  ;;  %14999 = vpow2.f32 %v11743_v4  ;;  %v13628_v13 = vpop.f32.mrb[188].mxu1  ;;  %v11808_v12 = vmul.f32 -1.442695, %v14265_v43 }
 0x9bc   :  { %v14982_v32 = vpop.eup %14981  ;;  %10103 = vst [vmem:[%s19405_s9 + $0x240] sm:$0xff] %v14980_v59  ;;  %15001 = vrcp.f32 %v10074_v7  ;;  %v10938_v20 = vpop.f32.mrb[189].mxu1  ;;  %v14266_v0 = vadd.f32 %v13628_v13, %v10122_v6 }
 0x9bd   :  { %v14984_v41 = vpop.eup %14983  ;;  %v10073_v5 = vadd.f32 1.0, %v14982_v32  ;;  %15003 = vpow2.f32 %v11807_v31  ;;  %v14267_v1 = vadd.f32 %v10938_v20, %v10121_v16 }
 0x9be   :  { %v14986_v40 = vpop.eup %14985  ;;  %v10076_v27 = vadd.f32 1.0, %v14984_v41  ;;  %15005 = vpow2.f32 %v11742_v34  ;;  %v11811_v55 = vmul.f32 -1.442695, %v14266_v0 }
 0x9bf   :  { %v14988_v63 = vpop.eup %14987  ;;  %10106 = vst [vmem:[%s19405_s9 + $0x258] sm:$0xff] %v14986_v40  ;;  %15007 = vrcp.f32 %v10073_v5  ;;  %v13631_v52 = vpop.f32.mrb[190].mxu1  ;;  %v11810_v28 = vmul.f32 -1.442695, %v14267_v1 }
 0x9c0   :  { %v14990_v24 = vpop.eup %14989  ;;  %10105 = vst [vmem:[%s19405_s9 + $0x250] sm:$0xff] %v14988_v63  ;;  %15009 = vrcp.f32 %v10076_v27  ;;  %v10948_v44 = vpop.f32.mrb[191].mxu1  ;;  %v14268_v46 = vadd.f32 %v13631_v52, %v10124_v36 }
 0x9c1   :  { %v14992_v17 = vpop.eup %14991  ;;  %v11016_v21 = vadd.f32 1.0, %v14990_v24  ;;  %15011 = vpow2.f32 %v11806_v22  ;;  %v14269_v58 = vadd.f32 %v10948_v44, %v10123_v23 }
 0x9c2   :  { %v14994_v38 = vpop.eup %14993  ;;  %v10075_v19 = vadd.f32 1.0, %v14992_v17  ;;  %15013 = vpow2.f32 %v11809_v50  ;;  %v11813_v26 = vmul.f32 -1.442695, %v14268_v46 }
 0x9c3   :  { %v14996_v48 = vpop.eup %14995  ;;  %10108 = vst [vmem:[%s19405_s9 + $0x268] sm:$0xff] %v14994_v38  ;;  %15015 = vrcp.f32 %v11016_v21  ;;  %v11812_v11 = vmul.f32 -1.442695, %v14269_v58 }
 0x9c4   :  { %v14998_v35 = vpop.eup %14997  ;;  %10107 = vst [vmem:[%s19405_s9 + $0x260] sm:$0xff] %v14996_v48  ;;  %15017 = vrcp.f32 %v10075_v19 }
 0x9c5   :  { %v13634_v37 = vpop.f32.mrb[192].mxu1  ;;  %v15000_v47 = vpop.eup %14999  ;;  %v11015_v33 = vadd.f32 1.0, %v14998_v35  ;;  %15019 = vpow2.f32 %v11808_v12 }
 0x9c6   :  { %v10958_v3 = vpop.f32.mrb[193].mxu1  ;;  %v15002_v62 = vpop.eup %15001  ;;  %v10078_v2 = vadd.f32 1.0, %v15000_v47  ;;  %15021 = vpow2.f32 %v11811_v55  ;;  %v14270_v14 = vadd.f32 %v13634_v37, %v19106_v10 }
 0x9c7   :  { %v15004_v54 = vpop.eup %15003  ;;  %10110 = vst [vmem:[%s19405_s9 + $0x278] sm:$0xff] %v15002_v62  ;;  %15023 = vrcp.f32 %v11015_v33  ;;  %v14271_v18 = vadd.f32 %v10958_v3, %v19112_v60 }
 0x9c8   :  { %v15006_v45 = vpop.eup %15005  ;;  %15025 = vrcp.f32 %v10078_v2  ;;  %v11018_v9 = vadd.f32 1.0, %v15004_v54  ;;  %v11815_v4 = vmul.f32 -1.442695, %v14270_v14 }
 0x9c9   :  { %v15008_v39 = vpop.eup %15007  ;;  %v10077_v8 = vadd.f32 1.0, %v15006_v45  ;;  %15027 = vpow2.f32 %v11810_v28  ;;  %v11814_v60 = vmul.f32 -1.442695, %v14271_v18 }
 0x9ca   :  { %v15010_v25 = vpop.eup %15009  ;;  %10109 = vst [vmem:[%s19405_s9 + $0x270] sm:$0xff] %v15008_v39  ;;  %15029 = vrcp.f32 %v11018_v9 }
 0x9cb   :  { %v15012_v42 = vpop.eup %15011  ;;  %10112 = vst [vmem:[%s19405_s9 + $0x288] sm:$0xff] %v15010_v25  ;;  %15031 = vrcp.f32 %v10077_v8 }
 0x9cc   :  { %v15014_v15 = vpop.eup %15013  ;;  %v11017_v10 = vadd.f32 1.0, %v15012_v42  ;;  %15033 = vpow2.f32 %v11813_v26 }
 0x9cd   :  { %v15016_v61 = vpop.eup %15015  ;;  %v11020_v57 = vadd.f32 1.0, %v15014_v15  ;;  %15035 = vpow2.f32 %v11812_v11 }
 0x9ce   :  { %v15018_v49 = vpop.eup %15017  ;;  %11052 = vst [vmem:[%s19405_s9 + $0x2a8] sm:$0xff] %v15016_v61  ;;  %15037 = vrcp.f32 %v11017_v10 }
 0x9cf   :  { %v15020_v53 = vpop.eup %15019  ;;  %10111 = vst [vmem:[%s19405_s9 + $0x280] sm:$0xff] %v15018_v49  ;;  %15039 = vrcp.f32 %v11020_v57 }
 0x9d0   :  { %v15022_v31 = vpop.eup %15021  ;;  %v11019_v30 = vadd.f32 1.0, %v15020_v53  ;;  %15041 = vpow2.f32 %v11815_v4 }
 0x9d1   :  { %v15024_v56 = vpop.eup %15023  ;;  %v11022_v7 = vadd.f32 1.0, %v15022_v31  ;;  %15043 = vpow2.f32 %v11814_v60 }
 0x9d2   :  { %v15026_v34 = vpop.eup %15025  ;;  %11051 = vst [vmem:[%s19405_s9 + $0x2a0] sm:$0xff] %v15024_v56  ;;  %15045 = vrcp.f32 %v11019_v30 }
 0x9d3   :  { %v15028_v29 = vpop.eup %15027  ;;  %10114 = vst [vmem:[%s19405_s9 + $0x298] sm:$0xff] %v15026_v34  ;;  %15047 = vrcp.f32 %v11022_v7 }
 0x9d4   :  { %v15030_v51 = vpop.eup %15029  ;;  %v11021_v59 = vadd.f32 1.0, %v15028_v29 }
 0x9d5   :  { %v15032_v6 = vpop.eup %15031  ;;  %11054 = vst [vmem:[%s19405_s9 + $0x2b8] sm:$0xff] %v15030_v51 }
 0x9d6   :  { %v15034_v13 = vpop.eup %15033  ;;  %10113 = vst [vmem:[%s19405_s9 + $0x290] sm:$0xff] %v15032_v6  ;;  %15049 = vrcp.f32 %v11021_v59 }
 0x9d7   :  { %v15036_v32 = vpop.eup %15035  ;;  %v11024_v20 = vadd.f32 1.0, %v15034_v13 }
 0x9d8   :  { %v15038_v41 = vpop.eup %15037  ;;  %v11023_v5 = vadd.f32 1.0, %v15036_v32 }
 0x9d9   :  { %v15040_v22 = vpop.eup %15039  ;;  %11053 = vst [vmem:[%s19405_s9 + $0x2b0] sm:$0xff] %v15038_v41  ;;  %15051 = vrcp.f32 %v11024_v20 }
 0x9da   :  { %v15042_v43 = vpop.eup %15041  ;;  %11056 = vst [vmem:[%s19405_s9 + $0x2c8] sm:$0xff] %v15040_v22  ;;  %15053 = vrcp.f32 %v11023_v5 }
 0x9db   :  { %v15044_v40 = vpop.eup %15043  ;;  %v11026_v27 = vadd.f32 1.0, %v15042_v43 }
 0x9dc   :  { %v15046_v50 = vpop.eup %15045  ;;  %v11025_v0 = vadd.f32 1.0, %v15044_v40 }
 0x9dd   :  { %v15048_v16 = vpop.eup %15047  ;;  %11055 = vst [vmem:[%s19405_s9 + $0x2c0] sm:$0xff] %v15046_v50  ;;  %15055 = vrcp.f32 %v11026_v27 }
 0x9de   :  { %11058 = vst [vmem:[%s19405_s9 + $0x2d8] sm:$0xff] %v15048_v16  ;;  %15057 = vrcp.f32 %v11025_v0 }
 0x9e0   :  { %v15050_v63 = vpop.eup %15049 }
 0x9e1   :  { %11057 = vst [vmem:[%s19405_s9 + $0x2d0] sm:$0xff] %v15050_v63 }
 0x9e3   :  { %v15052_v52 = vpop.eup %15051 }
 0x9e4   :  { %v15054_v24 = vpop.eup %15053  ;;  %11060 = vst [vmem:[%s19405_s9 + $0x2e8] sm:$0xff] %v15052_v52 }
 0x9e5   :  { %11059 = vst [vmem:[%s19405_s9 + $0x2e0] sm:$0xff] %v15054_v24 }
 0x9e7   :  { %v15056_v44 = vpop.eup %15055 }
 0x9e8   :  { %v15058_v17 = vpop.eup %15057  ;;  %11062 = vst [vmem:[%s19405_s9 + $0x2f8] sm:$0xff] %v15056_v44 }
 0x9e9   :  { %11061 = vst [vmem:[%s19405_s9 + $0x2f0] sm:$0xff] %v15058_v17 }

</bundles_post_ra>
